<compile_context>
chip_gen: v7x
topology: tpu7x:2x2x1
jax: 0.10.0
libtpu: 0.0.40
codegen_flags: <defaults>
</compile_context>

<pallas_src>
import functools

import jax
import jax.numpy as jnp
from jax import lax
from jax.experimental import pallas as pl
from jax.experimental.pallas import tpu as pltpu

LANE = 128
SUBLANE = 8


def _leaky(x, leak):
    return jnp.where(x >= 0, x, leak * x)


def _round_up(v, m):
    return ((v + m - 1) // m) * m


def wide_basic_kernel(*refs, H, W, Ho, Wo, stride, leak, has_conv_shortcut,
                      row_tile):
    """One batch element per grid step.

    refs (has_conv_shortcut=True):
      x_ref  : (H+2, Wp2, cin_p)      zero-padded NHWC input (matmul dtype)
      w1_ref : (3, 3*cin_p, cout_p)   conv1, kw taps merged along K
      b1_ref : (1, cout_p)            f32
      w2_ref : (3, 3*cout_p, cout_p)  conv2, kw taps merged along K
      b2_ref : (1, cout_p)            f32
      ws_ref : (cin_p, cout_p)        1x1 shortcut weights
      bs_ref : (1, cout_p)            f32
      out_ref: (Ho, Wo, cout_p)       f32
      mid_ref: VMEM scratch (H+2, Wp2, cout_p), matmul dtype.
    """
    if has_conv_shortcut:
        (x_ref, w1_ref, b1_ref, w2_ref, b2_ref, ws_ref, bs_ref,
         out_ref, mid_ref) = refs
    else:
        (x_ref, w1_ref, b1_ref, w2_ref, b2_ref, out_ref, mid_ref) = refs
        ws_ref = bs_ref = None

    cin_p = x_ref.shape[-1]
    cout_p = b1_ref.shape[-1]
    mm_dtype = w1_ref.dtype          # matmul operand / scratch dtype
    Wp2 = mid_ref.shape[1]

    # ---- re-zero only the 1-pixel halo of the mid scratch; the interior is
    #      fully overwritten below (correct under megacore scratch sharding) --
    zrow = jnp.zeros((1, Wp2, cout_p), mm_dtype)
    zcol = jnp.zeros((H, 1, cout_p), mm_dtype)
    mid_ref[0:1, :, :] = zrow
    mid_ref[H + 1:H + 2, :, :] = zrow
    mid_ref[1:1 + H, 0:1, :] = zcol
    mid_ref[1:1 + H, W + 1:W + 2, :] = zcol

    # lrelu(pad(x)) == pad(lrelu(x)) since lrelu(0) == 0.
    a = _leaky(x_ref[...], leak)                     # (H+2, Wp2, cin_p)

    # ---- conv1: 3x3 stride 1, row-tiled; 3 merged-kw matmuls per tile -------
    bias1 = b1_ref[...]                              # (1, cout_p) f32
    for r0 in range(0, H, row_tile):
        tr = min(row_tile, H - r0)
        acc = jnp.broadcast_to(bias1, (tr * W, cout_p))       # f32, hoisted bias
        for kh in range(3):
            parts = [a[r0 + kh:r0 + kh + tr, kw:kw + W, :] for kw in range(3)]
            patch = jnp.concatenate(parts, axis=-1).reshape(tr * W, 3 * cin_p)
            acc = acc + jnp.dot(patch, w1_ref[kh],
                                preferred_element_type=jnp.float32)
        h = _leaky(acc, leak).reshape(tr, W, cout_p).astype(mm_dtype)
        mid_ref[1 + r0:1 + r0 + tr, 1:1 + W, :] = h

    # ---- conv2 (stride) + shortcut + output write, row-tiled over output ----
    bias2 = b2_ref[...]
    for o0 in range(0, Ho, row_tile):
        tr = min(row_tile, Ho - o0)
        acc = jnp.broadcast_to(bias2, (tr * Wo, cout_p))
        for kh in range(3):
            if stride == 1:
                parts = [mid_ref[o0 + kh:o0 + kh + tr, kw:kw + W, :]
                         for kw in range(3)]
            else:
                # Ref-level strided reads directly at output positions.
                parts = [mid_ref[pl.ds(o0 * stride + kh, tr, stride=stride),
                                 pl.ds(kw, Wo, stride=stride), :]
                         for kw in range(3)]
            patch = jnp.concatenate(parts, axis=-1).reshape(tr * Wo, 3 * cout_p)
            acc = acc + jnp.dot(patch, w2_ref[kh],
                                preferred_element_type=jnp.float32)

        # Shortcut uses raw (padded) x, not lrelu(x).
        if stride == 1:
            x_in = x_ref[1 + o0:1 + o0 + tr, 1:1 + W, :]
        else:
            x_in = x_ref[pl.ds(1 + o0 * stride, tr, stride=stride),
                         pl.ds(1, Wo, stride=stride), :]
        x_in = x_in.reshape(tr * Wo, cin_p)
        if has_conv_shortcut:
            sc = jnp.dot(x_in, ws_ref[...],
                         preferred_element_type=jnp.float32) + bs_ref[...]
        else:
            sc = x_in.astype(jnp.float32)            # cin_p == cout_p here

        out_ref[o0:o0 + tr, :, :] = (
            (acc + sc).reshape(tr, Wo, cout_p).astype(out_ref.dtype))


def wide_basic_forward(x_nchw, params, *, stride=1, leak=0.2,
                       matmul_dtype=jnp.bfloat16, row_tile=8):
    """Runs the wide_basic block. Input/output in PyTorch NCHW layout (f32)."""
    N, cin, H, W = x_nchw.shape
    cout = params["w1"].shape[0]
    has_conv_shortcut = (stride != 1) or (cin != cout)
    Ho = (H - 1) // stride + 1
    Wo = (W - 1) // stride + 1
    cin_p = _round_up(cin, LANE)
    cout_p = _round_up(cout, LANE)
    Wp2 = _round_up(W + 2, SUBLANE)          # sublane-aligned padded width

    # NCHW -> NHWC; pad spatial (conv padding + width alignment) and channels
    # to a lane multiple (pad channels are exactly zero end-to-end).
    x = jnp.transpose(x_nchw, (0, 2, 3, 1)).astype(jnp.float32)
    xpad = jnp.pad(x, ((0, 0), (1, 1), (1, Wp2 - W - 1), (0, cin_p - cin)))
    xpad = xpad.astype(matmul_dtype)

    def prep_conv_w(w, ci, ci_p):
        # torch OIHW (cout, ci, 3, 3) -> (3, 3*ci_p, cout_p), kw-major along K.
        w = jnp.transpose(w, (2, 3, 1, 0))                       # (3,3,ci,cout)
        w = jnp.pad(w, ((0, 0), (0, 0), (0, ci_p - ci), (0, cout_p - cout)))
        return w.reshape(3, 3 * ci_p, cout_p).astype(matmul_dtype)

    def prep_bias(b):
        return jnp.pad(b, (0, cout_p - cout)).reshape(1, cout_p).astype(jnp.float32)

    w1 = prep_conv_w(params["w1"], cin, cin_p)
    w2 = prep_conv_w(params["w2"], cout, cout_p)
    b1 = prep_bias(params["b1"])
    b2 = prep_bias(params["b2"])

    # Grid-invariant weights/biases are single-buffered (no re-DMA anyway).
    const1 = dict(pipeline_mode=pl.Buffered(1))
    inputs = [xpad, w1, b1, w2, b2]
    in_specs = [
        pl.BlockSpec((None, H + 2, Wp2, cin_p), lambda b: (b, 0, 0, 0)),
        pl.BlockSpec((3, 3 * cin_p, cout_p), lambda b: (0, 0, 0), **const1),
        pl.BlockSpec((1, cout_p), lambda b: (0, 0), **const1),
        pl.BlockSpec((3, 3 * cout_p, cout_p), lambda b: (0, 0, 0), **const1),
        pl.BlockSpec((1, cout_p), lambda b: (0, 0), **const1),
    ]
    if has_conv_shortcut:
        ws = jnp.transpose(params["ws"][:, :, 0, 0], (1, 0))     # (cin, cout)
        ws = jnp.pad(ws, ((0, cin_p - cin), (0, cout_p - cout))).astype(matmul_dtype)
        bs = prep_bias(params["bs"])
        inputs += [ws, bs]
        in_specs += [
            pl.BlockSpec((cin_p, cout_p), lambda b: (0, 0), **const1),
            pl.BlockSpec((1, cout_p), lambda b: (0, 0), **const1),
        ]

    kernel = functools.partial(
        wide_basic_kernel, H=H, W=W, Ho=Ho, Wo=Wo, stride=stride, leak=leak,
        has_conv_shortcut=has_conv_shortcut, row_tile=row_tile)

    # Explicit scoped-VMEM limit sized from the real block + scratch footprint.
    itm = jnp.dtype(matmul_dtype).itemsize
    x_blk = (H + 2) * Wp2 * cin_p * itm
    out_blk = Ho * Wo * cout_p * 4
    w_bytes = (9 * cin_p * cout_p + 9 * cout_p * cout_p) * itm
    if has_conv_shortcut:
        w_bytes += cin_p * cout_p * itm
    scratch_bytes = (H + 2) * Wp2 * cout_p * itm
    footprint = (2 * x_blk + 2 * out_blk + w_bytes + scratch_bytes
                 + 4 * cout_p * 4)
    vmem_limit = int(min(max(2 * footprint + (4 << 20), 16 << 20), 64 << 20))

    out_nhwc = pl.pallas_call(
        kernel,
        out_shape=jax.ShapeDtypeStruct((N, Ho, Wo, cout_p), jnp.float32),
        grid_spec=pltpu.PrefetchScalarGridSpec(
            num_scalar_prefetch=0,
            grid=(N,),
            in_specs=in_specs,
            out_specs=pl.BlockSpec((None, Ho, Wo, cout_p),
                                   lambda b: (b, 0, 0, 0)),
            scratch_shapes=[pltpu.VMEM((H + 2, Wp2, cout_p), matmul_dtype)],
        ),
        compiler_params=pltpu.CompilerParams(
            dimension_semantics=("parallel",),
            vmem_limit_bytes=vmem_limit),
    )(*inputs)

    # Drop channel padding, NHWC -> NCHW to match the PyTorch convention.
    return jnp.transpose(out_nhwc[..., :cout], (0, 3, 1, 2))


def reference_forward(x, params, *, stride=1, leak=0.2):
    """Pure-JAX (lax.conv) reference mirroring the PyTorch forward."""
    def lrelu(v):
        return jnp.where(v >= 0, v, leak * v)

    def conv(v, w, b, s, pad):
        out = lax.conv_general_dilated(
            v, w, (s, s), [(pad, pad), (pad, pad)],
            dimension_numbers=("NCHW", "OIHW", "NCHW"))
        return out + b.reshape(1, -1, 1, 1)

    out = conv(lrelu(x), params["w1"], params["b1"], 1, 1)  # bn/dropout = Identity
    out = conv(lrelu(out), params["w2"], params["b2"], stride, 1)
    cin, cout = x.shape[1], params["w1"].shape[0]
    if stride != 1 or cin != cout:
        out = out + conv(x, params["ws"], params["bs"], stride, 0)
    else:
        out = out + x
    return out


if __name__ == "__main__":
    def make_params(key, in_planes, planes, with_shortcut):
        k = jax.random.split(key, 6)
        p = {
            "w1": jax.random.normal(k[0], (planes, in_planes, 3, 3), jnp.float32) * 0.1,
            "b1": jax.random.normal(k[1], (planes,), jnp.float32) * 0.1,
            "w2": jax.random.normal(k[2], (planes, planes, 3, 3), jnp.float32) * 0.1,
            "b2": jax.random.normal(k[3], (planes,), jnp.float32) * 0.1,
        }
        if with_shortcut:
            p["ws"] = jax.random.normal(k[4], (planes, in_planes, 1, 1), jnp.float32) * 0.1
            p["bs"] = jax.random.normal(k[5], (planes,), jnp.float32) * 0.1
        return p

    N, H, W, leak = 2, 16, 16, 0.2
    # (name, in_planes, planes, stride, matmul_dtype, atol, rtol)
    configs = [
        ("f32 conv-shortcut s1",  4, 8, 1, jnp.float32,  1e-4, 1e-4),
        ("f32 identity      s1",  8, 8, 1, jnp.float32,  1e-4, 1e-4),
        ("f32 conv-shortcut s2",  4, 8, 2, jnp.float32,  1e-4, 1e-4),
        ("bf16 conv-shortcut s2", 4, 8, 2, jnp.bfloat16, 5e-2, 5e-2),
        ("bf16 identity     s1",  8, 8, 1, jnp.bfloat16, 5e-2, 5e-2),
    ]

    key = jax.random.PRNGKey(0)
    for i, (name, cin, cout, stride, mm_dt, atol, rtol) in enumerate(configs):
        kx, kp = jax.random.split(jax.random.fold_in(key, i))
        x = jax.random.normal(kx, (N, cin, H, W), jnp.float32)
        has_sc = (stride != 1) or (cin != cout)
        params = make_params(kp, cin, cout, has_sc)

        out = jax.block_until_ready(
            wide_basic_forward(x, params, stride=stride, leak=leak,
                               matmul_dtype=mm_dt))
        ref = jax.block_until_ready(
            reference_forward(x, params, stride=stride, leak=leak))

        assert out.shape == ref.shape, (name, out.shape, ref.shape)
        err = float(jnp.max(jnp.abs(out - ref)))
        assert jnp.allclose(out, ref, atol=atol, rtol=rtol), (name, err)

    print("KERNEL_OK")
</pallas_src>

<mosaic_0001>
module attributes {stable_mosaic.version = 11 : i64} {
  func.func @wide_basic_kernel(%arg0: i32, %arg1: memref<1x18x24x128xf32, #tpu.memory_space<vmem>>, %arg2: memref<3x384x128xf32, #tpu.memory_space<vmem>>, %arg3: memref<1x128xf32, #tpu.memory_space<vmem>>, %arg4: memref<3x384x128xf32, #tpu.memory_space<vmem>>, %arg5: memref<1x128xf32, #tpu.memory_space<vmem>>, %arg6: memref<128x128xf32, #tpu.memory_space<vmem>>, %arg7: memref<1x128xf32, #tpu.memory_space<vmem>>, %arg8: memref<1x16x16x128xf32, #tpu.memory_space<vmem>>, %arg9: memref<18x24x128xf32, #tpu.memory_space<vmem>>) attributes {dimension_semantics = [#tpu.dimension_semantics<parallel>], iteration_bounds = array<i64: 2>, scalar_prefetch = 0 : i64, scratch_operands = 1 : i64, tpu.core_type = #tpu.core_type<tc>, window_params = [{transform_indices = @transform_0, window_bounds = array<i64: 1, 18, 24, 128>}, {pipeline_mode = #tpu.pipeline_mode<synchronous>, transform_indices = @transform_1, window_bounds = array<i64: 3, 384, 128>}, {pipeline_mode = #tpu.pipeline_mode<synchronous>, transform_indices = @transform_2, window_bounds = array<i64: 1, 128>}, {pipeline_mode = #tpu.pipeline_mode<synchronous>, transform_indices = @transform_3, window_bounds = array<i64: 3, 384, 128>}, {pipeline_mode = #tpu.pipeline_mode<synchronous>, transform_indices = @transform_4, window_bounds = array<i64: 1, 128>}, {pipeline_mode = #tpu.pipeline_mode<synchronous>, transform_indices = @transform_5, window_bounds = array<i64: 128, 128>}, {pipeline_mode = #tpu.pipeline_mode<synchronous>, transform_indices = @transform_6, window_bounds = array<i64: 1, 128>}, {transform_indices = @transform_7, window_bounds = array<i64: 1, 16, 16, 128>}]} {
    %cst = arith.constant 0.000000e+00 : f32
    %0 = vector.broadcast %cst : f32 to vector<1x24x128xf32>
    %cst_0 = arith.constant 0.000000e+00 : f32
    %1 = vector.broadcast %cst_0 : f32 to vector<16x1x128xf32>
    %c0 = arith.constant 0 : index
    %c0_1 = arith.constant 0 : index
    %c0_2 = arith.constant 0 : index
    %2 = vector.load %arg9[%c0, %c0_1, %c0_2] : memref<18x24x128xf32, #tpu.memory_space<vmem>>, vector<1x24x128xf32>
    tpu.vector_store %arg9[%c0, %c0_1, %c0_2], %0 {strides = array<i32>} : memref<18x24x128xf32, #tpu.memory_space<vmem>>, vector<1x24x128xf32>,
    %c17 = arith.constant 17 : index
    %c0_3 = arith.constant 0 : index
    %c0_4 = arith.constant 0 : index
    %3 = vector.load %arg9[%c17, %c0_3, %c0_4] : memref<18x24x128xf32, #tpu.memory_space<vmem>>, vector<1x24x128xf32>
    tpu.vector_store %arg9[%c17, %c0_3, %c0_4], %0 {strides = array<i32>} : memref<18x24x128xf32, #tpu.memory_space<vmem>>, vector<1x24x128xf32>,
    %c1 = arith.constant 1 : index
    %c0_5 = arith.constant 0 : index
    %c0_6 = arith.constant 0 : index
    %4 = vector.load %arg9[%c1, %c0_5, %c0_6] : memref<18x24x128xf32, #tpu.memory_space<vmem>>, vector<16x1x128xf32>
    tpu.vector_store %arg9[%c1, %c0_5, %c0_6], %1 {strides = array<i32>} : memref<18x24x128xf32, #tpu.memory_space<vmem>>, vector<16x1x128xf32>,
    %c1_7 = arith.constant 1 : index
    %c17_8 = arith.constant 17 : index
    %c0_9 = arith.constant 0 : index
    %5 = vector.load %arg9[%c1_7, %c17_8, %c0_9] : memref<18x24x128xf32, #tpu.memory_space<vmem>>, vector<16x1x128xf32>
    tpu.vector_store %arg9[%c1_7, %c17_8, %c0_9], %1 {strides = array<i32>} : memref<18x24x128xf32, #tpu.memory_space<vmem>>, vector<16x1x128xf32>,
    %c0_10 = arith.constant 0 : index
    %c0_11 = arith.constant 0 : index
    %c0_12 = arith.constant 0 : index
    %c0_13 = arith.constant 0 : index
    %6 = vector.load %arg1[%c0_10, %c0_11, %c0_12, %c0_13] : memref<1x18x24x128xf32, #tpu.memory_space<vmem>>, vector<1x18x24x128xf32>
    %7 = vector.shape_cast %6 : vector<1x18x24x128xf32> to vector<18x24x128xf32>
    %cst_14 = arith.constant 0.000000e+00 : f32
    %8 = vector.broadcast %cst_14 : f32 to vector<18x24x128xf32>
    %9 = arith.cmpf oge, %7, %8 : vector<18x24x128xf32>
    %cst_15 = arith.constant 2.000000e-01 : f32
    %10 = vector.broadcast %cst_15 : f32 to vector<18x24x128xf32>
    %11 = arith.mulf %10, %7 : vector<18x24x128xf32>
    %12 = arith.select %9, %7, %11 : vector<18x24x128xi1>, vector<18x24x128xf32>
    %c0_16 = arith.constant 0 : index
    %c0_17 = arith.constant 0 : index
    %13 = vector.load %arg3[%c0_16, %c0_17] : memref<1x128xf32, #tpu.memory_space<vmem>>, vector<1x128xf32>
    %14 = vector.shape_cast %13 : vector<1x128xf32> to vector<1x128xf32>
    %15 = vector.broadcast %14 : vector<1x128xf32> to vector<128x128xf32>
    %16 = vector.extract_strided_slice %12 {offsets = [0, 0, 0], sizes = [8, 16, 128], strides = [1, 1, 1]} : vector<18x24x128xf32> to vector<8x16x128xf32>
    %17 = vector.extract_strided_slice %12 {offsets = [0, 1, 0], sizes = [8, 16, 128], strides = [1, 1, 1]} : vector<18x24x128xf32> to vector<8x16x128xf32>
    %18 = vector.extract_strided_slice %12 {offsets = [0, 2, 0], sizes = [8, 16, 128], strides = [1, 1, 1]} : vector<18x24x128xf32> to vector<8x16x128xf32>
    %19 = tpu.concatenate %16, %17, %18 in 2 : vector<8x16x128xf32>, vector<8x16x128xf32>, vector<8x16x128xf32> -> vector<8x16x384xf32>
    %20 = vector.shape_cast %19 : vector<8x16x384xf32> to vector<128x384xf32>
    %c0_18 = arith.constant 0 : index
    %c0_19 = arith.constant 0 : index
    %c0_20 = arith.constant 0 : index
    %21 = vector.load %arg2[%c0_18, %c0_19, %c0_20] : memref<3x384x128xf32, #tpu.memory_space<vmem>>, vector<1x384x128xf32>
    %22 = vector.shape_cast %21 : vector<1x384x128xf32> to vector<384x128xf32>
    %cst_21 = arith.constant dense<0.000000e+00> : vector<128x128xf32>
    %23 = tpu.matmul %20, %22, %cst_21 {dimension_numbers = #tpu.dot_dimension_numbers<[1], [0], [0], [1], [0, 0, 1, 1], [], []>} : vector<128x384xf32>, vector<384x128xf32>, vector<128x128xf32> -> vector<128x128xf32>
    %24 = arith.addf %15, %23 : vector<128x128xf32>
    %25 = vector.extract_strided_slice %12 {offsets = [1, 0, 0], sizes = [8, 16, 128], strides = [1, 1, 1]} : vector<18x24x128xf32> to vector<8x16x128xf32>
    %26 = vector.extract_strided_slice %12 {offsets = [1, 1, 0], sizes = [8, 16, 128], strides = [1, 1, 1]} : vector<18x24x128xf32> to vector<8x16x128xf32>
    %27 = vector.extract_strided_slice %12 {offsets = [1, 2, 0], sizes = [8, 16, 128], strides = [1, 1, 1]} : vector<18x24x128xf32> to vector<8x16x128xf32>
    %28 = tpu.concatenate %25, %26, %27 in 2 : vector<8x16x128xf32>, vector<8x16x128xf32>, vector<8x16x128xf32> -> vector<8x16x384xf32>
    %29 = vector.shape_cast %28 : vector<8x16x384xf32> to vector<128x384xf32>
    %c1_22 = arith.constant 1 : index
    %c0_23 = arith.constant 0 : index
    %c0_24 = arith.constant 0 : index
    %30 = vector.load %arg2[%c1_22, %c0_23, %c0_24] : memref<3x384x128xf32, #tpu.memory_space<vmem>>, vector<1x384x128xf32>
    %31 = vector.shape_cast %30 : vector<1x384x128xf32> to vector<384x128xf32>
    %cst_25 = arith.constant dense<0.000000e+00> : vector<128x128xf32>
    %32 = tpu.matmul %29, %31, %cst_25 {dimension_numbers = #tpu.dot_dimension_numbers<[1], [0], [0], [1], [0, 0, 1, 1], [], []>} : vector<128x384xf32>, vector<384x128xf32>, vector<128x128xf32> -> vector<128x128xf32>
    %33 = arith.addf %24, %32 : vector<128x128xf32>
    %34 = vector.extract_strided_slice %12 {offsets = [2, 0, 0], sizes = [8, 16, 128], strides = [1, 1, 1]} : vector<18x24x128xf32> to vector<8x16x128xf32>
    %35 = vector.extract_strided_slice %12 {offsets = [2, 1, 0], sizes = [8, 16, 128], strides = [1, 1, 1]} : vector<18x24x128xf32> to vector<8x16x128xf32>
    %36 = vector.extract_strided_slice %12 {offsets = [2, 2, 0], sizes = [8, 16, 128], strides = [1, 1, 1]} : vector<18x24x128xf32> to vector<8x16x128xf32>
    %37 = tpu.concatenate %34, %35, %36 in 2 : vector<8x16x128xf32>, vector<8x16x128xf32>, vector<8x16x128xf32> -> vector<8x16x384xf32>
    %38 = vector.shape_cast %37 : vector<8x16x384xf32> to vector<128x384xf32>
    %c2 = arith.constant 2 : index
    %c0_26 = arith.constant 0 : index
    %c0_27 = arith.constant 0 : index
    %39 = vector.load %arg2[%c2, %c0_26, %c0_27] : memref<3x384x128xf32, #tpu.memory_space<vmem>>, vector<1x384x128xf32>
    %40 = vector.shape_cast %39 : vector<1x384x128xf32> to vector<384x128xf32>
    %cst_28 = arith.constant dense<0.000000e+00> : vector<128x128xf32>
    %41 = tpu.matmul %38, %40, %cst_28 {dimension_numbers = #tpu.dot_dimension_numbers<[1], [0], [0], [1], [0, 0, 1, 1], [], []>} : vector<128x384xf32>, vector<384x128xf32>, vector<128x128xf32> -> vector<128x128xf32>
    %42 = arith.addf %33, %41 : vector<128x128xf32>
    %cst_29 = arith.constant 0.000000e+00 : f32
    %43 = vector.broadcast %cst_29 : f32 to vector<128x128xf32>
    %44 = arith.cmpf oge, %42, %43 : vector<128x128xf32>
    %cst_30 = arith.constant 2.000000e-01 : f32
    %45 = vector.broadcast %cst_30 : f32 to vector<128x128xf32>
    %46 = arith.mulf %45, %42 : vector<128x128xf32>
    %47 = arith.select %44, %42, %46 : vector<128x128xi1>, vector<128x128xf32>
    %48 = vector.shape_cast %47 : vector<128x128xf32> to vector<8x16x128xf32>
    %c1_31 = arith.constant 1 : index
    %c1_32 = arith.constant 1 : index
    %c0_33 = arith.constant 0 : index
    %49 = vector.load %arg9[%c1_31, %c1_32, %c0_33] : memref<18x24x128xf32, #tpu.memory_space<vmem>>, vector<8x16x128xf32>
    tpu.vector_store %arg9[%c1_31, %c1_32, %c0_33], %48 {strides = array<i32>} : memref<18x24x128xf32, #tpu.memory_space<vmem>>, vector<8x16x128xf32>,
    %50 = vector.shape_cast %13 : vector<1x128xf32> to vector<1x128xf32>
    %51 = vector.broadcast %50 : vector<1x128xf32> to vector<128x128xf32>
    %52 = vector.extract_strided_slice %12 {offsets = [8, 0, 0], sizes = [8, 16, 128], strides = [1, 1, 1]} : vector<18x24x128xf32> to vector<8x16x128xf32>
    %53 = vector.extract_strided_slice %12 {offsets = [8, 1, 0], sizes = [8, 16, 128], strides = [1, 1, 1]} : vector<18x24x128xf32> to vector<8x16x128xf32>
    %54 = vector.extract_strided_slice %12 {offsets = [8, 2, 0], sizes = [8, 16, 128], strides = [1, 1, 1]} : vector<18x24x128xf32> to vector<8x16x128xf32>
    %55 = tpu.concatenate %52, %53, %54 in 2 : vector<8x16x128xf32>, vector<8x16x128xf32>, vector<8x16x128xf32> -> vector<8x16x384xf32>
    %56 = vector.shape_cast %55 : vector<8x16x384xf32> to vector<128x384xf32>
    %c0_34 = arith.constant 0 : index
    %c0_35 = arith.constant 0 : index
    %c0_36 = arith.constant 0 : index
    %57 = vector.load %arg2[%c0_34, %c0_35, %c0_36] : memref<3x384x128xf32, #tpu.memory_space<vmem>>, vector<1x384x128xf32>
    %58 = vector.shape_cast %57 : vector<1x384x128xf32> to vector<384x128xf32>
    %cst_37 = arith.constant dense<0.000000e+00> : vector<128x128xf32>
    %59 = tpu.matmul %56, %58, %cst_37 {dimension_numbers = #tpu.dot_dimension_numbers<[1], [0], [0], [1], [0, 0, 1, 1], [], []>} : vector<128x384xf32>, vector<384x128xf32>, vector<128x128xf32> -> vector<128x128xf32>
    %60 = arith.addf %51, %59 : vector<128x128xf32>
    %61 = vector.extract_strided_slice %12 {offsets = [9, 0, 0], sizes = [8, 16, 128], strides = [1, 1, 1]} : vector<18x24x128xf32> to vector<8x16x128xf32>
    %62 = vector.extract_strided_slice %12 {offsets = [9, 1, 0], sizes = [8, 16, 128], strides = [1, 1, 1]} : vector<18x24x128xf32> to vector<8x16x128xf32>
    %63 = vector.extract_strided_slice %12 {offsets = [9, 2, 0], sizes = [8, 16, 128], strides = [1, 1, 1]} : vector<18x24x128xf32> to vector<8x16x128xf32>
    %64 = tpu.concatenate %61, %62, %63 in 2 : vector<8x16x128xf32>, vector<8x16x128xf32>, vector<8x16x128xf32> -> vector<8x16x384xf32>
    %65 = vector.shape_cast %64 : vector<8x16x384xf32> to vector<128x384xf32>
    %c1_38 = arith.constant 1 : index
    %c0_39 = arith.constant 0 : index
    %c0_40 = arith.constant 0 : index
    %66 = vector.load %arg2[%c1_38, %c0_39, %c0_40] : memref<3x384x128xf32, #tpu.memory_space<vmem>>, vector<1x384x128xf32>
    %67 = vector.shape_cast %66 : vector<1x384x128xf32> to vector<384x128xf32>
    %cst_41 = arith.constant dense<0.000000e+00> : vector<128x128xf32>
    %68 = tpu.matmul %65, %67, %cst_41 {dimension_numbers = #tpu.dot_dimension_numbers<[1], [0], [0], [1], [0, 0, 1, 1], [], []>} : vector<128x384xf32>, vector<384x128xf32>, vector<128x128xf32> -> vector<128x128xf32>
    %69 = arith.addf %60, %68 : vector<128x128xf32>
    %70 = vector.extract_strided_slice %12 {offsets = [10, 0, 0], sizes = [8, 16, 128], strides = [1, 1, 1]} : vector<18x24x128xf32> to vector<8x16x128xf32>
    %71 = vector.extract_strided_slice %12 {offsets = [10, 1, 0], sizes = [8, 16, 128], strides = [1, 1, 1]} : vector<18x24x128xf32> to vector<8x16x128xf32>
    %72 = vector.extract_strided_slice %12 {offsets = [10, 2, 0], sizes = [8, 16, 128], strides = [1, 1, 1]} : vector<18x24x128xf32> to vector<8x16x128xf32>
    %73 = tpu.concatenate %70, %71, %72 in 2 : vector<8x16x128xf32>, vector<8x16x128xf32>, vector<8x16x128xf32> -> vector<8x16x384xf32>
    %74 = vector.shape_cast %73 : vector<8x16x384xf32> to vector<128x384xf32>
    %c2_42 = arith.constant 2 : index
    %c0_43 = arith.constant 0 : index
    %c0_44 = arith.constant 0 : index
    %75 = vector.load %arg2[%c2_42, %c0_43, %c0_44] : memref<3x384x128xf32, #tpu.memory_space<vmem>>, vector<1x384x128xf32>
    %76 = vector.shape_cast %75 : vector<1x384x128xf32> to vector<384x128xf32>
    %cst_45 = arith.constant dense<0.000000e+00> : vector<128x128xf32>
    %77 = tpu.matmul %74, %76, %cst_45 {dimension_numbers = #tpu.dot_dimension_numbers<[1], [0], [0], [1], [0, 0, 1, 1], [], []>} : vector<128x384xf32>, vector<384x128xf32>, vector<128x128xf32> -> vector<128x128xf32>
    %78 = arith.addf %69, %77 : vector<128x128xf32>
    %cst_46 = arith.constant 0.000000e+00 : f32
    %79 = vector.broadcast %cst_46 : f32 to vector<128x128xf32>
    %80 = arith.cmpf oge, %78, %79 : vector<128x128xf32>
    %cst_47 = arith.constant 2.000000e-01 : f32
    %81 = vector.broadcast %cst_47 : f32 to vector<128x128xf32>
    %82 = arith.mulf %81, %78 : vector<128x128xf32>
    %83 = arith.select %80, %78, %82 : vector<128x128xi1>, vector<128x128xf32>
    %84 = vector.shape_cast %83 : vector<128x128xf32> to vector<8x16x128xf32>
    %c9 = arith.constant 9 : index
    %c1_48 = arith.constant 1 : index
    %c0_49 = arith.constant 0 : index
    %85 = vector.load %arg9[%c9, %c1_48, %c0_49] : memref<18x24x128xf32, #tpu.memory_space<vmem>>, vector<8x16x128xf32>
    tpu.vector_store %arg9[%c9, %c1_48, %c0_49], %84 {strides = array<i32>} : memref<18x24x128xf32, #tpu.memory_space<vmem>>, vector<8x16x128xf32>,
    %c0_50 = arith.constant 0 : index
    %c0_51 = arith.constant 0 : index
    %86 = vector.load %arg5[%c0_50, %c0_51] : memref<1x128xf32, #tpu.memory_space<vmem>>, vector<1x128xf32>
    %87 = vector.shape_cast %86 : vector<1x128xf32> to vector<1x128xf32>
    %88 = vector.broadcast %87 : vector<1x128xf32> to vector<128x128xf32>
    %c0_52 = arith.constant 0 : index
    %c0_53 = arith.constant 0 : index
    %c0_54 = arith.constant 0 : index
    %89 = vector.load %arg9[%c0_52, %c0_53, %c0_54] : memref<18x24x128xf32, #tpu.memory_space<vmem>>, vector<8x16x128xf32>
    %c0_55 = arith.constant 0 : index
    %c1_56 = arith.constant 1 : index
    %c0_57 = arith.constant 0 : index
    %90 = vector.load %arg9[%c0_55, %c1_56, %c0_57] : memref<18x24x128xf32, #tpu.memory_space<vmem>>, vector<8x16x128xf32>
    %c0_58 = arith.constant 0 : index
    %c2_59 = arith.constant 2 : index
    %c0_60 = arith.constant 0 : index
    %91 = vector.load %arg9[%c0_58, %c2_59, %c0_60] : memref<18x24x128xf32, #tpu.memory_space<vmem>>, vector<8x16x128xf32>
    %92 = tpu.concatenate %89, %90, %91 in 2 : vector<8x16x128xf32>, vector<8x16x128xf32>, vector<8x16x128xf32> -> vector<8x16x384xf32>
    %93 = vector.shape_cast %92 : vector<8x16x384xf32> to vector<128x384xf32>
    %c0_61 = arith.constant 0 : index
    %c0_62 = arith.constant 0 : index
    %c0_63 = arith.constant 0 : index
    %94 = vector.load %arg4[%c0_61, %c0_62, %c0_63] : memref<3x384x128xf32, #tpu.memory_space<vmem>>, vector<1x384x128xf32>
    %95 = vector.shape_cast %94 : vector<1x384x128xf32> to vector<384x128xf32>
    %cst_64 = arith.constant dense<0.000000e+00> : vector<128x128xf32>
    %96 = tpu.matmul %93, %95, %cst_64 {dimension_numbers = #tpu.dot_dimension_numbers<[1], [0], [0], [1], [0, 0, 1, 1], [], []>} : vector<128x384xf32>, vector<384x128xf32>, vector<128x128xf32> -> vector<128x128xf32>
    %97 = arith.addf %88, %96 : vector<128x128xf32>
    %c1_65 = arith.constant 1 : index
    %c0_66 = arith.constant 0 : index
    %c0_67 = arith.constant 0 : index
    %98 = vector.load %arg9[%c1_65, %c0_66, %c0_67] : memref<18x24x128xf32, #tpu.memory_space<vmem>>, vector<8x16x128xf32>
    %c1_68 = arith.constant 1 : index
    %c1_69 = arith.constant 1 : index
    %c0_70 = arith.constant 0 : index
    %99 = vector.load %arg9[%c1_68, %c1_69, %c0_70] : memref<18x24x128xf32, #tpu.memory_space<vmem>>, vector<8x16x128xf32>
    %c1_71 = arith.constant 1 : index
    %c2_72 = arith.constant 2 : index
    %c0_73 = arith.constant 0 : index
    %100 = vector.load %arg9[%c1_71, %c2_72, %c0_73] : memref<18x24x128xf32, #tpu.memory_space<vmem>>, vector<8x16x128xf32>
    %101 = tpu.concatenate %98, %99, %100 in 2 : vector<8x16x128xf32>, vector<8x16x128xf32>, vector<8x16x128xf32> -> vector<8x16x384xf32>
    %102 = vector.shape_cast %101 : vector<8x16x384xf32> to vector<128x384xf32>
    %c1_74 = arith.constant 1 : index
    %c0_75 = arith.constant 0 : index
    %c0_76 = arith.constant 0 : index
    %103 = vector.load %arg4[%c1_74, %c0_75, %c0_76] : memref<3x384x128xf32, #tpu.memory_space<vmem>>, vector<1x384x128xf32>
    %104 = vector.shape_cast %103 : vector<1x384x128xf32> to vector<384x128xf32>
    %cst_77 = arith.constant dense<0.000000e+00> : vector<128x128xf32>
    %105 = tpu.matmul %102, %104, %cst_77 {dimension_numbers = #tpu.dot_dimension_numbers<[1], [0], [0], [1], [0, 0, 1, 1], [], []>} : vector<128x384xf32>, vector<384x128xf32>, vector<128x128xf32> -> vector<128x128xf32>
    %106 = arith.addf %97, %105 : vector<128x128xf32>
    %c2_78 = arith.constant 2 : index
    %c0_79 = arith.constant 0 : index
    %c0_80 = arith.constant 0 : index
    %107 = vector.load %arg9[%c2_78, %c0_79, %c0_80] : memref<18x24x128xf32, #tpu.memory_space<vmem>>, vector<8x16x128xf32>
    %c2_81 = arith.constant 2 : index
    %c1_82 = arith.constant 1 : index
    %c0_83 = arith.constant 0 : index
    %108 = vector.load %arg9[%c2_81, %c1_82, %c0_83] : memref<18x24x128xf32, #tpu.memory_space<vmem>>, vector<8x16x128xf32>
    %c2_84 = arith.constant 2 : index
    %c2_85 = arith.constant 2 : index
    %c0_86 = arith.constant 0 : index
    %109 = vector.load %arg9[%c2_84, %c2_85, %c0_86] : memref<18x24x128xf32, #tpu.memory_space<vmem>>, vector<8x16x128xf32>
    %110 = tpu.concatenate %107, %108, %109 in 2 : vector<8x16x128xf32>, vector<8x16x128xf32>, vector<8x16x128xf32> -> vector<8x16x384xf32>
    %111 = vector.shape_cast %110 : vector<8x16x384xf32> to vector<128x384xf32>
    %c2_87 = arith.constant 2 : index
    %c0_88 = arith.constant 0 : index
    %c0_89 = arith.constant 0 : index
    %112 = vector.load %arg4[%c2_87, %c0_88, %c0_89] : memref<3x384x128xf32, #tpu.memory_space<vmem>>, vector<1x384x128xf32>
    %113 = vector.shape_cast %112 : vector<1x384x128xf32> to vector<384x128xf32>
    %cst_90 = arith.constant dense<0.000000e+00> : vector<128x128xf32>
    %114 = tpu.matmul %111, %113, %cst_90 {dimension_numbers = #tpu.dot_dimension_numbers<[1], [0], [0], [1], [0, 0, 1, 1], [], []>} : vector<128x384xf32>, vector<384x128xf32>, vector<128x128xf32> -> vector<128x128xf32>
    %115 = arith.addf %106, %114 : vector<128x128xf32>
    %c0_91 = arith.constant 0 : index
    %c1_92 = arith.constant 1 : index
    %c1_93 = arith.constant 1 : index
    %c0_94 = arith.constant 0 : index
    %116 = vector.load %arg1[%c0_91, %c1_92, %c1_93, %c0_94] : memref<1x18x24x128xf32, #tpu.memory_space<vmem>>, vector<1x8x16x128xf32>
    %117 = vector.shape_cast %116 : vector<1x8x16x128xf32> to vector<8x16x128xf32>
    %118 = vector.shape_cast %117 : vector<8x16x128xf32> to vector<128x128xf32>
    %c0_95 = arith.constant 0 : index
    %c0_96 = arith.constant 0 : index
    %119 = vector.load %arg6[%c0_95, %c0_96] : memref<128x128xf32, #tpu.memory_space<vmem>>, vector<128x128xf32>
    %cst_97 = arith.constant dense<0.000000e+00> : vector<128x128xf32>
    %120 = tpu.matmul %118, %119, %cst_97 {dimension_numbers = #tpu.dot_dimension_numbers<[1], [0], [0], [1], [0, 0, 1, 1], [], []>} : vector<128x128xf32>, vector<128x128xf32>, vector<128x128xf32> -> vector<128x128xf32>
    %c0_98 = arith.constant 0 : index
    %c0_99 = arith.constant 0 : index
    %121 = vector.load %arg7[%c0_98, %c0_99] : memref<1x128xf32, #tpu.memory_space<vmem>>, vector<1x128xf32>
    %122 = vector.broadcast %121 : vector<1x128xf32> to vector<128x128xf32>
    %123 = arith.addf %120, %122 : vector<128x128xf32>
    %124 = arith.addf %115, %123 : vector<128x128xf32>
    %125 = vector.shape_cast %124 : vector<128x128xf32> to vector<8x16x128xf32>
    %c0_100 = arith.constant 0 : index
    %c0_101 = arith.constant 0 : index
    %c0_102 = arith.constant 0 : index
    %c0_103 = arith.constant 0 : index
    %126 = vector.load %arg8[%c0_100, %c0_101, %c0_102, %c0_103] : memref<1x16x16x128xf32, #tpu.memory_space<vmem>>, vector<1x8x16x128xf32>
    %127 = vector.shape_cast %126 : vector<1x8x16x128xf32> to vector<8x16x128xf32>
    %128 = vector.shape_cast %125 : vector<8x16x128xf32> to vector<1x8x16x128xf32>
    tpu.vector_store %arg8[%c0_100, %c0_101, %c0_102, %c0_103], %128 {strides = array<i32>} : memref<1x16x16x128xf32, #tpu.memory_space<vmem>>, vector<1x8x16x128xf32>,
    %129 = vector.shape_cast %86 : vector<1x128xf32> to vector<1x128xf32>
    %130 = vector.broadcast %129 : vector<1x128xf32> to vector<128x128xf32>
    %c8 = arith.constant 8 : index
    %c0_104 = arith.constant 0 : index
    %c0_105 = arith.constant 0 : index
    %131 = vector.load %arg9[%c8, %c0_104, %c0_105] : memref<18x24x128xf32, #tpu.memory_space<vmem>>, vector<8x16x128xf32>
    %c8_106 = arith.constant 8 : index
    %c1_107 = arith.constant 1 : index
    %c0_108 = arith.constant 0 : index
    %132 = vector.load %arg9[%c8_106, %c1_107, %c0_108] : memref<18x24x128xf32, #tpu.memory_space<vmem>>, vector<8x16x128xf32>
    %c8_109 = arith.constant 8 : index
    %c2_110 = arith.constant 2 : index
    %c0_111 = arith.constant 0 : index
    %133 = vector.load %arg9[%c8_109, %c2_110, %c0_111] : memref<18x24x128xf32, #tpu.memory_space<vmem>>, vector<8x16x128xf32>
    %134 = tpu.concatenate %131, %132, %133 in 2 : vector<8x16x128xf32>, vector<8x16x128xf32>, vector<8x16x128xf32> -> vector<8x16x384xf32>
    %135 = vector.shape_cast %134 : vector<8x16x384xf32> to vector<128x384xf32>
    %c0_112 = arith.constant 0 : index
    %c0_113 = arith.constant 0 : index
    %c0_114 = arith.constant 0 : index
    %136 = vector.load %arg4[%c0_112, %c0_113, %c0_114] : memref<3x384x128xf32, #tpu.memory_space<vmem>>, vector<1x384x128xf32>
    %137 = vector.shape_cast %136 : vector<1x384x128xf32> to vector<384x128xf32>
    %cst_115 = arith.constant dense<0.000000e+00> : vector<128x128xf32>
    %138 = tpu.matmul %135, %137, %cst_115 {dimension_numbers = #tpu.dot_dimension_numbers<[1], [0], [0], [1], [0, 0, 1, 1], [], []>} : vector<128x384xf32>, vector<384x128xf32>, vector<128x128xf32> -> vector<128x128xf32>
    %139 = arith.addf %130, %138 : vector<128x128xf32>
    %c9_116 = arith.constant 9 : index
    %c0_117 = arith.constant 0 : index
    %c0_118 = arith.constant 0 : index
    %140 = vector.load %arg9[%c9_116, %c0_117, %c0_118] : memref<18x24x128xf32, #tpu.memory_space<vmem>>, vector<8x16x128xf32>
    %c9_119 = arith.constant 9 : index
    %c1_120 = arith.constant 1 : index
    %c0_121 = arith.constant 0 : index
    %141 = vector.load %arg9[%c9_119, %c1_120, %c0_121] : memref<18x24x128xf32, #tpu.memory_space<vmem>>, vector<8x16x128xf32>
    %c9_122 = arith.constant 9 : index
    %c2_123 = arith.constant 2 : index
    %c0_124 = arith.constant 0 : index
    %142 = vector.load %arg9[%c9_122, %c2_123, %c0_124] : memref<18x24x128xf32, #tpu.memory_space<vmem>>, vector<8x16x128xf32>
    %143 = tpu.concatenate %140, %141, %142 in 2 : vector<8x16x128xf32>, vector<8x16x128xf32>, vector<8x16x128xf32> -> vector<8x16x384xf32>
    %144 = vector.shape_cast %143 : vector<8x16x384xf32> to vector<128x384xf32>
    %c1_125 = arith.constant 1 : index
    %c0_126 = arith.constant 0 : index
    %c0_127 = arith.constant 0 : index
    %145 = vector.load %arg4[%c1_125, %c0_126, %c0_127] : memref<3x384x128xf32, #tpu.memory_space<vmem>>, vector<1x384x128xf32>
    %146 = vector.shape_cast %145 : vector<1x384x128xf32> to vector<384x128xf32>
    %cst_128 = arith.constant dense<0.000000e+00> : vector<128x128xf32>
    %147 = tpu.matmul %144, %146, %cst_128 {dimension_numbers = #tpu.dot_dimension_numbers<[1], [0], [0], [1], [0, 0, 1, 1], [], []>} : vector<128x384xf32>, vector<384x128xf32>, vector<128x128xf32> -> vector<128x128xf32>
    %148 = arith.addf %139, %147 : vector<128x128xf32>
    %c10 = arith.constant 10 : index
    %c0_129 = arith.constant 0 : index
    %c0_130 = arith.constant 0 : index
    %149 = vector.load %arg9[%c10, %c0_129, %c0_130] : memref<18x24x128xf32, #tpu.memory_space<vmem>>, vector<8x16x128xf32>
    %c10_131 = arith.constant 10 : index
    %c1_132 = arith.constant 1 : index
    %c0_133 = arith.constant 0 : index
    %150 = vector.load %arg9[%c10_131, %c1_132, %c0_133] : memref<18x24x128xf32, #tpu.memory_space<vmem>>, vector<8x16x128xf32>
    %c10_134 = arith.constant 10 : index
    %c2_135 = arith.constant 2 : index
    %c0_136 = arith.constant 0 : index
    %151 = vector.load %arg9[%c10_134, %c2_135, %c0_136] : memref<18x24x128xf32, #tpu.memory_space<vmem>>, vector<8x16x128xf32>
    %152 = tpu.concatenate %149, %150, %151 in 2 : vector<8x16x128xf32>, vector<8x16x128xf32>, vector<8x16x128xf32> -> vector<8x16x384xf32>
    %153 = vector.shape_cast %152 : vector<8x16x384xf32> to vector<128x384xf32>
    %c2_137 = arith.constant 2 : index
    %c0_138 = arith.constant 0 : index
    %c0_139 = arith.constant 0 : index
    %154 = vector.load %arg4[%c2_137, %c0_138, %c0_139] : memref<3x384x128xf32, #tpu.memory_space<vmem>>, vector<1x384x128xf32>
    %155 = vector.shape_cast %154 : vector<1x384x128xf32> to vector<384x128xf32>
    %cst_140 = arith.constant dense<0.000000e+00> : vector<128x128xf32>
    %156 = tpu.matmul %153, %155, %cst_140 {dimension_numbers = #tpu.dot_dimension_numbers<[1], [0], [0], [1], [0, 0, 1, 1], [], []>} : vector<128x384xf32>, vector<384x128xf32>, vector<128x128xf32> -> vector<128x128xf32>
    %157 = arith.addf %148, %156 : vector<128x128xf32>
    %c0_141 = arith.constant 0 : index
    %c9_142 = arith.constant 9 : index
    %c1_143 = arith.constant 1 : index
    %c0_144 = arith.constant 0 : index
    %158 = vector.load %arg1[%c0_141, %c9_142, %c1_143, %c0_144] : memref<1x18x24x128xf32, #tpu.memory_space<vmem>>, vector<1x8x16x128xf32>
    %159 = vector.shape_cast %158 : vector<1x8x16x128xf32> to vector<8x16x128xf32>
    %160 = vector.shape_cast %159 : vector<8x16x128xf32> to vector<128x128xf32>
    %c0_145 = arith.constant 0 : index
    %c0_146 = arith.constant 0 : index
    %161 = vector.load %arg6[%c0_145, %c0_146] : memref<128x128xf32, #tpu.memory_space<vmem>>, vector<128x128xf32>
    %cst_147 = arith.constant dense<0.000000e+00> : vector<128x128xf32>
    %162 = tpu.matmul %160, %161, %cst_147 {dimension_numbers = #tpu.dot_dimension_numbers<[1], [0], [0], [1], [0, 0, 1, 1], [], []>} : vector<128x128xf32>, vector<128x128xf32>, vector<128x128xf32> -> vector<128x128xf32>
    %c0_148 = arith.constant 0 : index
    %c0_149 = arith.constant 0 : index
    %163 = vector.load %arg7[%c0_148, %c0_149] : memref<1x128xf32, #tpu.memory_space<vmem>>, vector<1x128xf32>
    %164 = vector.broadcast %163 : vector<1x128xf32> to vector<128x128xf32>
    %165 = arith.addf %162, %164 : vector<128x128xf32>
    %166 = arith.addf %157, %165 : vector<128x128xf32>
    %167 = vector.shape_cast %166 : vector<128x128xf32> to vector<8x16x128xf32>
    %c0_150 = arith.constant 0 : index
    %c8_151 = arith.constant 8 : index
    %c0_152 = arith.constant 0 : index
    %c0_153 = arith.constant 0 : index
    %168 = vector.load %arg8[%c0_150, %c8_151, %c0_152, %c0_153] : memref<1x16x16x128xf32, #tpu.memory_space<vmem>>, vector<1x8x16x128xf32>
    %169 = vector.shape_cast %168 : vector<1x8x16x128xf32> to vector<8x16x128xf32>
    %170 = vector.shape_cast %167 : vector<8x16x128xf32> to vector<1x8x16x128xf32>
    tpu.vector_store %arg8[%c0_150, %c8_151, %c0_152, %c0_153], %170 {strides = array<i32>} : memref<1x16x16x128xf32, #tpu.memory_space<vmem>>, vector<1x8x16x128xf32>,
    return
  }
  func.func @transform_0(%arg0: i32) -> (i32, i32, i32, i32) {
    %c0_i32 = arith.constant 0 : i32
    %c0_i32_0 = arith.constant 0 : i32
    %c0_i32_1 = arith.constant 0 : i32
    %c0_i32_2 = arith.constant 0 : i32
    return %arg0, %c0_i32, %c0_i32_0, %c0_i32_1 : i32, i32, i32, i32
  }
  func.func @transform_1(%arg0: i32) -> (i32, i32, i32) {
    %c0_i32 = arith.constant 0 : i32
    %c0_i32_0 = arith.constant 0 : i32
    %c0_i32_1 = arith.constant 0 : i32
    %c0_i32_2 = arith.constant 0 : i32
    return %c0_i32, %c0_i32_0, %c0_i32_1 : i32, i32, i32
  }
  func.func @transform_2(%arg0: i32) -> (i32, i32) {
    %c0_i32 = arith.constant 0 : i32
    %c0_i32_0 = arith.constant 0 : i32
    %c0_i32_1 = arith.constant 0 : i32
    return %c0_i32, %c0_i32_0 : i32, i32
  }
  func.func @transform_3(%arg0: i32) -> (i32, i32, i32) {
    %c0_i32 = arith.constant 0 : i32
    %c0_i32_0 = arith.constant 0 : i32
    %c0_i32_1 = arith.constant 0 : i32
    %c0_i32_2 = arith.constant 0 : i32
    return %c0_i32, %c0_i32_0, %c0_i32_1 : i32, i32, i32
  }
  func.func @transform_4(%arg0: i32) -> (i32, i32) {
    %c0_i32 = arith.constant 0 : i32
    %c0_i32_0 = arith.constant 0 : i32
    %c0_i32_1 = arith.constant 0 : i32
    return %c0_i32, %c0_i32_0 : i32, i32
  }
  func.func @transform_5(%arg0: i32) -> (i32, i32) {
    %c0_i32 = arith.constant 0 : i32
    %c0_i32_0 = arith.constant 0 : i32
    %c0_i32_1 = arith.constant 0 : i32
    return %c0_i32, %c0_i32_0 : i32, i32
  }
  func.func @transform_6(%arg0: i32) -> (i32, i32) {
    %c0_i32 = arith.constant 0 : i32
    %c0_i32_0 = arith.constant 0 : i32
    %c0_i32_1 = arith.constant 0 : i32
    return %c0_i32, %c0_i32_0 : i32, i32
  }
  func.func @transform_7(%arg0: i32) -> (i32, i32, i32, i32) {
    %c0_i32 = arith.constant 0 : i32
    %c0_i32_0 = arith.constant 0 : i32
    %c0_i32_1 = arith.constant 0 : i32
    %c0_i32_2 = arith.constant 0 : i32
    return %arg0, %c0_i32, %c0_i32_0, %c0_i32_1 : i32, i32, i32, i32
  }
}

</mosaic_0001>

<bundles_post_ra>
// kernel: tpu_custom_call.1
= control target key start
LH: loop header
LB: loop body
LE: loop exit
PB: predicated region body
PF: predicated region fallthrough
CT: control target
= control target key end

     0   :  { %12 = vsyncpa [#allocation4], 0  ;;  %s12298_s0 = inlined_call_operand.hbm [shape: f32[2,18,24,128], index: 0, kind: input, shape index: {}]   ;;  %s12299_s1 = inlined_call_operand.hbm [shape: f32[3,384,128], index: 1, kind: input, shape index: {}]   ;;  %s12300_s2 = inlined_call_operand.vmem [shape: f32[1,128], index: 2, kind: input, shape index: {}]   ;;  %s12301_s3 = inlined_call_operand.hbm [shape: f32[3,384,128], index: 3, kind: input, shape index: {}]   ;;  %s12302_s4 = inlined_call_operand.vmem [shape: f32[1,128], index: 4, kind: input, shape index: {}]   ;;  %s12303_s5 = inlined_call_operand.hbm [shape: f32[128,128], index: 5, kind: input, shape index: {}]   ;;  %s12304_s6 = inlined_call_operand.vmem [shape: f32[1,128], index: 6, kind: input, shape index: {}]   ;;  %s12305_s7 = inlined_call_operand.hbm [shape: f32[2,16,16,128], index: 7, kind: output, shape index: {}]  }
   0x1   :  { %14 = vsyncpa [#allocation4 + $0x1], 0 }
   0x2   :  { %15 = vsyncpa [#allocation7], 0 }
   0x3   :  { %16 = vsyncpa [#allocation10], 0 }
   0x4   :  { %17 = vsyncpa [#allocation5], 0 }
   0x5   :  { %19 = vsyncpa [#allocation5 + $0x1], 0  ;;  %s10013_s24 = smov 0   ;;  %s10015_s25 = smov 0  }
   0x6   :  { %s10017_s26 = smov 0   ;;  %s10019_s27 = smov 0  }
   0x7 LB: > { %s10034_s28 = sadd.s32 4294967295, %s9961_s27   ;;  %s6142_s29 = sadd.s32 4294967294, %s9961_s27   ;;  %s9961_s27 = sphi %s10019_s27, %s12449_s27   ;;  %s9957_s26 = sphi %s10017_s26, %s12448_s26   ;;  %s9953_s25 = sphi %s10015_s25, %s12447_s25   ;;  %s9949_s24 = sphi %s10013_s24, %s12446_s24  }
   0x8   : > { %p45_p0 = scmp.ne.s32.totalorder %s9953_s25, %s9949_s24  ;;  %p12306_p1 = scmp.eq.s32.totalorder %s10034_s28, 0 }
   0x9   : > { %p201_p3 = scmp.eq.s32.totalorder %s6142_s29, 1  ;;  %p6143_p5 = scmp.ge.s32.totalorder %s9961_s27, 1 }
   0xa   : > { %p10043_p4 = por %p12306_p1, %p45_p0  ;;  %p208_p7 = scmp.lt.s32.totalorder %s9961_s27, 3 }
   0xb   : > { %p10048_p6 = por %p201_p3, %p45_p0  ;;  %s9963_s10 = smov [#allocation6]  }
   0xc   : > { %s12346_s30 = scalar_select %p10043_p4, 1, 0 }
   0xd   : > { %s12347_s8 = scalar_select %p10048_p6, 1, 0 }
   0xe   : > { %p10053_p8 = pnand %p6143_p5, %p208_p7  ;;  %s220_s11 = sshll.u32 %s9963_s10, 4  ;;  %s10057_s11 = int_to_ptr.vmem [resolvable:$true] %s220_s11 }
   0xf   : > { %12348 = sst [smem:[#allocation16_spill]] %s12347_s8  ;;  %s9964_s13 = smov [#allocation8]  }
  0x10   : > { %s12349_s9 = scalar_select %p10053_p8, 1, 0 }
  0x11   : > { %p9703_p9 = pneg %p10053_p8  ;;  %s236_s14 = sshll.u32 %s9964_s13, 4  ;;  %s10068_s14 = int_to_ptr.vmem [resolvable:$true] %s236_s14 }
  0x12   : > { %s9965_s15 = smov [#allocation9]   ;;  %s9773_s19 = scalar_lea.hbm %s12299_s1, 18432 }
  0x13   : > { %p10064_p11 = pnand %p9703_p9, %p12306_p1  ;;  %s10070_s16 = sshll.u32 %s9965_s15, 4  ;;  %s253_s16 = int_to_ptr.vmem [resolvable:$true] %s10070_s16 }
  0x14   : > { %p9774_p12 = scmp.ne.s32.totalorder %s12299_s1, %s9773_s19  ;;  %p9780_p5 = scmp.lt.u32.totalorder %s9773_s19, %s12299_s1 }
  0x15   : > { %p10080_p13 = pneg %p10064_p11 }
  0x17   : > { %p9776_p0 = pnand %p10080_p13, %p9774_p12 }
  0x19   : > { %p9777_p3 = pneg %p9776_p0 }
  0x1b   : > { %p9782_p7 = pnand %p9780_p5, %p9777_p3 }
  0x1d   : > { %9785 = shalt.err (!%p9782_p7)
}
  0x1e   : > { %s9786_s10 = scalar_lea.vmem %s10057_s11, 18432  ;;  %p9794_p2 = scmp.lt.s32.totalorder %s10057_s11, %s10057_s11 }
  0x1f   : > { %p9787_p9 = scmp.ne.s32.totalorder %s10057_s11, %s9786_s10  ;;  %p9795_p6 = scmp.lt.s32.totalorder %s9786_s10, %s9786_s10 }
  0x21   : > { %p9789_p10 = pnand %p9787_p9, %p10080_p13  ;;  %p9796_p12 = por %p9795_p6, %p9794_p2 }
  0x23   : > { %p9790_p1 = pneg %p9789_p10 }
  0x25   : > { %p9797_p0 = pnand %p9796_p12, %p9790_p1 }
  0x27   : > { %9800 = shalt.err (!%p9797_p0)
}
  0x28   : > { %s12310_s13 = smov 128   ;;  %s12311_s15 = smov 8  }
  0x29   : > { %9706 = dma.hbm_to_vmem [thread:$0]  (!%p10064_p11), %s12299_s1, 18432, %s10057_s11, [#allocation7], %s12310_s13, %s12310_s13, %s12311_s15  }
  0x2a   : > { %s9801_s21 = scalar_lea.hbm %s12301_s3, 18432 }
  0x2b   : > { %p9802_p1 = scmp.ne.s32.totalorder %s12301_s3, %s9801_s21  ;;  %p9808_p10 = scmp.lt.u32.totalorder %s9801_s21, %s12301_s3 }
  0x2d   : > { %p9804_p2 = pnand %p9802_p1, %p10080_p13 }
  0x2f   : > { %p9805_p6 = pneg %p9804_p2 }
  0x31   : > { %p9810_p3 = pnand %p9808_p10, %p9805_p6 }
  0x33   : > { %9813 = shalt.err (!%p9810_p3)
}
  0x34   : > { %s9814_s11 = scalar_lea.vmem %s10068_s14, 18432  ;;  %p9822_p12 = scmp.lt.s32.totalorder %s10068_s14, %s10068_s14 }
  0x35   : > { %p9815_p5 = scmp.ne.s32.totalorder %s10068_s14, %s9814_s11  ;;  %p9823_p0 = scmp.lt.s32.totalorder %s9814_s11, %s9814_s11 }
  0x37   : > { %p9817_p7 = pnand %p9815_p5, %p10080_p13  ;;  %p9824_p1 = por %p9823_p0, %p9822_p12 }
  0x39   : > { %p9818_p9 = pneg %p9817_p7 }
  0x3b   : > { %p9825_p2 = pnand %p9824_p1, %p9818_p9 }
  0x3d   : > { %9828 = shalt.err (!%p9825_p2)
}
  0x3e   : > { %9709 = dma.hbm_to_vmem [thread:$0]  (!%p10064_p11), %s12301_s3, 18432, %s10068_s14, [#allocation7], %s12310_s13, %s12310_s13, %s12311_s15  }
  0x3f   : > { %s9829_s20 = scalar_lea.hbm %s12303_s5, 2048 }
  0x40   : > { %p9830_p6 = scmp.ne.s32.totalorder %s12303_s5, %s9829_s20  ;;  %p9836_p5 = scmp.lt.u32.totalorder %s9829_s20, %s12303_s5 }
  0x42   : > { %p9832_p10 = pnand %p9830_p6, %p10080_p13 }
  0x44   : > { %p9833_p3 = pneg %p9832_p10 }
  0x46   : > { %p9838_p7 = pnand %p9836_p5, %p9833_p3 }
  0x48   : > { %9841 = shalt.err (!%p9838_p7)
}
  0x49   : > { %s9842_s11 = scalar_lea.vmem %s253_s16, 2048  ;;  %p9850_p1 = scmp.lt.s32.totalorder %s253_s16, %s253_s16 }
  0x4a   : > { %p9843_p9 = scmp.ne.s32.totalorder %s253_s16, %s9842_s11  ;;  %p9851_p2 = scmp.lt.s32.totalorder %s9842_s11, %s9842_s11 }
  0x4c   : > { %p9845_p12 = pnand %p9843_p9, %p10080_p13  ;;  %p9852_p4 = por %p9851_p2, %p9850_p1 }
  0x4e   : > { %p9846_p0 = pneg %p9845_p12 }
  0x50   : > { %p9853_p8 = pnand %p9852_p4, %p9846_p0 }
  0x52   : > { %9856 = shalt.err (!%p9853_p8)
}
  0x53   : > { %9712 = dma.hbm_to_vmem [thread:$0]  (!%p10064_p11), %s12303_s5, 2048, %s253_s16, [#allocation10], %s12310_s13, %s12310_s13, %s12311_s15  }
  0x54   : > { %s10153_s22 = sadd.s32 1, %s9961_s27   ;;  %s32_s17 = sadd.s32 1, %s9957_s26 }
  0x55   : > { %s29_s12 = ssub.s32 %s9961_s27, %s10153_s22  ;;  %p39_p8 = scmp.ne.s32.totalorder %s9957_s26, %s9953_s25 }
  0x56   : > { %p30_p4 = scmp.eq.s32.totalorder %s29_s12, 0  ;;  %p40_p13 = scmp.eq.s32.totalorder %s9961_s27, 0 }
  0x57   : > { %p9724_p6 = scmp.lt.s32.totalorder %s9961_s27, 2  ;;  %p12352_p3 = scmp.eq.s32.totalorder %s10034_s28, 1 }
  0x58   : > { %s10163_s18 = scalar_select %p30_p4, %s9957_s26, %s32_s17  }
  0x59   : > { %p41_p10 = por %p40_p13, %p39_p8  ;;  %p10167_p5 = por %p12352_p3, %p39_p8 }
  0x5a   : > { %s269_s20 = sand.u32 1, %s9957_s26   ;;  %s9685_s21 = smul.u32 6912, %s9961_s27 }
  0x5b   : > { %s9684_s16 = smul.u32 432, %s269_s20  ;;  %p10173_p11 = pnand %p9724_p6, %p41_p10 }
  0x5c   : > { %s10180_s11 = scalar_lea.hbm %s12298_s0, %s9685_s21  ;;  %s10184_s12 = scalar_lea.sflag [#allocation4], %s269_s20 }
  0x5d   : > { %s273_s14 = scalar_lea.vmem [#allocation3], %s9684_s16  ;;  %s9857_s17 = scalar_lea.hbm %s10180_s11, 6912 }
  0x5e   : > { %s280_s8 = sshll.u32 %s273_s14, 4  ;;  %p9858_p7 = scmp.ne.s32.totalorder %s10180_s11, %s9857_s17  ;;  %s10182_s8 = int_to_ptr.vmem [resolvable:$true] %s280_s8 }
  0x5f   : > { %p9859_p9 = pneg %p10173_p11  ;;  %s9862_s10 = scalar_lea.hbm %s12298_s0, 13824 }
  0x60   : > { %p9863_p1 = scmp.lt.u32.totalorder %s10180_s11, %s12298_s0  ;;  %p9864_p2 = scmp.lt.u32.totalorder %s9862_s10, %s9857_s17 }
  0x61   : > { %p9860_p12 = pnand %p9859_p9, %p9858_p7  ;;  %p9866_p8 = scmp.lt.u32.totalorder %s9857_s17, %s10180_s11 }
  0x62   : > { %p9865_p4 = por %p9864_p2, %p9863_p1 }
  0x63   : > { %p9861_p0 = pneg %p9860_p12 }
  0x64   : > { %p9867_p13 = por %p9866_p8, %p9865_p4 }
  0x66   : > { %p9868_p6 = pnand %p9867_p13, %p9861_p0 }
  0x68   : > { %9871 = shalt.err (!%p9868_p6)
}
  0x69   : > { %s9872_s20 = scalar_lea.vmem %s10182_s8, 6912  ;;  %s9968_s16 = smov [#allocation3]  }
  0x6a   : > { %p9873_p10 = scmp.ne.s32.totalorder %s10182_s8, %s9872_s20  ;;  %s9877_s14 = sshll.u32 %s9968_s16, 4  ;;  %s9878_s14 = int_to_ptr.vmem [resolvable:$false] %s9877_s14 }
  0x6b   : > { %s9879_s13 = scalar_lea.vmem %s9878_s14, 13824  ;;  %p9880_p12 = scmp.lt.s32.totalorder %s10182_s8, %s9878_s14 }
  0x6c   : > { %p9875_p3 = pnand %p9873_p10, %p9859_p9  ;;  %p9881_p1 = scmp.lt.s32.totalorder %s9879_s13, %s9872_s20 }
  0x6e   : > { %p9876_p7 = pneg %p9875_p3  ;;  %p9882_p2 = por %p9881_p1, %p9880_p12 }
  0x70   : > { %p9883_p4 = pnand %p9882_p2, %p9876_p7 }
  0x72   : > { %9886 = shalt.err (!%p9883_p4)
}
  0x73   : > { %s12355_s15 = smov 8   ;;  %s12356_s17 = smov 128  }
  0x74   : > { %9716 = dma.hbm_to_vmem [thread:$0]  (!%p10173_p11), %s10180_s11, 6912, %s10182_s8, %s10184_s12, %s12356_s17, %s12356_s17, %s12355_s15  }
  0x75   : > { %p12357_p9 = scmp.ne.s32.totalorder %s12349_s9, 0 }
  0x77   : > { %292 = sbr.rel (%p12357_p9) target bundleno = 1132 (0x46c), region = 48 }
  0x7e   : > { %s10218_s21 = sand.u32 1, %s9953_s25   ;;  %p12358_p0 = scmp.ne.s32.totalorder %s12346_s30, 0 }
  0x7f   : > { %s9686_s29 = smul.u32 432, %s10218_s21  ;;  %s295_s10 = scalar_lea.sflag [#allocation4], %s10218_s21 }
  0x81   : > { %s10222_s20 = scalar_lea.vmem [#allocation3], %s9686_s29 }
  0x82   : > { %9932 = dma.done.wait (%p12358_p0), %s295_s10, 6912  }
  0x83   : > { %9934 = vsyncadd (%p12358_p0), %s295_s10, 4294960384  ;;  %p12359_p11 = scmp.eq.s32.totalorder %s10034_s28, 0 }
  0x85   : > { %9936 = dma.done.wait (%p12359_p11), [#allocation7], 36864   ;;  %p12360_p8 = pmov %p12359_p11 }
  0x87   : > { %9938 = vsyncadd (%p12360_p8), [#allocation7], 4294930432  ;;  %p12361_p13 = pmov %p12360_p8 }
  0x88   : > { %p12362_p6 = pmov %p12360_p8 }
  0x89   : > { %9940 = dma.done.wait (%p12361_p13), [#allocation10], 2048  }
  0x8a   : > { %9942 = vsyncadd (%p12362_p6), [#allocation10], 4294965248  ;;  %v758_v0 = vld [vmem:[#allocation6 + $0x80] sm:$0xff]  ;;  %v759_v1 = vld [vmem:[#allocation6 + $0x88] sm:$0xff]  ;;  %vm628_vm0 = vcmask 1046528   ;;  %s6153_s16 = sshll.u32 %s10218_s21, 8 }
  0x8b   : > { %v1130_v2 = vld [vmem:[#allocation6 + $0x200] sm:$0xff]  ;;  %v8404_v3 = vpack.c.bf16 %v759_v1, %v758_v0  ;;  %v1131_v4 = vld [vmem:[#allocation6 + $0x208] sm:$0xff]  ;;  %v760_v11 = vld [vmem:[#allocation6 + $0x90] sm:$0xff]  ;;  %s12094_s15 = scalar_lea.vmem [#allocation11], %s6153_s16  ;;  %s6211_s10 = sshll.u32 %s10034_s28, 12 }
  0x8c   : > { %v742_v5 = vld [vmem:[#allocation6] sm:$0xff]  ;;  %v743_v6 = vld [vmem:[#allocation6 + $0x8] sm:$0xff]  ;;  %v8468_v7 = vpack.c.bf16 %v1131_v4, %v1130_v2  ;;  %v761_v13 = vld [vmem:[#allocation6 + $0x98] sm:$0xff]  ;;  %s12250_s23 = scalar_lea.hbm %s12305_s7, %s6211_s10  ;;  %s6027_s28 = scalar_lea.sflag [#allocation5], %s10218_s21 }
  0x8d   : > { %v8406_v8 = vpack.c.bf16 %v743_v6, %v742_v5  ;;  %v1114_v9 = vld [vmem:[#allocation6 + $0x180] sm:$0xff]  ;;  %v1115_v10 = vld [vmem:[#allocation6 + $0x188] sm:$0xff]  ;;  %8405 = vmatprep.subr.bf16.mxu0 %v8404_v3  ;;  %v1132_v14 = vld [vmem:[#allocation6 + $0x210] sm:$0xff]  ;;  %v8408_v16 = vpack.c.bf16 %v761_v13, %v760_v11  ;;  %s9970_s8 = smov [#allocation11]  }
  0x8e   : > { %v8470_v12 = vpack.c.bf16 %v1115_v10, %v1114_v9  ;;  %v1133_v15 = vld [vmem:[#allocation6 + $0x218] sm:$0xff]  ;;  %8469 = vmatprep.subr.bf16.mxu1 %v8468_v7  ;;  %v744_v18 = vld [vmem:[#allocation6 + $0x10] sm:$0xff]  ;;  %v762_v23 = vld [vmem:[#allocation6 + $0xa0] sm:$0xff]  ;;  %s9891_s12 = sshll.u32 %s9970_s8, 4  ;;  %s9892_s12 = int_to_ptr.vmem [resolvable:$false] %s9891_s12 }
  0x8f   : > { %8407 = vmatpush3.bf16.msra.mxu0 %v8406_v8  ;;  %v8472_v17 = vpack.c.bf16 %v1133_v15, %v1132_v14  ;;  %v745_v19 = vld [vmem:[#allocation6 + $0x18] sm:$0xff]  ;;  %v1116_v20 = vld [vmem:[#allocation6 + $0x190] sm:$0xff]  ;;  %v763_v24 = vld [vmem:[#allocation6 + $0xa8] sm:$0xff]  ;;  %s9893_s16 = scalar_lea.vmem %s9892_s12, 8192 }
  0x90   : > { %8471 = vmatpush3.bf16.msra.mxu1 %v8470_v12  ;;  %v8410_v21 = vpack.c.bf16 %v745_v19, %v744_v18  ;;  %v1117_v22 = vld [vmem:[#allocation6 + $0x198] sm:$0xff]  ;;  %8409 = vmatprep.subr.bf16.mxu0 %v8408_v16  ;;  %v8412_v26 = vpack.c.bf16 %v763_v24, %v762_v23  ;;  %v1134_v27 = vld [vmem:[#allocation6 + $0x220] sm:$0xff]  ;;  %v1135_v28 = vld [vmem:[#allocation6 + $0x228] sm:$0xff] }
  0x91   : > { %8473 = vmatprep.subr.bf16.mxu1 %v8472_v17  ;;  %v8474_v25 = vpack.c.bf16 %v1117_v22, %v1116_v20  ;;  %v746_v29 = vld [vmem:[#allocation6 + $0x20] sm:$0xff]  ;;  %v8476_v30 = vpack.c.bf16 %v1135_v28, %v1134_v27  ;;  %v747_v31 = vld [vmem:[#allocation6 + $0x28] sm:$0xff]  ;;  %v764_v35 = vld [vmem:[#allocation6 + $0xb0] sm:$0xff] }
  0x92   : > { %v1118_v32 = vld [vmem:[#allocation6 + $0x1a0] sm:$0xff]  ;;  %v1119_v33 = vld [vmem:[#allocation6 + $0x1a8] sm:$0xff]  ;;  %v8414_v34 = vpack.c.bf16 %v747_v31, %v746_v29  ;;  %v765_v36 = vld [vmem:[#allocation6 + $0xb8] sm:$0xff] }
  0x93   : > { %8411 = vmatpush3.bf16.msra.mxu0 %v8410_v21  ;;  %v1136_v37 = vld [vmem:[#allocation6 + $0x230] sm:$0xff]  ;;  %v8478_v38 = vpack.c.bf16 %v1119_v33, %v1118_v32  ;;  %v8416_v39 = vpack.c.bf16 %v765_v36, %v764_v35  ;;  %v1137_v40 = vld [vmem:[#allocation6 + $0x238] sm:$0xff]  ;;  %v766_v46 = vld [vmem:[#allocation6 + $0xc0] sm:$0xff] }
  0x94   : > { %8475 = vmatpush3.bf16.msra.mxu1 %v8474_v25  ;;  %8413 = vmatprep.subr.bf16.mxu0 %v8412_v26  ;;  %v748_v41 = vld [vmem:[#allocation6 + $0x30] sm:$0xff]  ;;  %v749_v42 = vld [vmem:[#allocation6 + $0x38] sm:$0xff]  ;;  %v8480_v43 = vpack.c.bf16 %v1137_v40, %v1136_v37  ;;  %v767_v47 = vld [vmem:[#allocation6 + $0xc8] sm:$0xff] }
  0x95   : > { %8477 = vmatprep.subr.bf16.mxu1 %v8476_v30  ;;  %v1120_v44 = vld [vmem:[#allocation6 + $0x1b0] sm:$0xff]  ;;  %v1121_v45 = vld [vmem:[#allocation6 + $0x1b8] sm:$0xff]  ;;  %v1138_v48 = vld [vmem:[#allocation6 + $0x240] sm:$0xff]  ;;  %v8418_v50 = vpack.c.bf16 %v749_v42, %v748_v41  ;;  %v8420_v54 = vpack.c.bf16 %v767_v47, %v766_v46 }
  0x96   : > { %v1139_v49 = vld [vmem:[#allocation6 + $0x248] sm:$0xff]  ;;  %v750_v51 = vld [vmem:[#allocation6 + $0x40] sm:$0xff]  ;;  %v8482_v53 = vpack.c.bf16 %v1121_v45, %v1120_v44  ;;  %v768_v57 = vld [vmem:[#allocation6 + $0xd0] sm:$0xff] }
  0x97   : > { %8415 = vmatpush3.bf16.msra.mxu0 %v8414_v34  ;;  %v751_v52 = vld [vmem:[#allocation6 + $0x48] sm:$0xff]  ;;  %v1122_v55 = vld [vmem:[#allocation6 + $0x1c0] sm:$0xff]  ;;  %v8484_v58 = vpack.c.bf16 %v1139_v49, %v1138_v48  ;;  %v769_v59 = vld [vmem:[#allocation6 + $0xd8] sm:$0xff] }
  0x98   : > { %8479 = vmatpush3.bf16.msra.mxu1 %v8478_v38  ;;  %8417 = vmatprep.subr.bf16.mxu0 %v8416_v39  ;;  %v1123_v56 = vld [vmem:[#allocation6 + $0x1c8] sm:$0xff]  ;;  %v1140_v60 = vld [vmem:[#allocation6 + $0x250] sm:$0xff]  ;;  %v1141_v61 = vld [vmem:[#allocation6 + $0x258] sm:$0xff]  ;;  %v8422_v2 = vpack.c.bf16 %v751_v52, %v750_v51  ;;  %v8424_v7 = vpack.c.bf16 %v769_v59, %v768_v57 }
  0x99   : > { %8481 = vmatprep.subr.bf16.mxu1 %v8480_v43  ;;  %v752_v62 = vld [vmem:[#allocation6 + $0x50] sm:$0xff]  ;;  %v753_v63 = vld [vmem:[#allocation6 + $0x58] sm:$0xff]  ;;  %v770_v3 = vld [vmem:[#allocation6 + $0xe0] sm:$0xff]  ;;  %v8486_v6 = vpack.c.bf16 %v1123_v56, %v1122_v55  ;;  %v8488_v11 = vpack.c.bf16 %v1141_v61, %v1140_v60 }
  0x9a   : > { %v1124_v0 = vld [vmem:[#allocation6 + $0x1d0] sm:$0xff]  ;;  %v1125_v1 = vld [vmem:[#allocation6 + $0x1d8] sm:$0xff]  ;;  %v771_v4 = vld [vmem:[#allocation6 + $0xe8] sm:$0xff]  ;;  %v8426_v18 = vpack.c.bf16 %v753_v63, %v752_v62 }
  0x9b   : > { %8419 = vmatpush3.bf16.msra.mxu0 %v8418_v50  ;;  %v1142_v5 = vld [vmem:[#allocation6 + $0x260] sm:$0xff]  ;;  %v1143_v8 = vld [vmem:[#allocation6 + $0x268] sm:$0xff]  ;;  %v10242_v14 = vld [vmem:[#allocation6 + $0xf0] sm:$0xff]  ;;  %v8490_v19 = vpack.c.bf16 %v1125_v1, %v1124_v0  ;;  %v8428_v20 = vpack.c.bf16 %v771_v4, %v770_v3 }
  0x9c   : > { %8483 = vmatpush3.bf16.msra.mxu1 %v8482_v53  ;;  %8421 = vmatprep.subr.bf16.mxu0 %v8420_v54  ;;  %v10236_v9 = vld [vmem:[#allocation6 + $0x60] sm:$0xff]  ;;  %v755_v10 = vld [vmem:[#allocation6 + $0x68] sm:$0xff]  ;;  %v773_v15 = vld [vmem:[#allocation6 + $0xf8] sm:$0xff]  ;;  %v8492_v24 = vpack.c.bf16 %v1143_v8, %v1142_v5 }
  0x9d   : > { %8485 = vmatprep.subr.bf16.mxu1 %v8484_v58  ;;  %v10238_v12 = vld [vmem:[#allocation6 + $0x1e0] sm:$0xff]  ;;  %v10240_v13 = vld [vmem:[#allocation6 + $0x1e8] sm:$0xff]  ;;  %v10244_v16 = vld [vmem:[#allocation6 + $0x270] sm:$0xff]  ;;  %v8430_v25 = vpack.c.bf16 %v755_v10, %v10236_v9  ;;  %v8432_v30 = vpack.c.bf16 %v773_v15, %v10242_v14 }
  0x9e   : > { %v10246_v17 = vld [vmem:[#allocation6 + $0x278] sm:$0xff]  ;;  %v10248_v21 = vld [vmem:[#allocation6 + $0x70] sm:$0xff]  ;;  %v8494_v26 = vpack.c.bf16 %v10240_v13, %v10238_v12  ;;  %v1146_v51 = vld [vmem:[#allocation6 + $0x280] sm:$0xff] }
  0x9f   : > { %8423 = vmatpush3.bf16.msra.mxu0 %v8422_v2  ;;  %v10250_v22 = vld [vmem:[#allocation6 + $0x78] sm:$0xff]  ;;  %v10252_v23 = vld [vmem:[#allocation6 + $0x1f0] sm:$0xff]  ;;  %v8496_v36 = vpack.c.bf16 %v10246_v17, %v10244_v16  ;;  %v1147_v52 = vld [vmem:[#allocation6 + $0x288] sm:$0xff] }
  0xa0   : > { %8487 = vmatpush3.bf16.msra.mxu1 %v8486_v6  ;;  %8425 = vmatprep.subr.bf16.mxu0 %v8424_v7  ;;  %v10257_v27 = vld [vmem:[#allocation6 + $0x1f8] sm:$0xff]  ;;  %v381_v28 = vld [vmem:[%s10222_s20] sm:$0xff]  ;;  %v8434_v37 = vpack.c.bf16 %v10250_v22, %v10248_v21  ;;  %v383_v40 = vld [vmem:[%s10222_s20 + $0x10] sm:$0xff]  ;;  %v8500_v63 = vpack.c.bf16 %v1147_v52, %v1146_v51 }
  0xa1   : > { %v382_v29 = vld [vmem:[%s10222_s20 + $0x8] sm:$0xff]  ;;  %8489 = vmatprep.subr.bf16.mxu1 %v8488_v11  ;;  %vm435_vm1 = vcmp.ge.f32.partialorder %v381_v28, 0.0  ;;  %v489_v31 = vmul.f32 0.2, %v381_v28  ;;  %v384_v32 = vld [vmem:[%s10222_s20 + $0x18] sm:$0xff]  ;;  %v385_v33 = vld [vmem:[%s10222_s20 + $0x20] sm:$0xff]  ;;  %v8498_v41 = vpack.c.bf16 %v10257_v27, %v10252_v23 }
  0xa2   : > { %vm436_vm2 = vcmp.ge.f32.partialorder %v382_v29, 0.0  ;;  %v490_v34 = vmul.f32 0.2, %v382_v29  ;;  %vm438_vm3 = vcmp.ge.f32.partialorder %v384_v32, 0.0  ;;  %vm439_vm4 = vcmp.ge.f32.partialorder %v385_v33, 0.0  ;;  %v386_v45 = vld [vmem:[%s10222_s20 + $0x28] sm:$0xff] }
  0xa3   : > { %v492_v35 = vmul.f32 0.2, %v384_v32  ;;  %8427 = vmatpush3.bf16.msra.mxu0 %v8426_v18  ;;  %v10268_v38 = vsel %vm435_vm1, %v381_v28, %v489_v31  ;;  %v493_v39 = vmul.f32 0.2, %v385_v33  ;;  %v387_v46 = vld [vmem:[%s10222_s20 + $0x30] sm:$0xff]  ;;  %v388_v47 = vld [vmem:[%s10222_s20 + $0x38] sm:$0xff] }
  0xa4   : > { %8491 = vmatpush3.bf16.msra.mxu1 %v8490_v19  ;;  %8429 = vmatprep.subr.bf16.mxu0 %v8428_v20  ;;  %v10274_v42 = vsel %vm436_vm2, %v382_v29, %v490_v34  ;;  %v629_v43 = vrot.slane %v10268_v38, 1  ;;  %vm437_vm5 = vcmp.ge.f32.partialorder %v383_v40, 0.0  ;;  %v491_v54 = vmul.f32 0.2, %v383_v40  ;;  %v389_v62 = vld [vmem:[%s10222_s20 + $0x40] sm:$0xff]  ;;  %v1149_v5 = vld [vmem:[#allocation6 + $0x298] sm:$0xff] }
  0xa5   : > { %v10277_v44 = vsel %vm438_vm3, %v384_v32, %v492_v35  ;;  %8493 = vmatprep.subr.bf16.mxu1 %v8492_v24  ;;  %v630_v48 = vrot.slane %v10274_v42, 1  ;;  %v10284_v49 = vsel %vm439_vm4, %v385_v33, %v493_v39  ;;  %vm440_vm6 = vcmp.ge.f32.partialorder %v386_v45, 0.0  ;;  %v1148_v2 = vld [vmem:[#allocation6 + $0x290] sm:$0xff]  ;;  %v390_v6 = vld [vmem:[%s10222_s20 + $0x48] sm:$0xff]  ;;  %v1150_v12 = vld [vmem:[#allocation6 + $0x2a0] sm:$0xff] }
  0xa6   : > { %v634_v50 = vrot.slane %v10277_v44, 1  ;;  %v635_v53 = vrot.slane %v10284_v49, 1  ;;  %v494_v55 = vmul.f32 0.2, %v386_v45  ;;  %vm441_vm7 = vcmp.ge.f32.partialorder %v387_v46, 0.0  ;;  %v391_v7 = vld [vmem:[%s10222_s20 + $0x50] sm:$0xff] }
  0xa7   : > { %8431 = vmatpush3.bf16.msra.mxu0 %v8430_v25  ;;  %v631_v56 = vsel %vm628_vm0, %v629_v43, %v630_v48  ;;  %vm442_vm8 = vcmp.ge.f32.partialorder %v388_v47, 0.0  ;;  %v495_v57 = vmul.f32 0.2, %v387_v46  ;;  %v10290_v59 = vsel %vm437_vm5, %v383_v40, %v491_v54  ;;  %v1151_v17 = vld [vmem:[#allocation6 + $0x2a8] sm:$0xff]  ;;  %v774_v20 = vld [vmem:[#allocation6 + $0x100] sm:$0xff]  ;;  %v1152_v31 = vld [vmem:[#allocation6 + $0x2b0] sm:$0xff] }
  0xa8   : > { %8495 = vmatpush3.bf16.msra.mxu1 %v8494_v26  ;;  %8433 = vmatprep.subr.bf16.mxu0 %v8432_v30  ;;  %v636_v58 = vsel %vm628_vm0, %v634_v50, %v635_v53  ;;  %v10292_v60 = vsel %vm440_vm6, %v386_v45, %v494_v55  ;;  %v496_v61 = vmul.f32 0.2, %v388_v47  ;;  %v632_v0 = vrot.slane %v10290_v59, 1  ;;  %v392_v18 = vld [vmem:[%s10222_s20 + $0x58] sm:$0xff]  ;;  %v393_v28 = vld [vmem:[%s10222_s20 + $0x60] sm:$0xff]  ;;  %v394_v30 = vld [vmem:[%s10222_s20 + $0x68] sm:$0xff] }
  0xa9   : > { %8497 = vmatprep.subr.bf16.mxu1 %v8496_v36  ;;  %854 = vmatprep.mubr.f32.mxu0 %v631_v56  ;;  %v637_v1 = vrot.slane %v10292_v60, 1  ;;  %v10298_v3 = vsel %vm441_vm7, %v387_v46, %v495_v57  ;;  %vm443_vm9 = vcmp.ge.f32.partialorder %v389_v62, 0.0  ;;  %v497_v11 = vmul.f32 0.2, %v389_v62  ;;  %v775_v21 = vld [vmem:[#allocation6 + $0x108] sm:$0xff]  ;;  %v1153_v32 = vld [vmem:[#allocation6 + $0x2b8] sm:$0xff] }
  0xaa   : > { %1226 = vmatprep.mubr.f32.mxu1 %v636_v58  ;;  %v10301_v4 = vsel %vm442_vm8, %v388_v47, %v496_v61  ;;  %v633_v8 = vsel %vm628_vm0, %v630_v48, %v632_v0  ;;  %v639_v9 = vrot.slane %v10298_v3, 1  ;;  %v8504_v14 = vpack.c.bf16 %v1149_v5, %v1148_v2  ;;  %v776_v33 = vld [vmem:[#allocation6 + $0x110] sm:$0xff]  ;;  %v777_v34 = vld [vmem:[#allocation6 + $0x118] sm:$0xff]  ;;  %v1154_v46 = vld [vmem:[#allocation6 + $0x2c0] sm:$0xff] }
  0xab   : > { %8435 = vmatpush3.bf16.msra.mxu0 %v8434_v37  ;;  %v640_v10 = vrot.slane %v10301_v4, 1  ;;  %v638_v13 = vsel %vm628_vm0, %v635_v53, %v637_v1  ;;  %v498_v15 = vmul.f32 0.2, %v390_v6  ;;  %v499_v16 = vmul.f32 0.2, %v391_v7  ;;  %v395_v45 = vld [vmem:[%s10222_s20 + $0x70] sm:$0xff] }
  0xac   : > { %8499 = vmatpush3.bf16.msra.mxu1 %v8498_v41  ;;  %v10311_v19 = vsel %vm443_vm9, %v389_v62, %v497_v11  ;;  %vm444_vm10 = vcmp.ge.f32.partialorder %v390_v6, 0.0  ;;  %vm445_vm11 = vcmp.ge.f32.partialorder %v391_v7, 0.0  ;;  %v8508_v23 = vpack.c.bf16 %v1151_v17, %v1150_v12  ;;  %v1155_v47 = vld [vmem:[#allocation6 + $0x2c8] sm:$0xff]  ;;  %v778_v50 = vld [vmem:[#allocation6 + $0x120] sm:$0xff]  ;;  %v1157_v0 = vld [vmem:[#allocation6 + $0x2d8] sm:$0xff] }
  0xad   : > { %8501 = vmatprep.subr.bf16.mxu1 %v8500_v63  ;;  %v10315_v22 = vsel %vm628_vm0, %v639_v9, %v640_v10  ;;  %vm446_vm12 = vcmp.ge.f32.partialorder %v392_v18, 0.0  ;;  %v500_v24 = vmul.f32 0.2, %v392_v18  ;;  %v642_v25 = vrot.slane %v10311_v19, 1  ;;  %v779_v51 = vld [vmem:[#allocation6 + $0x128] sm:$0xff]  ;;  %v397_v61 = vld [vmem:[%s10222_s20 + $0x80] sm:$0xff] }
  0xae   : > { %855 = vmatmul.mubr.f32.vlgmr.msra.gmra.mrb[0].mxu0 %v10268_v38  ;;  %v10318_v26 = vsel %vm444_vm10, %v390_v6, %v498_v15  ;;  %v10320_v27 = vsel %vm445_vm11, %v391_v7, %v499_v16  ;;  %v10323_v29 = vpack.c.bf16 %v775_v21, %v774_v20  ;;  %v501_v40 = vmul.f32 0.2, %v393_v28  ;;  %v396_v57 = vld [vmem:[%s10222_s20 + $0x78] sm:$0xff]  ;;  %v780_v1 = vld [vmem:[#allocation6 + $0x130] sm:$0xff]  ;;  %v398_v15 = vld [vmem:[%s10222_s20 + $0x88] sm:$0xff] }
  0xaf   : > { %1227 = vmatmul.mubr.f32.vlgmr.msra.gmra.mrb[0].mxu1 %v10277_v44  ;;  %859 = vmatprep.mubr.f32.mxu0 %v633_v8  ;;  %v644_v35 = vrot.slane %v10318_v26, 1  ;;  %v645_v36 = vrot.slane %v10320_v27, 1  ;;  %v10332_v37 = vsel %vm446_vm12, %v392_v18, %v500_v24  ;;  %v10335_v39 = vsel %vm628_vm0, %v640_v10, %v642_v25  ;;  %v781_v2 = vld [vmem:[#allocation6 + $0x138] sm:$0xff]  ;;  %v782_v16 = vld [vmem:[#allocation6 + $0x140] sm:$0xff]  ;;  %v783_v17 = vld [vmem:[#allocation6 + $0x148] sm:$0xff] }
  0xb0   : > { %8503 = vmatpush3.bf16.msra.mxu1 %v8500_v63  ;;  %1231 = vmatprep.mubr.f32.mxu1 %v638_v13  ;;  %v502_v41 = vmul.f32 0.2, %v394_v30  ;;  %v8512_v43 = vpack.c.bf16 %v1153_v32, %v1152_v31  ;;  %vm447_vm13 = vcmp.ge.f32.partialorder %v393_v28, 0.0  ;;  %vm448_vm14 = vcmp.ge.f32.partialorder %v394_v30, 0.0  ;;  %v1156_v63 = vld [vmem:[#allocation6 + $0x2d0] sm:$0xff]  ;;  %v1161_v32 = vld [vmem:[#allocation6 + $0x2f8] sm:$0xff] }
  0xb1   : > { %8505 = vmatprep.subr.bf16.mxu1 %v8504_v14  ;;  %8437 = vmatprep.subr.bf16.mxu0 %v10323_v29  ;;  %v10340_v48 = vpack.c.bf16 %v777_v34, %v776_v33  ;;  %v10345_v52 = vsel %vm628_vm0, %v644_v35, %v645_v36  ;;  %v647_v53 = vrot.slane %v10332_v37, 1  ;;  %v10348_v54 = vsel %vm447_vm13, %v393_v28, %v501_v40  ;;  %v399_v28 = vld [vmem:[%s10222_s20 + $0x90] sm:$0xff]  ;;  %v400_v33 = vld [vmem:[%s10222_s20 + $0x98] sm:$0xff] }
  0xb2   : > { %860 = vmatmul.mubr.f32.gmra.mrb[2].mxu0 %v10274_v42  ;;  %v10350_v55 = vsel %vm448_vm14, %v394_v30, %v502_v41  ;;  %v503_v56 = vmul.f32 0.2, %v395_v45  ;;  %vm449_vm15 = vcmp.ge.f32.partialorder %v395_v45, 0.0  ;;  %v10357_v62 = vpack.c.bf16 %v779_v51, %v778_v50  ;;  %v1160_v31 = vld [vmem:[#allocation6 + $0x2f0] sm:$0xff]  ;;  %v785_v35 = vld [vmem:[#allocation6 + $0x158] sm:$0xff] }
  0xb3   : > { %1232 = vmatmul.mubr.f32.gmra.mrb[2].mxu1 %v10284_v49  ;;  %864 = vmatprep.mubr.f32.mxu0 %v636_v58  ;;  %v8516_v58 = vpack.c.bf16 %v1155_v47, %v1154_v46  ;;  %v10363_v5 = vsel %vm628_vm0, %v645_v36, %v647_v53  ;;  %v649_v6 = vrot.slane %v10348_v54, 1  ;;  %v650_v7 = vrot.slane %v10350_v55, 1  ;;  %v784_v34 = vld [vmem:[#allocation6 + $0x150] sm:$0xff] }
  0xb4   : > { %1236 = vmatprep.mubr.f32.mxu1 %v10315_v22  ;;  %8507 = vmatpush3.bf16.msra.mxu1 %v8504_v14  ;;  %v10367_v8 = vsel %vm449_vm15, %v395_v45, %v503_v56  ;;  %v504_v9 = vmul.f32 0.2, %v396_v57  ;;  %v505_v10 = vmul.f32 0.2, %v397_v61  ;;  %v8520_v11 = vpack.c.bf16 %v1157_v0, %v1156_v63  ;;  %v1159_v14 = vld [vmem:[#allocation6 + $0x2e8] sm:$0xff] }
  0xb5   : > { %8509 = vmatprep.subr.bf16.mxu1 %v8508_v23  ;;  %8439 = vmatpush3.bf16.msra.mxu0 %v10323_v29  ;;  %vm450_vm1 = vcmp.ge.f32.partialorder %v396_v57, 0.0  ;;  %vm451_vm2 = vcmp.ge.f32.partialorder %v397_v61, 0.0  ;;  %v10372_v12 = vpack.c.bf16 %v781_v2, %v780_v1  ;;  %v10379_v18 = vsel %vm628_vm0, %v649_v6, %v650_v7  ;;  %v787_v63 = vld [vmem:[#allocation6 + $0x168] sm:$0xff] }
  0xb6   : > { %865 = vmatmul.mubr.f32.gmra.mrb[4].mxu0 %v10277_v44  ;;  %8441 = vmatprep.subr.bf16.mxu0 %v10340_v48  ;;  %v652_v20 = vrot.slane %v10367_v8, 1  ;;  %v10382_v21 = vsel %vm450_vm1, %v396_v57, %v504_v9  ;;  %v506_v25 = vmul.f32 0.2, %v398_v15  ;;  %v10390_v30 = vpack.c.bf16 %v783_v17, %v782_v16  ;;  %v1518_v57 = vld [vmem:[#allocation6 + $0x400] sm:$0xff]  ;;  %v788_v16 = vld [vmem:[#allocation6 + $0x170] sm:$0xff]  ;;  %v789_v17 = vld [vmem:[#allocation6 + $0x178] sm:$0xff] }
  0xb7   : > { %1237 = vmatmul.mubr.f32.gmra.mrb[4].mxu1 %v10298_v3  ;;  %869 = vmatprep.mubr.f32.mxu0 %v638_v13  ;;  %v1158_v13 = vld [vmem:[#allocation6 + $0x2e0] sm:$0xff]  ;;  %vm452_vm3 = vcmp.ge.f32.partialorder %v398_v15, 0.0  ;;  %vm685_vm4 = vcmask 1045504   ;;  %v654_v40 = vrot.slane %v10382_v21, 1  ;;  %v8528_v45 = vpack.c.bf16 %v1161_v32, %v1160_v31 }
  0xb8   : > { %1241 = vmatprep.mubr.f32.mxu1 %v10335_v39  ;;  %8511 = vmatpush3.bf16.msra.mxu1 %v8508_v23  ;;  %v10384_v23 = vsel %vm451_vm2, %v397_v61, %v505_v10  ;;  %v8524_v24 = vpack.c.bf16 %v1159_v14, %v1158_v13  ;;  %v10397_v36 = vsel %vm628_vm0, %v650_v7, %v652_v20  ;;  %v687_v46 = vrot.slane %v10274_v42, 2  ;;  %v786_v61 = vld [vmem:[#allocation6 + $0x160] sm:$0xff]  ;;  %v402_v13 = vld [vmem:[%s10222_s20 + $0xa8] sm:$0xff] }
  0xb9   : > { %8513 = vmatprep.subr.bf16.mxu1 %v8512_v43  ;;  %8443 = vmatpush3.bf16.msra.mxu0 %v10340_v48  ;;  %v655_v41 = vrot.slane %v10384_v23, 1  ;;  %v691_v47 = vrot.slane %v10277_v44, 2  ;;  %v692_v50 = vrot.slane %v10284_v49, 2  ;;  %v10408_v51 = vsel %vm452_vm3, %v398_v15, %v506_v25  ;;  %v401_v44 = vld [vmem:[%s10222_s20 + $0xa0] sm:$0xff]  ;;  %v403_v15 = vld [vmem:[%s10222_s20 + $0xb0] sm:$0xff] }
  0xba   : > { %870 = vmatmul.mubr.f32.gmra.mrb[6].mxu0 %v10284_v49  ;;  %8445 = vmatprep.subr.bf16.mxu0 %v10357_v62  ;;  %v507_v53 = vmul.f32 0.2, %v399_v28  ;;  %v508_v56 = vmul.f32 0.2, %v400_v33  ;;  %vm453_vm5 = vcmp.ge.f32.partialorder %v399_v28, 0.0  ;;  %vm454_vm6 = vcmp.ge.f32.partialorder %v400_v33, 0.0 }
  0xbb   : > { %1242 = vmatmul.mubr.f32.gmra.mrb[6].mxu1 %v10301_v4  ;;  %874 = vmatprep.mubr.f32.mxu0 %v10315_v22  ;;  %v10424_v1 = vsel %vm685_vm4, %v691_v47, %v692_v50  ;;  %v10428_v2 = vsel %vm628_vm0, %v654_v40, %v655_v41  ;;  %v657_v6 = vrot.slane %v10408_v51, 1  ;;  %v10441_v14 = vpack.c.bf16 %v787_v63, %v786_v61  ;;  %v1503_v40 = vld [vmem:[#allocation6 + $0x388] sm:$0xff] }
  0xbc   : > { %1246 = vmatprep.mubr.f32.mxu1 %v10345_v52  ;;  %8515 = vmatpush3.bf16.msra.mxu1 %v8512_v43  ;;  %v686_v43 = vrot.slane %v10268_v38, 2  ;;  %v10411_v38 = vpack.c.bf16 %v785_v35, %v784_v34  ;;  %v10435_v9 = vsel %vm453_vm5, %v399_v28, %v507_v53  ;;  %v10437_v10 = vsel %vm454_vm6, %v400_v33, %v508_v56  ;;  %v404_v34 = vld [vmem:[%s10222_s20 + $0xb8] sm:$0xff]  ;;  %v1502_v35 = vld [vmem:[#allocation6 + $0x380] sm:$0xff] }
  0xbd   : > { %8517 = vmatprep.subr.bf16.mxu1 %v8516_v58  ;;  %8447 = vmatpush3.bf16.msra.mxu0 %v10357_v62  ;;  %vm455_vm7 = vcmp.ge.f32.partialorder %v401_v44, 0.0  ;;  %v10448_v20 = vsel %vm628_vm0, %v655_v41, %v657_v6  ;;  %v660_v25 = vrot.slane %v10437_v10, 1  ;;  %v510_v31 = vmul.f32 0.2, %v402_v13 }
  0xbe   : > { %875 = vmatmul.mubr.f32.gmra.mrb[8].mxu0 %v10298_v3  ;;  %8449 = vmatprep.subr.bf16.mxu0 %v10372_v12  ;;  %v10419_v0 = vsel %vm685_vm4, %v686_v43, %v687_v46  ;;  %v511_v32 = vmul.f32 0.2, %v403_v15  ;;  %v10458_v33 = vpack.c.bf16 %v789_v17, %v788_v16  ;;  %vm456_vm8 = vcmp.ge.f32.partialorder %v402_v13, 0.0 }
  0xbf   : > { %1247 = vmatmul.mubr.f32.gmra.mrb[8].mxu1 %v10318_v26  ;;  %879 = vmatprep.mubr.f32.mxu0 %v10335_v39  ;;  %vm457_vm9 = vcmp.ge.f32.partialorder %v403_v15, 0.0  ;;  %v512_v53 = vmul.f32 0.2, %v404_v34  ;;  %v10475_v56 = vpack.c.bf16 %v1503_v40, %v1502_v35  ;;  %vm458_vm10 = vcmp.ge.f32.partialorder %v404_v34, 0.0 }
  0xc0   : > { %1251 = vmatprep.mubr.f32.mxu1 %v10363_v5  ;;  %8519 = vmatpush3.bf16.msra.mxu1 %v8516_v58  ;;  %v1519_v58 = vld [vmem:[#allocation6 + $0x408] sm:$0xff]  ;;  %v10472_v47 = vsel %vm457_vm9, %v403_v15, %v511_v32  ;;  %v407_v15 = vld [vmem:[%s10222_s20 + $0xd0] sm:$0xff] }
  0xc1   : > { %8521 = vmatprep.subr.bf16.mxu1 %v8520_v11  ;;  %8451 = vmatpush3.bf16.msra.mxu0 %v10372_v12  ;;  %v10432_v7 = vpack.c.bf16 %v1519_v58, %v1518_v57  ;;  %12363 = vst [vmem:[#allocation17_spill] sm:$0xff] %v10475_v56  ;;  %v405_v57 = vld [vmem:[%s10222_s20 + $0xc0] sm:$0xff]  ;;  %v406_v58 = vld [vmem:[%s10222_s20 + $0xc8] sm:$0xff]  ;;  %v665_v63 = vrot.slane %v10472_v47, 1  ;;  %v10489_v6 = vsel %vm458_vm10, %v404_v34, %v512_v53  ;;  %vm461_vm13 = vcmp.ge.f32.partialorder %v407_v15, 0.0 }
  0xc2   : > { %880 = vmatmul.mubr.f32.gmra.mrb[10].mxu0 %v10301_v4  ;;  %8453 = vmatprep.subr.bf16.mxu0 %v10390_v30  ;;  %vm459_vm11 = vcmp.ge.f32.partialorder %v405_v57, 0.0  ;;  %vm460_vm12 = vcmp.ge.f32.partialorder %v406_v58, 0.0  ;;  %v667_v17 = vrot.slane %v10489_v6, 1 }
  0xc3   : > { %1252 = vmatmul.mubr.f32.gmra.mrb[10].mxu1 %v10320_v27  ;;  %884 = vmatprep.mubr.f32.mxu0 %v10345_v52 }
  0xc4   : > { %1256 = vmatprep.mubr.f32.mxu1 %v10379_v18  ;;  %8523 = vmatpush3.bf16.msra.mxu1 %v8520_v11  ;;  %v509_v11 = vmul.f32 0.2, %v401_v44  ;;  %v10509_v32 = vsel %vm628_vm0, %v665_v63, %v667_v17  ;;  %v1504_v17 = vld [vmem:[#allocation6 + $0x390] sm:$0xff] }
  0xc5   : > { %8525 = vmatprep.subr.bf16.mxu1 %v8524_v24  ;;  %8455 = vmatpush3.bf16.msra.mxu0 %v10390_v30  ;;  %12365 = vst [vmem:[#allocation19_spill] sm:$0xff] %v10509_v32 }
  0xc6   : > { %885 = vmatmul.mubr.f32.gmra.mrb[12].mxu0 %v10318_v26  ;;  %8457 = vmatprep.subr.bf16.mxu0 %v10411_v38  ;;  %v10455_v28 = vsel %vm455_vm7, %v401_v44, %v509_v11  ;;  %v513_v11 = vmul.f32 0.2, %v405_v57 }
  0xc7   : > { %1257 = vmatmul.mubr.f32.gmra.mrb[12].mxu1 %v10348_v54  ;;  %889 = vmatprep.mubr.f32.mxu0 %v10363_v5  ;;  %v662_v43 = vrot.slane %v10455_v28, 1 }
  0xc8   : > { %1261 = vmatprep.mubr.f32.mxu1 %v10397_v36  ;;  %8527 = vmatpush3.bf16.msra.mxu1 %v8524_v24  ;;  %v659_v24 = vrot.slane %v10435_v9, 1 }
  0xc9   : > { %8529 = vmatprep.subr.bf16.mxu1 %v8528_v45  ;;  %8459 = vmatpush3.bf16.msra.mxu0 %v10411_v38  ;;  %v10483_v44 = vsel %vm628_vm0, %v660_v25, %v662_v43 }
  0xca   : > { %890 = vmatmul.mubr.f32.gmra.mrb[14].mxu0 %v10320_v27  ;;  %8461 = vmatprep.subr.bf16.mxu0 %v10441_v14  ;;  %v10465_v41 = vsel %vm628_vm0, %v659_v24, %v660_v25  ;;  %v10501_v24 = vsel %vm459_vm11, %v405_v57, %v513_v11  ;;  %v1487_v11 = vld [vmem:[#allocation6 + $0x308] sm:$0xff] }
  0xcb   : > { %1262 = vmatmul.mubr.f32.gmra.mrb[14].mxu1 %v10350_v55  ;;  %894 = vmatprep.mubr.f32.mxu0 %v10379_v18  ;;  %v1099_v34 = vrot.slane %v10501_v24, 1 }
  0xcc   : > { %1266 = vmatprep.mubr.f32.mxu1 %v10428_v2  ;;  %8531 = vmatpush3.bf16.msra.mxu1 %v8528_v45  ;;  %v10470_v45 = vsel %vm456_vm8, %v402_v13, %v510_v31  ;;  %v514_v13 = vmul.f32 0.2, %v406_v58  ;;  %v515_v31 = vmul.f32 0.2, %v407_v15 }
  0xcd   : > { %8565 = vmatprep.subr.bf16.mxu1 %v10432_v7  ;;  %8463 = vmatpush3.bf16.msra.mxu0 %v10441_v14  ;;  %v664_v61 = vrot.slane %v10470_v45, 1 }
  0xce   : > { %895 = vmatmul.mubr.f32.gmra.mrb[16].mxu0 %v10348_v54  ;;  %8465 = vmatprep.subr.bf16.mxu0 %v10458_v33  ;;  %v10503_v25 = vsel %vm460_vm12, %v406_v58, %v514_v13  ;;  %v10514_v40 = vsel %vm461_vm13, %v407_v15, %v515_v31  ;;  %v689_v58 = vrot.slane %v10290_v59, 2  ;;  %v696_v13 = vrot.slane %v10298_v3, 2  ;;  %v1505_v31 = vld [vmem:[#allocation6 + $0x398] sm:$0xff] }
  0xcf   : > { %1267 = vmatmul.mubr.f32.gmra.mrb[16].mxu1 %v10382_v21  ;;  %899 = vmatprep.mubr.f32.mxu0 %v10397_v36  ;;  %v10497_v16 = vsel %vm628_vm0, %v664_v61, %v665_v63  ;;  %12364 = vst [vmem:[#allocation18_spill] sm:$0xff] %v10503_v25  ;;  %v1100_v35 = vrot.slane %v10503_v25, 1  ;;  %v1102_v53 = vrot.slane %v10514_v40, 1  ;;  %v694_v61 = vrot.slane %v10292_v60, 2  ;;  %v1486_v63 = vld [vmem:[#allocation6 + $0x300] sm:$0xff] }
  0xd0   : > { %1271 = vmatprep.mubr.f32.mxu1 %v10448_v20  ;;  %v697_v15 = vrot.slane %v10301_v4, 2  ;;  %v690_v59 = vsel %vm685_vm4, %v687_v46, %v689_v58  ;;  %v10544_v60 = vpack.c.bf16 %v1487_v11, %v1486_v63  ;;  %v702_v58 = vrot.slane %v10320_v27, 2  ;;  %v1506_v63 = vld [vmem:[#allocation6 + $0x3a0] sm:$0xff]  ;;  %v1507_v11 = vld [vmem:[#allocation6 + $0x3a8] sm:$0xff] }
  0xd1   : > { %8467 = vmatpush3.bf16.msra.mxu0 %v10458_v33  ;;  %v10520_v43 = vsel %vm628_vm0, %v1099_v34, %v1100_v35  ;;  %v10528_v57 = vsel %vm628_vm0, %v1100_v35, %v1102_v53  ;;  %v1520_v34 = vld [vmem:[#allocation6 + $0x410] sm:$0xff]  ;;  %v1521_v35 = vld [vmem:[#allocation6 + $0x418] sm:$0xff]  ;;  %v695_v53 = vsel %vm685_vm4, %v692_v50, %v694_v61  ;;  %v1523_v50 = vld [vmem:[#allocation6 + $0x428] sm:$0xff] }
  0xd2   : > { %900 = vmatmul.mubr.f32.gmra.mrb[18].mxu0 %v10350_v55  ;;  %8533 = vmatprep.subr.bf16.mxu0 %v10475_v56  ;;  %12366 = vst [vmem:[#allocation20_spill] sm:$0xff] %v10520_v43  ;;  %12367 = vst [vmem:[#allocation21_spill] sm:$0xff] %v10528_v57  ;;  %v699_v56 = vrot.slane %v10311_v19, 2  ;;  %v10554_v42 = vsel %vm685_vm4, %v696_v13, %v697_v15  ;;  %v8568_v46 = vpack.c.bf16 %v1521_v35, %v1520_v34  ;;  %v1522_v19 = vld [vmem:[#allocation6 + $0x420] sm:$0xff]  ;;  %v1524_v34 = vld [vmem:[#allocation6 + $0x430] sm:$0xff] }
  0xd3   : > { %1272 = vmatmul.mubr.f32.gmra.mrb[18].mxu1 %v10384_v23  ;;  %904 = vmatprep.mubr.f32.mxu0 %v10428_v2  ;;  %12368 = vst [vmem:[#allocation22_spill] sm:$0xff] %v10544_v60  ;;  %v704_v13 = vrot.slane %v10332_v37, 2  ;;  %v1509_v37 = vld [vmem:[#allocation6 + $0x3b8] sm:$0xff] }
  0xd4   : > { %1276 = vmatprep.mubr.f32.mxu1 %v10465_v41  ;;  %v10564_v61 = vsel %vm685_vm4, %v697_v15, %v699_v56  ;;  %v707_v56 = vrot.slane %v10350_v55, 2  ;;  %v1525_v35 = vld [vmem:[#allocation6 + $0x438] sm:$0xff] }
  0xd6   : > { %905 = vmatmul.mubr.f32.gmra.mrb[20].mxu0 %v10382_v21 }
  0xd7   : > { %1277 = vmatmul.mubr.f32.gmra.mrb[20].mxu1 %v10435_v9  ;;  %909 = vmatprep.mubr.f32.mxu0 %v10448_v20 }
  0xd8   : > { %1281 = vmatprep.mubr.f32.mxu1 %v10483_v44 }
  0xda   : > { %910 = vmatmul.mubr.f32.gmra.mrb[22].mxu0 %v10384_v23 }
  0xdb   : > { %1282 = vmatmul.mubr.f32.gmra.mrb[22].mxu1 %v10437_v10  ;;  %914 = vmatprep.mubr.f32.mxu0 %v10465_v41 }
  0xdc   : > { %1286 = vmatprep.mubr.f32.mxu1 %v10497_v16 }
  0xde   : > { %915 = vmatmul.mubr.f32.gmra.mrb[24].mxu0 %v10435_v9 }
  0xdf   : > { %1287 = vmatmul.mubr.f32.gmra.mrb[24].mxu1 %v10470_v45  ;;  %919 = vmatprep.mubr.f32.mxu0 %v10483_v44 }
  0xe0   : > { %1291 = vmatprep.mubr.f32.mxu1 %v10509_v32 }
  0xe2   : > { %920 = vmatmul.mubr.f32.gmra.mrb[26].mxu0 %v10437_v10 }
  0xe3   : > { %1292 = vmatmul.mubr.f32.gmra.mrb[26].mxu1 %v10472_v47  ;;  %924 = vmatprep.mubr.f32.mxu0 %v10497_v16 }
  0xe4   : > { %1296 = vmatprep.mubr.f32.mxu1 %v10520_v43  ;;  %v1489_v43 = vld [vmem:[#allocation6 + $0x318] sm:$0xff] }
  0xe6   : > { %925 = vmatmul.mubr.f32.gmra.mrb[28].mxu0 %v10470_v45 }
  0xe7   : > { %1297 = vmatmul.mubr.f32.gmra.mrb[28].mxu1 %v10501_v24  ;;  %929 = vmatprep.mubr.f32.mxu0 %v10509_v32  ;;  %v10551_v32 = vpack.c.bf16 %v1505_v31, %v1504_v17  ;;  %v1490_v17 = vld [vmem:[#allocation6 + $0x320] sm:$0xff]  ;;  %v1491_v31 = vld [vmem:[#allocation6 + $0x328] sm:$0xff] }
  0xe8   : > { %1301 = vmatprep.mubr.f32.mxu1 %v10528_v57  ;;  %v1488_v57 = vld [vmem:[#allocation6 + $0x310] sm:$0xff]  ;;  %v10578_v15 = vpack.c.bf16 %v1491_v31, %v1490_v17  ;;  %v1511_v17 = vld [vmem:[#allocation6 + $0x3c8] sm:$0xff] }
  0xe9   : > { %12369 = vst [vmem:[#allocation23_spill] sm:$0xff] %v10551_v32  ;;  %v10559_v49 = vpack.c.bf16 %v1489_v43, %v1488_v57  ;;  %v1508_v57 = vld [vmem:[#allocation6 + $0x3b0] sm:$0xff] }
  0xea   : > { %930 = vmatmul.mubr.f32.gmra.mrb[30].mxu0 %v10472_v47  ;;  %12372 = vst [vmem:[#allocation26_spill] sm:$0xff] %v10578_v15 }
  0xeb   : > { %1302 = vmatmul.mubr.f32.gmra.mrb[30].mxu1 %v10503_v25  ;;  %7652 = vmatprep.mubr.f32.mxu0 %v10419_v0  ;;  %v701_v0 = vrot.slane %v10318_v26, 2  ;;  %12370 = vst [vmem:[#allocation24_spill] sm:$0xff] %v10559_v49 }
  0xec   : > { %7708 = vmatprep.mubr.f32.mxu1 %v10424_v1 }
  0xed   : > { %v10572_v43 = vsel %vm685_vm4, %v701_v0, %v702_v58  ;;  %v709_v0 = vrot.slane %v10367_v8, 2  ;;  %v1510_v8 = vld [vmem:[#allocation6 + $0x3c0] sm:$0xff] }
  0xee   : > { %7653 = vmatmul.mubr.f32.vlgmr.msra.gmra.mrb[32].mxu0 %v690_v59  ;;  %v10569_v59 = vpack.c.bf16 %v1507_v11, %v1506_v63  ;;  %v1492_v63 = vld [vmem:[#allocation6 + $0x330] sm:$0xff]  ;;  %v1493_v11 = vld [vmem:[#allocation6 + $0x338] sm:$0xff] }
  0xef   : > { %7709 = vmatmul.mubr.f32.vlgmr.msra.gmra.mrb[32].mxu1 %v695_v53  ;;  %8535 = vmatpush3.bf16.msra.mxu0 %v10544_v60  ;;  %v10597_v31 = vpack.c.bf16 %v1493_v11, %v1492_v63  ;;  %v1513_v11 = vld [vmem:[#allocation6 + $0x3d8] sm:$0xff] }
  0xf0   : > { %8567 = vmatpush3.bf16.msra.mxu1 %v10432_v7  ;;  %7655 = vmatprep.mubr.f32.mxu0 %v10424_v1  ;;  %12371 = vst [vmem:[#allocation25_spill] sm:$0xff] %v10569_v59  ;;  %v8572_v7 = vpack.c.bf16 %v1523_v50, %v1522_v19  ;;  %v706_v1 = vrot.slane %v10348_v54, 2  ;;  %v10587_v19 = vpack.c.bf16 %v1509_v37, %v1508_v57  ;;  %v1526_v57 = vld [vmem:[#allocation6 + $0x440] sm:$0xff]  ;;  %v1527_v37 = vld [vmem:[#allocation6 + $0x448] sm:$0xff] }
  0xf1   : > { %7711 = vmatprep.mubr.f32.mxu1 %v10554_v42  ;;  %8537 = vmatprep.subr.bf16.mxu0 %v10551_v32  ;;  %v8576_v50 = vpack.c.bf16 %v1525_v35, %v1524_v34  ;;  %12374 = vst [vmem:[#allocation28_spill] sm:$0xff] %v10597_v31  ;;  %v714_v34 = vrot.slane %v10408_v51, 2  ;;  %v1494_v35 = vld [vmem:[#allocation6 + $0x340] sm:$0xff]  ;;  %v8580_v63 = vpack.c.bf16 %v1527_v37, %v1526_v57  ;;  %v1512_v51 = vld [vmem:[#allocation6 + $0x3d0] sm:$0xff]  ;;  %v719_v57 = vrot.slane %v10455_v28, 2 }
  0xf2   : > { %7656 = vmatmul.mubr.f32.gmra.mrb[34].mxu0 %v695_v53  ;;  %8569 = vmatprep.subr.bf16.mxu1 %v8568_v46  ;;  %v10582_v53 = vsel %vm685_vm4, %v702_v58, %v704_v13  ;;  %12373 = vst [vmem:[#allocation27_spill] sm:$0xff] %v10587_v19  ;;  %v711_v58 = vrot.slane %v10382_v21, 2  ;;  %v712_v13 = vrot.slane %v10384_v23, 2  ;;  %v1496_v37 = vld [vmem:[#allocation6 + $0x350] sm:$0xff]  ;;  %v10625_v32 = vpack.c.bf16 %v1513_v11, %v1512_v51  ;;  %v1514_v28 = vld [vmem:[#allocation6 + $0x3e0] sm:$0xff]  ;;  %v1531_v11 = vld [vmem:[#allocation6 + $0x468] sm:$0xff] }
  0xf3   : > { %7712 = vmatmul.mubr.f32.gmra.mrb[34].mxu1 %v10564_v61  ;;  %8539 = vmatpush3.bf16.msra.mxu0 %v10559_v49  ;;  %v10606_v49 = vpack.c.bf16 %v1511_v17, %v1510_v8  ;;  %v1528_v8 = vld [vmem:[#allocation6 + $0x450] sm:$0xff]  ;;  %v1529_v17 = vld [vmem:[#allocation6 + $0x458] sm:$0xff]  ;;  %v1530_v51 = vld [vmem:[#allocation6 + $0x460] sm:$0xff] }
  0xf4   : > { %8571 = vmatpush3.bf16.msra.mxu1 %v8568_v46  ;;  %7658 = vmatprep.mubr.f32.mxu0 %v10554_v42  ;;  %v10591_v46 = vsel %vm685_vm4, %v706_v1, %v707_v56  ;;  %v10601_v1 = vsel %vm685_vm4, %v707_v56, %v709_v0  ;;  %v716_v56 = vrot.slane %v10435_v9, 2  ;;  %v717_v0 = vrot.slane %v10437_v10, 2  ;;  %12377 = vst [vmem:[#allocation31_spill] sm:$0xff] %v10625_v32 }
  0xf5   : > { %7714 = vmatprep.mubr.f32.mxu1 %v10572_v43  ;;  %8541 = vmatprep.subr.bf16.mxu0 %v10569_v59  ;;  %v1495_v59 = vld [vmem:[#allocation6 + $0x348] sm:$0xff]  ;;  %12375 = vst [vmem:[#allocation29_spill] sm:$0xff] %v10606_v49 }
  0xf6   : > { %7659 = vmatmul.mubr.f32.gmra.mrb[36].mxu0 %v10564_v61  ;;  %8573 = vmatprep.subr.bf16.mxu1 %v8572_v7 }
  0xf7   : > { %7715 = vmatmul.mubr.f32.gmra.mrb[36].mxu1 %v10582_v53  ;;  %8543 = vmatpush3.bf16.msra.mxu0 %v10578_v15  ;;  %v1497_v15 = vld [vmem:[#allocation6 + $0x358] sm:$0xff] }
  0xf8   : > { %8575 = vmatpush3.bf16.msra.mxu1 %v8572_v7  ;;  %7661 = vmatprep.mubr.f32.mxu0 %v10572_v43  ;;  %v10610_v7 = vsel %vm685_vm4, %v711_v58, %v712_v13  ;;  %v10620_v58 = vsel %vm685_vm4, %v712_v13, %v714_v34  ;;  %v721_v13 = vrot.slane %v10470_v45, 2  ;;  %v722_v34 = vrot.slane %v10472_v47, 2 }
  0xf9   : > { %7717 = vmatprep.mubr.f32.mxu1 %v10591_v46  ;;  %8545 = vmatprep.subr.bf16.mxu0 %v10587_v19  ;;  %v10616_v19 = vpack.c.bf16 %v1495_v59, %v1494_v35  ;;  %v10629_v59 = vsel %vm685_vm4, %v716_v56, %v717_v0  ;;  %v1515_v35 = vld [vmem:[#allocation6 + $0x3e8] sm:$0xff]  ;;  %v10639_v56 = vsel %vm685_vm4, %v717_v0, %v719_v57  ;;  %v1106_v0 = vrot.slane %v10501_v24, 2 }
  0xfa   : > { %7662 = vmatmul.mubr.f32.gmra.mrb[38].mxu0 %v10582_v53  ;;  %8577 = vmatprep.subr.bf16.mxu1 %v8576_v50  ;;  %v10644_v60 = vpack.c.bf16 %v1515_v35, %v1514_v28  ;;  %v1107_v57 = vrot.slane %v10503_v25, 2  ;;  %v1532_v28 = vld [vmem:[#allocation6 + $0x470] sm:$0xff]  ;;  %v1533_v35 = vld [vmem:[#allocation6 + $0x478] sm:$0xff] }
  0xfb   : > { %7718 = vmatmul.mubr.f32.gmra.mrb[38].mxu1 %v10601_v1  ;;  %8547 = vmatpush3.bf16.msra.mxu0 %v10597_v31  ;;  %12376 = vst [vmem:[#allocation30_spill] sm:$0xff] %v10616_v19  ;;  %v1499_v31 = vld [vmem:[#allocation6 + $0x368] sm:$0xff] }
  0xfc   : > { %8579 = vmatpush3.bf16.msra.mxu1 %v8576_v50  ;;  %7664 = vmatprep.mubr.f32.mxu0 %v10591_v46  ;;  %v8584_v50 = vpack.c.bf16 %v1529_v17, %v1528_v8  ;;  %v724_v8 = vrot.slane %v10489_v6, 2  ;;  %v1498_v17 = vld [vmem:[#allocation6 + $0x360] sm:$0xff]  ;;  %v1516_v6 = vld [vmem:[#allocation6 + $0x3f0] sm:$0xff] }
  0xfd   : > { %7720 = vmatprep.mubr.f32.mxu1 %v10610_v7  ;;  %8549 = vmatprep.subr.bf16.mxu0 %v10606_v49  ;;  %v10635_v49 = vpack.c.bf16 %v1497_v15, %v1496_v37  ;;  %v10648_v15 = vsel %vm685_vm4, %v721_v13, %v722_v34  ;;  %v1517_v37 = vld [vmem:[#allocation6 + $0x3f8] sm:$0xff] }
  0xfe   : > { %7665 = vmatmul.mubr.f32.gmra.mrb[40].mxu0 %v10601_v1  ;;  %8581 = vmatprep.subr.bf16.mxu1 %v8580_v63  ;;  %v10658_v13 = vsel %vm685_vm4, %v722_v34, %v724_v8  ;;  %v10663_v25 = vpack.c.bf16 %v1517_v37, %v1516_v6  ;;  %v2022_v34 = vld [vmem:[#allocation6 + $0x80] sm:$0xff]  ;;  %v2023_v8 = vld [vmem:[#allocation6 + $0x88] sm:$0xff] }
  0xff   : > { %7721 = vmatmul.mubr.f32.gmra.mrb[40].mxu1 %v10620_v58  ;;  %8551 = vmatpush3.bf16.msra.mxu0 %v10616_v19  ;;  %v1501_v19 = vld [vmem:[#allocation6 + $0x378] sm:$0xff]  ;;  %v2006_v6 = vld [vmem:[#allocation6] sm:$0xff]  ;;  %v2007_v37 = vld [vmem:[#allocation6 + $0x8] sm:$0xff] }
 0x100   : > { %8583 = vmatpush3.bf16.msra.mxu1 %v8580_v63  ;;  %7667 = vmatprep.mubr.f32.mxu0 %v10610_v7  ;;  %v8588_v63 = vpack.c.bf16 %v1531_v11, %v1530_v51  ;;  %v1109_v51 = vrot.slane %v10514_v40, 2  ;;  %v1500_v11 = vld [vmem:[#allocation6 + $0x370] sm:$0xff] }
 0x101   : > { %7723 = vmatprep.mubr.f32.mxu1 %v10629_v59  ;;  %8553 = vmatprep.subr.bf16.mxu0 %v10625_v32  ;;  %v10654_v32 = vpack.c.bf16 %v1499_v31, %v1498_v17  ;;  %v10667_v31 = vsel %vm685_vm4, %v1106_v0, %v1107_v57  ;;  %v10671_v40 = vpack.c.bf16 %v1501_v19, %v1500_v11  ;;  %v2024_v19 = vld [vmem:[#allocation6 + $0x90] sm:$0xff]  ;;  %v2026_v11 = vld [vmem:[#allocation6 + $0xa0] sm:$0xff] }
 0x102   : > { %7668 = vmatmul.mubr.f32.gmra.mrb[42].mxu0 %v10620_v58  ;;  %8585 = vmatprep.subr.bf16.mxu1 %v8584_v50  ;;  %v10675_v17 = vsel %vm685_vm4, %v1107_v57, %v1109_v51  ;;  %v8596_v0 = vpack.c.bf16 %v2023_v8, %v2022_v34  ;;  %v8598_v57 = vpack.c.bf16 %v2007_v37, %v2006_v6  ;;  %v2009_v51 = vld [vmem:[#allocation6 + $0x18] sm:$0xff]  ;;  %v2027_v34 = vld [vmem:[#allocation6 + $0xa8] sm:$0xff] }
 0x103   : > { %7724 = vmatmul.mubr.f32.gmra.mrb[42].mxu1 %v10639_v56  ;;  %8555 = vmatpush3.bf16.msra.mxu0 %v10635_v49  ;;  %v2013_v8 = vld [vmem:[#allocation6 + $0x38] sm:$0xff] }
 0x104   : > { %8587 = vmatpush3.bf16.msra.mxu1 %v8584_v50  ;;  %7670 = vmatprep.mubr.f32.mxu0 %v10629_v59  ;;  %v8592_v50 = vpack.c.bf16 %v1533_v35, %v1532_v28  ;;  %v2008_v35 = vld [vmem:[#allocation6 + $0x10] sm:$0xff] }
 0x105   : > { %7726 = vmatprep.mubr.f32.mxu1 %v10648_v15  ;;  %8557 = vmatprep.subr.bf16.mxu0 %v10644_v60 }
 0x106   : > { %7671 = vmatmul.mubr.f32.gmra.mrb[44].mxu0 %v10639_v56  ;;  %8589 = vmatprep.subr.bf16.mxu1 %v8588_v63 }
 0x107   : > { %7727 = vmatmul.mubr.f32.gmra.mrb[44].mxu1 %v10658_v13  ;;  %8559 = vmatpush3.bf16.msra.mxu0 %v10654_v32 }
 0x108   : > { %8591 = vmatpush3.bf16.msra.mxu1 %v8588_v63  ;;  %7673 = vmatprep.mubr.f32.mxu0 %v10648_v15  ;;  %v2025_v63 = vld [vmem:[#allocation6 + $0x98] sm:$0xff] }
 0x109   : > { %7729 = vmatprep.mubr.f32.mxu1 %v10667_v31  ;;  %8561 = vmatprep.subr.bf16.mxu0 %v10663_v25  ;;  %v8600_v28 = vpack.c.bf16 %v2025_v63, %v2024_v19  ;;  %v2014_v19 = vld [vmem:[#allocation6 + $0x40] sm:$0xff] }
 0x10a   : > { %7674 = vmatmul.mubr.f32.gmra.mrb[46].mxu0 %v10658_v13  ;;  %8593 = vmatprep.subr.bf16.mxu1 %v8592_v50 }
 0x10b   : > { %7730 = vmatmul.mubr.f32.gmra.mrb[46].mxu1 %v10675_v17  ;;  %8563 = vmatpush3.bf16.msra.mxu0 %v10671_v40 }
 0x10c   : > { %8595 = vmatpush3.bf16.msra.mxu1 %v8592_v50  ;;  %1598 = vmatprep.mubr.f32.mxu0 %v10315_v22  ;;  %v8602_v22 = vpack.c.bf16 %v2009_v51, %v2008_v35  ;;  %v2011_v50 = vld [vmem:[#allocation6 + $0x28] sm:$0xff] }
 0x10d   : > { %7764 = vmatprep.mubr.f32.mxu1 %v10554_v42  ;;  %8629 = vmatprep.subr.bf16.mxu1 %v10323_v29  ;;  %v2010_v42 = vld [vmem:[#allocation6 + $0x20] sm:$0xff]  ;;  %v2035_v35 = vld [vmem:[#allocation6 + $0xe8] sm:$0xff] }
 0x10e   : > { %1599 = vmatmul.mubr.f32.vlgmr.msra.gmra.mrb[48].mxu0 %v10298_v3  ;;  %8597 = vmatprep.subr.bf16.mxu0 %v8596_v0  ;;  %v8604_v3 = vpack.c.bf16 %v2027_v34, %v2026_v11  ;;  %v2031_v0 = vld [vmem:[#allocation6 + $0xc8] sm:$0xff]  ;;  %v411_v34 = vld [vmem:[%s10222_s20 + $0xf0] sm:$0xff] }
 0x10f   : > { %7765 = vmatmul.mubr.f32.vlgmr.msra.gmra.mrb[32].mxu1 %v10564_v61  ;;  %1603 = vmatprep.mubr.f32.mxu0 %v10335_v39  ;;  %v2028_v39 = vld [vmem:[#allocation6 + $0xb0] sm:$0xff]  ;;  %v408_v61 = vld [vmem:[%s10222_s20 + $0xd8] sm:$0xff]  ;;  %vm465_vm2 = vcmp.ge.f32.partialorder %v411_v34, 0.0 }
 0x110   : > { %8631 = vmatpush3.bf16.msra.mxu1 %v10323_v29  ;;  %7767 = vmatprep.mubr.f32.mxu1 %v10572_v43  ;;  %v2029_v29 = vld [vmem:[#allocation6 + $0xb8] sm:$0xff]  ;;  %v516_v6 = vmul.f32 0.2, %v408_v61  ;;  %vm462_vm14 = vcmp.ge.f32.partialorder %v408_v61, 0.0 }
 0x111   : > { %8633 = vmatprep.subr.bf16.mxu1 %v10340_v48  ;;  %8599 = vmatpush3.bf16.msra.mxu0 %v8598_v57  ;;  %v8608_v43 = vpack.c.bf16 %v2029_v29, %v2028_v39  ;;  %v2410_v39 = vld [vmem:[#allocation6 + $0x288] sm:$0xff]  ;;  %v519_v29 = vmul.f32 0.2, %v411_v34 }
 0x112   : > { %1604 = vmatmul.mubr.f32.gmra.mrb[50].mxu0 %v10301_v4  ;;  %8601 = vmatprep.subr.bf16.mxu0 %v8600_v28  ;;  %v8606_v4 = vpack.c.bf16 %v2011_v50, %v2010_v42  ;;  %v10713_v57 = vsel %vm462_vm14, %v408_v61, %v516_v6  ;;  %v2016_v28 = vld [vmem:[#allocation6 + $0x50] sm:$0xff]  ;;  %v2037_v50 = vld [vmem:[#allocation6 + $0xf8] sm:$0xff] }
 0x113   : > { %7768 = vmatmul.mubr.f32.gmra.mrb[34].mxu1 %v10582_v53  ;;  %1608 = vmatprep.mubr.f32.mxu0 %v10345_v52  ;;  %v2012_v53 = vld [vmem:[#allocation6 + $0x30] sm:$0xff]  ;;  %v414_v61 = vld [vmem:[%s10222_s20 + $0x108] sm:$0xff] }
 0x114   : > { %8635 = vmatpush3.bf16.msra.mxu1 %v10340_v48  ;;  %7770 = vmatprep.mubr.f32.mxu1 %v10591_v46  ;;  %v409_v52 = vld [vmem:[%s10222_s20 + $0xe0] sm:$0xff]  ;;  %v410_v46 = vld [vmem:[%s10222_s20 + $0xe8] sm:$0xff]  ;;  %vm468_vm6 = vcmp.ge.f32.partialorder %v414_v61, 0.0 }
 0x115   : > { %8637 = vmatprep.subr.bf16.mxu1 %v10357_v62  ;;  %8603 = vmatpush3.bf16.msra.mxu0 %v8602_v22  ;;  %v2030_v48 = vld [vmem:[#allocation6 + $0xc0] sm:$0xff]  ;;  %v517_v37 = vmul.f32 0.2, %v409_v52  ;;  %vm463_vm15 = vcmp.ge.f32.partialorder %v409_v52, 0.0  ;;  %vm464_vm1 = vcmp.ge.f32.partialorder %v410_v46, 0.0  ;;  %v412_v22 = vld [vmem:[%s10222_s20 + $0xf8] sm:$0xff] }
 0x116   : > { %1609 = vmatmul.mubr.f32.gmra.mrb[52].mxu0 %v10318_v26  ;;  %8605 = vmatprep.subr.bf16.mxu0 %v8604_v3  ;;  %v8610_v26 = vpack.c.bf16 %v2013_v8, %v2012_v53  ;;  %v2018_v3 = vld [vmem:[#allocation6 + $0x60] sm:$0xff]  ;;  %v2036_v42 = vld [vmem:[#allocation6 + $0xf0] sm:$0xff]  ;;  %vm466_vm3 = vcmp.ge.f32.partialorder %v412_v22, 0.0  ;;  %v2412_v6 = vld [vmem:[#allocation6 + $0x298] sm:$0xff] }
 0x117   : > { %7771 = vmatmul.mubr.f32.gmra.mrb[36].mxu1 %v10601_v1  ;;  %1613 = vmatprep.mubr.f32.mxu0 %v10363_v5  ;;  %v8612_v1 = vpack.c.bf16 %v2031_v0, %v2030_v48  ;;  %v2015_v5 = vld [vmem:[#allocation6 + $0x48] sm:$0xff]  ;;  %v8624_v53 = vpack.c.bf16 %v2037_v50, %v2036_v42  ;;  %v2020_v8 = vld [vmem:[#allocation6 + $0x70] sm:$0xff]  ;;  %v2393_v0 = vld [vmem:[#allocation6 + $0x200] sm:$0xff] }
 0x118   : > { %8639 = vmatpush3.bf16.msra.mxu1 %v10357_v62  ;;  %7773 = vmatprep.mubr.f32.mxu1 %v10610_v7  ;;  %v2032_v62 = vld [vmem:[#allocation6 + $0xd0] sm:$0xff]  ;;  %v2033_v7 = vld [vmem:[#allocation6 + $0xd8] sm:$0xff]  ;;  %v8614_v63 = vpack.c.bf16 %v2015_v5, %v2014_v19 }
 0x119   : > { %8641 = vmatprep.subr.bf16.mxu1 %v10372_v12  ;;  %8607 = vmatpush3.bf16.msra.mxu0 %v8606_v4  ;;  %v520_v4 = vmul.f32 0.2, %v412_v22  ;;  %v416_v19 = vld [vmem:[%s10222_s20 + $0x118] sm:$0xff]  ;;  %v2415_v50 = vld [vmem:[#allocation6 + $0x2b0] sm:$0xff] }
 0x11a   : > { %1614 = vmatmul.mubr.f32.gmra.mrb[54].mxu0 %v10320_v27  ;;  %8609 = vmatprep.subr.bf16.mxu0 %v8608_v43  ;;  %v518_v27 = vmul.f32 0.2, %v410_v46  ;;  %vm470_vm8 = vcmp.ge.f32.partialorder %v416_v19, 0.0 }
 0x11b   : > { %7774 = vmatmul.mubr.f32.gmra.mrb[38].mxu1 %v10620_v58  ;;  %1618 = vmatprep.mubr.f32.mxu0 %v10379_v18  ;;  %v10715_v58 = vsel %vm463_vm15, %v409_v52, %v517_v37  ;;  %v8616_v18 = vpack.c.bf16 %v2033_v7, %v2032_v62  ;;  %v2021_v52 = vld [vmem:[#allocation6 + $0x78] sm:$0xff]  ;;  %v10750_v37 = vsel %vm465_vm2, %v411_v34, %v519_v29  ;;  %v417_v62 = vld [vmem:[%s10222_s20 + $0x120] sm:$0xff] }
 0x11c   : > { %8643 = vmatpush3.bf16.msra.mxu1 %v10372_v12  ;;  %7776 = vmatprep.mubr.f32.mxu1 %v10629_v59  ;;  %v2017_v12 = vld [vmem:[#allocation6 + $0x58] sm:$0xff]  ;;  %v2034_v59 = vld [vmem:[#allocation6 + $0xe0] sm:$0xff]  ;;  %v1479_v51 = vrot.slane %v10715_v58, 2  ;;  %v10724_v11 = vsel %vm464_vm1, %v410_v46, %v518_v27  ;;  %v2394_v46 = vld [vmem:[#allocation6 + $0x208] sm:$0xff]  ;;  %v8626_v7 = vpack.c.bf16 %v2021_v52, %v2020_v8  ;;  %vm471_vm9 = vcmp.ge.f32.partialorder %v417_v62, 0.0 }
 0x11d   : > { %8645 = vmatprep.subr.bf16.mxu1 %v10390_v30  ;;  %8611 = vmatpush3.bf16.msra.mxu0 %v8610_v26  ;;  %v2411_v26 = vld [vmem:[#allocation6 + $0x290] sm:$0xff]  ;;  %v418_v27 = vld [vmem:[%s10222_s20 + $0x128] sm:$0xff]  ;;  %v424_v8 = vld [vmem:[%s10222_s20 + $0x158] sm:$0xff] }
 0x11e   : > { %1619 = vmatmul.mubr.f32.gmra.mrb[56].mxu0 %v10348_v54  ;;  %8613 = vmatprep.subr.bf16.mxu0 %v8612_v1  ;;  %v1478_v54 = vrot.slane %v10713_v57, 2  ;;  %v10753_v1 = vsel %vm466_vm3, %v412_v22, %v520_v4  ;;  %vm472_vm10 = vcmp.ge.f32.partialorder %v418_v27, 0.0  ;;  %v420_v22 = vld [vmem:[%s10222_s20 + $0x138] sm:$0xff]  ;;  %vm478_vm1 = vcmp.ge.f32.partialorder %v424_v8, 0.0 }
 0x11f   : > { %7777 = vmatmul.mubr.f32.gmra.mrb[40].mxu1 %v10639_v56  ;;  %1623 = vmatprep.mubr.f32.mxu0 %v10397_v36  ;;  %v8618_v56 = vpack.c.bf16 %v2017_v12, %v2016_v28  ;;  %v8620_v36 = vpack.c.bf16 %v2035_v35, %v2034_v59  ;;  %v1964_v28 = vrot.slane %v10750_v37, 2  ;;  %v1965_v12 = vrot.slane %v10753_v1, 2  ;;  %v2413_v59 = vld [vmem:[#allocation6 + $0x2a0] sm:$0xff]  ;;  %v2414_v35 = vld [vmem:[#allocation6 + $0x2a8] sm:$0xff] }
 0x120   : > { %8647 = vmatpush3.bf16.msra.mxu1 %v10390_v30  ;;  %7779 = vmatprep.mubr.f32.mxu1 %v10648_v15  ;;  %v2019_v30 = vld [vmem:[#allocation6 + $0x68] sm:$0xff]  ;;  %v2409_v15 = vld [vmem:[#allocation6 + $0x280] sm:$0xff]  ;;  %v528_v4 = vmul.f32 0.2, %v420_v22  ;;  %vm474_vm12 = vcmp.ge.f32.partialorder %v420_v22, 0.0 }
 0x121   : > { %8649 = vmatprep.subr.bf16.mxu1 %v10411_v38  ;;  %8615 = vmatpush3.bf16.msra.mxu0 %v8614_v63  ;;  %v8622_v43 = vpack.c.bf16 %v2019_v30, %v2018_v3  ;;  %v8692_v48 = vpack.c.bf16 %v2410_v39, %v2409_v15  ;;  %v8660_v63 = vpack.c.bf16 %v2394_v46, %v2393_v0  ;;  %v2417_v46 = vld [vmem:[#allocation6 + $0x2c0] sm:$0xff] }
 0x122   : > { %1624 = vmatmul.mubr.f32.gmra.mrb[58].mxu0 %v10350_v55  ;;  %8617 = vmatprep.subr.bf16.mxu0 %v8616_v18  ;;  %v1481_v55 = vrot.slane %v10724_v11, 2  ;;  %v8696_v18 = vpack.c.bf16 %v2412_v6, %v2411_v26  ;;  %v8700_v30 = vpack.c.bf16 %v2414_v35, %v2413_v59  ;;  %v10817_v26 = vsel %vm474_vm12, %v420_v22, %v528_v4  ;;  %v2419_v59 = vld [vmem:[#allocation6 + $0x2d0] sm:$0xff]  ;;  %v2420_v35 = vld [vmem:[#allocation6 + $0x2d8] sm:$0xff] }
 0x123   : > { %7780 = vmatmul.mubr.f32.gmra.mrb[42].mxu1 %v10658_v13  ;;  %1628 = vmatprep.mubr.f32.mxu0 %v10428_v2  ;;  %v10736_v13 = vsel %vm685_vm4, %v1478_v54, %v1479_v51  ;;  %v413_v2 = vld [vmem:[%s10222_s20 + $0x100] sm:$0xff]  ;;  %v524_v54 = vmul.f32 0.2, %v416_v19 }
 0x124   : > { %8651 = vmatpush3.bf16.msra.mxu1 %v10411_v38  ;;  %7782 = vmatprep.mubr.f32.mxu1 %v10667_v31  ;;  %v415_v38 = vld [vmem:[%s10222_s20 + $0x110] sm:$0xff]  ;;  %vm467_vm5 = vcmp.ge.f32.partialorder %v413_v2, 0.0 }
 0x125   : > { %8653 = vmatprep.subr.bf16.mxu1 %v10441_v14  ;;  %8619 = vmatpush3.bf16.msra.mxu0 %v8618_v56  ;;  %v523_v5 = vmul.f32 0.2, %v415_v38  ;;  %vm469_vm7 = vcmp.ge.f32.partialorder %v415_v38, 0.0  ;;  %v421_v56 = vld [vmem:[%s10222_s20 + $0x140] sm:$0xff]  ;;  %v10789_v42 = vsel %vm470_vm8, %v416_v19, %v524_v54 }
 0x126   : > { %1629 = vmatmul.mubr.f32.gmra.mrb[60].mxu0 %v10382_v21  ;;  %8621 = vmatprep.subr.bf16.mxu0 %v8620_v36  ;;  %v10747_v21 = vsel %vm685_vm4, %v1479_v51, %v1481_v55  ;;  %v10782_v36 = vsel %vm685_vm4, %v1964_v28, %v1965_v12  ;;  %v422_v55 = vld [vmem:[%s10222_s20 + $0x148] sm:$0xff]  ;;  %vm475_vm13 = vcmp.ge.f32.partialorder %v421_v56, 0.0 }
 0x127   : > { %7783 = vmatmul.mubr.f32.gmra.mrb[44].mxu1 %v10675_v17  ;;  %1633 = vmatprep.mubr.f32.mxu0 %v10448_v20  ;;  %v521_v20 = vmul.f32 0.2, %v413_v2  ;;  %v10773_v34 = vsel %vm469_vm7, %v415_v38, %v523_v5  ;;  %vm476_vm14 = vcmp.ge.f32.partialorder %v422_v55, 0.0  ;;  %v425_v5 = vld [vmem:[%s10222_s20 + $0x160] sm:$0xff] }
 0x128   : > { %8655 = vmatpush3.bf16.msra.mxu1 %v10441_v14  ;;  %7785 = vmatprep.mubr.f32.mxu1 %v10736_v13  ;;  %v522_v14 = vmul.f32 0.2, %v414_v61  ;;  %v1970_v15 = vrot.slane %v10773_v34, 2  ;;  %vm479_vm2 = vcmp.ge.f32.partialorder %v425_v5, 0.0 }
 0x129   : > { %8657 = vmatprep.subr.bf16.mxu1 %v10458_v33  ;;  %8623 = vmatpush3.bf16.msra.mxu0 %v8622_v43  ;;  %v1972_v43 = vrot.slane %v10789_v42, 2 }
 0x12a   : > { %1634 = vmatmul.mubr.f32.gmra.mrb[62].mxu0 %v10384_v23  ;;  %8625 = vmatprep.subr.bf16.mxu0 %v8624_v53  ;;  %v10767_v23 = vsel %vm467_vm5, %v413_v2, %v521_v20  ;;  %v10770_v51 = vsel %vm468_vm6, %v414_v61, %v522_v14  ;;  %v529_v2 = vmul.f32 0.2, %v421_v56  ;;  %v423_v53 = vld [vmem:[%s10222_s20 + $0x150] sm:$0xff]  ;;  %v2418_v20 = vld [vmem:[#allocation6 + $0x2c8] sm:$0xff]  ;;  %v532_v14 = vmul.f32 0.2, %v424_v8 }
 0x12b   : > { %7786 = vmatmul.mubr.f32.gmra.mrb[46].mxu1 %v10747_v21  ;;  %1638 = vmatprep.mubr.f32.mxu0 %v10465_v41  ;;  %v525_v41 = vmul.f32 0.2, %v417_v62  ;;  %v1967_v3 = vrot.slane %v10767_v23, 2  ;;  %v531_v19 = vmul.f32 0.2, %v423_v53  ;;  %vm477_vm15 = vcmp.ge.f32.partialorder %v423_v53, 0.0 }
 0x12c   : > { %8659 = vmatpush3.bf16.msra.mxu1 %v10458_v33  ;;  %7820 = vmatprep.mubr.f32.mxu1 %v10667_v31  ;;  %v526_v33 = vmul.f32 0.2, %v418_v27  ;;  %v419_v31 = vld [vmem:[%s10222_s20 + $0x130] sm:$0xff]  ;;  %v10820_v6 = vsel %vm475_vm13, %v421_v56, %v529_v2  ;;  %v10846_v22 = vsel %vm478_vm1, %v424_v8, %v532_v14 }
 0x12d   : > { %8693 = vmatprep.subr.bf16.mxu1 %v8692_v48  ;;  %8627 = vmatpush3.bf16.msra.mxu0 %v8626_v7  ;;  %v527_v29 = vmul.f32 0.2, %v419_v31  ;;  %vm473_vm11 = vcmp.ge.f32.partialorder %v419_v31, 0.0  ;;  %v10802_v61 = vsel %vm685_vm4, %v1965_v12, %v1967_v3  ;;  %v10827_v7 = vsel %vm685_vm4, %v1970_v15, %v1972_v43 }
 0x12e   : > { %1639 = vmatmul.mubr.f32.gmra.mrb[64].mxu0 %v10435_v9  ;;  %8661 = vmatprep.subr.bf16.mxu0 %v8660_v63  ;;  %v1969_v9 = vrot.slane %v10770_v51, 2  ;;  %v10796_v39 = vsel %vm472_vm10, %v418_v27, %v526_v33  ;;  %v426_v27 = vld [vmem:[%s10222_s20 + $0x168] sm:$0xff]  ;;  %v427_v63 = vld [vmem:[%s10222_s20 + $0x170] sm:$0xff]  ;;  %v1980_v28 = vrot.slane %v10820_v6, 2  ;;  %v533_v33 = vmul.f32 0.2, %v425_v5 }
 0x12f   : > { %7821 = vmatmul.mubr.f32.vlgmr.msra.gmra.mrb[48].mxu1 %v10675_v17  ;;  %1643 = vmatprep.mubr.f32.mxu0 %v10483_v44  ;;  %v2416_v17 = vld [vmem:[#allocation6 + $0x2b8] sm:$0xff]  ;;  %v10792_v44 = vsel %vm471_vm9, %v417_v62, %v525_v41  ;;  %v10814_v0 = vsel %vm473_vm11, %v419_v31, %v527_v29  ;;  %v12378_v62 = vld [vmem:[#allocation19_spill] sm:$0xff]  ;;  %v8708_v41 = vpack.c.bf16 %v2418_v20, %v2417_v46  ;;  %v534_v56 = vmul.f32 0.2, %v426_v27 }
 0x130   : > { %8695 = vmatpush3.bf16.msra.mxu1 %v8692_v48  ;;  %7823 = vmatprep.mubr.f32.mxu1 %v10736_v13  ;;  %v8704_v38 = vpack.c.bf16 %v2416_v17, %v2415_v50  ;;  %v1974_v52 = vrot.slane %v10792_v44, 2  ;;  %v1975_v48 = vrot.slane %v10796_v39, 2  ;;  %v10843_v31 = vsel %vm477_vm15, %v423_v53, %v531_v19  ;;  %v2422_v53 = vld [vmem:[#allocation6 + $0x2e8] sm:$0xff] }
 0x131   : > { %8697 = vmatprep.subr.bf16.mxu1 %v8696_v18  ;;  %v535_v3 = vmul.f32 0.2, %v427_v63  ;;  %v8712_v50 = vpack.c.bf16 %v2420_v35, %v2419_v59  ;;  %vm480_vm3 = vcmp.ge.f32.partialorder %v426_v27, 0.0  ;;  %vm481_vm5 = vcmp.ge.f32.partialorder %v427_v63, 0.0  ;;  %v2424_v59 = vld [vmem:[#allocation6 + $0x2f8] sm:$0xff] }
 0x132   : > { %1644 = vmatmul.mubr.f32.gmra.mrb[66].mxu0 %v10437_v10  ;;  %v10809_v10 = vsel %vm685_vm4, %v1969_v9, %v1970_v15  ;;  %v10839_v54 = vsel %vm685_vm4, %v1974_v52, %v1975_v48  ;;  %v12379_v9 = vld [vmem:[#allocation20_spill] sm:$0xff]  ;;  %v1472_v29 = vrot.slane %v10715_v58, 1  ;;  %v1984_v4 = vrot.slane %v10843_v31, 2 }
 0x133   : > { %7824 = vmatmul.mubr.f32.gmra.mrb[50].mxu1 %v10747_v21  ;;  %1648 = vmatprep.mubr.f32.mxu0 %v10497_v16  ;;  %v530_v16 = vmul.f32 0.2, %v422_v55  ;;  %v1985_v2 = vrot.slane %v10846_v22, 2  ;;  %v10864_v43 = vsel %vm479_vm2, %v425_v5, %v533_v33  ;;  %v10868_v52 = vsel %vm480_vm3, %v426_v27, %v534_v56 }
 0x134   : > { %8699 = vmatpush3.bf16.msra.mxu1 %v8696_v18  ;;  %7826 = vmatprep.mubr.f32.mxu1 %v10782_v36  ;;  %v1979_v18 = vrot.slane %v10817_v26, 2  ;;  %v1987_v19 = vrot.slane %v10864_v43, 2  ;;  %v1474_v5 = vrot.slane %v10724_v11, 1  ;;  %v1989_v27 = vrot.slane %v10868_v52, 2 }
 0x135   : > { %8701 = vmatprep.subr.bf16.mxu1 %v8700_v30  ;;  %v10836_v12 = vsel %vm476_vm14, %v422_v55, %v530_v16  ;;  %v1471_v55 = vrot.slane %v10713_v57, 1  ;;  %v12380_v16 = vld [vmem:[#allocation21_spill] sm:$0xff] }
 0x136   : > { %1649 = vmatmul.mubr.f32.gmra.mrb[68].mxu0 %v10470_v45  ;;  %v1977_v45 = vrot.slane %v10814_v0, 2  ;;  %v1982_v15 = vrot.slane %v10836_v12, 2  ;;  %v10857_v17 = vsel %vm685_vm4, %v1979_v18, %v1980_v28  ;;  %v12381_v18 = vld [vmem:[#allocation18_spill] sm:$0xff]  ;;  %v10896_v11 = vsel %vm685_vm4, %v1985_v2, %v1987_v19 }
 0x137   : > { %7827 = vmatmul.mubr.f32.gmra.mrb[52].mxu1 %v10802_v61  ;;  %1653 = vmatprep.mubr.f32.mxu0 %v12378_v62  ;;  %v10880_v20 = vsel %vm628_vm0, %v1471_v55, %v1472_v29  ;;  %v10885_v62 = vsel %vm685_vm4, %v1984_v4, %v1985_v2  ;;  %v10899_v35 = vsel %vm628_vm0, %v1472_v29, %v1474_v5  ;;  %v2396_v55 = vld [vmem:[#allocation6 + $0x218] sm:$0xff]  ;;  %v12382_v29 = vld [vmem:[#allocation17_spill] sm:$0xff]  ;;  %v2398_v19 = vld [vmem:[#allocation6 + $0x228] sm:$0xff] }
 0x138   : > { %8703 = vmatpush3.bf16.msra.mxu1 %v8700_v30  ;;  %7829 = vmatprep.mubr.f32.mxu1 %v10809_v10  ;;  %v428_v30 = vld [vmem:[%s10222_s20 + $0x178] sm:$0xff]  ;;  %v10876_v46 = vsel %vm685_vm4, %v1980_v28, %v1982_v15  ;;  %v2423_v28 = vld [vmem:[#allocation6 + $0x2f0] sm:$0xff]  ;;  %v2381_v5 = vld [vmem:[#allocation6 + $0x1a0] sm:$0xff] }
 0x139   : > { %8705 = vmatprep.subr.bf16.mxu1 %v8704_v38  ;;  %v536_v8 = vmul.f32 0.2, %v428_v30  ;;  %vm482_vm6 = vcmp.ge.f32.partialorder %v428_v30, 0.0  ;;  %v8720_v56 = vpack.c.bf16 %v2424_v59, %v2423_v28  ;;  %v2378_v15 = vld [vmem:[#allocation6 + $0x188] sm:$0xff]  ;;  %v1922_v28 = vrot.slane %v10750_v37, 1  ;;  %v12386_v59 = vld [vmem:[#allocation25_spill] sm:$0xff] }
 0x13a   : > { %1654 = vmatmul.mubr.f32.gmra.mrb[70].mxu0 %v10472_v47  ;;  %v10854_v47 = vsel %vm685_vm4, %v1975_v48, %v1977_v45  ;;  %v10871_v48 = vsel %vm481_vm5, %v427_v63, %v535_v3 }
 0x13b   : > { %7830 = vmatmul.mubr.f32.gmra.mrb[54].mxu1 %v10827_v7  ;;  %1658 = vmatprep.mubr.f32.mxu0 %v12379_v9  ;;  %v1990_v63 = vrot.slane %v10871_v48, 2  ;;  %v10889_v45 = vsel %vm482_vm6, %v428_v30, %v536_v8  ;;  %v2377_v30 = vld [vmem:[#allocation6 + $0x180] sm:$0xff] }
 0x13c   : > { %8707 = vmatpush3.bf16.msra.mxu1 %v8704_v38  ;;  %7832 = vmatprep.mubr.f32.mxu1 %v10839_v54  ;;  %v2421_v38 = vld [vmem:[#allocation6 + $0x2e0] sm:$0xff]  ;;  %v8662_v4 = vpack.c.bf16 %v2378_v15, %v2377_v30  ;;  %v2383_v15 = vld [vmem:[#allocation6 + $0x1b0] sm:$0xff] }
 0x13d   : > { %8709 = vmatprep.subr.bf16.mxu1 %v8708_v41  ;;  %v8716_v14 = vpack.c.bf16 %v2422_v53, %v2421_v38  ;;  %v10903_v33 = vsel %vm685_vm4, %v1989_v27, %v1990_v63  ;;  %v2379_v38 = vld [vmem:[#allocation6 + $0x190] sm:$0xff]  ;;  %v2380_v53 = vld [vmem:[#allocation6 + $0x198] sm:$0xff]  ;;  %v2397_v8 = vld [vmem:[#allocation6 + $0x220] sm:$0xff] }
 0x13e   : > { %1659 = vmatmul.mubr.f32.gmra.mrb[72].mxu0 %v10501_v24  ;;  %v2382_v27 = vld [vmem:[#allocation6 + $0x1a8] sm:$0xff] }
 0x13f   : > { %7833 = vmatmul.mubr.f32.gmra.mrb[56].mxu1 %v10854_v47  ;;  %1663 = vmatprep.mubr.f32.mxu0 %v12380_v16 }
 0x140   : > { %8711 = vmatpush3.bf16.msra.mxu1 %v8708_v41  ;;  %7835 = vmatprep.mubr.f32.mxu1 %v10857_v17  ;;  %v1992_v41 = vrot.slane %v10889_v45, 2 }
 0x141   : > { %8713 = vmatprep.subr.bf16.mxu1 %v8712_v50 }
 0x142   : > { %1664 = vmatmul.mubr.f32.gmra.mrb[74].mxu0 %v12381_v18  ;;  %v10910_v3 = vsel %vm685_vm4, %v1990_v63, %v1992_v41  ;;  %v12385_v63 = vld [vmem:[#allocation24_spill] sm:$0xff]  ;;  %v8670_v41 = vpack.c.bf16 %v2382_v27, %v2381_v5  ;;  %v10947_v5 = vld [vmem:[#allocation6 + $0x1c0] sm:$0xff]  ;;  %v10949_v27 = vld [vmem:[#allocation6 + $0x1c8] sm:$0xff] }
 0x143   : > { %7836 = vmatmul.mubr.f32.gmra.mrb[58].mxu1 %v10876_v46  ;;  %1668 = vmatprep.mubr.f32.mxu0 %v10880_v20 }
 0x144   : > { %8715 = vmatpush3.bf16.msra.mxu1 %v8712_v50  ;;  %7838 = vmatprep.mubr.f32.mxu1 %v10885_v62  ;;  %v2395_v50 = vld [vmem:[#allocation6 + $0x210] sm:$0xff] }
 0x145   : > { %8717 = vmatprep.subr.bf16.mxu1 %v8716_v14  ;;  %v8664_v2 = vpack.c.bf16 %v2396_v55, %v2395_v50  ;;  %v2384_v50 = vld [vmem:[#allocation6 + $0x1b8] sm:$0xff] }
 0x146   : > { %1669 = vmatmul.mubr.f32.gmra.mrb[76].mxu0 %v10713_v57  ;;  %v430_v55 = vld [vmem:[%s10222_s20 + $0x188] sm:$0xff] }
 0x147   : > { %7839 = vmatmul.mubr.f32.gmra.mrb[60].mxu1 %v10896_v11  ;;  %1673 = vmatprep.mubr.f32.mxu0 %v10899_v35  ;;  %vm484_vm8 = vcmp.ge.f32.partialorder %v430_v55, 0.0 }
 0x148   : > { %8719 = vmatpush3.bf16.msra.mxu1 %v8716_v14  ;;  %7841 = vmatprep.mubr.f32.mxu1 %v10903_v33  ;;  %v12384_v14 = vld [vmem:[#allocation23_spill] sm:$0xff] }
 0x149   : > { %8721 = vmatprep.subr.bf16.mxu1 %v8720_v56 }
 0x14a   : > { %1674 = vmatmul.mubr.f32.gmra.mrb[78].mxu0 %v10715_v58 }
 0x14b   : > { %7842 = vmatmul.mubr.f32.gmra.mrb[62].mxu1 %v10910_v3  ;;  %2118 = vmatprep.mubr.f32.mxu0 %v12379_v9  ;;  %v12383_v9 = vld [vmem:[#allocation22_spill] sm:$0xff] }
 0x14c   : > { %8723 = vmatpush3.bf16.msra.mxu1 %v8720_v56  ;;  %7876 = vmatprep.mubr.f32.mxu1 %v10736_v13  ;;  %v8666_v13 = vpack.c.bf16 %v2380_v53, %v2379_v38  ;;  %v429_v56 = vld [vmem:[%s10222_s20 + $0x180] sm:$0xff]  ;;  %v1925_v53 = vrot.slane %v10767_v23, 1 }
 0x14d   : > { %8725 = vmatprep.subr.bf16.mxu1 %v12382_v29  ;;  %v2401_v29 = vld [vmem:[#allocation6 + $0x240] sm:$0xff]  ;;  %vm483_vm7 = vcmp.ge.f32.partialorder %v429_v56, 0.0  ;;  %v10953_v23 = vld [vmem:[#allocation6 + $0x250] sm:$0xff] }
 0x14e   : > { %2119 = vmatmul.mubr.f32.vlgmr.msra.gmra.mrb[80].mxu0 %v10501_v24  ;;  %v8668_v24 = vpack.c.bf16 %v2398_v19, %v2397_v8  ;;  %v12388_v8 = vld [vmem:[#allocation27_spill] sm:$0xff] }
 0x14f   : > { %7877 = vmatmul.mubr.f32.vlgmr.msra.gmra.mrb[48].mxu1 %v10747_v21  ;;  %2123 = vmatprep.mubr.f32.mxu0 %v12380_v16  ;;  %v2399_v21 = vld [vmem:[#allocation6 + $0x230] sm:$0xff]  ;;  %v2400_v16 = vld [vmem:[#allocation6 + $0x238] sm:$0xff] }
 0x150   : > { %8727 = vmatpush3.bf16.msra.mxu1 %v12383_v9  ;;  %7879 = vmatprep.mubr.f32.mxu1 %v10782_v36  ;;  %v8672_v30 = vpack.c.bf16 %v2400_v16, %v2399_v21  ;;  %v10944_v19 = vld [vmem:[%s10222_s20 + $0x190] sm:$0xff]  ;;  %v8674_v9 = vpack.c.bf16 %v2384_v50, %v2383_v15  ;;  %v10955_v21 = vld [vmem:[#allocation6 + $0x258] sm:$0xff]  ;;  %v8678_v15 = vpack.c.bf16 %v10949_v27, %v10947_v5 }
 0x151   : > { %8729 = vmatprep.subr.bf16.mxu1 %v12384_v14  ;;  %8663 = vmatpush3.bf16.msra.mxu0 %v8662_v4  ;;  %v2402_v4 = vld [vmem:[#allocation6 + $0x248] sm:$0xff]  ;;  %v537_v14 = vmul.f32 0.2, %v429_v56  ;;  %v12389_v16 = vld [vmem:[#allocation28_spill] sm:$0xff]  ;;  %vm485_vm9 = vcmp.ge.f32.partialorder %v10944_v19, 0.0 }
 0x152   : > { %2124 = vmatmul.mubr.f32.gmra.mrb[82].mxu0 %v12381_v18  ;;  %8665 = vmatprep.subr.bf16.mxu0 %v8664_v2  ;;  %v1923_v18 = vrot.slane %v10753_v1, 1  ;;  %v12387_v2 = vld [vmem:[#allocation26_spill] sm:$0xff] }
 0x153   : > { %7880 = vmatmul.mubr.f32.gmra.mrb[50].mxu1 %v10802_v61  ;;  %2128 = vmatprep.mubr.f32.mxu0 %v10880_v20  ;;  %v10970_v50 = vsel %vm483_vm7, %v429_v56, %v537_v14  ;;  %v9969_v56 = vmov 0.0   ;;  %v1930_v14 = vrot.slane %v10789_v42, 1 }
 0x154   : > { %8731 = vmatpush3.bf16.msra.mxu1 %v12385_v63  ;;  %7882 = vmatprep.mubr.f32.mxu1 %v10809_v10  ;;  %v10939_v38 = vsel %vm628_vm0, %v1922_v28, %v1923_v18  ;;  %v10960_v63 = vsel %vm628_vm0, %v1923_v18, %v1925_v53  ;;  %v1927_v28 = vrot.slane %v10770_v51, 1  ;;  %v10982_v53 = vld [vmem:[#allocation6 + $0x260] sm:$0xff]  ;;  %341 = vst [vmem:[#allocation2] sm:$0xff] %v9969_v56  ;;  %342 = vst [vmem:[#allocation2 + $0x8] sm:$0xff] %v9969_v56 }
 0x155   : > { %8733 = vmatprep.subr.bf16.mxu1 %v12386_v59  ;;  %8667 = vmatpush3.bf16.msra.mxu0 %v8666_v13  ;;  %v538_v13 = vmul.f32 0.2, %v430_v55  ;;  %v1928_v59 = vrot.slane %v10773_v34, 1  ;;  %343 = vst [vmem:[#allocation2 + $0x10] sm:$0xff] %v9969_v56  ;;  %345 = vst [vmem:[#allocation2 + $0x198] sm:$0xff] %v9969_v56 }
 0x156   : > { %2129 = vmatmul.mubr.f32.gmra.mrb[84].mxu0 %v10713_v57  ;;  %8669 = vmatprep.subr.bf16.mxu0 %v8668_v24  ;;  %v8676_v24 = vpack.c.bf16 %v2402_v4, %v2401_v29  ;;  %v8680_v29 = vpack.c.bf16 %v10955_v21, %v10953_v23  ;;  %v10976_v4 = vld [vmem:[#allocation6 + $0x1d0] sm:$0xff]  ;;  %346 = vst [vmem:[#allocation2 + $0x1a0] sm:$0xff] %v9969_v56  ;;  %347 = vst [vmem:[#allocation2 + $0x1a8] sm:$0xff] %v9969_v56  ;;  %v2389_v21 = vld [vmem:[#allocation6 + $0x1e0] sm:$0xff] }
 0x157   : > { %7883 = vmatmul.mubr.f32.gmra.mrb[52].mxu1 %v10827_v7  ;;  %2133 = vmatprep.mubr.f32.mxu0 %v10899_v35  ;;  %v10972_v18 = vsel %vm484_vm8, %v430_v55, %v538_v13  ;;  %349 = vst [vmem:[#allocation2 + $0x18] sm:$0x1] %v9969_v56  ;;  %350 = vst [vmem:[#allocation2 + $0x30] sm:$0x1] %v9969_v56  ;;  %v12391_v55 = vld [vmem:[#allocation30_spill] sm:$0xff]  ;;  %v12392_v13 = vld [vmem:[#allocation31_spill] sm:$0xff] }
 0x158   : > { %8735 = vmatpush3.bf16.msra.mxu1 %v12387_v2  ;;  %7885 = vmatprep.mubr.f32.mxu1 %v10839_v54  ;;  %v10978_v2 = vld [vmem:[#allocation6 + $0x1d8] sm:$0xff]  ;;  %351 = vst [vmem:[#allocation2 + $0x48] sm:$0x1] %v9969_v56  ;;  %352 = vst [vmem:[#allocation2 + $0x60] sm:$0x1] %v9969_v56  ;;  %v2371_v5 = vrot.slane %v10972_v18, 2 }
 0x159   : > { %8737 = vmatprep.subr.bf16.mxu1 %v12388_v8  ;;  %8671 = vmatpush3.bf16.msra.mxu0 %v8670_v41  ;;  %v12390_v41 = vld [vmem:[#allocation29_spill] sm:$0xff]  ;;  %v10984_v8 = vld [vmem:[#allocation6 + $0x268] sm:$0xff]  ;;  %353 = vst [vmem:[#allocation2 + $0x78] sm:$0x1] %v9969_v56  ;;  %354 = vst [vmem:[#allocation2 + $0x90] sm:$0x1] %v9969_v56  ;;  %v8682_v23 = vpack.c.bf16 %v10978_v2, %v10976_v4 }
 0x15a   : > { %2134 = vmatmul.mubr.f32.gmra.mrb[86].mxu0 %v10715_v58  ;;  %8673 = vmatprep.subr.bf16.mxu0 %v8672_v30  ;;  %v539_v30 = vmul.f32 0.2, %v10944_v19  ;;  %355 = vst [vmem:[#allocation2 + $0xa8] sm:$0x1] %v9969_v56  ;;  %356 = vst [vmem:[#allocation2 + $0xc0] sm:$0x1] %v9969_v56  ;;  %v8684_v42 = vpack.c.bf16 %v10984_v8, %v10982_v53 }
 0x15b   : > { %7886 = vmatmul.mubr.f32.gmra.mrb[54].mxu1 %v10854_v47  ;;  %2138 = vmatprep.mubr.f32.mxu0 %v10939_v38  ;;  %357 = vst [vmem:[#allocation2 + $0xd8] sm:$0x1] %v9969_v56  ;;  %358 = vst [vmem:[#allocation2 + $0xf0] sm:$0x1] %v9969_v56  ;;  %v2780_v2 = vld [vmem:[#allocation6 + $0x400] sm:$0xff]  ;;  %v2781_v53 = vld [vmem:[#allocation6 + $0x408] sm:$0xff] }
 0x15c   : > { %8739 = vmatpush3.bf16.msra.mxu1 %v12389_v16  ;;  %7888 = vmatprep.mubr.f32.mxu1 %v10857_v17  ;;  %359 = vst [vmem:[#allocation2 + $0x108] sm:$0x1] %v9969_v56  ;;  %360 = vst [vmem:[#allocation2 + $0x120] sm:$0x1] %v9969_v56  ;;  %v11000_v27 = vsel %vm485_vm9, %v10944_v19, %v539_v30  ;;  %v2390_v16 = vld [vmem:[#allocation6 + $0x1e8] sm:$0xff]  ;;  %v11014_v19 = vsel %vm628_vm0, %v1928_v59, %v1930_v14  ;;  %v2391_v8 = vld [vmem:[#allocation6 + $0x1f0] sm:$0xff] }
 0x15d   : > { %8741 = vmatprep.subr.bf16.mxu1 %v12390_v41  ;;  %8675 = vmatpush3.bf16.msra.mxu0 %v8674_v9  ;;  %361 = vst [vmem:[#allocation2 + $0x138] sm:$0x1] %v9969_v56  ;;  %362 = vst [vmem:[#allocation2 + $0x150] sm:$0x1] %v9969_v56  ;;  %v10991_v9 = vsel %vm628_vm0, %v1927_v28, %v1928_v59  ;;  %v2407_v28 = vld [vmem:[#allocation6 + $0x270] sm:$0xff]  ;;  %v2408_v41 = vld [vmem:[#allocation6 + $0x278] sm:$0xff] }
 0x15e   : > { %2139 = vmatmul.mubr.f32.gmra.mrb[88].mxu0 %v10750_v37  ;;  %8677 = vmatprep.subr.bf16.mxu0 %v8676_v24  ;;  %363 = vst [vmem:[#allocation2 + $0x168] sm:$0x1] %v9969_v56  ;;  %364 = vst [vmem:[#allocation2 + $0x180] sm:$0x1] %v9969_v56  ;;  %v2370_v24 = vrot.slane %v10970_v50, 2  ;;  %v2373_v30 = vrot.slane %v11000_v27, 2  ;;  %v8688_v59 = vpack.c.bf16 %v2408_v41, %v2407_v28 }
 0x15f   : > { %7889 = vmatmul.mubr.f32.gmra.mrb[56].mxu1 %v10876_v46  ;;  %2143 = vmatprep.mubr.f32.mxu0 %v10960_v63  ;;  %365 = vst [vmem:[#allocation2 + $0x29] sm:$0x1] %v9969_v56  ;;  %366 = vst [vmem:[#allocation2 + $0x41] sm:$0x1] %v9969_v56  ;;  %v3239_v14 = vld [vmem:[#allocation8 + $0x88] sm:$0xff]  ;;  %v2784_v41 = vld [vmem:[#allocation6 + $0x420] sm:$0xff] }
 0x160   : > { %367 = vst [vmem:[#allocation2 + $0x59] sm:$0x1] %v9969_v56  ;;  %368 = vst [vmem:[#allocation2 + $0x71] sm:$0x1] %v9969_v56  ;;  %8743 = vmatpush3.bf16.msra.mxu1 %v12391_v55  ;;  %7891 = vmatprep.mubr.f32.mxu1 %v10885_v62  ;;  %v11021_v4 = vsel %vm685_vm4, %v2370_v24, %v2371_v5  ;;  %v3238_v55 = vld [vmem:[#allocation8 + $0x80] sm:$0xff]  ;;  %v1935_v24 = vrot.slane %v10814_v0, 1 }
 0x161   : > { %369 = vst [vmem:[#allocation2 + $0x89] sm:$0x1] %v9969_v56  ;;  %370 = vst [vmem:[#allocation2 + $0xa1] sm:$0x1] %v9969_v56  ;;  %8745 = vmatprep.subr.bf16.mxu1 %v12392_v13  ;;  %8679 = vmatpush3.bf16.msra.mxu0 %v8678_v15  ;;  %v1932_v15 = vrot.slane %v10792_v44, 1  ;;  %v1937_v0 = vrot.slane %v10817_v26, 1 }
 0x162   : > { %371 = vst [vmem:[#allocation2 + $0xb9] sm:$0x1] %v9969_v56  ;;  %372 = vst [vmem:[#allocation2 + $0xd1] sm:$0x1] %v9969_v56  ;;  %2144 = vmatmul.mubr.f32.gmra.mrb[90].mxu0 %v10753_v1  ;;  %8681 = vmatprep.subr.bf16.mxu0 %v8680_v29  ;;  %v1933_v29 = vrot.slane %v10796_v39, 1 }
 0x163   : > { %373 = vst [vmem:[#allocation2 + $0xe9] sm:$0x1] %v9969_v56  ;;  %374 = vst [vmem:[#allocation2 + $0x101] sm:$0x1] %v9969_v56  ;;  %7892 = vmatmul.mubr.f32.gmra.mrb[58].mxu1 %v10896_v11  ;;  %2148 = vmatprep.mubr.f32.mxu0 %v10991_v9 }
 0x164   : > { %375 = vst [vmem:[#allocation2 + $0x119] sm:$0x1] %v9969_v56  ;;  %376 = vst [vmem:[#allocation2 + $0x131] sm:$0x1] %v9969_v56  ;;  %8747 = vmatpush3.bf16.msra.mxu1 %v10635_v49  ;;  %7894 = vmatprep.mubr.f32.mxu1 %v10903_v33  ;;  %v8686_v49 = vpack.c.bf16 %v2390_v16, %v2389_v21  ;;  %v11032_v13 = vsel %vm628_vm0, %v1932_v15, %v1933_v29  ;;  %v2782_v21 = vld [vmem:[#allocation6 + $0x410] sm:$0xff]  ;;  %v2783_v16 = vld [vmem:[#allocation6 + $0x418] sm:$0xff] }
 0x165   : > { %377 = vst [vmem:[#allocation2 + $0x149] sm:$0x1] %v9969_v56  ;;  %378 = vst [vmem:[#allocation2 + $0x161] sm:$0x1] %v9969_v56  ;;  %8749 = vmatprep.subr.bf16.mxu1 %v10644_v60  ;;  %8683 = vmatpush3.bf16.msra.mxu0 %v8682_v23  ;;  %v11029_v60 = vsel %vm685_vm4, %v2371_v5, %v2373_v30  ;;  %v8756_v23 = vpack.c.bf16 %v2781_v53, %v2780_v2  ;;  %v1938_v5 = vrot.slane %v10820_v6, 1  ;;  %v2785_v30 = vld [vmem:[#allocation6 + $0x428] sm:$0xff] }
 0x166   : > { %379 = vst [vmem:[#allocation2 + $0x179] sm:$0x1] %v9969_v56  ;;  %380 = vst [vmem:[#allocation2 + $0x191] sm:$0x1] %v9969_v56  ;;  %2149 = vmatmul.mubr.f32.gmra.mrb[92].mxu0 %v10770_v51  ;;  %8685 = vmatprep.subr.bf16.mxu0 %v8684_v42  ;;  %v2392_v56 = vld [vmem:[#allocation6 + $0x1f8] sm:$0xff]  ;;  %v8760_v28 = vpack.c.bf16 %v2783_v16, %v2782_v21  ;;  %v1940_v15 = vrot.slane %v10836_v12, 1 }
 0x167   : > { %12393 = vst [vmem:[#allocation19_spill] sm:$0xff] %v11021_v4  ;;  %7895 = vmatmul.mubr.f32.gmra.mrb[60].mxu1 %v10910_v3  ;;  %2153 = vmatprep.mubr.f32.mxu0 %v11014_v19  ;;  %12394 = vst [vmem:[#allocation20_spill] sm:$0xff] %v11029_v60  ;;  %v8690_v42 = vpack.c.bf16 %v2392_v56, %v2391_v8  ;;  %v2786_v2 = vld [vmem:[#allocation6 + $0x430] sm:$0xff]  ;;  %v1943_v12 = vrot.slane %v10846_v22, 1  ;;  %v2788_v56 = vld [vmem:[#allocation6 + $0x440] sm:$0xff] }
 0x168   : > { %8751 = vmatpush3.bf16.msra.mxu1 %v10654_v32  ;;  %7897 = vmatprep.mubr.f32.mxu1 %v11021_v4  ;;  %v11037_v32 = vpack.c.bf16 %v3239_v14, %v3238_v55  ;;  %v11062_v53 = vsel %vm628_vm0, %v1938_v5, %v1940_v15  ;;  %v2789_v55 = vld [vmem:[#allocation6 + $0x448] sm:$0xff]  ;;  %v2791_v21 = vld [vmem:[#allocation6 + $0x458] sm:$0xff]  ;;  %v1950_v15 = vrot.slane %v10889_v45, 1 }
 0x169   : > { %8753 = vmatprep.subr.bf16.mxu1 %v10663_v25  ;;  %8687 = vmatpush3.bf16.msra.mxu0 %v8686_v49  ;;  %v11044_v25 = vsel %vm628_vm0, %v1933_v29, %v1935_v24  ;;  %v8764_v29 = vpack.c.bf16 %v2785_v30, %v2784_v41  ;;  %v2787_v49 = vld [vmem:[#allocation6 + $0x438] sm:$0xff]  ;;  %v1945_v24 = vrot.slane %v10864_v43, 1  ;;  %v2793_v41 = vld [vmem:[#allocation6 + $0x468] sm:$0xff] }
 0x16a   : > { %2154 = vmatmul.mubr.f32.gmra.mrb[94].mxu0 %v10773_v34  ;;  %8689 = vmatprep.subr.bf16.mxu0 %v8688_v59  ;;  %12395 = vst [vmem:[#allocation21_spill] sm:$0xff] %v11037_v32  ;;  %v1942_v59 = vrot.slane %v10843_v31, 1  ;;  %v8768_v8 = vpack.c.bf16 %v2787_v49, %v2786_v2 }
 0x16b   : > { %7898 = vmatmul.mubr.f32.gmra.mrb[62].mxu1 %v11029_v60  ;;  %2158 = vmatprep.mubr.f32.mxu0 %v11032_v13  ;;  %v11079_v16 = vsel %vm628_vm0, %v1943_v12, %v1945_v24  ;;  %v3241_v60 = vld [vmem:[#allocation8 + $0x98] sm:$0xff] }
 0x16c   : > { %8755 = vmatpush3.bf16.msra.mxu1 %v10671_v40  ;;  %2860 = vmatprep.mubr.f32.mxu1 %v10939_v38  ;;  %v11054_v40 = vsel %vm628_vm0, %v1937_v0, %v1938_v5  ;;  %v11071_v14 = vsel %vm628_vm0, %v1942_v59, %v1943_v12  ;;  %v1947_v0 = vrot.slane %v10868_v52, 1  ;;  %v1948_v5 = vrot.slane %v10871_v48, 1  ;;  %v2794_v12 = vld [vmem:[#allocation6 + $0x470] sm:$0xff] }
 0x16d   : > { %8757 = vmatprep.subr.bf16.mxu1 %v8756_v23  ;;  %8691 = vmatpush3.bf16.msra.mxu0 %v8690_v42  ;;  %v2790_v42 = vld [vmem:[#allocation6 + $0x450] sm:$0xff] }
 0x16e   : > { %2159 = vmatmul.mubr.f32.gmra.mrb[96].mxu0 %v10792_v44  ;;  %8789 = vmatprep.subr.bf16.mxu0 %v11037_v32  ;;  %v8776_v43 = vpack.c.bf16 %v2791_v21, %v2790_v42  ;;  %v11088_v30 = vsel %vm628_vm0, %v1947_v0, %v1948_v5  ;;  %v11100_v45 = vsel %vm628_vm0, %v1948_v5, %v1950_v15  ;;  %v3223_v15 = vld [vmem:[#allocation8 + $0x8] sm:$0xff] }
 0x16f   : > { %2861 = vmatmul.mubr.f32.vlgmr.msra.gmra.mrb[64].mxu1 %v10750_v37  ;;  %2163 = vmatprep.mubr.f32.mxu0 %v11044_v25 }
 0x170   : > { %8759 = vmatpush3.bf16.msra.mxu1 %v8756_v23  ;;  %2865 = vmatprep.mubr.f32.mxu1 %v10960_v63  ;;  %v8772_v23 = vpack.c.bf16 %v2789_v55, %v2788_v56 }
 0x171   : > { %8761 = vmatprep.subr.bf16.mxu1 %v8760_v28 }
 0x172   : > { %2164 = vmatmul.mubr.f32.gmra.mrb[98].mxu0 %v10796_v39 }
 0x173   : > { %2866 = vmatmul.mubr.f32.gmra.mrb[66].mxu1 %v10753_v1  ;;  %2168 = vmatprep.mubr.f32.mxu0 %v11054_v40 }
 0x174   : > { %2870 = vmatprep.mubr.f32.mxu1 %v10991_v9  ;;  %8763 = vmatpush3.bf16.msra.mxu1 %v8760_v28  ;;  %v2792_v28 = vld [vmem:[#allocation6 + $0x460] sm:$0xff] }
 0x175   : > { %8765 = vmatprep.subr.bf16.mxu1 %v8764_v29  ;;  %v8780_v2 = vpack.c.bf16 %v2793_v41, %v2792_v28  ;;  %v3641_v28 = vld [vmem:[#allocation8 + $0x200] sm:$0xff]  ;;  %v3642_v41 = vld [vmem:[#allocation8 + $0x208] sm:$0xff] }
 0x176   : > { %2169 = vmatmul.mubr.f32.gmra.mrb[100].mxu0 %v10817_v26 }
 0x177   : > { %2871 = vmatmul.mubr.f32.gmra.mrb[68].mxu1 %v10770_v51  ;;  %2173 = vmatprep.mubr.f32.mxu0 %v11062_v53 }
 0x178   : > { %2875 = vmatprep.mubr.f32.mxu1 %v11014_v19  ;;  %8767 = vmatpush3.bf16.msra.mxu1 %v8764_v29 }
 0x179   : > { %8769 = vmatprep.subr.bf16.mxu1 %v8768_v8 }
 0x17a   : > { %2174 = vmatmul.mubr.f32.gmra.mrb[102].mxu0 %v10820_v6 }
 0x17b   : > { %2876 = vmatmul.mubr.f32.gmra.mrb[70].mxu1 %v10773_v34  ;;  %2178 = vmatprep.mubr.f32.mxu0 %v11071_v14 }
 0x17c   : > { %2880 = vmatprep.mubr.f32.mxu1 %v11032_v13  ;;  %8771 = vmatpush3.bf16.msra.mxu1 %v8768_v8  ;;  %v2795_v8 = vld [vmem:[#allocation6 + $0x478] sm:$0xff] }
 0x17d   : > { %8773 = vmatprep.subr.bf16.mxu1 %v8772_v23  ;;  %v8784_v42 = vpack.c.bf16 %v2795_v8, %v2794_v12 }
 0x17e   : > { %2179 = vmatmul.mubr.f32.gmra.mrb[104].mxu0 %v10843_v31 }
 0x17f   : > { %2881 = vmatmul.mubr.f32.gmra.mrb[72].mxu1 %v10792_v44  ;;  %2183 = vmatprep.mubr.f32.mxu0 %v11079_v16 }
 0x180   : > { %2885 = vmatprep.mubr.f32.mxu1 %v11044_v25  ;;  %8775 = vmatpush3.bf16.msra.mxu1 %v8772_v23 }
 0x181   : > { %8777 = vmatprep.subr.bf16.mxu1 %v8776_v43  ;;  %v6244_v29 = vpop.f32.mrb[0].mxu0 }
 0x182   : > { %v6356_v49 = vpop.f32.mrb[0].mxu1  ;;  %2184 = vmatmul.mubr.f32.gmra.mrb[106].mxu0 %v10846_v22  ;;  %v6245_v59 = vpop.f32.mrb[1].mxu0 }
 0x183   : > { %v6357_v56 = vpop.f32.mrb[1].mxu1  ;;  %2886 = vmatmul.mubr.f32.gmra.mrb[74].mxu1 %v10796_v39  ;;  %2188 = vmatprep.mubr.f32.mxu0 %v11088_v30  ;;  %v11094_v55 = vadd.f32 %v6245_v59, %v6244_v29  ;;  %v8852_v59 = vpack.c.bf16 %v3642_v41, %v3641_v28  ;;  %v3224_v28 = vld [vmem:[#allocation8 + $0x10] sm:$0xff]  ;;  %v3225_v41 = vld [vmem:[#allocation8 + $0x18] sm:$0xff] }
 0x184   : > { %v11096_v24 = vadd.f32 %v6357_v56, %v6356_v49  ;;  %2890 = vmatprep.mubr.f32.mxu1 %v11054_v40  ;;  %8779 = vmatpush3.bf16.msra.mxu1 %v8776_v43  ;;  %v3222_v43 = vld [vmem:[#allocation8] sm:$0xff]  ;;  %v3240_v56 = vld [vmem:[#allocation8 + $0x90] sm:$0xff] }
 0x185   : > { %8781 = vmatprep.subr.bf16.mxu1 %v8780_v2  ;;  %v6247_v23 = vpop.f32.mrb[2].mxu0 }
 0x186   : > { %12396 = vst [vmem:[#allocation18_spill] sm:$0xff] %v11096_v24  ;;  %v6359_v21 = vpop.f32.mrb[2].mxu1  ;;  %2189 = vmatmul.mubr.f32.gmra.mrb[108].mxu0 %v10868_v52  ;;  %v6248_v0 = vpop.f32.mrb[3].mxu0 }
 0x187   : > { %v6360_v32 = vpop.f32.mrb[3].mxu1  ;;  %2891 = vmatmul.mubr.f32.gmra.mrb[76].mxu1 %v10817_v26  ;;  %2193 = vmatprep.mubr.f32.mxu0 %v11100_v45  ;;  %v11105_v29 = vadd.f32 %v6248_v0, %v6247_v23  ;;  %v11120_v0 = vpack.c.bf16 %v3241_v60, %v3240_v56  ;;  %v11131_v60 = vpack.c.bf16 %v3225_v41, %v3224_v28  ;;  %v3245_v56 = vld [vmem:[#allocation8 + $0xb8] sm:$0xff]  ;;  %v433_v28 = vld [vmem:[%s10222_s20 + $0x1a0] sm:$0xff] }
 0x188   : > { %v11107_v49 = vadd.f32 %v6360_v32, %v6359_v21  ;;  %2895 = vmatprep.mubr.f32.mxu1 %v11062_v53  ;;  %8783 = vmatpush3.bf16.msra.mxu1 %v8780_v2  ;;  %v11118_v2 = vpack.c.bf16 %v3223_v15, %v3222_v43  ;;  %vm487_vm11 = vcmp.ge.f32.partialorder %v433_v28, 0.0 }
 0x189   : > { %v6250_v5 = vpop.f32.mrb[4].mxu0  ;;  %8785 = vmatprep.subr.bf16.mxu1 %v8784_v42  ;;  %12400 = vst [vmem:[#allocation24_spill] sm:$0xff] %v11120_v0  ;;  %12402 = vst [vmem:[#allocation26_spill] sm:$0xff] %v11131_v60 }
 0x18a   : > { %12397 = vst [vmem:[#allocation17_spill] sm:$0xff] %v11107_v49  ;;  %v6362_v12 = vpop.f32.mrb[4].mxu1  ;;  %2194 = vmatmul.mubr.f32.gmra.mrb[110].mxu0 %v10871_v48  ;;  %v6251_v8 = vpop.f32.mrb[5].mxu0  ;;  %12399 = vst [vmem:[#allocation23_spill] sm:$0xff] %v11118_v2 }
 0x18b   : > { %v6363_v24 = vpop.f32.mrb[5].mxu1  ;;  %2896 = vmatmul.mubr.f32.gmra.mrb[78].mxu1 %v10820_v6  ;;  %2489 = vmatprep.mubr.f32.mxu0 %v10880_v20  ;;  %v11113_v32 = vadd.f32 %v6251_v8, %v6250_v5  ;;  %v3242_v20 = vld [vmem:[#allocation8 + $0xa0] sm:$0xff]  ;;  %v3243_v5 = vld [vmem:[#allocation8 + $0xa8] sm:$0xff] }
 0x18c   : > { %v11115_v23 = vadd.f32 %v6363_v24, %v6362_v12  ;;  %2900 = vmatprep.mubr.f32.mxu1 %v11071_v14  ;;  %8787 = vmatpush3.bf16.msra.mxu1 %v8784_v42  ;;  %v11134_v15 = vpack.c.bf16 %v3243_v5, %v3242_v20  ;;  %v3227_v12 = vld [vmem:[#allocation8 + $0x28] sm:$0xff]  ;;  %v2363_v20 = vrot.slane %v10970_v50, 1  ;;  %v2364_v5 = vrot.slane %v10972_v18, 1 }
 0x18d   : > { %v6253_v21 = vpop.f32.mrb[6].mxu0  ;;  %8853 = vmatprep.subr.bf16.mxu1 %v8852_v59  ;;  %v3226_v59 = vld [vmem:[#allocation8 + $0x20] sm:$0xff] }
 0x18e   : > { %12398 = vst [vmem:[#allocation22_spill] sm:$0xff] %v11115_v23  ;;  %v6365_v4 = vpop.f32.mrb[6].mxu1  ;;  %2490 = vmatmul.mubr.f32.vlgmr.msra.gmra.mrb[112].mxu0 %v10713_v57  ;;  %v6254_v49 = vpop.f32.mrb[7].mxu0  ;;  %12403 = vst [vmem:[#allocation27_spill] sm:$0xff] %v11134_v15  ;;  %v2366_v23 = vrot.slane %v11000_v27, 1  ;;  %v3249_v27 = vld [vmem:[#allocation8 + $0xd8] sm:$0xff] }
 0x18f   : > { %v6366_v24 = vpop.f32.mrb[7].mxu1  ;;  %2901 = vmatmul.mubr.f32.gmra.mrb[80].mxu1 %v10843_v31  ;;  %2494 = vmatprep.mubr.f32.mxu0 %v10899_v35  ;;  %v11125_v42 = vadd.f32 %v6254_v49, %v6253_v21  ;;  %v432_v35 = vld [vmem:[%s10222_s20 + $0x198] sm:$0xff]  ;;  %v3244_v49 = vld [vmem:[#allocation8 + $0xb0] sm:$0xff] }
 0x190   : > { %v11127_v43 = vadd.f32 %v6366_v24, %v6365_v4  ;;  %2905 = vmatprep.mubr.f32.mxu1 %v11079_v16  ;;  %8791 = vmatpush3.bf16.msra.mxu0 %v11118_v2  ;;  %vm486_vm10 = vcmp.ge.f32.partialorder %v432_v35, 0.0 }
 0x191   : > { %v6256_v57 = vpop.f32.mrb[8].mxu0  ;;  %8793 = vmatprep.subr.bf16.mxu0 %v11120_v0  ;;  %v540_v0 = vmul.f32 0.2, %v432_v35 }
 0x192   : > { %12401 = vst [vmem:[#allocation25_spill] sm:$0xff] %v11127_v43  ;;  %v6368_v8 = vpop.f32.mrb[8].mxu1  ;;  %2495 = vmatmul.mubr.f32.gmra.mrb[114].mxu0 %v10715_v58  ;;  %v6257_v4 = vpop.f32.mrb[9].mxu0  ;;  %v11148_v58 = vpack.c.bf16 %v3227_v12, %v3226_v59  ;;  %v434_v12 = vld [vmem:[%s10222_s20 + $0x1a8] sm:$0xff] }
 0x193   : > { %v6369_v21 = vpop.f32.mrb[9].mxu1  ;;  %2906 = vmatmul.mubr.f32.gmra.mrb[82].mxu1 %v10846_v22  ;;  %2499 = vmatprep.mubr.f32.mxu0 %v10939_v38  ;;  %v11141_v41 = vadd.f32 %v6257_v4, %v6256_v57  ;;  %v11152_v38 = vpack.c.bf16 %v3245_v56, %v3244_v49  ;;  %v3228_v57 = vld [vmem:[#allocation8 + $0x30] sm:$0xff]  ;;  %v11167_v56 = vsel %vm628_vm0, %v2363_v20, %v2364_v5  ;;  %v542_v20 = vmul.f32 0.2, %v434_v12 }
 0x194   : > { %v11143_v24 = vadd.f32 %v6369_v21, %v6368_v8  ;;  %2910 = vmatprep.mubr.f32.mxu1 %v11088_v30  ;;  %8795 = vmatpush3.bf16.msra.mxu0 %v11131_v60  ;;  %12406 = vst [vmem:[#allocation30_spill] sm:$0xff] %v11148_v58  ;;  %v3229_v8 = vld [vmem:[#allocation8 + $0x38] sm:$0xff]  ;;  %v541_v21 = vmul.f32 0.2, %v433_v28  ;;  %v3247_v60 = vld [vmem:[#allocation8 + $0xc8] sm:$0xff]  ;;  %vm488_vm12 = vcmp.ge.f32.partialorder %v434_v12, 0.0 }
 0x195   : > { %12404 = vst [vmem:[#allocation28_spill] sm:$0xff] %v11141_v41  ;;  %v6259_v2 = vpop.f32.mrb[10].mxu0  ;;  %8797 = vmatprep.subr.bf16.mxu0 %v11134_v15  ;;  %12407 = vst [vmem:[#allocation31_spill] sm:$0xff] %v11152_v38  ;;  %v3246_v41 = vld [vmem:[#allocation8 + $0xc0] sm:$0xff] }
 0x196   : > { %12405 = vst [vmem:[#allocation29_spill] sm:$0xff] %v11143_v24  ;;  %v6371_v4 = vpop.f32.mrb[10].mxu1  ;;  %2500 = vmatmul.mubr.f32.gmra.mrb[116].mxu0 %v10750_v37  ;;  %v6260_v24 = vpop.f32.mrb[11].mxu0  ;;  %v11164_v37 = vpack.c.bf16 %v3229_v8, %v3228_v57  ;;  %v11178_v57 = vsel %vm487_vm11, %v433_v28, %v541_v21 }
 0x197   : > { %v6372_v59 = vpop.f32.mrb[11].mxu1  ;;  %2911 = vmatmul.mubr.f32.gmra.mrb[84].mxu1 %v10868_v52  ;;  %2504 = vmatprep.mubr.f32.mxu0 %v10960_v63  ;;  %v11158_v15 = vadd.f32 %v6260_v24, %v6259_v2  ;;  %v11171_v63 = vpack.c.bf16 %v3247_v60, %v3246_v41  ;;  %v3230_v2 = vld [vmem:[#allocation8 + $0x40] sm:$0xff]  ;;  %v3231_v24 = vld [vmem:[#allocation8 + $0x48] sm:$0xff]  ;;  %v2735_v28 = vrot.slane %v11178_v57, 1 }
 0x198   : > { %v11160_v49 = vadd.f32 %v6372_v59, %v6371_v4  ;;  %2915 = vmatprep.mubr.f32.mxu1 %v11100_v45  ;;  %8799 = vmatpush3.bf16.msra.mxu0 %v11148_v58  ;;  %12409 = vst [vmem:[#allocation33_spill] sm:$0xff] %v11164_v37  ;;  %v11175_v59 = vsel %vm486_vm10, %v432_v35, %v540_v0  ;;  %v3248_v58 = vld [vmem:[#allocation8 + $0xd0] sm:$0xff] }
 0x199   : > { %v6262_v43 = vpop.f32.mrb[12].mxu0  ;;  %8801 = vmatprep.subr.bf16.mxu0 %v11152_v38  ;;  %12410 = vst [vmem:[#allocation34_spill] sm:$0xff] %v11171_v63  ;;  %v11191_v0 = vsel %vm628_vm0, %v2364_v5, %v2366_v23  ;;  %v2734_v35 = vrot.slane %v11175_v59, 1  ;;  %v3250_v23 = vld [vmem:[#allocation8 + $0xe0] sm:$0xff]  ;;  %v3251_v5 = vld [vmem:[#allocation8 + $0xe8] sm:$0xff]  ;;  %v3253_v38 = vld [vmem:[#allocation8 + $0xf8] sm:$0xff] }
 0x19a   : > { %12408 = vst [vmem:[#allocation32_spill] sm:$0xff] %v11160_v49  ;;  %v6374_v4 = vpop.f32.mrb[12].mxu1  ;;  %2505 = vmatmul.mubr.f32.gmra.mrb[118].mxu0 %v10753_v1  ;;  %v6263_v8 = vpop.f32.mrb[13].mxu0  ;;  %v11188_v1 = vpack.c.bf16 %v3231_v24, %v3230_v2  ;;  %v11200_v2 = vsel %vm488_vm12, %v434_v12, %v542_v20 }
 0x19b   : > { %v6375_v49 = vpop.f32.mrb[13].mxu1  ;;  %2916 = vmatmul.mubr.f32.gmra.mrb[86].mxu1 %v10871_v48  ;;  %2509 = vmatprep.mubr.f32.mxu0 %v10991_v9  ;;  %v11182_v60 = vadd.f32 %v6263_v8, %v6262_v43  ;;  %v11196_v9 = vpack.c.bf16 %v3249_v27, %v3248_v58  ;;  %v3232_v43 = vld [vmem:[#allocation8 + $0x50] sm:$0xff]  ;;  %v2736_v12 = vsel %vm628_vm0, %v2734_v35, %v2735_v28  ;;  %v2737_v20 = vrot.slane %v11200_v2, 1 }
 0x19c   : > { %v11184_v41 = vadd.f32 %v6375_v49, %v6374_v4  ;;  %2920 = vmatprep.mubr.f32.mxu1 %v11167_v56  ;;  %8803 = vmatpush3.bf16.msra.mxu0 %v11164_v37  ;;  %12412 = vst [vmem:[#allocation36_spill] sm:$0xff] %v11188_v1  ;;  %v3233_v49 = vld [vmem:[#allocation8 + $0x58] sm:$0xff] }
 0x19d   : > { %v6265_v21 = vpop.f32.mrb[14].mxu0  ;;  %8805 = vmatprep.subr.bf16.mxu0 %v11171_v63  ;;  %12413 = vst [vmem:[#allocation37_spill] sm:$0xff] %v11196_v9  ;;  %v11215_v63 = vpack.c.bf16 %v3251_v5, %v3250_v23  ;;  %v2738_v23 = vsel %vm628_vm0, %v2735_v28, %v2737_v20 }
 0x19e   : > { %12411 = vst [vmem:[#allocation35_spill] sm:$0xff] %v11184_v41  ;;  %v6377_v4 = vpop.f32.mrb[14].mxu1  ;;  %2510 = vmatmul.mubr.f32.gmra.mrb[120].mxu0 %v10770_v51  ;;  %v6266_v24 = vpop.f32.mrb[15].mxu0  ;;  %v11210_v51 = vpack.c.bf16 %v3233_v49, %v3232_v43  ;;  %v3237_v41 = vld [vmem:[#allocation8 + $0x78] sm:$0xff] }
 0x19f   : > { %v6378_v8 = vpop.f32.mrb[15].mxu1  ;;  %2921 = vmatmul.mubr.f32.gmra.mrb[88].mxu1 %v10970_v50  ;;  %2514 = vmatprep.mubr.f32.mxu0 %v11014_v19  ;;  %v11204_v37 = vadd.f32 %v6266_v24, %v6265_v21  ;;  %v3234_v19 = vld [vmem:[#allocation8 + $0x60] sm:$0xff]  ;;  %v3235_v21 = vld [vmem:[#allocation8 + $0x68] sm:$0xff] }
 0x1a0   : > { %v11206_v58 = vadd.f32 %v6378_v8, %v6377_v4  ;;  %2925 = vmatprep.mubr.f32.mxu1 %v11191_v0  ;;  %8807 = vmatpush3.bf16.msra.mxu0 %v11188_v1  ;;  %v3252_v8 = vld [vmem:[#allocation8 + $0xf0] sm:$0xff]  ;;  %v11225_v49 = vpack.c.bf16 %v3235_v21, %v3234_v19  ;;  %v3625_v21 = vld [vmem:[#allocation8 + $0x180] sm:$0xff] }
 0x1a1   : > { %v6268_v27 = vpop.f32.mrb[16].mxu0  ;;  %8809 = vmatprep.subr.bf16.mxu0 %v11196_v9  ;;  %v11229_v5 = vpack.c.bf16 %v3253_v38, %v3252_v8  ;;  %v3236_v9 = vld [vmem:[#allocation8 + $0x70] sm:$0xff] }
 0x1a2   : > { %12414 = vst [vmem:[#allocation38_spill] sm:$0xff] %v11206_v58  ;;  %v6380_v24 = vpop.f32.mrb[16].mxu1  ;;  %2515 = vmatmul.mubr.f32.gmra.mrb[122].mxu0 %v10773_v34  ;;  %v6269_v4 = vpop.f32.mrb[17].mxu0  ;;  %12415 = vst [vmem:[#allocation39_spill] sm:$0xff] %v11225_v49  ;;  %v11239_v38 = vpack.c.bf16 %v3237_v41, %v3236_v9  ;;  %v3643_v8 = vld [vmem:[#allocation8 + $0x210] sm:$0xff] }
 0x1a3   : > { %v6381_v1 = vpop.f32.mrb[17].mxu1  ;;  %2926 = vmatmul.mubr.f32.gmra.mrb[90].mxu1 %v10972_v18  ;;  %2519 = vmatprep.mubr.f32.mxu0 %v11032_v13  ;;  %v11220_v35 = vadd.f32 %v6269_v4, %v6268_v27  ;;  %12416 = vst [vmem:[#allocation40_spill] sm:$0xff] %v11229_v5  ;;  %v3255_v27 = vld [vmem:[#allocation8 + $0x108] sm:$0xff] }
 0x1a4   : > { %v11222_v43 = vadd.f32 %v6381_v1, %v6380_v24  ;;  %2930 = vmatprep.mubr.f32.mxu1 %v2736_v12  ;;  %8811 = vmatpush3.bf16.msra.mxu0 %v11210_v51  ;;  %v3254_v1 = vld [vmem:[#allocation8 + $0x100] sm:$0xff]  ;;  %12417 = vst [vmem:[#allocation41_spill] sm:$0xff] %v11239_v38 }
 0x1a5   : > { %v6271_v34 = vpop.f32.mrb[18].mxu0  ;;  %8813 = vmatprep.subr.bf16.mxu0 %v11215_v63  ;;  %v11242_v24 = vpack.c.bf16 %v3255_v27, %v3254_v1  ;;  %v3628_v27 = vld [vmem:[#allocation8 + $0x198] sm:$0xff] }
 0x1a6   : > { %v6383_v58 = vpop.f32.mrb[18].mxu1  ;;  %2520 = vmatmul.mubr.f32.gmra.mrb[124].mxu0 %v10792_v44  ;;  %v6272_v13 = vpop.f32.mrb[19].mxu0  ;;  %v3626_v44 = vld [vmem:[#allocation8 + $0x188] sm:$0xff] }
 0x1a7   : > { %v6384_v12 = vpop.f32.mrb[19].mxu1  ;;  %2931 = vmatmul.mubr.f32.gmra.mrb[92].mxu1 %v11175_v59  ;;  %2524 = vmatprep.mubr.f32.mxu0 %v11044_v25  ;;  %v11234_v19 = vadd.f32 %v6272_v13, %v6271_v34  ;;  %v3644_v34 = vld [vmem:[#allocation8 + $0x218] sm:$0xff] }
 0x1a8   : > { %v11236_v28 = vadd.f32 %v6384_v12, %v6383_v58  ;;  %2935 = vmatprep.mubr.f32.mxu1 %v2738_v23  ;;  %8815 = vmatpush3.bf16.msra.mxu0 %v11225_v49  ;;  %v8854_v23 = vpack.c.bf16 %v3626_v44, %v3625_v21  ;;  %v8856_v1 = vpack.c.bf16 %v3644_v34, %v3643_v8  ;;  %v3630_v34 = vld [vmem:[#allocation8 + $0x1a8] sm:$0xff]  ;;  %v3648_v49 = vld [vmem:[#allocation8 + $0x238] sm:$0xff] }
 0x1a9   : > { %v6274_v20 = vpop.f32.mrb[20].mxu0  ;;  %8817 = vmatprep.subr.bf16.mxu0 %v11229_v5 }
 0x1aa   : > { %v6386_v4 = vpop.f32.mrb[20].mxu1  ;;  %2525 = vmatmul.mubr.f32.gmra.mrb[126].mxu0 %v10796_v39  ;;  %v6275_v25 = vpop.f32.mrb[21].mxu0  ;;  %v3627_v39 = vld [vmem:[#allocation8 + $0x190] sm:$0xff] }
 0x1ab   : > { %v6387_v58 = vpop.f32.mrb[21].mxu1  ;;  %2936 = vmatmul.mubr.f32.gmra.mrb[94].mxu1 %v11178_v57  ;;  %2529 = vmatprep.mubr.f32.mxu0 %v11054_v40  ;;  %v11247_v41 = vadd.f32 %v6275_v25, %v6274_v20  ;;  %v3645_v40 = vld [vmem:[#allocation8 + $0x220] sm:$0xff]  ;;  %v3646_v20 = vld [vmem:[#allocation8 + $0x228] sm:$0xff]  ;;  %v8858_v44 = vpack.c.bf16 %v3628_v27, %v3627_v39  ;;  %v3632_v39 = vld [vmem:[#allocation8 + $0x1b8] sm:$0xff] }
 0x1ac   : > { %v11249_v9 = vadd.f32 %v6387_v58, %v6386_v4  ;;  %7932 = vmatprep.mubr.f32.mxu1 %v10782_v36  ;;  %8819 = vmatpush3.bf16.msra.mxu0 %v11239_v38  ;;  %v8860_v8 = vpack.c.bf16 %v3646_v20, %v3645_v40  ;;  %v3650_v40 = vld [vmem:[#allocation8 + $0x248] sm:$0xff] }
 0x1ad   : > { %v6277_v13 = vpop.f32.mrb[22].mxu0  ;;  %8821 = vmatprep.subr.bf16.mxu0 %v11242_v24 }
 0x1ae   : > { %v6389_v12 = vpop.f32.mrb[22].mxu1  ;;  %2530 = vmatmul.mubr.f32.gmra.mrb[128].mxu0 %v10817_v26  ;;  %v6278_v5 = vpop.f32.mrb[23].mxu0  ;;  %v3629_v26 = vld [vmem:[#allocation8 + $0x1a0] sm:$0xff] }
 0x1af   : > { %v6390_v25 = vpop.f32.mrb[23].mxu1  ;;  %7933 = vmatmul.mubr.f32.vlgmr.msra.gmra.mrb[48].mxu1 %v10802_v61  ;;  %2534 = vmatprep.mubr.f32.mxu0 %v11062_v53  ;;  %v11257_v36 = vadd.f32 %v6278_v5, %v6277_v13  ;;  %v3647_v61 = vld [vmem:[#allocation8 + $0x230] sm:$0xff] }
 0x1b0   : > { %v11259_v21 = vadd.f32 %v6390_v25, %v6389_v12  ;;  %7935 = vmatprep.mubr.f32.mxu1 %v10809_v10  ;;  %8855 = vmatpush3.bf16.msra.mxu1 %v8854_v23  ;;  %v8862_v23 = vpack.c.bf16 %v3630_v34, %v3629_v26  ;;  %v3652_v26 = vld [vmem:[#allocation8 + $0x258] sm:$0xff] }
 0x1b1   : > { %v6280_v4 = vpop.f32.mrb[24].mxu0  ;;  %8857 = vmatprep.subr.bf16.mxu1 %v8856_v1  ;;  %v8864_v1 = vpack.c.bf16 %v3648_v49, %v3647_v61 }
 0x1b2   : > { %v6392_v58 = vpop.f32.mrb[24].mxu1  ;;  %2535 = vmatmul.mubr.f32.gmra.mrb[130].mxu0 %v10820_v6  ;;  %v6281_v38 = vpop.f32.mrb[25].mxu0  ;;  %v3631_v6 = vld [vmem:[#allocation8 + $0x1b0] sm:$0xff] }
 0x1b3   : > { %v6393_v53 = vpop.f32.mrb[25].mxu1  ;;  %7936 = vmatmul.mubr.f32.gmra.mrb[50].mxu1 %v10827_v7  ;;  %2539 = vmatprep.mubr.f32.mxu0 %v11071_v14  ;;  %v11265_v5 = vadd.f32 %v6281_v38, %v6280_v4  ;;  %v3649_v7 = vld [vmem:[#allocation8 + $0x240] sm:$0xff]  ;;  %v8866_v49 = vpack.c.bf16 %v3632_v39, %v3631_v6  ;;  %v3654_v6 = vld [vmem:[#allocation8 + $0x268] sm:$0xff] }
 0x1b4   : > { %v11267_v10 = vadd.f32 %v6393_v53, %v6392_v58  ;;  %7938 = vmatprep.mubr.f32.mxu1 %v10839_v54  ;;  %8859 = vmatpush3.bf16.msra.mxu1 %v8858_v44  ;;  %v8868_v25 = vpack.c.bf16 %v3650_v40, %v3649_v7  ;;  %v3634_v44 = vld [vmem:[#allocation8 + $0x1c8] sm:$0xff] }
 0x1b5   : > { %v6283_v13 = vpop.f32.mrb[26].mxu0  ;;  %8861 = vmatprep.subr.bf16.mxu1 %v8860_v8 }
 0x1b6   : > { %v6395_v27 = vpop.f32.mrb[26].mxu1  ;;  %2540 = vmatmul.mubr.f32.gmra.mrb[132].mxu0 %v10843_v31  ;;  %v6284_v12 = vpop.f32.mrb[27].mxu0  ;;  %v3633_v31 = vld [vmem:[#allocation8 + $0x1c0] sm:$0xff] }
 0x1b7   : > { %v6396_v14 = vpop.f32.mrb[27].mxu1  ;;  %7939 = vmatmul.mubr.f32.gmra.mrb[52].mxu1 %v10854_v47  ;;  %2544 = vmatprep.mubr.f32.mxu0 %v11079_v16  ;;  %v11273_v38 = vadd.f32 %v6284_v12, %v6283_v13  ;;  %v3651_v47 = vld [vmem:[#allocation8 + $0x250] sm:$0xff]  ;;  %v8870_v58 = vpack.c.bf16 %v3634_v44, %v3633_v31 }
 0x1b8   : > { %v11275_v54 = vadd.f32 %v6396_v14, %v6395_v27  ;;  %7941 = vmatprep.mubr.f32.mxu1 %v10857_v17  ;;  %8863 = vmatpush3.bf16.msra.mxu1 %v8862_v23  ;;  %v8872_v53 = vpack.c.bf16 %v3652_v26, %v3651_v47  ;;  %v3636_v23 = vld [vmem:[#allocation8 + $0x1d8] sm:$0xff]  ;;  %v2741_v14 = vrot.slane %v11175_v59, 2  ;;  %v12418_v59 = vld [vmem:[#allocation17_spill] sm:$0xff] }
 0x1b9   : > { %v6286_v20 = vpop.f32.mrb[28].mxu0  ;;  %8865 = vmatprep.subr.bf16.mxu1 %v8864_v1 }
 0x1ba   : > { %v6398_v4 = vpop.f32.mrb[28].mxu1  ;;  %2545 = vmatmul.mubr.f32.gmra.mrb[134].mxu0 %v10846_v22  ;;  %v6287_v8 = vpop.f32.mrb[29].mxu0  ;;  %v3635_v22 = vld [vmem:[#allocation8 + $0x1d0] sm:$0xff] }
 0x1bb   : > { %v6399_v16 = vpop.f32.mrb[29].mxu1  ;;  %7942 = vmatmul.mubr.f32.gmra.mrb[54].mxu1 %v10876_v46  ;;  %2549 = vmatprep.mubr.f32.mxu0 %v11088_v30  ;;  %v11281_v34 = vadd.f32 %v6287_v8, %v6286_v20  ;;  %v11290_v46 = vld [vmem:[%s12300_s2] ss:$0 sm:$0xff]  ;;  %v3653_v30 = vld [vmem:[#allocation8 + $0x260] sm:$0xff]  ;;  %v8874_v12 = vpack.c.bf16 %v3636_v23, %v3635_v22  ;;  %v3638_v20 = vld [vmem:[#allocation8 + $0x1e8] sm:$0xff] }
 0x1bc   : > { %v11283_v17 = vadd.f32 %v6399_v16, %v6398_v4  ;;  %7944 = vmatprep.mubr.f32.mxu1 %v10885_v62  ;;  %8867 = vmatpush3.bf16.msra.mxu1 %v8866_v49  ;;  %v9241_v40 = vadd.f32 %v11094_v55, %v11290_v46  ;;  %v8876_v49 = vpack.c.bf16 %v3654_v6, %v3653_v30  ;;  %v2744_v55 = vrot.slane %v11200_v2, 2  ;;  %v12419_v8 = vld [vmem:[#allocation19_spill] sm:$0xff]  ;;  %v12421_v23 = vld [vmem:[#allocation20_spill] sm:$0xff] }
 0x1bd   : > { %v6289_v61 = vpop.f32.mrb[30].mxu0  ;;  %8869 = vmatprep.subr.bf16.mxu1 %v8868_v25  ;;  %v3190_v6 = vld [vmem:[#allocation2 + $0x1] sm:$0xff] }
 0x1be   : > { %v6401_v13 = vpop.f32.mrb[30].mxu1  ;;  %2550 = vmatmul.mubr.f32.gmra.mrb[136].mxu0 %v10868_v52  ;;  %v6290_v1 = vpop.f32.mrb[31].mxu0  ;;  %v9236_v52 = vadd.f32 %v11105_v29, %v11290_v46  ;;  %v3655_v29 = vld [vmem:[#allocation8 + $0x270] sm:$0xff] }
 0x1bf   : > { %v6402_v39 = vpop.f32.mrb[31].mxu1  ;;  %7945 = vmatmul.mubr.f32.gmra.mrb[56].mxu1 %v10896_v11  ;;  %v11293_v62 = vadd.f32 %v6290_v1, %v6289_v61  ;;  %2554 = vmatprep.mubr.f32.mxu0 %v11100_v45  ;;  %v2742_v11 = vrot.slane %v11178_v57, 2  ;;  %v3637_v45 = vld [vmem:[#allocation8 + $0x1e0] sm:$0xff]  ;;  %v9246_v57 = vadd.f32 %v11125_v42, %v11290_v46  ;;  %v3640_v61 = vld [vmem:[#allocation8 + $0x1f8] sm:$0xff] }
 0x1c0   : > { %v11296_v27 = vadd.f32 %v6402_v39, %v6401_v13  ;;  %7947 = vmatprep.mubr.f32.mxu1 %v10903_v33  ;;  %8871 = vmatpush3.bf16.msra.mxu1 %v8870_v58  ;;  %v3656_v33 = vld [vmem:[#allocation8 + $0x278] sm:$0xff]  ;;  %v8878_v47 = vpack.c.bf16 %v3638_v20, %v3637_v45  ;;  %v3639_v58 = vld [vmem:[#allocation8 + $0x1f0] sm:$0xff]  ;;  %v12422_v1 = vld [vmem:[#allocation25_spill] sm:$0xff] }
 0x1c1   : > { %v7654_v7 = vpop.f32.mrb[32].mxu0  ;;  %8873 = vmatprep.subr.bf16.mxu1 %v8872_v53  ;;  %v8880_v2 = vpack.c.bf16 %v3656_v33, %v3655_v29  ;;  %v2745_v13 = vsel %vm685_vm4, %v2742_v11, %v2744_v55  ;;  %v8882_v39 = vpack.c.bf16 %v3640_v61, %v3639_v58  ;;  %v12426_v33 = vld [vmem:[#allocation29_spill] sm:$0xff]  ;;  %v12429_v58 = vld [vmem:[#allocation35_spill] sm:$0xff] }
 0x1c2   : > { %v9237_v25 = vadd.f32 %v9236_v52, %v7654_v7  ;;  %v1001_v31 = vpop.f32.mrb[33].mxu0  ;;  %2555 = vmatmul.mubr.f32.gmra.mrb[138].mxu0 %v10871_v48  ;;  %v12420_v48 = vld [vmem:[#allocation18_spill] sm:$0xff]  ;;  %v12424_v7 = vld [vmem:[#allocation28_spill] sm:$0xff] }
 0x1c3   : > { %v9242_v44 = vadd.f32 %v9241_v40, %v1001_v31  ;;  %7948 = vmatmul.mubr.f32.gmra.mrb[58].mxu1 %v10910_v3  ;;  %2559 = vmatprep.mubr.f32.mxu0 %v11167_v56  ;;  %v9251_v3 = vadd.f32 %v11113_v32, %v11290_v46  ;;  %v2743_v56 = vsel %vm685_vm4, %v2741_v14, %v2742_v11  ;;  %v12423_v52 = vld [vmem:[#allocation22_spill] sm:$0xff]  ;;  %v3257_v14 = vld [vmem:[#allocation8 + $0x118] sm:$0xff] }
 0x1c4   : > { %v11310_v4 = vadd.f32 %v9237_v25, %v12418_v59  ;;  %7950 = vmatprep.mubr.f32.mxu1 %v12419_v8  ;;  %8875 = vmatpush3.bf16.msra.mxu1 %v8874_v12  ;;  %v9256_v32 = vadd.f32 %v11158_v15, %v11290_v46  ;;  %v9261_v40 = vadd.f32 %v12424_v7, %v11290_v46  ;;  %v12425_v15 = vld [vmem:[#allocation32_spill] sm:$0xff]  ;;  %v12427_v8 = vld [vmem:[#allocation21_spill] sm:$0xff]  ;;  %v3263_v7 = vld [vmem:[#allocation8 + $0x148] sm:$0xff] }
 0x1c5   : > { %v11316_v26 = vadd.f32 %v9242_v44, %v12420_v48  ;;  %v7657_v16 = vpop.f32.mrb[34].mxu0  ;;  %8877 = vmatprep.subr.bf16.mxu1 %v8876_v49  ;;  %v9266_v25 = vadd.f32 %v11204_v37, %v11290_v46  ;;  %v3191_v31 = vld [vmem:[#allocation2 + $0x9] sm:$0xff]  ;;  %v9271_v59 = vadd.f32 %v11182_v60, %v11290_v46  ;;  %v12428_v37 = vld [vmem:[#allocation38_spill] sm:$0xff] }
 0x1c6   : > { %v9247_v53 = vadd.f32 %v9246_v57, %v7657_v16  ;;  %v1011_v22 = vpop.f32.mrb[35].mxu0  ;;  %2560 = vmatmul.mubr.f32.gmra.mrb[140].mxu0 %v10970_v50  ;;  %v3259_v57 = vld [vmem:[#allocation8 + $0x128] sm:$0xff]  ;;  %v9769_v16 = vld [vmem:[#allocation2] sm:$0xff] }
 0x1c7   : > { %v9252_v42 = vadd.f32 %v9251_v3, %v1011_v22  ;;  %7951 = vmatmul.mubr.f32.gmra.mrb[60].mxu1 %v12421_v23  ;;  %2564 = vmatprep.mubr.f32.mxu0 %v11191_v0  ;;  %v3256_v0 = vld [vmem:[#allocation8 + $0x110] sm:$0xff]  ;;  %v9281_v22 = vadd.f32 %v11220_v35, %v11290_v46  ;;  %v3261_v23 = vld [vmem:[#allocation8 + $0x138] sm:$0xff]  ;;  %v9291_v35 = vadd.f32 %v11247_v41, %v11290_v46 }
 0x1c8   : > { %v11326_v30 = vadd.f32 %v9247_v53, %v12422_v1  ;;  %7953 = vmatprep.mubr.f32.mxu1 %v2743_v56  ;;  %8879 = vmatpush3.bf16.msra.mxu1 %v8878_v47  ;;  %v8824_v29 = vpack.c.bf16 %v3257_v14, %v3256_v0  ;;  %v9301_v41 = vadd.f32 %v11265_v5, %v11290_v46 }
 0x1c9   : > { %v11331_v12 = vadd.f32 %v9252_v42, %v12423_v52  ;;  %v7660_v50 = vpop.f32.mrb[36].mxu0  ;;  %8881 = vmatprep.subr.bf16.mxu1 %v8880_v2  ;;  %v9276_v2 = vadd.f32 %v11234_v19, %v11290_v46  ;;  %v3260_v42 = vld [vmem:[#allocation8 + $0x130] sm:$0xff]  ;;  %v9286_v19 = vadd.f32 %v11257_v36, %v11290_v46  ;;  %v9296_v36 = vadd.f32 %v11273_v38, %v11290_v46 }
 0x1ca   : > { %v9257_v11 = vadd.f32 %v9256_v32, %v7660_v50  ;;  %v1021_v49 = vpop.f32.mrb[37].mxu0  ;;  %2565 = vmatmul.mubr.f32.gmra.mrb[142].mxu0 %v10972_v18  ;;  %v3258_v18 = vld [vmem:[#allocation8 + $0x120] sm:$0xff]  ;;  %v9306_v38 = vadd.f32 %v11293_v62, %v11290_v46  ;;  %v9311_v5 = vadd.f32 %v11281_v34, %v11290_v46 }
 0x1cb   : > { %v9262_v45 = vadd.f32 %v9261_v40, %v1021_v49  ;;  %7954 = vmatmul.mubr.f32.gmra.mrb[62].mxu1 %v2745_v13  ;;  %3334 = vmatprep.mubr.f32.mxu0 %v3190_v6  ;;  %v8828_v60 = vpack.c.bf16 %v3259_v57, %v3258_v18  ;;  %v8832_v6 = vpack.c.bf16 %v3261_v23, %v3260_v42  ;;  %v3262_v50 = vld [vmem:[#allocation8 + $0x140] sm:$0xff]  ;;  %v3267_v18 = vld [vmem:[#allocation8 + $0x168] sm:$0xff] }
 0x1cc   : > { %v11337_v20 = vadd.f32 %v9257_v11, %v12425_v15  ;;  %8883 = vmatpush3.bf16.msra.mxu1 %v8882_v39  ;;  %v8836_v11 = vpack.c.bf16 %v3263_v7, %v3262_v50  ;;  %v3265_v15 = vld [vmem:[#allocation8 + $0x158] sm:$0xff]  ;;  %v3657_v42 = vld [vmem:[#allocation8 + $0x280] sm:$0xff]  ;;  %v3658_v23 = vld [vmem:[#allocation8 + $0x288] sm:$0xff] }
 0x1cd   : > { %v11342_v44 = vadd.f32 %v9262_v45, %v12426_v33  ;;  %v7663_v55 = vpop.f32.mrb[38].mxu0  ;;  %9013 = vmatprep.subr.bf16.mxu1 %v12427_v8  ;;  %v3264_v45 = vld [vmem:[#allocation8 + $0x150] sm:$0xff] }
 0x1ce   : > { %v9267_v47 = vadd.f32 %v9266_v25, %v7663_v55  ;;  %v1031_v48 = vpop.f32.mrb[39].mxu0  ;;  %3335 = vmatmul.mubr.f32.vlgmr.msra.gmra.mrb[144].mxu0 %v9769_v16  ;;  %v8840_v33 = vpack.c.bf16 %v3265_v15, %v3264_v45 }
 0x1cf   : > { %v9272_v3 = vadd.f32 %v9271_v59, %v1031_v48  ;;  %3339 = vmatprep.mubr.f32.mxu0 %v3191_v31  ;;  %8823 = vmatpush3.bf16.msra.mxu0 %v11242_v24  ;;  %v3266_v59 = vld [vmem:[#allocation8 + $0x160] sm:$0xff] }
 0x1d0   : > { %v11349_v56 = vadd.f32 %v9267_v47, %v12428_v37  ;;  %8825 = vmatprep.subr.bf16.mxu0 %v8824_v29  ;;  %v8844_v62 = vpack.c.bf16 %v3267_v18, %v3266_v59 }
 0x1d1   : > { %v11354_v61 = vadd.f32 %v9272_v3, %v12429_v58  ;;  %v7666_v53 = vpop.f32.mrb[40].mxu0  ;;  %v3269_v3 = vld [vmem:[#allocation8 + $0x178] sm:$0xff] }
 0x1d2   : > { %v9277_v13 = vadd.f32 %v9276_v2, %v7666_v53  ;;  %v1041_v1 = vpop.f32.mrb[41].mxu0  ;;  %3340 = vmatmul.mubr.f32.gmra.mrb[146].mxu0 %v9769_v16  ;;  %v3268_v16 = vld [vmem:[#allocation8 + $0x170] sm:$0xff] }
 0x1d3   : > { %v9282_v24 = vadd.f32 %v9281_v22, %v1041_v1  ;;  %8827 = vmatpush3.bf16.msra.mxu0 %v8824_v29 }
 0x1d4   : > { %v11359_v32 = vadd.f32 %v9277_v13, %v11236_v28  ;;  %8829 = vmatprep.subr.bf16.mxu0 %v8828_v60 }
 0x1d5   : > { %v11364_v39 = vadd.f32 %v9282_v24, %v11222_v43  ;;  %v7669_v52 = vpop.f32.mrb[42].mxu0 }
 0x1d6   : > { %v9287_v40 = vadd.f32 %v9286_v19, %v7669_v52  ;;  %v1051_v0 = vpop.f32.mrb[43].mxu0  ;;  %v11396_v52 = vpack.c.bf16 %v3658_v23, %v3657_v42  ;;  %v12432_v42 = vld [vmem:[#allocation26_spill] sm:$0xff] }
 0x1d7   : > { %v9292_v14 = vadd.f32 %v9291_v35, %v1051_v0  ;;  %8831 = vmatpush3.bf16.msra.mxu0 %v8828_v60  ;;  %v8848_v60 = vpack.c.bf16 %v3269_v3, %v3268_v16  ;;  %v12430_v16 = vld [vmem:[#allocation23_spill] sm:$0xff] }
 0x1d8   : > { %v11369_v28 = vadd.f32 %v9287_v40, %v11259_v21  ;;  %8833 = vmatprep.subr.bf16.mxu0 %v8832_v6 }
 0x1d9   : > { %v11374_v43 = vadd.f32 %v9292_v14, %v11249_v9  ;;  %v7672_v49 = vpop.f32.mrb[44].mxu0 }
 0x1da   : > { %v9297_v25 = vadd.f32 %v9296_v36, %v7672_v49  ;;  %v1061_v31 = vpop.f32.mrb[45].mxu0 }
 0x1db   : > { %v9302_v29 = vadd.f32 %v9301_v41, %v1061_v31  ;;  %8835 = vmatpush3.bf16.msra.mxu0 %v8832_v6 }
 0x1dc   : > { %v11379_v21 = vadd.f32 %v9297_v25, %v11275_v54  ;;  %8837 = vmatprep.subr.bf16.mxu0 %v8836_v11 }
 0x1dd   : > { %v11384_v9 = vadd.f32 %v9302_v29, %v11267_v10  ;;  %v7675_v55 = vpop.f32.mrb[46].mxu0 }
 0x1de   : > { %v9307_v57 = vadd.f32 %v9306_v38, %v7675_v55  ;;  %v1071_v8 = vpop.f32.mrb[47].mxu0 }
 0x1df   : > { %v9312_v47 = vadd.f32 %v9311_v5, %v1071_v8  ;;  %8839 = vmatpush3.bf16.msra.mxu0 %v8836_v11 }
 0x1e0   : > { %v11389_v54 = vadd.f32 %v9307_v57, %v11296_v27  ;;  %8841 = vmatprep.subr.bf16.mxu0 %v8840_v33 }
 0x1e1   : > { %v11392_v48 = vadd.f32 %v9312_v47, %v11283_v17  ;;  %v6468_v10 = vpop.f32.mrb[48].mxu0 }
 0x1e2   : > { %v7766_v37 = vpop.f32.mrb[32].mxu1  ;;  %v6469_v2 = vpop.f32.mrb[49].mxu0 }
 0x1e3   : > { %v6470_v34 = vadd.f32 %v6469_v2, %v6468_v10  ;;  %v1745_v46 = vpop.f32.mrb[33].mxu1  ;;  %8843 = vmatpush3.bf16.msra.mxu0 %v8840_v33 }
 0x1e4   : > { %8845 = vmatprep.subr.bf16.mxu0 %v8844_v62 }
 0x1e5   : > { %v9244_v58 = vadd.f32 %v11316_v26, %v6470_v34  ;;  %v6471_v53 = vpop.f32.mrb[50].mxu0 }
 0x1e6   : > { %v7769_v27 = vpop.f32.mrb[34].mxu1  ;;  %v6472_v22 = vpop.f32.mrb[51].mxu0 }
 0x1e7   : > { %v9245_v13 = vadd.f32 %v9244_v58, %v1745_v46  ;;  %v6473_v17 = vadd.f32 %v6472_v22, %v6471_v53  ;;  %v1755_v1 = vpop.f32.mrb[35].mxu1  ;;  %8847 = vmatpush3.bf16.msra.mxu0 %v8844_v62 }
 0x1e8   : > { %8849 = vmatprep.subr.bf16.mxu0 %v8848_v60 }
 0x1e9   : > { %vm1840_vm0 = vcmp.ge.f32.partialorder %v9245_v13, 0.0  ;;  %v1856_v24 = vmul.f32 0.2, %v9245_v13  ;;  %v9239_v19 = vadd.f32 %v11310_v4, %v6473_v17  ;;  %v6474_v6 = vpop.f32.mrb[52].mxu0 }
 0x1ea   : > { %v11398_v35 = vpop.f32.mrb[36].mxu1  ;;  %v6475_v26 = vpop.f32.mrb[53].mxu0 }
 0x1eb   : > { %v1872_v50 = vsel %vm1840_vm0, %v9245_v13, %v1856_v24  ;;  %v9240_v7 = vadd.f32 %v9239_v19, %v7766_v37  ;;  %v6476_v40 = vadd.f32 %v6475_v26, %v6474_v6  ;;  %v1765_v0 = vpop.f32.mrb[37].mxu1  ;;  %8851 = vmatpush3.bf16.msra.mxu0 %v8848_v60  ;;  %v12431_v60 = vld [vmem:[#allocation24_spill] sm:$0xff]  ;;  %v12433_v19 = vld [vmem:[#allocation27_spill] sm:$0xff] }
 0x1ec   : > { %1888 = vst [vmem:[#allocation2 + $0x19] sm:$0xff] %v1872_v50  ;;  %3344 = vmatprep.mubr.f32.mxu0 %v1872_v50  ;;  %3737 = vmatprep.mubr.f32.mxu1 %v1872_v50 }
 0x1ed   : > { %vm1841_vm4 = vcmp.ge.f32.partialorder %v9240_v7, 0.0  ;;  %v1857_v14 = vmul.f32 0.2, %v9240_v7  ;;  %v9254_v36 = vadd.f32 %v11331_v12, %v6476_v40  ;;  %v6477_v11 = vpop.f32.mrb[54].mxu0  ;;  %8885 = vmatprep.subr.bf16.mxu0 %v11396_v52 }
 0x1ee   : > { %v11402_v4 = vpop.f32.mrb[38].mxu1  ;;  %v6478_v49 = vpop.f32.mrb[55].mxu0 }
 0x1ef   : > { %v1873_v41 = vsel %vm1841_vm4, %v9240_v7, %v1857_v14  ;;  %v9255_v45 = vadd.f32 %v9254_v36, %v1755_v1  ;;  %v6479_v15 = vadd.f32 %v6478_v49, %v6477_v11  ;;  %v11404_v25 = vpop.f32.mrb[39].mxu1  ;;  %v12435_v49 = vld [vmem:[#allocation31_spill] sm:$0xff] }
 0x1f0   : > { %1889 = vst [vmem:[#allocation2 + $0x21] sm:$0xff] %v1873_v41 }
 0x1f1   : > { %vm1842_vm13 = vcmp.ge.f32.partialorder %v9255_v45, 0.0  ;;  %v1858_v31 = vmul.f32 0.2, %v9255_v45  ;;  %v9249_v29 = vadd.f32 %v11326_v30, %v6479_v15  ;;  %v6480_v38 = vpop.f32.mrb[56].mxu0 }
 0x1f2   : > { %v11407_v33 = vpop.f32.mrb[40].mxu1  ;;  %v6481_v12 = vpop.f32.mrb[57].mxu0 }
 0x1f3   : > { %v1874_v55 = vsel %vm1842_vm13, %v9255_v45, %v1858_v31  ;;  %v9250_v5 = vadd.f32 %v9249_v29, %v7769_v27  ;;  %v6482_v59 = vadd.f32 %v6481_v12, %v6480_v38  ;;  %v11409_v18 = vpop.f32.mrb[41].mxu1  ;;  %v3176_v57 = vld [vmem:[#allocation2 + $0x18] sm:$0xff]  ;;  %v12436_v31 = vld [vmem:[#allocation33_spill] sm:$0xff] }
 0x1f4   : > { %1890 = vst [vmem:[#allocation2 + $0x31] sm:$0xff] %v1874_v55  ;;  %3345 = vmatmul.mubr.f32.gmra.mrb[148].mxu0 %v3176_v57  ;;  %3738 = vmatmul.mubr.f32.vlgmr.msra.gmra.mrb[96].mxu1 %v3176_v57 }
 0x1f5   : > { %vm1843_vm14 = vcmp.ge.f32.partialorder %v9250_v5, 0.0  ;;  %v1859_v8 = vmul.f32 0.2, %v9250_v5  ;;  %v9264_v47 = vadd.f32 %v11342_v44, %v6482_v59  ;;  %v6483_v62 = vpop.f32.mrb[58].mxu0  ;;  %3349 = vmatprep.mubr.f32.mxu0 %v1873_v41  ;;  %3742 = vmatprep.mubr.f32.mxu1 %v1873_v41 }
 0x1f6   : > { %v11412_v30 = vpop.f32.mrb[42].mxu1  ;;  %v6484_v10 = vpop.f32.mrb[59].mxu0  ;;  %9015 = vmatpush3.bf16.msra.mxu1 %v12430_v16  ;;  %v12439_v16 = vld [vmem:[#allocation37_spill] sm:$0xff] }
 0x1f7   : > { %v1875_v3 = vsel %vm1843_vm14, %v9250_v5, %v1859_v8  ;;  %v9265_v37 = vadd.f32 %v9264_v47, %v1765_v0  ;;  %v6485_v2 = vadd.f32 %v6484_v10, %v6483_v62  ;;  %v11415_v34 = vpop.f32.mrb[43].mxu1  ;;  %v3177_v46 = vld [vmem:[#allocation2 + $0x20] sm:$0xff]  ;;  %9017 = vmatprep.subr.bf16.mxu1 %v12431_v60  ;;  %v12438_v8 = vld [vmem:[#allocation36_spill] sm:$0xff] }
 0x1f8   : > { %1891 = vst [vmem:[#allocation2 + $0x39] sm:$0xff] %v1875_v3  ;;  %3350 = vmatmul.mubr.f32.gmra.mrb[150].mxu0 %v3177_v46  ;;  %3743 = vmatmul.mubr.f32.gmra.mrb[98].mxu1 %v3177_v46 }
 0x1f9   : > { %vm1844_vm15 = vcmp.ge.f32.partialorder %v9265_v37, 0.0  ;;  %v1860_v44 = vmul.f32 0.2, %v9265_v37  ;;  %v9259_v58 = vadd.f32 %v11337_v20, %v6485_v2  ;;  %v6486_v53 = vpop.f32.mrb[60].mxu0  ;;  %3354 = vmatprep.mubr.f32.mxu0 %v1874_v55  ;;  %3747 = vmatprep.mubr.f32.mxu1 %v1874_v55  ;;  %v12437_v55 = vld [vmem:[#allocation34_spill] sm:$0xff] }
 0x1fa   : > { %v11419_v27 = vpop.f32.mrb[44].mxu1  ;;  %v6487_v22 = vpop.f32.mrb[61].mxu0  ;;  %9019 = vmatpush3.bf16.msra.mxu1 %v12432_v42  ;;  %v12440_v42 = vld [vmem:[#allocation39_spill] sm:$0xff] }
 0x1fb   : > { %v1876_v23 = vsel %vm1844_vm15, %v9265_v37, %v1860_v44  ;;  %v9260_v13 = vadd.f32 %v9259_v58, %v11398_v35  ;;  %v6488_v17 = vadd.f32 %v6487_v22, %v6486_v53  ;;  %v11423_v1 = vpop.f32.mrb[45].mxu1  ;;  %v3178_v24 = vld [vmem:[#allocation2 + $0x30] sm:$0xff]  ;;  %9021 = vmatprep.subr.bf16.mxu1 %v12433_v19  ;;  %v12434_v35 = vld [vmem:[#allocation30_spill] sm:$0xff] }
 0x1fc   : > { %1892 = vst [vmem:[#allocation2 + $0x49] sm:$0xff] %v1876_v23  ;;  %3355 = vmatmul.mubr.f32.gmra.mrb[152].mxu0 %v3178_v24  ;;  %3748 = vmatmul.mubr.f32.gmra.mrb[100].mxu1 %v3178_v24 }
 0x1fd   : > { %vm1845_vm1 = vcmp.ge.f32.partialorder %v9260_v13, 0.0  ;;  %v1861_v20 = vmul.f32 0.2, %v9260_v13  ;;  %v9274_v6 = vadd.f32 %v11354_v61, %v6488_v17  ;;  %v6489_v26 = vpop.f32.mrb[62].mxu0  ;;  %3359 = vmatprep.mubr.f32.mxu0 %v1875_v3  ;;  %3752 = vmatprep.mubr.f32.mxu1 %v1875_v3  ;;  %v12441_v17 = vld [vmem:[#allocation40_spill] sm:$0xff] }
 0x1fe   : > { %v11427_v50 = vpop.f32.mrb[46].mxu1  ;;  %v6490_v7 = vpop.f32.mrb[63].mxu0  ;;  %9023 = vmatpush3.bf16.msra.mxu1 %v12434_v35 }
 0x1ff   : > { %v1877_v40 = vsel %vm1845_vm1, %v9260_v13, %v1861_v20  ;;  %v9275_v0 = vadd.f32 %v9274_v6, %v11404_v25  ;;  %v6491_v14 = vadd.f32 %v6490_v7, %v6489_v26  ;;  %v11431_v36 = vpop.f32.mrb[47].mxu1  ;;  %v3179_v11 = vld [vmem:[#allocation2 + $0x38] sm:$0xff]  ;;  %9025 = vmatprep.subr.bf16.mxu1 %v12435_v49  ;;  %v12442_v26 = vld [vmem:[#allocation41_spill] sm:$0xff] }
 0x200   : > { %1893 = vst [vmem:[#allocation2 + $0x51] sm:$0xff] %v1877_v40  ;;  %3360 = vmatmul.mubr.f32.gmra.mrb[154].mxu0 %v3179_v11  ;;  %3753 = vmatmul.mubr.f32.gmra.mrb[102].mxu1 %v3179_v11  ;;  %v4682_v20 = vld [vmem:[#allocation8 + $0x108] sm:$0xff] }
 0x201   : > { %vm1846_vm2 = vcmp.ge.f32.partialorder %v9275_v0, 0.0  ;;  %v1862_v61 = vmul.f32 0.2, %v9275_v0  ;;  %v9269_v41 = vadd.f32 %v11349_v56, %v6491_v14  ;;  %v6492_v45 = vpop.f32.mrb[64].mxu0  ;;  %3364 = vmatprep.mubr.f32.mxu0 %v1876_v23  ;;  %3757 = vmatprep.mubr.f32.mxu1 %v1876_v23 }
 0x202   : > { %v6493_v15 = vpop.f32.mrb[65].mxu0  ;;  %9027 = vmatpush3.bf16.msra.mxu1 %v12436_v31 }
 0x203   : > { %v1878_v25 = vsel %vm1846_vm2, %v9275_v0, %v1862_v61  ;;  %v9270_v29 = vadd.f32 %v9269_v41, %v11402_v4  ;;  %v6494_v38 = vadd.f32 %v6493_v15, %v6492_v45  ;;  %v3180_v12 = vld [vmem:[#allocation2 + $0x48] sm:$0xff]  ;;  %9029 = vmatprep.subr.bf16.mxu1 %v12437_v55 }
 0x204   : > { %1894 = vst [vmem:[#allocation2 + $0x61] sm:$0xff] %v1878_v25  ;;  %3365 = vmatmul.mubr.f32.gmra.mrb[156].mxu0 %v3180_v12  ;;  %3758 = vmatmul.mubr.f32.gmra.mrb[104].mxu1 %v3180_v12 }
 0x205   : > { %vm1847_vm3 = vcmp.ge.f32.partialorder %v9270_v29, 0.0  ;;  %v1863_v5 = vmul.f32 0.2, %v9270_v29  ;;  %v9284_v56 = vadd.f32 %v11364_v39, %v6494_v38  ;;  %v6495_v59 = vpop.f32.mrb[66].mxu0  ;;  %3369 = vmatprep.mubr.f32.mxu0 %v1877_v40  ;;  %3762 = vmatprep.mubr.f32.mxu1 %v1877_v40 }
 0x206   : > { %v6496_v57 = vpop.f32.mrb[67].mxu0  ;;  %9031 = vmatpush3.bf16.msra.mxu1 %v12438_v8 }
 0x207   : > { %v1879_v47 = vsel %vm1847_vm3, %v9270_v29, %v1863_v5  ;;  %v9285_v4 = vadd.f32 %v9284_v56, %v11409_v18  ;;  %v6497_v62 = vadd.f32 %v6496_v57, %v6495_v59  ;;  %v3181_v10 = vld [vmem:[#allocation2 + $0x50] sm:$0xff]  ;;  %9033 = vmatprep.subr.bf16.mxu1 %v12439_v16 }
 0x208   : > { %1895 = vst [vmem:[#allocation2 + $0x69] sm:$0xff] %v1879_v47  ;;  %3370 = vmatmul.mubr.f32.gmra.mrb[158].mxu0 %v3181_v10  ;;  %3763 = vmatmul.mubr.f32.gmra.mrb[106].mxu1 %v3181_v10 }
 0x209   : > { %vm1848_vm5 = vcmp.ge.f32.partialorder %v9285_v4, 0.0  ;;  %v1864_v3 = vmul.f32 0.2, %v9285_v4  ;;  %v9279_v39 = vadd.f32 %v11359_v32, %v6497_v62  ;;  %v6498_v37 = vpop.f32.mrb[68].mxu0  ;;  %3374 = vmatprep.mubr.f32.mxu0 %v1878_v25  ;;  %3767 = vmatprep.mubr.f32.mxu1 %v1878_v25 }
 0x20a   : > { %v6499_v2 = vpop.f32.mrb[69].mxu0  ;;  %9035 = vmatpush3.bf16.msra.mxu1 %v11210_v51 }
 0x20b   : > { %v1880_v46 = vsel %vm1848_vm5, %v9285_v4, %v1864_v3  ;;  %v9280_v18 = vadd.f32 %v9279_v39, %v11407_v33  ;;  %v6500_v60 = vadd.f32 %v6499_v2, %v6498_v37  ;;  %v3182_v44 = vld [vmem:[#allocation2 + $0x60] sm:$0xff]  ;;  %9037 = vmatprep.subr.bf16.mxu1 %v11215_v63  ;;  %v4681_v63 = vld [vmem:[#allocation8 + $0x100] sm:$0xff] }
 0x20c   : > { %1896 = vst [vmem:[#allocation2 + $0x79] sm:$0xff] %v1880_v46  ;;  %3375 = vmatmul.mubr.f32.gmra.mrb[160].mxu0 %v3182_v44  ;;  %3768 = vmatmul.mubr.f32.gmra.mrb[108].mxu1 %v3182_v44  ;;  %v3206_v2 = vld [vmem:[#allocation2 + $0x2] sm:$0xff] }
 0x20d   : > { %vm1849_vm6 = vcmp.ge.f32.partialorder %v9280_v18, 0.0  ;;  %v1865_v58 = vmul.f32 0.2, %v9280_v18  ;;  %v9294_v32 = vadd.f32 %v11374_v43, %v6500_v60  ;;  %v6501_v53 = vpop.f32.mrb[70].mxu0  ;;  %3379 = vmatprep.mubr.f32.mxu0 %v1879_v47  ;;  %3772 = vmatprep.mubr.f32.mxu1 %v1879_v47  ;;  %v3659_v60 = vld [vmem:[#allocation8 + $0x290] sm:$0xff]  ;;  %v3660_v44 = vld [vmem:[#allocation8 + $0x298] sm:$0xff] }
 0x20e   : > { %v6502_v22 = vpop.f32.mrb[71].mxu0  ;;  %9039 = vmatpush3.bf16.msra.mxu1 %v12440_v42 }
 0x20f   : > { %v1881_v51 = vsel %vm1849_vm6, %v9280_v18, %v1865_v58  ;;  %v9295_v33 = vadd.f32 %v9294_v32, %v11415_v34  ;;  %v6503_v23 = vadd.f32 %v6502_v22, %v6501_v53  ;;  %v3183_v13 = vld [vmem:[#allocation2 + $0x68] sm:$0xff]  ;;  %9041 = vmatprep.subr.bf16.mxu1 %v12441_v17  ;;  %v11452_v34 = vpack.c.bf16 %v4682_v20, %v4681_v63 }
 0x210   : > { %1897 = vst [vmem:[#allocation2 + $0x81] sm:$0xff] %v1881_v51  ;;  %3380 = vmatmul.mubr.f32.gmra.mrb[162].mxu0 %v3183_v13  ;;  %3773 = vmatmul.mubr.f32.gmra.mrb[110].mxu1 %v3183_v13  ;;  %v8888_v53 = vpack.c.bf16 %v3660_v44, %v3659_v60  ;;  %v11470_v13 = vld [vmem:[#allocation2 + $0x1a] sm:$0xff] }
 0x211   : > { %vm1850_vm7 = vcmp.ge.f32.partialorder %v9295_v33, 0.0  ;;  %v1866_v24 = vmul.f32 0.2, %v9295_v33  ;;  %v9289_v43 = vadd.f32 %v11369_v28, %v6503_v23  ;;  %v6504_v19 = vpop.f32.mrb[72].mxu0  ;;  %3384 = vmatprep.mubr.f32.mxu0 %v1880_v46  ;;  %3777 = vmatprep.mubr.f32.mxu1 %v1880_v46 }
 0x212   : > { %v6505_v6 = vpop.f32.mrb[73].mxu0  ;;  %9043 = vmatpush3.bf16.msra.mxu1 %v12442_v26 }
 0x213   : > { %v1882_v7 = vsel %vm1850_vm7, %v9295_v33, %v1866_v24  ;;  %v9290_v35 = vadd.f32 %v9289_v43, %v11412_v30  ;;  %v6506_v40 = vadd.f32 %v6505_v6, %v6504_v19  ;;  %v3184_v0 = vld [vmem:[#allocation2 + $0x78] sm:$0xff]  ;;  %9045 = vmatprep.subr.bf16.mxu1 %v11452_v34  ;;  %v3663_v24 = vld [vmem:[#allocation8 + $0x2b0] sm:$0xff]  ;;  %v3664_v6 = vld [vmem:[#allocation8 + $0x2b8] sm:$0xff] }
 0x214   : > { %1898 = vst [vmem:[#allocation2 + $0x91] sm:$0xff] %v1882_v7  ;;  %3385 = vmatmul.mubr.f32.gmra.mrb[164].mxu0 %v3184_v0  ;;  %3778 = vmatmul.mubr.f32.gmra.mrb[112].mxu1 %v3184_v0  ;;  %v3662_v33 = vld [vmem:[#allocation8 + $0x2a8] sm:$0xff]  ;;  %v11474_v19 = vld [vmem:[#allocation2 + $0x22] sm:$0xff] }
 0x215   : > { %vm1851_vm8 = vcmp.ge.f32.partialorder %v9290_v35, 0.0  ;;  %v1867_v14 = vmul.f32 0.2, %v9290_v35  ;;  %v9304_v28 = vadd.f32 %v11384_v9, %v6506_v40  ;;  %v6507_v11 = vpop.f32.mrb[74].mxu0  ;;  %3389 = vmatprep.mubr.f32.mxu0 %v1881_v51  ;;  %3782 = vmatprep.mubr.f32.mxu1 %v1881_v51  ;;  %v3661_v51 = vld [vmem:[#allocation8 + $0x2a0] sm:$0xff]  ;;  %v3666_v0 = vld [vmem:[#allocation8 + $0x2c8] sm:$0xff] }
 0x216   : > { %v6508_v49 = vpop.f32.mrb[75].mxu0  ;;  %v8892_v63 = vpack.c.bf16 %v3662_v33, %v3661_v51  ;;  %v3665_v40 = vld [vmem:[#allocation8 + $0x2c0] sm:$0xff] }
 0x217   : > { %v1883_v61 = vsel %vm1851_vm8, %v9290_v35, %v1867_v14  ;;  %v9305_v41 = vadd.f32 %v9304_v28, %v11423_v1  ;;  %v6509_v45 = vadd.f32 %v6508_v49, %v6507_v11  ;;  %v3185_v30 = vld [vmem:[#allocation2 + $0x80] sm:$0xff]  ;;  %v8896_v35 = vpack.c.bf16 %v3664_v6, %v3663_v24  ;;  %v4046_v24 = vld [vmem:[#allocation8 + $0x388] sm:$0xff] }
 0x218   : > { %1899 = vst [vmem:[#allocation2 + $0x99] sm:$0xff] %v1883_v61  ;;  %3390 = vmatmul.mubr.f32.gmra.mrb[166].mxu0 %v3185_v30  ;;  %3783 = vmatmul.mubr.f32.gmra.mrb[114].mxu1 %v3185_v30  ;;  %v11482_v28 = vld [vmem:[#allocation2 + $0x3a] sm:$0xff]  ;;  %v4685_v30 = vld [vmem:[#allocation8 + $0x120] sm:$0xff] }
 0x219   : > { %vm1852_vm9 = vcmp.ge.f32.partialorder %v9305_v41, 0.0  ;;  %v1868_v15 = vmul.f32 0.2, %v9305_v41  ;;  %v9299_v31 = vadd.f32 %v11379_v21, %v6509_v45  ;;  %v6510_v25 = vpop.f32.mrb[76].mxu0  ;;  %3394 = vmatprep.mubr.f32.mxu0 %v1882_v7  ;;  %3787 = vmatprep.mubr.f32.mxu1 %v1882_v7  ;;  %v11479_v7 = vld [vmem:[#allocation2 + $0x32] sm:$0xff]  ;;  %v4683_v49 = vld [vmem:[#allocation8 + $0x110] sm:$0xff] }
 0x21a   : > { %v6511_v9 = vpop.f32.mrb[77].mxu0 }
 0x21b   : > { %v1884_v29 = vsel %vm1852_vm9, %v9305_v41, %v1868_v15  ;;  %v9300_v38 = vadd.f32 %v9299_v31, %v11419_v27  ;;  %v6512_v12 = vadd.f32 %v6511_v9, %v6510_v25  ;;  %v3186_v55 = vld [vmem:[#allocation2 + $0x90] sm:$0xff]  ;;  %v4686_v15 = vld [vmem:[#allocation8 + $0x128] sm:$0xff]  ;;  %v8900_v31 = vpack.c.bf16 %v3666_v0, %v3665_v40 }
 0x21c   : > { %1900 = vst [vmem:[#allocation2 + $0xa9] sm:$0xff] %v1884_v29  ;;  %3395 = vmatmul.mubr.f32.gmra.mrb[168].mxu0 %v3186_v55  ;;  %3788 = vmatmul.mubr.f32.gmra.mrb[116].mxu1 %v3186_v55  ;;  %v11487_v41 = vld [vmem:[#allocation2 + $0x4a] sm:$0xff]  ;;  %v4694_v0 = vld [vmem:[#allocation8 + $0x168] sm:$0xff] }
 0x21d   : > { %vm1853_vm10 = vcmp.ge.f32.partialorder %v9300_v38, 0.0  ;;  %v1869_v1 = vmul.f32 0.2, %v9300_v38  ;;  %v9314_v5 = vadd.f32 %v11392_v48, %v6512_v12  ;;  %v6513_v56 = vpop.f32.mrb[78].mxu0  ;;  %3399 = vmatprep.mubr.f32.mxu0 %v1883_v61  ;;  %3792 = vmatprep.mubr.f32.mxu1 %v1883_v61  ;;  %v4684_v61 = vld [vmem:[#allocation8 + $0x118] sm:$0xff]  ;;  %v4693_v40 = vld [vmem:[#allocation8 + $0x160] sm:$0xff] }
 0x21e   : > { %v6514_v21 = vpop.f32.mrb[79].mxu0  ;;  %v9048_v9 = vpack.c.bf16 %v4684_v61, %v4683_v49  ;;  %v3668_v12 = vld [vmem:[#allocation8 + $0x2d8] sm:$0xff]  ;;  %v4029_v61 = vld [vmem:[#allocation8 + $0x300] sm:$0xff] }
 0x21f   : > { %v1885_v59 = vsel %vm1853_vm10, %v9300_v38, %v1869_v1  ;;  %v9315_v57 = vadd.f32 %v9314_v5, %v11431_v36  ;;  %v6515_v8 = vadd.f32 %v6514_v21, %v6513_v56  ;;  %v3187_v47 = vld [vmem:[#allocation2 + $0x98] sm:$0xff]  ;;  %v3667_v38 = vld [vmem:[#allocation8 + $0x2d0] sm:$0xff]  ;;  %v9052_v5 = vpack.c.bf16 %v4686_v15, %v4685_v30 }
 0x220   : > { %1901 = vst [vmem:[#allocation2 + $0xb1] sm:$0xff] %v1885_v59  ;;  %3400 = vmatmul.mubr.f32.gmra.mrb[170].mxu0 %v3187_v47  ;;  %3793 = vmatmul.mubr.f32.gmra.mrb[118].mxu1 %v3187_v47  ;;  %v11496_v1 = vld [vmem:[#allocation2 + $0x62] sm:$0xff]  ;;  %v11499_v47 = vld [vmem:[#allocation2 + $0x6a] sm:$0xff]  ;;  %v11512_v60 = vld [vmem:[#allocation2 + $0x92] sm:$0xff] }
 0x221   : > { %vm1854_vm11 = vcmp.ge.f32.partialorder %v9315_v57, 0.0  ;;  %v1870_v27 = vmul.f32 0.2, %v9315_v57  ;;  %v9309_v4 = vadd.f32 %v11389_v54, %v6515_v8  ;;  %3404 = vmatprep.mubr.f32.mxu0 %v1884_v29  ;;  %3797 = vmatprep.mubr.f32.mxu1 %v1884_v29  ;;  %v6580_v62 = vpop.f32.mrb[80].mxu0  ;;  %v11490_v29 = vld [vmem:[#allocation2 + $0x52] sm:$0xff]  ;;  %v4687_v21 = vld [vmem:[#allocation8 + $0x130] sm:$0xff] }
 0x222   : > { %v6581_v48 = vpop.f32.mrb[81].mxu0 }
 0x223   : > { %v1886_v10 = vsel %vm1854_vm11, %v9315_v57, %v1870_v27  ;;  %v9310_v16 = vadd.f32 %v9309_v4, %v11427_v50  ;;  %v3188_v3 = vld [vmem:[#allocation2 + $0xa8] sm:$0xff]  ;;  %v11464_v39 = vadd.f32 %v6581_v48, %v6580_v62  ;;  %v8904_v57 = vpack.c.bf16 %v3668_v12, %v3667_v38  ;;  %v3669_v27 = vld [vmem:[#allocation8 + $0x2e0] sm:$0xff]  ;;  %v11504_v62 = vld [vmem:[#allocation2 + $0x7a] sm:$0xff] }
 0x224   : > { %1902 = vst [vmem:[#allocation2 + $0xc1] sm:$0xff] %v1886_v10  ;;  %3405 = vmatmul.mubr.f32.gmra.mrb[172].mxu0 %v3188_v3  ;;  %3798 = vmatmul.mubr.f32.gmra.mrb[120].mxu1 %v3188_v3  ;;  %v3207_v50 = vld [vmem:[#allocation2 + $0xa] sm:$0xff]  ;;  %v4690_v3 = vld [vmem:[#allocation8 + $0x148] sm:$0xff] }
 0x225   : > { %vm1855_vm12 = vcmp.ge.f32.partialorder %v9310_v16, 0.0  ;;  %v1871_v36 = vmul.f32 0.2, %v9310_v16  ;;  %3409 = vmatprep.mubr.f32.mxu0 %v1885_v59  ;;  %3802 = vmatprep.mubr.f32.mxu1 %v1885_v59  ;;  %v6583_v37 = vpop.f32.mrb[82].mxu0  ;;  %v4688_v59 = vld [vmem:[#allocation8 + $0x138] sm:$0xff] }
 0x226   : > { %v6584_v54 = vpop.f32.mrb[83].mxu0  ;;  %v9056_v48 = vpack.c.bf16 %v4688_v59, %v4687_v21  ;;  %v4695_v59 = vld [vmem:[#allocation8 + $0x170] sm:$0xff] }
 0x227   : > { %v1887_v46 = vsel %vm1855_vm12, %v9310_v16, %v1871_v36  ;;  %v3189_v18 = vld [vmem:[#allocation2 + $0xb0] sm:$0xff]  ;;  %v11466_v58 = vadd.f32 %v6584_v54, %v6583_v37  ;;  %v3671_v54 = vld [vmem:[#allocation8 + $0x2f0] sm:$0xff] }
 0x228   : > { %1903 = vst [vmem:[#allocation2 + $0xc9] sm:$0xff] %v1887_v46  ;;  %3410 = vmatmul.mubr.f32.gmra.mrb[174].mxu0 %v3189_v18  ;;  %3803 = vmatmul.mubr.f32.gmra.mrb[122].mxu1 %v3189_v18  ;;  %v4689_v16 = vld [vmem:[#allocation8 + $0x140] sm:$0xff] }
 0x229   : > { %7988 = vmatprep.mubr.f32.mxu0 %v3206_v2  ;;  %3807 = vmatprep.mubr.f32.mxu1 %v1886_v10  ;;  %v6586_v32 = vpop.f32.mrb[84].mxu0  ;;  %v11507_v2 = vld [vmem:[#allocation2 + $0x82] sm:$0xff]  ;;  %v9060_v44 = vpack.c.bf16 %v4690_v3, %v4689_v16  ;;  %v11522_v6 = vld [vmem:[#allocation2 + $0xaa] sm:$0xff] }
 0x22a   : > { %v6587_v22 = vpop.f32.mrb[85].mxu0  ;;  %v4049_v3 = vld [vmem:[#allocation8 + $0x3a0] sm:$0xff] }
 0x22b   : > { %v3590_v42 = vld [vmem:[#allocation2 + $0xc0] sm:$0xff]  ;;  %v11468_v23 = vadd.f32 %v6587_v22, %v6586_v32 }
 0x22c   : > { %7989 = vmatmul.mubr.f32.vlgmr.msra.gmra.mrb[176].mxu0 %v3207_v50  ;;  %3808 = vmatmul.mubr.f32.gmra.mrb[124].mxu1 %v3590_v42  ;;  %v4691_v32 = vld [vmem:[#allocation8 + $0x150] sm:$0xff] }
 0x22d   : > { %7991 = vmatprep.mubr.f32.mxu0 %v11470_v13  ;;  %8887 = vmatpush3.bf16.msra.mxu0 %v11396_v52  ;;  %v6589_v17 = vpop.f32.mrb[86].mxu0 }
 0x22e   : > { %3812 = vmatprep.mubr.f32.mxu1 %v1887_v46  ;;  %8889 = vmatprep.subr.bf16.mxu0 %v8888_v53  ;;  %v6590_v43 = vpop.f32.mrb[87].mxu0 }
 0x22f   : > { %v3591_v20 = vld [vmem:[#allocation2 + $0xc8] sm:$0xff]  ;;  %v11476_v26 = vadd.f32 %v6590_v43, %v6589_v17  ;;  %v11515_v17 = vld [vmem:[#allocation2 + $0x9a] sm:$0xff] }
 0x230   : > { %7992 = vmatmul.mubr.f32.gmra.mrb[178].mxu0 %v11474_v19  ;;  %3813 = vmatmul.mubr.f32.gmra.mrb[126].mxu1 %v3591_v20 }
 0x231   : > { %7994 = vmatprep.mubr.f32.mxu0 %v11479_v7  ;;  %8891 = vmatpush3.bf16.msra.mxu0 %v8888_v53  ;;  %v6592_v52 = vpop.f32.mrb[88].mxu0  ;;  %v4692_v53 = vld [vmem:[#allocation8 + $0x158] sm:$0xff] }
 0x232   : > { %4761 = vmatprep.mubr.f32.mxu1 %v1886_v10  ;;  %8893 = vmatprep.subr.bf16.mxu0 %v8892_v63  ;;  %v6593_v14 = vpop.f32.mrb[89].mxu0 }
 0x233   : > { %v11484_v11 = vadd.f32 %v6593_v14, %v6592_v52  ;;  %v9064_v52 = vpack.c.bf16 %v4692_v53, %v4691_v32  ;;  %v5068_v32 = vld [vmem:[#allocation8 + $0x208] sm:$0xff] }
 0x234   : > { %7995 = vmatmul.mubr.f32.gmra.mrb[180].mxu0 %v11482_v28  ;;  %4762 = vmatmul.mubr.f32.vlgmr.msra.gmra.mrb[128].mxu1 %v3590_v42 }
 0x235   : > { %7997 = vmatprep.mubr.f32.mxu0 %v11487_v41  ;;  %8895 = vmatpush3.bf16.msra.mxu0 %v8892_v63  ;;  %v6595_v45 = vpop.f32.mrb[90].mxu0  ;;  %v4045_v63 = vld [vmem:[#allocation8 + $0x380] sm:$0xff] }
 0x236   : > { %4766 = vmatprep.mubr.f32.mxu1 %v1887_v46  ;;  %8897 = vmatprep.subr.bf16.mxu0 %v8896_v35  ;;  %v6596_v25 = vpop.f32.mrb[91].mxu0  ;;  %v3672_v46 = vld [vmem:[#allocation8 + $0x2f8] sm:$0xff]  ;;  %v8916_v49 = vpack.c.bf16 %v4046_v24, %v4045_v63 }
 0x237   : > { %v11492_v55 = vadd.f32 %v6596_v25, %v6595_v45  ;;  %9047 = vmatpush3.bf16.msra.mxu1 %v11452_v34  ;;  %v3670_v34 = vld [vmem:[#allocation8 + $0x2e8] sm:$0xff]  ;;  %v8912_v42 = vpack.c.bf16 %v3672_v46, %v3671_v54  ;;  %v4047_v25 = vld [vmem:[#allocation8 + $0x390] sm:$0xff] }
 0x238   : > { %7998 = vmatmul.mubr.f32.gmra.mrb[182].mxu0 %v11490_v29  ;;  %4767 = vmatmul.mubr.f32.gmra.mrb[130].mxu1 %v3591_v20  ;;  %v8908_v36 = vpack.c.bf16 %v3670_v34, %v3669_v27  ;;  %v4030_v45 = vld [vmem:[#allocation8 + $0x308] sm:$0xff]  ;;  %v4031_v34 = vld [vmem:[#allocation8 + $0x310] sm:$0xff] }
 0x239   : > { %8000 = vmatprep.mubr.f32.mxu0 %v11496_v1  ;;  %8899 = vmatpush3.bf16.msra.mxu0 %v8896_v35  ;;  %v6598_v56 = vpop.f32.mrb[92].mxu0 }
 0x23a   : > { %8901 = vmatprep.subr.bf16.mxu0 %v8900_v31  ;;  %v6599_v8 = vpop.f32.mrb[93].mxu0  ;;  %9049 = vmatprep.subr.bf16.mxu1 %v9048_v9 }
 0x23b   : > { %v11501_v4 = vadd.f32 %v6599_v8, %v6598_v56  ;;  %9051 = vmatpush3.bf16.msra.mxu1 %v9048_v9  ;;  %v4048_v9 = vld [vmem:[#allocation8 + $0x398] sm:$0xff]  ;;  %v8918_v56 = vpack.c.bf16 %v4030_v45, %v4029_v61  ;;  %v4035_v45 = vld [vmem:[#allocation8 + $0x330] sm:$0xff] }
 0x23c   : > { %8001 = vmatmul.mubr.f32.gmra.mrb[184].mxu0 %v11499_v47  ;;  %9053 = vmatprep.subr.bf16.mxu1 %v9052_v5  ;;  %v8920_v27 = vpack.c.bf16 %v4048_v9, %v4047_v25  ;;  %v4053_v9 = vld [vmem:[#allocation8 + $0x3c0] sm:$0xff] }
 0x23d   : > { %8003 = vmatprep.mubr.f32.mxu0 %v11504_v62  ;;  %8903 = vmatpush3.bf16.msra.mxu0 %v8900_v31  ;;  %v6601_v10 = vpop.f32.mrb[94].mxu0  ;;  %v11525_v31 = vld [vmem:[#allocation2 + $0xb2] sm:$0xff] }
 0x23e   : > { %8905 = vmatprep.subr.bf16.mxu0 %v8904_v57  ;;  %v6602_v37 = vpop.f32.mrb[95].mxu0 }
 0x23f   : > { %v11509_v18 = vadd.f32 %v6602_v37, %v6601_v10  ;;  %9055 = vmatpush3.bf16.msra.mxu1 %v9052_v5  ;;  %v9068_v5 = vpack.c.bf16 %v4694_v0, %v4693_v40 }
 0x240   : > { %8004 = vmatmul.mubr.f32.gmra.mrb[186].mxu0 %v11507_v2  ;;  %9057 = vmatprep.subr.bf16.mxu1 %v9056_v48 }
 0x241   : > { %8006 = vmatprep.mubr.f32.mxu0 %v11512_v60  ;;  %8907 = vmatpush3.bf16.msra.mxu0 %v8904_v57  ;;  %v6604_v50 = vpop.f32.mrb[96].mxu0  ;;  %v4696_v57 = vld [vmem:[#allocation8 + $0x178] sm:$0xff] }
 0x242   : > { %v6804_v22 = vpop.f32.mrb[64].mxu1  ;;  %8909 = vmatprep.subr.bf16.mxu0 %v8908_v36  ;;  %v6605_v51 = vpop.f32.mrb[97].mxu0 }
 0x243   : > { %v6805_v33 = vpop.f32.mrb[65].mxu1  ;;  %v11517_v43 = vadd.f32 %v6605_v51, %v6604_v50  ;;  %9059 = vmatpush3.bf16.msra.mxu1 %v9056_v48  ;;  %v4032_v48 = vld [vmem:[#allocation8 + $0x318] sm:$0xff]  ;;  %v5067_v50 = vld [vmem:[#allocation8 + $0x200] sm:$0xff]  ;;  %v4034_v51 = vld [vmem:[#allocation8 + $0x328] sm:$0xff] }
 0x244   : > { %v11519_v20 = vadd.f32 %v6805_v33, %v6804_v22  ;;  %8007 = vmatmul.mubr.f32.gmra.mrb[188].mxu0 %v11515_v17  ;;  %9061 = vmatprep.subr.bf16.mxu1 %v9060_v44  ;;  %v8922_v46 = vpack.c.bf16 %v4032_v48, %v4031_v34 }
 0x245   : > { %8009 = vmatprep.mubr.f32.mxu0 %v11522_v6  ;;  %8911 = vmatpush3.bf16.msra.mxu0 %v8908_v36  ;;  %v6607_v35 = vpop.f32.mrb[98].mxu0  ;;  %v4050_v36 = vld [vmem:[#allocation8 + $0x3a8] sm:$0xff] }
 0x246   : > { %v6807_v14 = vpop.f32.mrb[66].mxu1  ;;  %8913 = vmatprep.subr.bf16.mxu0 %v8912_v42  ;;  %v6608_v30 = vpop.f32.mrb[99].mxu0  ;;  %v8924_v22 = vpack.c.bf16 %v4050_v36, %v4049_v3 }
 0x247   : > { %v6808_v15 = vpop.f32.mrb[67].mxu1  ;;  %v11527_v38 = vadd.f32 %v6608_v30, %v6607_v35  ;;  %9063 = vmatpush3.bf16.msra.mxu1 %v9060_v44  ;;  %v4036_v30 = vld [vmem:[#allocation8 + $0x338] sm:$0xff] }
 0x248   : > { %v11529_v12 = vadd.f32 %v6808_v15, %v6807_v14  ;;  %8010 = vmatmul.mubr.f32.gmra.mrb[190].mxu0 %v11525_v31  ;;  %9065 = vmatprep.subr.bf16.mxu1 %v9064_v52 }
 0x249   : > { %8915 = vmatpush3.bf16.msra.mxu0 %v8912_v42  ;;  %8044 = vmatprep.mubr.f32.mxu0 %v11470_v13  ;;  %v6610_v21 = vpop.f32.mrb[100].mxu0  ;;  %v9072_v13 = vpack.c.bf16 %v4696_v57, %v4695_v59  ;;  %v4033_v42 = vld [vmem:[#allocation8 + $0x320] sm:$0xff] }
 0x24a   : > { %v6810_v8 = vpop.f32.mrb[68].mxu1  ;;  %8917 = vmatprep.subr.bf16.mxu0 %v8916_v49  ;;  %v6611_v10 = vpop.f32.mrb[101].mxu0  ;;  %v8926_v40 = vpack.c.bf16 %v4034_v51, %v4033_v42  ;;  %v4058_v42 = vld [vmem:[#allocation8 + $0x3e8] sm:$0xff] }
 0x24b   : > { %v6811_v16 = vpop.f32.mrb[69].mxu1  ;;  %v11533_v37 = vadd.f32 %v6611_v10, %v6610_v21  ;;  %9067 = vmatpush3.bf16.msra.mxu1 %v9064_v52  ;;  %v4051_v52 = vld [vmem:[#allocation8 + $0x3b0] sm:$0xff] }
 0x24c   : > { %v11535_v54 = vadd.f32 %v6811_v16, %v6810_v8  ;;  %8045 = vmatmul.mubr.f32.vlgmr.msra.gmra.mrb[176].mxu0 %v11474_v19  ;;  %9069 = vmatprep.subr.bf16.mxu1 %v9068_v5  ;;  %v4052_v19 = vld [vmem:[#allocation8 + $0x3b8] sm:$0xff]  ;;  %v4037_v8 = vld [vmem:[#allocation8 + $0x340] sm:$0xff]  ;;  %v4055_v10 = vld [vmem:[#allocation8 + $0x3d0] sm:$0xff] }
 0x24d   : > { %8047 = vmatprep.mubr.f32.mxu0 %v11479_v7  ;;  %8919 = vmatpush3.bf16.msra.mxu0 %v8918_v56  ;;  %v6613_v44 = vpop.f32.mrb[102].mxu0  ;;  %v9076_v7 = vpack.c.bf16 %v5068_v32, %v5067_v50  ;;  %v8928_v49 = vpack.c.bf16 %v4052_v19, %v4051_v52  ;;  %v4056_v16 = vld [vmem:[#allocation8 + $0x3d8] sm:$0xff]  ;;  %v4041_v19 = vld [vmem:[#allocation8 + $0x360] sm:$0xff] }
 0x24e   : > { %v6813_v53 = vpop.f32.mrb[70].mxu1  ;;  %8921 = vmatprep.subr.bf16.mxu0 %v8920_v27  ;;  %v6614_v33 = vpop.f32.mrb[103].mxu0  ;;  %v4038_v27 = vld [vmem:[#allocation8 + $0x348] sm:$0xff]  ;;  %v4040_v50 = vld [vmem:[#allocation8 + $0x358] sm:$0xff] }
 0x24f   : > { %v6814_v63 = vpop.f32.mrb[71].mxu1  ;;  %v11539_v24 = vadd.f32 %v6614_v33, %v6613_v44  ;;  %9071 = vmatpush3.bf16.msra.mxu1 %v9068_v5  ;;  %v4054_v5 = vld [vmem:[#allocation8 + $0x3c8] sm:$0xff]  ;;  %v4039_v44 = vld [vmem:[#allocation8 + $0x350] sm:$0xff] }
 0x250   : > { %v11541_v35 = vadd.f32 %v6814_v63, %v6813_v53  ;;  %8048 = vmatmul.mubr.f32.gmra.mrb[178].mxu0 %v11482_v28  ;;  %9073 = vmatprep.subr.bf16.mxu1 %v9072_v13  ;;  %v8932_v57 = vpack.c.bf16 %v4054_v5, %v4053_v9  ;;  %v4043_v9 = vld [vmem:[#allocation8 + $0x370] sm:$0xff]  ;;  %v4044_v5 = vld [vmem:[#allocation8 + $0x378] sm:$0xff] }
 0x251   : > { %8050 = vmatprep.mubr.f32.mxu0 %v11487_v41  ;;  %8923 = vmatpush3.bf16.msra.mxu0 %v8922_v46  ;;  %v6616_v0 = vpop.f32.mrb[104].mxu0  ;;  %v8930_v41 = vpack.c.bf16 %v4036_v30, %v4035_v45  ;;  %v8936_v46 = vpack.c.bf16 %v4056_v16, %v4055_v10  ;;  %v8946_v10 = vpack.c.bf16 %v4044_v5, %v4043_v9 }
 0x252   : > { %v6816_v14 = vpop.f32.mrb[72].mxu1  ;;  %8925 = vmatprep.subr.bf16.mxu0 %v8924_v22  ;;  %v6617_v61 = vpop.f32.mrb[105].mxu0  ;;  %v4057_v22 = vld [vmem:[#allocation8 + $0x3e0] sm:$0xff] }
 0x253   : > { %v6817_v15 = vpop.f32.mrb[73].mxu1  ;;  %v11545_v25 = vadd.f32 %v6617_v61, %v6616_v0  ;;  %9075 = vmatpush3.bf16.msra.mxu1 %v9072_v13  ;;  %v8940_v52 = vpack.c.bf16 %v4058_v42, %v4057_v22  ;;  %v3996_v22 = vld [vmem:[#allocation2 + $0x31] sm:$0xff] }
 0x254   : > { %v11547_v28 = vadd.f32 %v6817_v15, %v6816_v14  ;;  %8051 = vmatmul.mubr.f32.gmra.mrb[180].mxu0 %v11490_v29  ;;  %9077 = vmatprep.subr.bf16.mxu1 %v9076_v7  ;;  %v4042_v7 = vld [vmem:[#allocation8 + $0x368] sm:$0xff]  ;;  %v4059_v14 = vld [vmem:[#allocation8 + $0x3f0] sm:$0xff] }
 0x255   : > { %8053 = vmatprep.mubr.f32.mxu0 %v11496_v1  ;;  %8927 = vmatpush3.bf16.msra.mxu0 %v8926_v40  ;;  %v6619_v56 = vpop.f32.mrb[106].mxu0  ;;  %v8934_v1 = vpack.c.bf16 %v4038_v27, %v4037_v8  ;;  %v11579_v8 = vld [vmem:[#allocation2 + $0xc2] sm:$0xff] }
 0x256   : > { %v6819_v21 = vpop.f32.mrb[74].mxu1  ;;  %8929 = vmatprep.subr.bf16.mxu0 %v8928_v49  ;;  %v6620_v59 = vpop.f32.mrb[107].mxu0  ;;  %v4060_v49 = vld [vmem:[#allocation8 + $0x3f8] sm:$0xff] }
 0x257   : > { %v6820_v34 = vpop.f32.mrb[75].mxu1  ;;  %v11551_v48 = vadd.f32 %v6620_v59, %v6619_v56  ;;  %v8944_v15 = vpack.c.bf16 %v4060_v49, %v4059_v14  ;;  %v4061_v59 = vld [vmem:[#allocation8 + $0x400] sm:$0xff]  ;;  %v4066_v14 = vld [vmem:[#allocation8 + $0x428] sm:$0xff] }
 0x258   : > { %v11553_v3 = vadd.f32 %v6820_v34, %v6819_v21  ;;  %8054 = vmatmul.mubr.f32.gmra.mrb[182].mxu0 %v11499_v47 }
 0x259   : > { %8056 = vmatprep.mubr.f32.mxu0 %v11504_v62  ;;  %8931 = vmatpush3.bf16.msra.mxu0 %v8930_v41  ;;  %v6622_v29 = vpop.f32.mrb[108].mxu0  ;;  %v8938_v62 = vpack.c.bf16 %v4040_v50, %v4039_v44  ;;  %v11572_v41 = vld [vmem:[%s12300_s2] ss:$0 sm:$0xff]  ;;  %v4064_v50 = vld [vmem:[#allocation8 + $0x418] sm:$0xff] }
 0x25a   : > { %v6822_v36 = vpop.f32.mrb[76].mxu1  ;;  %8933 = vmatprep.subr.bf16.mxu0 %v8932_v57  ;;  %v6623_v13 = vpop.f32.mrb[109].mxu0  ;;  %v9320_v56 = vadd.f32 %v11572_v41, %v11464_v39  ;;  %v4063_v44 = vld [vmem:[#allocation8 + $0x410] sm:$0xff]  ;;  %v9324_v9 = vadd.f32 %v11572_v41, %v11476_v26 }
 0x25b   : > { %v6823_v32 = vpop.f32.mrb[77].mxu1  ;;  %v11557_v53 = vadd.f32 %v6623_v13, %v6622_v29 }
 0x25c   : > { %v11559_v51 = vadd.f32 %v6823_v32, %v6822_v36  ;;  %8057 = vmatmul.mubr.f32.gmra.mrb[184].mxu0 %v11507_v2 }
 0x25d   : > { %8059 = vmatprep.mubr.f32.mxu0 %v11512_v60  ;;  %8935 = vmatpush3.bf16.msra.mxu0 %v8934_v1  ;;  %v6625_v47 = vpop.f32.mrb[110].mxu0  ;;  %v8942_v60 = vpack.c.bf16 %v4042_v7, %v4041_v19  ;;  %v9316_v1 = vadd.f32 %v11572_v41, %v11466_v58  ;;  %v3980_v19 = vld [vmem:[#allocation2 + $0x30] sm:$0xff] }
 0x25e   : > { %v6825_v33 = vpop.f32.mrb[78].mxu1  ;;  %v6626_v63 = vpop.f32.mrb[111].mxu0  ;;  %8937 = vmatprep.subr.bf16.mxu0 %v8936_v46  ;;  %v11584_v46 = vld [vmem:[#allocation2 + $0xca] sm:$0xff] }
 0x25f   : > { %v6826_v40 = vpop.f32.mrb[79].mxu1  ;;  %v11563_v0 = vadd.f32 %v6626_v63, %v6625_v47  ;;  %v9328_v63 = vadd.f32 %v11572_v41, %v11468_v23 }
 0x260   : > { %v11565_v61 = vadd.f32 %v6826_v40, %v6825_v33  ;;  %8060 = vmatmul.mubr.f32.gmra.mrb[186].mxu0 %v11515_v17  ;;  %v8952_v33 = vpack.c.bf16 %v4064_v50, %v4063_v44  ;;  %v4065_v40 = vld [vmem:[#allocation8 + $0x420] sm:$0xff]  ;;  %v4070_v50 = vld [vmem:[#allocation8 + $0x448] sm:$0xff] }
 0x261   : > { %v6692_v2 = vpop.f32.mrb[112].mxu0  ;;  %8062 = vmatprep.mubr.f32.mxu0 %v11522_v6  ;;  %8939 = vmatpush3.bf16.msra.mxu0 %v8938_v62  ;;  %v4062_v6 = vld [vmem:[#allocation8 + $0x408] sm:$0xff]  ;;  %v8956_v23 = vpack.c.bf16 %v4066_v14, %v4065_v40  ;;  %v4069_v44 = vld [vmem:[#allocation8 + $0x440] sm:$0xff]  ;;  %v4071_v40 = vld [vmem:[#allocation8 + $0x450] sm:$0xff] }
 0x262   : > { %v6828_v45 = vpop.f32.mrb[80].mxu1  ;;  %v6693_v30 = vpop.f32.mrb[113].mxu0  ;;  %8941 = vmatprep.subr.bf16.mxu0 %v8940_v52  ;;  %v8948_v39 = vpack.c.bf16 %v4062_v6, %v4061_v59  ;;  %v4068_v59 = vld [vmem:[#allocation8 + $0x438] sm:$0xff] }
 0x263   : > { %v6694_v17 = vadd.f32 %v6693_v30, %v6692_v2  ;;  %v6829_v21 = vpop.f32.mrb[81].mxu1  ;;  %v3997_v2 = vld [vmem:[#allocation2 + $0x39] sm:$0xff]  ;;  %v4072_v14 = vld [vmem:[#allocation8 + $0x458] sm:$0xff] }
 0x264   : > { %v11576_v57 = vadd.f32 %v6829_v21, %v6828_v45  ;;  %8063 = vmatmul.mubr.f32.gmra.mrb[188].mxu0 %v11525_v31  ;;  %v4067_v21 = vld [vmem:[#allocation8 + $0x430] sm:$0xff] }
 0x265   : > { %v9321_v27 = vadd.f32 %v9320_v56, %v6694_v17  ;;  %v6695_v34 = vpop.f32.mrb[114].mxu0  ;;  %8065 = vmatprep.mubr.f32.mxu0 %v11579_v8  ;;  %8943 = vmatpush3.bf16.msra.mxu0 %v8942_v60  ;;  %v3981_v56 = vld [vmem:[#allocation2 + $0x38] sm:$0xff]  ;;  %v8960_v26 = vpack.c.bf16 %v4068_v59, %v4067_v21  ;;  %v4073_v21 = vld [vmem:[#allocation8 + $0x460] sm:$0xff] }
 0x266   : > { %v6831_v16 = vpop.f32.mrb[82].mxu1  ;;  %v6696_v29 = vpop.f32.mrb[115].mxu0  ;;  %8945 = vmatprep.subr.bf16.mxu0 %v8944_v15  ;;  %v4074_v59 = vld [vmem:[#allocation8 + $0x468] sm:$0xff] }
 0x267   : > { %v6697_v36 = vadd.f32 %v6696_v29, %v6695_v34  ;;  %v6832_v13 = vpop.f32.mrb[83].mxu1  ;;  %v11587_v31 = vadd.f32 %v9321_v27, %v11519_v20  ;;  %v3998_v27 = vld [vmem:[#allocation2 + $0x49] sm:$0xff] }
 0x268   : > { %v11589_v32 = vadd.f32 %v6832_v13, %v6831_v16  ;;  %8066 = vmatmul.mubr.f32.gmra.mrb[190].mxu0 %v11584_v46 }
 0x269   : > { %v9317_v42 = vadd.f32 %v9316_v1, %v6697_v36  ;;  %v6698_v47 = vpop.f32.mrb[116].mxu0  ;;  %8947 = vmatpush3.bf16.msra.mxu0 %v8946_v10  ;;  %4141 = vmatprep.mubr.f32.mxu0 %v3996_v22  ;;  %v3982_v36 = vld [vmem:[#allocation2 + $0x48] sm:$0xff] }
 0x26a   : > { %v6834_v62 = vpop.f32.mrb[84].mxu1  ;;  %v6699_v58 = vpop.f32.mrb[117].mxu0  ;;  %8949 = vmatprep.subr.bf16.mxu0 %v8948_v39 }
 0x26b   : > { %v6700_v20 = vadd.f32 %v6699_v58, %v6698_v47  ;;  %v6835_v52 = vpop.f32.mrb[85].mxu1  ;;  %v11595_v7 = vadd.f32 %v9317_v42, %v11529_v12  ;;  %v3999_v42 = vld [vmem:[#allocation2 + $0x51] sm:$0xff] }
 0x26c   : > { %v11597_v49 = vadd.f32 %v6835_v52, %v6834_v62  ;;  %4142 = vmatmul.mubr.f32.vlgmr.msra.gmra.mrb[192].mxu0 %v3980_v19  ;;  %v3983_v52 = vld [vmem:[#allocation2 + $0x50] sm:$0xff] }
 0x26d   : > { %v9329_v60 = vadd.f32 %v9328_v63, %v6700_v20  ;;  %v6701_v45 = vpop.f32.mrb[118].mxu0  ;;  %4146 = vmatprep.mubr.f32.mxu0 %v3997_v2  ;;  %8951 = vmatpush3.bf16.msra.mxu0 %v8948_v39  ;;  %v9336_v39 = vadd.f32 %v11572_v41, %v11484_v11  ;;  %v8964_v11 = vpack.c.bf16 %v4070_v50, %v4069_v44  ;;  %v4075_v44 = vld [vmem:[#allocation8 + $0x470] sm:$0xff]  ;;  %v4076_v50 = vld [vmem:[#allocation8 + $0x478] sm:$0xff] }
 0x26e   : > { %v6837_v30 = vpop.f32.mrb[86].mxu1  ;;  %v6702_v15 = vpop.f32.mrb[119].mxu0  ;;  %8953 = vmatprep.subr.bf16.mxu0 %v8952_v33  ;;  %v9332_v63 = vadd.f32 %v11572_v41, %v11492_v55  ;;  %v8968_v55 = vpack.c.bf16 %v4072_v14, %v4071_v40  ;;  %v4400_v14 = vld [vmem:[#allocation9] sm:$0xff] }
 0x26f   : > { %v6703_v5 = vadd.f32 %v6702_v15, %v6701_v45  ;;  %v6838_v12 = vpop.f32.mrb[87].mxu1  ;;  %v11602_v17 = vadd.f32 %v9329_v60, %v11535_v54  ;;  %v4000_v60 = vld [vmem:[#allocation2 + $0x61] sm:$0xff] }
 0x270   : > { %v11604_v6 = vadd.f32 %v6838_v12, %v6837_v30  ;;  %4147 = vmatmul.mubr.f32.gmra.mrb[194].mxu0 %v3981_v56  ;;  %v3984_v12 = vld [vmem:[#allocation2 + $0x60] sm:$0xff] }
 0x271   : > { %v9325_v34 = vadd.f32 %v9324_v9, %v6703_v5  ;;  %v6704_v10 = vpop.f32.mrb[120].mxu0  ;;  %4151 = vmatprep.mubr.f32.mxu0 %v3998_v27  ;;  %8955 = vmatpush3.bf16.msra.mxu0 %v8952_v33  ;;  %v9344_v9 = vadd.f32 %v11572_v41, %v11501_v4  ;;  %v8972_v4 = vpack.c.bf16 %v4074_v59, %v4073_v21  ;;  %v3987_v59 = vld [vmem:[#allocation2 + $0x80] sm:$0xff] }
 0x272   : > { %v6840_v16 = vpop.f32.mrb[88].mxu1  ;;  %v6705_v29 = vpop.f32.mrb[121].mxu0  ;;  %8957 = vmatprep.subr.bf16.mxu0 %v8956_v23 }
 0x273   : > { %v6706_v1 = vadd.f32 %v6705_v29, %v6704_v10  ;;  %v6841_v54 = vpop.f32.mrb[89].mxu1  ;;  %v11609_v13 = vadd.f32 %v9325_v34, %v11541_v35  ;;  %v4001_v34 = vld [vmem:[#allocation2 + $0x69] sm:$0xff] }
 0x274   : > { %v11611_v22 = vadd.f32 %v6841_v54, %v6840_v16  ;;  %4152 = vmatmul.mubr.f32.gmra.mrb[196].mxu0 %v3982_v36  ;;  %v3985_v54 = vld [vmem:[#allocation2 + $0x68] sm:$0xff] }
 0x275   : > { %v9337_v47 = vadd.f32 %v9336_v39, %v6706_v1  ;;  %v6707_v62 = vpop.f32.mrb[122].mxu0  ;;  %4156 = vmatprep.mubr.f32.mxu0 %v3999_v42  ;;  %8959 = vmatpush3.bf16.msra.mxu0 %v8956_v23  ;;  %v9340_v39 = vadd.f32 %v11572_v41, %v11509_v18  ;;  %v8976_v18 = vpack.c.bf16 %v4076_v50, %v4075_v44  ;;  %v3988_v50 = vld [vmem:[#allocation2 + $0x90] sm:$0xff] }
 0x276   : > { %v6843_v58 = vpop.f32.mrb[90].mxu1  ;;  %v6708_v33 = vpop.f32.mrb[123].mxu0  ;;  %8961 = vmatprep.subr.bf16.mxu0 %v8960_v26 }
 0x277   : > { %v6709_v20 = vadd.f32 %v6708_v33, %v6707_v62  ;;  %v6844_v35 = vpop.f32.mrb[91].mxu1  ;;  %v11616_v19 = vadd.f32 %v9337_v47, %v11547_v28  ;;  %v4002_v47 = vld [vmem:[#allocation2 + $0x79] sm:$0xff] }
 0x278   : > { %v11618_v2 = vadd.f32 %v6844_v35, %v6843_v58  ;;  %4157 = vmatmul.mubr.f32.gmra.mrb[198].mxu0 %v3983_v52  ;;  %v3986_v52 = vld [vmem:[#allocation2 + $0x78] sm:$0xff] }
 0x279   : > { %v9333_v45 = vadd.f32 %v9332_v63, %v6709_v20  ;;  %v6710_v30 = vpop.f32.mrb[124].mxu0  ;;  %4161 = vmatprep.mubr.f32.mxu0 %v4000_v60  ;;  %8963 = vmatpush3.bf16.msra.mxu0 %v8960_v26  ;;  %v9352_v63 = vadd.f32 %v11572_v41, %v11517_v43  ;;  %v4401_v60 = vld [vmem:[#allocation9 + $0x8] sm:$0xff]  ;;  %v9348_v43 = vadd.f32 %v11572_v41, %v11527_v38 }
 0x27a   : > { %v6846_v15 = vpop.f32.mrb[92].mxu1  ;;  %v6711_v23 = vpop.f32.mrb[125].mxu0  ;;  %8965 = vmatprep.subr.bf16.mxu0 %v8964_v11 }
 0x27b   : > { %v6712_v5 = vadd.f32 %v6711_v23, %v6710_v30  ;;  %v6847_v28 = vpop.f32.mrb[93].mxu1  ;;  %v11623_v56 = vadd.f32 %v9333_v45, %v11553_v3  ;;  %v4003_v30 = vld [vmem:[#allocation2 + $0x81] sm:$0xff] }
 0x27c   : > { %v11625_v27 = vadd.f32 %v6847_v28, %v6846_v15  ;;  %4162 = vmatmul.mubr.f32.gmra.mrb[200].mxu0 %v3984_v12 }
 0x27d   : > { %v9345_v10 = vadd.f32 %v9344_v9, %v6712_v5  ;;  %v6713_v16 = vpop.f32.mrb[126].mxu0  ;;  %4166 = vmatprep.mubr.f32.mxu0 %v4001_v34  ;;  %8967 = vmatpush3.bf16.msra.mxu0 %v8964_v11  ;;  %v11643_v5 = vpack.c.bf16 %v4401_v60, %v4400_v14  ;;  %v3989_v14 = vld [vmem:[#allocation2 + $0x98] sm:$0xff] }
 0x27e   : > { %v6849_v29 = vpop.f32.mrb[94].mxu1  ;;  %v6714_v26 = vpop.f32.mrb[127].mxu0  ;;  %8969 = vmatprep.subr.bf16.mxu0 %v8968_v55 }
 0x27f   : > { %v6715_v1 = vadd.f32 %v6714_v26, %v6713_v16  ;;  %v6850_v3 = vpop.f32.mrb[95].mxu1  ;;  %v11630_v36 = vadd.f32 %v9345_v10, %v11559_v51  ;;  %v4004_v16 = vld [vmem:[#allocation2 + $0x91] sm:$0xff] }
 0x280   : > { %v11632_v42 = vadd.f32 %v6850_v3, %v6849_v29  ;;  %4167 = vmatmul.mubr.f32.gmra.mrb[202].mxu0 %v3985_v54 }
 0x281   : > { %v9341_v62 = vadd.f32 %v9340_v39, %v6715_v1  ;;  %v6716_v58 = vpop.f32.mrb[128].mxu0  ;;  %4171 = vmatprep.mubr.f32.mxu0 %v4002_v47  ;;  %8971 = vmatpush3.bf16.msra.mxu0 %v8968_v55 }
 0x282   : > { %v7934_v33 = vpop.f32.mrb[48].mxu1  ;;  %v6717_v11 = vpop.f32.mrb[129].mxu0  ;;  %8973 = vmatprep.subr.bf16.mxu0 %v8972_v4 }
 0x283   : > { %v9319_v51 = vadd.f32 %v11595_v7, %v7934_v33  ;;  %v6718_v20 = vadd.f32 %v6717_v11, %v6716_v58  ;;  %v3007_v35 = vpop.f32.mrb[49].mxu1  ;;  %v11638_v40 = vadd.f32 %v9341_v62, %v11565_v61  ;;  %v4005_v58 = vld [vmem:[#allocation2 + $0x99] sm:$0xff] }
 0x284   : > { %v9323_v45 = vadd.f32 %v11587_v31, %v3007_v35  ;;  %4172 = vmatmul.mubr.f32.gmra.mrb[204].mxu0 %v3986_v52 }
 0x285   : > { %vm3103_vm0 = vcmp.ge.f32.partialorder %v9319_v51, 0.0  ;;  %v3119_v15 = vmul.f32 0.2, %v9319_v51  ;;  %v9353_v23 = vadd.f32 %v9352_v63, %v6718_v20  ;;  %v6719_v55 = vpop.f32.mrb[130].mxu0  ;;  %4176 = vmatprep.mubr.f32.mxu0 %v4003_v30  ;;  %8975 = vmatpush3.bf16.msra.mxu0 %v8972_v4 }
 0x286   : > { %vm3102_vm4 = vcmp.ge.f32.partialorder %v9323_v45, 0.0  ;;  %v3118_v7 = vmul.f32 0.2, %v9323_v45  ;;  %v7937_v9 = vpop.f32.mrb[50].mxu1  ;;  %v6720_v61 = vpop.f32.mrb[131].mxu0  ;;  %8977 = vmatprep.subr.bf16.mxu0 %v8976_v18 }
 0x287   : > { %v11645_v28 = vsel %vm3103_vm0, %v9319_v51, %v3119_v15  ;;  %v9327_v31 = vadd.f32 %v11609_v13, %v7937_v9  ;;  %v6721_v12 = vadd.f32 %v6720_v61, %v6719_v55  ;;  %v3017_v21 = vpop.f32.mrb[51].mxu1  ;;  %v11649_v34 = vadd.f32 %v9353_v23, %v11576_v57  ;;  %v4006_v15 = vld [vmem:[#allocation2 + $0xa9] sm:$0xff] }
 0x288   : > { %3152 = vst [vmem:[#allocation2 + $0xe1] sm:$0xff] %v11645_v28  ;;  %v11652_v38 = vsel %vm3102_vm4, %v9323_v45, %v3118_v7  ;;  %v9331_v10 = vadd.f32 %v11602_v17, %v3017_v21  ;;  %4177 = vmatmul.mubr.f32.gmra.mrb[206].mxu0 %v3987_v59  ;;  %v9360_v57 = vadd.f32 %v11572_v41, %v11533_v37  ;;  %v3990_v59 = vld [vmem:[#allocation2 + $0xa8] sm:$0xff] }
 0x289   : > { %3151 = vst [vmem:[#allocation2 + $0xd9] sm:$0xff] %v11652_v38  ;;  %vm3105_vm13 = vcmp.ge.f32.partialorder %v9327_v31, 0.0  ;;  %v3121_v29 = vmul.f32 0.2, %v9327_v31  ;;  %v9349_v26 = vadd.f32 %v9348_v43, %v6721_v12  ;;  %v6722_v13 = vpop.f32.mrb[132].mxu0  ;;  %4181 = vmatprep.mubr.f32.mxu0 %v4004_v16  ;;  %4771 = vmatprep.mubr.f32.mxu1 %v11652_v38 }
 0x28a   : > { %vm3104_vm14 = vcmp.ge.f32.partialorder %v9331_v10, 0.0  ;;  %v3120_v4 = vmul.f32 0.2, %v9331_v10  ;;  %v7940_v39 = vpop.f32.mrb[52].mxu1  ;;  %v6723_v1 = vpop.f32.mrb[133].mxu0  ;;  %8979 = vmatpush3.bf16.msra.mxu0 %v8976_v18 }
 0x28b   : > { %v11659_v17 = vsel %vm3105_vm13, %v9327_v31, %v3121_v29  ;;  %v9335_v3 = vadd.f32 %v11623_v56, %v7940_v39  ;;  %v6724_v54 = vadd.f32 %v6723_v1, %v6722_v13  ;;  %v3027_v44 = vpop.f32.mrb[53].mxu1  ;;  %v9350_v47 = vadd.f32 %v9349_v26, %v11589_v32  ;;  %8981 = vmatprep.subr.bf16.mxu0 %v11643_v5  ;;  %v4007_v29 = vld [vmem:[#allocation2 + $0xb1] sm:$0xff] }
 0x28c   : > { %3154 = vst [vmem:[#allocation2 + $0xf9] sm:$0xff] %v11659_v17  ;;  %v11665_v62 = vsel %vm3104_vm14, %v9331_v10, %v3120_v4  ;;  %v9339_v37 = vadd.f32 %v11616_v19, %v3027_v44  ;;  %4182 = vmatmul.mubr.f32.gmra.mrb[208].mxu0 %v3988_v50  ;;  %v9356_v32 = vadd.f32 %v11572_v41, %v11539_v24  ;;  %v3991_v50 = vld [vmem:[#allocation2 + $0xb0] sm:$0xff] }
 0x28d   : > { %3153 = vst [vmem:[#allocation2 + $0xf1] sm:$0xff] %v11665_v62  ;;  %vm3107_vm15 = vcmp.ge.f32.partialorder %v9335_v3, 0.0  ;;  %v3123_v33 = vmul.f32 0.2, %v9335_v3  ;;  %v9361_v56 = vadd.f32 %v9360_v57, %v6724_v54  ;;  %v6725_v11 = vpop.f32.mrb[134].mxu0  ;;  %4186 = vmatprep.mubr.f32.mxu0 %v4005_v58 }
 0x28e   : > { %vm3106_vm1 = vcmp.ge.f32.partialorder %v9339_v37, 0.0  ;;  %v3122_v18 = vmul.f32 0.2, %v9339_v37  ;;  %v7943_v63 = vpop.f32.mrb[54].mxu1  ;;  %v6726_v51 = vpop.f32.mrb[135].mxu0 }
 0x28f   : > { %v11671_v20 = vsel %vm3107_vm15, %v9335_v3, %v3123_v33  ;;  %v9343_v19 = vadd.f32 %v11638_v40, %v7943_v63  ;;  %v6727_v35 = vadd.f32 %v6726_v51, %v6725_v11  ;;  %v3037_v52 = vpop.f32.mrb[55].mxu1  ;;  %v9362_v60 = vadd.f32 %v9361_v56, %v11597_v49  ;;  %v4008_v33 = vld [vmem:[#allocation2 + $0xc1] sm:$0xff] }
 0x290   : > { %3156 = vst [vmem:[#allocation2 + $0x111] sm:$0xff] %v11671_v20  ;;  %v11676_v45 = vsel %vm3106_vm1, %v9339_v37, %v3122_v18  ;;  %v9347_v30 = vadd.f32 %v11630_v36, %v3037_v52  ;;  %4187 = vmatmul.mubr.f32.gmra.mrb[210].mxu0 %v3989_v14  ;;  %v11679_v24 = vld [vmem:[#allocation2 + $0xd8] sm:$0xff]  ;;  %v9368_v49 = vadd.f32 %v11572_v41, %v11545_v25  ;;  %v11693_v16 = vld [vmem:[#allocation2 + $0xe0] sm:$0xff] }
 0x291   : > { %3155 = vst [vmem:[#allocation2 + $0x109] sm:$0xff] %v11676_v45  ;;  %vm3109_vm2 = vcmp.ge.f32.partialorder %v9343_v19, 0.0  ;;  %v3125_v23 = vmul.f32 0.2, %v9343_v19  ;;  %v9357_v40 = vadd.f32 %v9356_v32, %v6727_v35  ;;  %v6728_v55 = vpop.f32.mrb[136].mxu0  ;;  %4772 = vmatmul.mubr.f32.gmra.mrb[132].mxu1 %v11679_v24  ;;  %4191 = vmatprep.mubr.f32.mxu0 %v4006_v15  ;;  %v9376_v63 = vadd.f32 %v11572_v41, %v11557_v53  ;;  %v3992_v14 = vld [vmem:[#allocation2 + $0xc0] sm:$0xff] }
 0x292   : > { %vm3108_vm3 = vcmp.ge.f32.partialorder %v9347_v30, 0.0  ;;  %v3124_v43 = vmul.f32 0.2, %v9347_v30  ;;  %v7946_v7 = vpop.f32.mrb[56].mxu1  ;;  %v6729_v36 = vpop.f32.mrb[137].mxu0  ;;  %4776 = vmatprep.mubr.f32.mxu1 %v11645_v28 }
 0x293   : > { %v11686_v9 = vsel %vm3109_vm2, %v9343_v19, %v3125_v23  ;;  %v9351_v61 = vadd.f32 %v9350_v47, %v7946_v7  ;;  %v6730_v31 = vadd.f32 %v6729_v36, %v6728_v55  ;;  %v3047_v12 = vpop.f32.mrb[57].mxu1  ;;  %v9358_v21 = vadd.f32 %v9357_v40, %v11604_v6  ;;  %v4009_v23 = vld [vmem:[#allocation2 + $0xc9] sm:$0xff] }
 0x294   : > { %3158 = vst [vmem:[#allocation2 + $0x129] sm:$0xff] %v11686_v9  ;;  %v11690_v10 = vsel %vm3108_vm3, %v9347_v30, %v3124_v43  ;;  %v9355_v25 = vadd.f32 %v11649_v34, %v3047_v12  ;;  %4192 = vmatmul.mubr.f32.gmra.mrb[212].mxu0 %v3990_v59  ;;  %v9364_v6 = vadd.f32 %v11572_v41, %v11551_v48  ;;  %v11706_v48 = vld [vmem:[#allocation2 + $0xf0] sm:$0xff]  ;;  %v11719_v15 = vld [vmem:[#allocation2 + $0xf8] sm:$0xff]  ;;  %v3993_v12 = vld [vmem:[#allocation2 + $0xc8] sm:$0xff] }
 0x295   : > { %3157 = vst [vmem:[#allocation2 + $0x121] sm:$0xff] %v11690_v10  ;;  %vm3111_vm5 = vcmp.ge.f32.partialorder %v9351_v61, 0.0  ;;  %v3127_v26 = vmul.f32 0.2, %v9351_v61  ;;  %v9369_v13 = vadd.f32 %v9368_v49, %v6730_v31  ;;  %v6731_v57 = vpop.f32.mrb[138].mxu0  ;;  %4777 = vmatmul.mubr.f32.gmra.mrb[134].mxu1 %v11693_v16  ;;  %4196 = vmatprep.mubr.f32.mxu0 %v4007_v29 }
 0x296   : > { %vm3110_vm6 = vcmp.ge.f32.partialorder %v9355_v25, 0.0  ;;  %v3126_v4 = vmul.f32 0.2, %v9355_v25  ;;  %v7949_v39 = vpop.f32.mrb[58].mxu1  ;;  %v6732_v34 = vpop.f32.mrb[139].mxu0  ;;  %4781 = vmatprep.mubr.f32.mxu1 %v11665_v62 }
 0x297   : > { %v11700_v1 = vsel %vm3111_vm5, %v9351_v61, %v3127_v26  ;;  %v9359_v3 = vadd.f32 %v9358_v21, %v7949_v39  ;;  %v6733_v54 = vadd.f32 %v6732_v34, %v6731_v57  ;;  %v3057_v44 = vpop.f32.mrb[59].mxu1  ;;  %v9370_v47 = vadd.f32 %v9369_v13, %v11611_v22  ;;  %v4012_v39 = vld [vmem:[#allocation2 + $0x32] sm:$0xff] }
 0x298   : > { %3160 = vst [vmem:[#allocation2 + $0x141] sm:$0xff] %v11700_v1  ;;  %v11704_v37 = vsel %vm3110_vm6, %v9355_v25, %v3126_v4  ;;  %v9363_v58 = vadd.f32 %v9362_v60, %v3057_v44  ;;  %4197 = vmatmul.mubr.f32.gmra.mrb[214].mxu0 %v3991_v50  ;;  %v11729_v59 = vld [vmem:[#allocation2 + $0x108] sm:$0xff]  ;;  %v11742_v57 = vld [vmem:[#allocation2 + $0x110] sm:$0xff] }
 0x299   : > { %3159 = vst [vmem:[#allocation2 + $0x139] sm:$0xff] %v11704_v37  ;;  %vm3113_vm7 = vcmp.ge.f32.partialorder %v9359_v3, 0.0  ;;  %v3129_v62 = vmul.f32 0.2, %v9359_v3  ;;  %v9365_v56 = vadd.f32 %v9364_v6, %v6733_v54  ;;  %v6734_v11 = vpop.f32.mrb[140].mxu0  ;;  %4782 = vmatmul.mubr.f32.gmra.mrb[136].mxu1 %v11706_v48  ;;  %4201 = vmatprep.mubr.f32.mxu0 %v4008_v33  ;;  %v4403_v54 = vld [vmem:[#allocation9 + $0x18] sm:$0xff] }
 0x29a   : > { %vm3112_vm8 = vcmp.ge.f32.partialorder %v9363_v58, 0.0  ;;  %v3128_v22 = vmul.f32 0.2, %v9363_v58  ;;  %v7952_v32 = vpop.f32.mrb[60].mxu1  ;;  %v6735_v18 = vpop.f32.mrb[141].mxu0  ;;  %4786 = vmatprep.mubr.f32.mxu1 %v11659_v17  ;;  %v4405_v33 = vld [vmem:[#allocation9 + $0x28] sm:$0xff] }
 0x29b   : > { %v11713_v51 = vsel %vm3113_vm7, %v9359_v3, %v3129_v62  ;;  %v9366_v19 = vadd.f32 %v9365_v56, %v11618_v2  ;;  %v6736_v35 = vadd.f32 %v6735_v18, %v6734_v11  ;;  %v3067_v52 = vpop.f32.mrb[61].mxu1  ;;  %v9372_v2 = vadd.f32 %v11572_v41, %v11563_v0  ;;  %v4402_v3 = vld [vmem:[#allocation9 + $0x10] sm:$0xff] }
 0x29c   : > { %3162 = vst [vmem:[#allocation2 + $0x159] sm:$0xff] %v11713_v51  ;;  %v11717_v60 = vsel %vm3112_vm8, %v9363_v58, %v3128_v22  ;;  %v9371_v30 = vadd.f32 %v9370_v47, %v3067_v52  ;;  %4202 = vmatmul.mubr.f32.gmra.mrb[216].mxu0 %v3992_v14  ;;  %v8984_v50 = vpack.c.bf16 %v4403_v54, %v4402_v3  ;;  %v11754_v47 = vld [vmem:[#allocation2 + $0x128] sm:$0xff]  ;;  %v4404_v58 = vld [vmem:[#allocation9 + $0x20] sm:$0xff]  ;;  %v4406_v11 = vld [vmem:[#allocation9 + $0x30] sm:$0xff] }
 0x29d   : > { %3161 = vst [vmem:[#allocation2 + $0x151] sm:$0xff] %v11717_v60  ;;  %v9367_v17 = vadd.f32 %v9366_v19, %v7952_v32  ;;  %v9377_v53 = vadd.f32 %v9376_v63, %v6736_v35  ;;  %v6737_v40 = vpop.f32.mrb[142].mxu0  ;;  %4787 = vmatmul.mubr.f32.gmra.mrb[138].mxu1 %v11719_v15  ;;  %4206 = vmatprep.mubr.f32.mxu0 %v4009_v23  ;;  %v4016_v62 = vld [vmem:[#allocation2 + $0x62] sm:$0xff]  ;;  %v4017_v32 = vld [vmem:[#allocation2 + $0x6a] sm:$0xff]  ;;  %v4409_v19 = vld [vmem:[#allocation9 + $0x48] sm:$0xff] }
 0x29e   : > { %vm3114_vm9 = vcmp.ge.f32.partialorder %v9371_v30, 0.0  ;;  %v3130_v55 = vmul.f32 0.2, %v9371_v30  ;;  %v7955_v49 = vpop.f32.mrb[62].mxu1  ;;  %v6738_v43 = vpop.f32.mrb[143].mxu0  ;;  %4791 = vmatprep.mubr.f32.mxu1 %v11676_v45  ;;  %v8988_v56 = vpack.c.bf16 %v4405_v33, %v4404_v58  ;;  %v4407_v22 = vld [vmem:[#allocation9 + $0x38] sm:$0xff] }
 0x29f   : > { %vm3115_vm10 = vcmp.ge.f32.partialorder %v9367_v17, 0.0  ;;  %v3131_v7 = vmul.f32 0.2, %v9367_v17  ;;  %v6739_v36 = vadd.f32 %v6738_v43, %v6737_v40  ;;  %v3077_v61 = vpop.f32.mrb[63].mxu1  ;;  %v9378_v31 = vadd.f32 %v9377_v53, %v11625_v27  ;;  %v4408_v63 = vld [vmem:[#allocation9 + $0x40] sm:$0xff]  ;;  %v4019_v35 = vld [vmem:[#allocation2 + $0x82] sm:$0xff] }
 0x2a0   : > { %v11727_v21 = vsel %vm3114_vm9, %v9371_v30, %v3130_v55  ;;  %4207 = vmatmul.mubr.f32.gmra.mrb[218].mxu0 %v3993_v12  ;;  %v8992_v18 = vpack.c.bf16 %v4407_v22, %v4406_v11  ;;  %v4020_v52 = vld [vmem:[#allocation2 + $0x92] sm:$0xff]  ;;  %v8996_v14 = vpack.c.bf16 %v4409_v19, %v4408_v63  ;;  %v4410_v30 = vld [vmem:[#allocation9 + $0x50] sm:$0xff]  ;;  %v4411_v23 = vld [vmem:[#allocation9 + $0x58] sm:$0xff] }
 0x2a1   : > { %v11731_v25 = vsel %vm3115_vm10, %v9367_v17, %v3131_v7  ;;  %3163 = vst [vmem:[#allocation2 + $0x169] sm:$0xff] %v11727_v21  ;;  %v9373_v0 = vadd.f32 %v9372_v2, %v6739_v36  ;;  %v9379_v41 = vadd.f32 %v9378_v31, %v3077_v61  ;;  %4792 = vmatmul.mubr.f32.gmra.mrb[140].mxu1 %v11729_v59  ;;  %v6916_v45 = vpop.f32.mrb[144].mxu0  ;;  %v4021_v17 = vld [vmem:[#allocation2 + $0x9a] sm:$0xff]  ;;  %v4022_v53 = vld [vmem:[#allocation2 + $0xaa] sm:$0xff] }
 0x2a2   : > { %4211 = vmatprep.mubr.f32.mxu0 %v11652_v38  ;;  %3164 = vst [vmem:[#allocation2 + $0x171] sm:$0xff] %v11731_v25  ;;  %4796 = vmatprep.mubr.f32.mxu1 %v11671_v20  ;;  %v6917_v27 = vpop.f32.mrb[145].mxu0  ;;  %v9000_v40 = vpack.c.bf16 %v4411_v23, %v4410_v30  ;;  %v4412_v2 = vld [vmem:[#allocation9 + $0x60] sm:$0xff]  ;;  %v4413_v55 = vld [vmem:[#allocation9 + $0x68] sm:$0xff]  ;;  %v4414_v7 = vld [vmem:[#allocation9 + $0x70] sm:$0xff] }
 0x2a3   : > { %v9374_v29 = vadd.f32 %v9373_v0, %v11632_v42  ;;  %vm3116_vm11 = vcmp.ge.f32.partialorder %v9379_v41, 0.0  ;;  %v3132_v26 = vmul.f32 0.2, %v9379_v41  ;;  %v11739_v13 = vadd.f32 %v6917_v27, %v6916_v45  ;;  %v4415_v36 = vld [vmem:[#allocation9 + $0x78] sm:$0xff]  ;;  %v11783_v61 = vld [vmem:[%s12302_s4] ss:$0 sm:$0xff] }
 0x2a4   : > { %4212 = vmatmul.mubr.f32.gmra.mrb[220].mxu0 %v11679_v24  ;;  %v11750_v24 = vld [vmem:[#allocation2 + $0x120] sm:$0xff]  ;;  %v9004_v43 = vpack.c.bf16 %v4413_v55, %v4412_v2  ;;  %v9008_v31 = vpack.c.bf16 %v4415_v36, %v4414_v7  ;;  %v5051_v12 = vld [vmem:[#allocation8 + $0x180] sm:$0xff]  ;;  %v5471_v27 = vld [vmem:[#allocation8 + $0x388] sm:$0xff] }
 0x2a5   : > { %v9375_v6 = vadd.f32 %v9374_v29, %v7955_v49  ;;  %v3148_v4 = vsel %vm3116_vm11, %v9379_v41, %v3132_v26  ;;  %4797 = vmatmul.mubr.f32.gmra.mrb[142].mxu1 %v11742_v57  ;;  %4216 = vmatprep.mubr.f32.mxu0 %v11645_v28  ;;  %v6919_v38 = vpop.f32.mrb[146].mxu0  ;;  %v4013_v28 = vld [vmem:[#allocation2 + $0x3a] sm:$0xff]  ;;  %v4023_v49 = vld [vmem:[#allocation2 + $0xb2] sm:$0xff]  ;;  %v5070_v29 = vld [vmem:[#allocation8 + $0x218] sm:$0xff] }
 0x2a6   : > { %3165 = vst [vmem:[#allocation2 + $0x181] sm:$0xff] %v3148_v4  ;;  %4801 = vmatprep.mubr.f32.mxu1 %v11690_v10  ;;  %v6920_v20 = vpop.f32.mrb[147].mxu0  ;;  %v4014_v10 = vld [vmem:[#allocation2 + $0x4a] sm:$0xff]  ;;  %v11788_v45 = vld [vmem:[#allocation2 + $0xda] sm:$0xff] }
 0x2a7   : > { %vm3117_vm12 = vcmp.ge.f32.partialorder %v9375_v6, 0.0  ;;  %v3133_v42 = vmul.f32 0.2, %v9375_v6  ;;  %v11747_v34 = vadd.f32 %v6920_v20, %v6919_v38  ;;  %v5470_v0 = vld [vmem:[#allocation8 + $0x380] sm:$0xff]  ;;  %v11796_v20 = vld [vmem:[#allocation2 + $0xe2] sm:$0xff]  ;;  %v5455_v54 = vld [vmem:[#allocation8 + $0x308] sm:$0xff] }
 0x2a8   : > { %4217 = vmatmul.mubr.f32.gmra.mrb[222].mxu0 %v11693_v16  ;;  %v4015_v16 = vld [vmem:[#allocation2 + $0x52] sm:$0xff]  ;;  %v5073_v2 = vld [vmem:[#allocation8 + $0x230] sm:$0xff] }
 0x2a9   : > { %v3149_v44 = vsel %vm3117_vm12, %v9375_v6, %v3133_v42  ;;  %4802 = vmatmul.mubr.f32.gmra.mrb[144].mxu1 %v11750_v24  ;;  %8100 = vmatprep.mubr.f32.mxu0 %v4012_v39  ;;  %v11786_v41 = vld [vmem:[#allocation2 + $0x170] sm:$0xff]  ;;  %v9385_v6 = vadd.f32 %v11739_v13, %v11783_v61  ;;  %v9140_v39 = vpack.c.bf16 %v5471_v27, %v5470_v0  ;;  %v5475_v36 = vld [vmem:[#allocation8 + $0x3a8] sm:$0xff]  ;;  %v11815_v0 = vld [vmem:[#allocation8 + $0x1b0] sm:$0xff] }
 0x2aa   : > { %3166 = vst [vmem:[#allocation2 + $0x189] sm:$0xff] %v3149_v44  ;;  %4806 = vmatprep.mubr.f32.mxu1 %v11686_v9  ;;  %v11759_v9 = vld [vmem:[#allocation2 + $0x138] sm:$0xff]  ;;  %v5454_v3 = vld [vmem:[#allocation8 + $0x300] sm:$0xff] }
 0x2ab   : > { %v6156_v26 = vld [vmem:[%s10222_s20 + $0x19] sm:$0xff]  ;;  %v6157_v11 = vld [vmem:[%s10222_s20 + $0x21] sm:$0xff]  ;;  %v9142_v22 = vpack.c.bf16 %v5455_v54, %v5454_v3 }
 0x2ac   : > { %8101 = vmatmul.mubr.f32.vlgmr.msra.gmra.mrb[176].mxu0 %v4013_v28  ;;  %v5071_v58 = vld [vmem:[#allocation8 + $0x220] sm:$0xff]  ;;  %v11819_v3 = vld [vmem:[#allocation2 + $0xfa] sm:$0xff] }
 0x2ad   : > { %4807 = vmatmul.mubr.f32.gmra.mrb[146].mxu1 %v11754_v47  ;;  %8103 = vmatprep.mubr.f32.mxu0 %v4014_v10  ;;  %v5053_v10 = vld [vmem:[#allocation8 + $0x190] sm:$0xff]  ;;  %v5474_v7 = vld [vmem:[#allocation8 + $0x3a0] sm:$0xff] }
 0x2ae   : > { %8983 = vmatpush3.bf16.msra.mxu0 %v11643_v5  ;;  %4811 = vmatprep.mubr.f32.mxu1 %v11704_v37  ;;  %v4018_v5 = vld [vmem:[#allocation2 + $0x7a] sm:$0xff] }
 0x2af   : > { %8985 = vmatprep.subr.bf16.mxu0 %v8984_v50  ;;  %v11763_v37 = vld [vmem:[#allocation2 + $0x140] sm:$0xff] }
 0x2b0   : > { %8104 = vmatmul.mubr.f32.gmra.mrb[178].mxu0 %v4015_v16  ;;  %v5072_v16 = vld [vmem:[#allocation8 + $0x228] sm:$0xff] }
 0x2b1   : > { %4812 = vmatmul.mubr.f32.gmra.mrb[148].mxu1 %v11759_v9  ;;  %8106 = vmatprep.mubr.f32.mxu0 %v4016_v62  ;;  %v5472_v62 = vld [vmem:[#allocation8 + $0x390] sm:$0xff] }
 0x2b2   : > { %8987 = vmatpush3.bf16.msra.mxu0 %v8984_v50  ;;  %4816 = vmatprep.mubr.f32.mxu1 %v11700_v1  ;;  %v11767_v1 = vld [vmem:[#allocation2 + $0x150] sm:$0xff]  ;;  %v5054_v50 = vld [vmem:[#allocation8 + $0x198] sm:$0xff] }
 0x2b3   : > { %8989 = vmatprep.subr.bf16.mxu0 %v8988_v56 }
 0x2b4   : > { %8107 = vmatmul.mubr.f32.gmra.mrb[180].mxu0 %v4017_v32  ;;  %v6158_v32 = vld [vmem:[%s10222_s20 + $0x31] sm:$0xff] }
 0x2b5   : > { %4817 = vmatmul.mubr.f32.gmra.mrb[150].mxu1 %v11763_v37  ;;  %8109 = vmatprep.mubr.f32.mxu0 %v4018_v5  ;;  %v9380_v5 = vadd.f32 %v11747_v34, %v11783_v61  ;;  %v5074_v34 = vld [vmem:[#allocation8 + $0x238] sm:$0xff] }
 0x2b6   : > { %8991 = vmatpush3.bf16.msra.mxu0 %v8988_v56  ;;  %4821 = vmatprep.mubr.f32.mxu1 %v11717_v60  ;;  %v11771_v60 = vld [vmem:[#allocation2 + $0x158] sm:$0xff]  ;;  %v5473_v56 = vld [vmem:[#allocation8 + $0x398] sm:$0xff]  ;;  %v9088_v54 = vpack.c.bf16 %v5074_v34, %v5073_v2 }
 0x2b7   : > { %8993 = vmatprep.subr.bf16.mxu0 %v8992_v18  ;;  %v5078_v2 = vld [vmem:[#allocation8 + $0x258] sm:$0xff] }
 0x2b8   : > { %8110 = vmatmul.mubr.f32.gmra.mrb[182].mxu0 %v4019_v35  ;;  %v5055_v35 = vld [vmem:[#allocation8 + $0x1a0] sm:$0xff] }
 0x2b9   : > { %4822 = vmatmul.mubr.f32.gmra.mrb[152].mxu1 %v11767_v1  ;;  %8112 = vmatprep.mubr.f32.mxu0 %v4020_v52  ;;  %v5456_v52 = vld [vmem:[#allocation8 + $0x310] sm:$0xff] }
 0x2ba   : > { %8995 = vmatpush3.bf16.msra.mxu0 %v8992_v18  ;;  %4826 = vmatprep.mubr.f32.mxu1 %v11713_v51  ;;  %v11775_v51 = vld [vmem:[#allocation2 + $0x168] sm:$0xff] }
 0x2bb   : > { %8997 = vmatprep.subr.bf16.mxu0 %v8996_v14 }
 0x2bc   : > { %8113 = vmatmul.mubr.f32.gmra.mrb[184].mxu0 %v4021_v17  ;;  %v9084_v17 = vpack.c.bf16 %v5072_v16, %v5071_v58  ;;  %v5476_v16 = vld [vmem:[#allocation8 + $0x3b0] sm:$0xff] }
 0x2bd   : > { %4827 = vmatmul.mubr.f32.gmra.mrb[154].mxu1 %v11771_v60  ;;  %8115 = vmatprep.mubr.f32.mxu0 %v4022_v53  ;;  %v9144_v53 = vpack.c.bf16 %v5473_v56, %v5472_v62  ;;  %v5477_v62 = vld [vmem:[#allocation8 + $0x3b8] sm:$0xff] }
 0x2be   : > { %8999 = vmatpush3.bf16.msra.mxu0 %v8996_v14  ;;  %4831 = vmatprep.mubr.f32.mxu1 %v11727_v21  ;;  %v5052_v21 = vld [vmem:[#allocation8 + $0x188] sm:$0xff]  ;;  %v5457_v14 = vld [vmem:[#allocation8 + $0x318] sm:$0xff] }
 0x2bf   : > { %9001 = vmatprep.subr.bf16.mxu0 %v9000_v40  ;;  %v9078_v42 = vpack.c.bf16 %v5052_v21, %v5051_v12  ;;  %v9146_v12 = vpack.c.bf16 %v5457_v14, %v5456_v52  ;;  %v6160_v21 = vld [vmem:[%s10222_s20 + $0x49] sm:$0xff]  ;;  %v6161_v56 = vld [vmem:[%s10222_s20 + $0x51] sm:$0xff] }
 0x2c0   : > { %8116 = vmatmul.mubr.f32.gmra.mrb[186].mxu0 %v4023_v49  ;;  %v5461_v52 = vld [vmem:[#allocation8 + $0x338] sm:$0xff] }
 0x2c1   : > { %4832 = vmatmul.mubr.f32.gmra.mrb[156].mxu1 %v11775_v51  ;;  %8118 = vmatprep.mubr.f32.mxu0 %v11579_v8 }
 0x2c2   : > { %9003 = vmatpush3.bf16.msra.mxu0 %v9000_v40  ;;  %4836 = vmatprep.mubr.f32.mxu1 %v11731_v25  ;;  %v5069_v25 = vld [vmem:[#allocation8 + $0x210] sm:$0xff]  ;;  %v5056_v40 = vld [vmem:[#allocation8 + $0x1a8] sm:$0xff] }
 0x2c3   : > { %9005 = vmatprep.subr.bf16.mxu0 %v9004_v43 }
 0x2c4   : > { %8119 = vmatmul.mubr.f32.gmra.mrb[188].mxu0 %v11584_v46 }
 0x2c5   : > { %4837 = vmatmul.mubr.f32.gmra.mrb[158].mxu1 %v11786_v41  ;;  %8121 = vmatprep.mubr.f32.mxu0 %v11788_v45 }
 0x2c6   : > { %9007 = vmatpush3.bf16.msra.mxu0 %v9004_v43  ;;  %8212 = vmatprep.mubr.f32.mxu1 %v11579_v8  ;;  %v9080_v8 = vpack.c.bf16 %v5070_v29, %v5069_v25  ;;  %v11810_v43 = vld [vmem:[#allocation2 + $0xf2] sm:$0xff] }
 0x2c7   : > { %v6922_v4 = vpop.f32.mrb[148].mxu0  ;;  %v7028_v38 = vpop.f32.mrb[96].mxu1  ;;  %9009 = vmatprep.subr.bf16.mxu0 %v9008_v31 }
 0x2c8   : > { %v6923_v44 = vpop.f32.mrb[149].mxu0  ;;  %v7029_v28 = vpop.f32.mrb[97].mxu1  ;;  %8122 = vmatmul.mubr.f32.gmra.mrb[190].mxu0 %v11796_v20 }
 0x2c9   : > { %v6924_v13 = vadd.f32 %v6923_v44, %v6922_v4  ;;  %v7030_v33 = vadd.f32 %v7029_v28, %v7028_v38  ;;  %8213 = vmatmul.mubr.f32.vlgmr.msra.gmra.mrb[160].mxu1 %v11584_v46  ;;  %8156 = vmatprep.mubr.f32.mxu0 %v6156_v26  ;;  %v9082_v46 = vpack.c.bf16 %v5054_v50, %v5053_v10  ;;  %v5458_v4 = vld [vmem:[#allocation8 + $0x320] sm:$0xff]  ;;  %v5459_v38 = vld [vmem:[#allocation8 + $0x328] sm:$0xff] }
 0x2ca   : > { %9011 = vmatpush3.bf16.msra.mxu0 %v9008_v31  ;;  %8215 = vmatprep.mubr.f32.mxu1 %v11788_v45  ;;  %v6159_v31 = vld [vmem:[%s10222_s20 + $0x39] sm:$0xff]  ;;  %v9086_v26 = vpack.c.bf16 %v5056_v40, %v5055_v35  ;;  %v9148_v44 = vpack.c.bf16 %v5475_v36, %v5474_v7 }
 0x2cb   : > { %v11805_v18 = vadd.f32 %v9385_v6, %v7030_v33  ;;  %9079 = vmatpush3.bf16.msra.mxu1 %v9078_v42  ;;  %v6925_v63 = vpop.f32.mrb[150].mxu0  ;;  %v7031_v19 = vpop.f32.mrb[98].mxu1  ;;  %9141 = vmatprep.subr.bf16.mxu0 %v9140_v39  ;;  %v5058_v6 = vld [vmem:[#allocation8 + $0x1b8] sm:$0xff]  ;;  %v5075_v28 = vld [vmem:[#allocation8 + $0x240] sm:$0xff]  ;;  %v9395_v10 = vadd.f32 %v6924_v13, %v11783_v61  ;;  %v5460_v35 = vld [vmem:[#allocation8 + $0x330] sm:$0xff] }
 0x2cc   : > { %v6926_v30 = vpop.f32.mrb[151].mxu0  ;;  %v7032_v23 = vpop.f32.mrb[99].mxu1  ;;  %9081 = vmatprep.subr.bf16.mxu1 %v9080_v8  ;;  %v5076_v8 = vld [vmem:[#allocation8 + $0x248] sm:$0xff]  ;;  %v11825_v33 = vld [vmem:[#allocation2 + $0x10a] sm:$0xff]  ;;  %v5077_v40 = vld [vmem:[#allocation8 + $0x250] sm:$0xff] }
 0x2cd   : > { %v11807_v55 = vadd.f32 %v6926_v30, %v6925_v63  ;;  %v7033_v49 = vadd.f32 %v7032_v23, %v7031_v19  ;;  %8157 = vmatmul.mubr.f32.vlgmr.msra.gmra.mrb[176].mxu0 %v6157_v11  ;;  %8216 = vmatmul.mubr.f32.gmra.mrb[162].mxu1 %v11796_v20  ;;  %v9150_v11 = vpack.c.bf16 %v5459_v38, %v5458_v4  ;;  %v11835_v23 = vld [vmem:[#allocation2 + $0x112] sm:$0xff]  ;;  %v11842_v36 = vld [vmem:[#allocation2 + $0x122] sm:$0xff] }
 0x2ce   : > { %8218 = vmatprep.mubr.f32.mxu1 %v11810_v43  ;;  %9143 = vmatpush3.bf16.msra.mxu0 %v9142_v22  ;;  %v6162_v22 = vld [vmem:[%s10222_s20 + $0x61] sm:$0xff]  ;;  %v9090_v19 = vpack.c.bf16 %v5058_v6, %v11815_v0  ;;  %v9154_v0 = vpack.c.bf16 %v5461_v52, %v5460_v35 }
 0x2cf   : > { %v11817_v27 = vadd.f32 %v9380_v5, %v7033_v49  ;;  %9083 = vmatpush3.bf16.msra.mxu1 %v9082_v46  ;;  %v6928_v25 = vpop.f32.mrb[152].mxu0  ;;  %v7034_v29 = vpop.f32.mrb[100].mxu1  ;;  %8159 = vmatprep.mubr.f32.mxu0 %v6158_v32  ;;  %v11830_v32 = vld [vmem:[#allocation8 + $0x1c0] sm:$0xff]  ;;  %v5060_v46 = vld [vmem:[#allocation8 + $0x1c8] sm:$0xff]  ;;  %v9390_v34 = vadd.f32 %v11807_v55, %v11783_v61  ;;  %v5062_v38 = vld [vmem:[#allocation8 + $0x1d8] sm:$0xff] }
 0x2d0   : > { %v6929_v42 = vpop.f32.mrb[153].mxu0  ;;  %v7035_v39 = vpop.f32.mrb[101].mxu1  ;;  %9085 = vmatprep.subr.bf16.mxu1 %v9084_v17  ;;  %9145 = vmatprep.subr.bf16.mxu0 %v9144_v53  ;;  %v9092_v17 = vpack.c.bf16 %v5076_v8, %v5075_v28  ;;  %v9152_v53 = vpack.c.bf16 %v5477_v62, %v5476_v16  ;;  %v9094_v4 = vpack.c.bf16 %v5060_v46, %v11830_v32  ;;  %v11852_v28 = vld [vmem:[#allocation2 + $0x12a] sm:$0xff]  ;;  %v5080_v16 = vld [vmem:[#allocation8 + $0x268] sm:$0xff]  ;;  %v5480_v32 = vld [vmem:[#allocation8 + $0x3d0] sm:$0xff] }
 0x2d1   : > { %v11822_v50 = vadd.f32 %v6929_v42, %v6928_v25  ;;  %v7036_v58 = vadd.f32 %v7035_v39, %v7034_v29  ;;  %8160 = vmatmul.mubr.f32.gmra.mrb[178].mxu0 %v6159_v31  ;;  %8219 = vmatmul.mubr.f32.gmra.mrb[164].mxu1 %v11819_v3  ;;  %v5478_v31 = vld [vmem:[#allocation8 + $0x3c0] sm:$0xff]  ;;  %v11847_v29 = vld [vmem:[#allocation8 + $0x1d0] sm:$0xff]  ;;  %v5463_v39 = vld [vmem:[#allocation8 + $0x348] sm:$0xff]  ;;  %v9096_v8 = vpack.c.bf16 %v5078_v2, %v5077_v40 }
 0x2d2   : > { %8221 = vmatprep.mubr.f32.mxu1 %v11825_v33  ;;  %9147 = vmatpush3.bf16.msra.mxu0 %v9146_v12  ;;  %v5479_v12 = vld [vmem:[#allocation8 + $0x3c8] sm:$0xff]  ;;  %v5462_v42 = vld [vmem:[#allocation8 + $0x340] sm:$0xff]  ;;  %v5465_v40 = vld [vmem:[#allocation8 + $0x358] sm:$0xff] }
 0x2d3   : > { %v11832_v5 = vadd.f32 %v9395_v10, %v7036_v58  ;;  %9087 = vmatpush3.bf16.msra.mxu1 %v9086_v26  ;;  %v6931_v13 = vpop.f32.mrb[154].mxu0  ;;  %v7037_v63 = vpop.f32.mrb[102].mxu1  ;;  %8162 = vmatprep.mubr.f32.mxu0 %v6160_v21  ;;  %v6163_v21 = vld [vmem:[%s10222_s20 + $0x69] sm:$0xff]  ;;  %v6164_v25 = vld [vmem:[%s10222_s20 + $0x79] sm:$0xff]  ;;  %v9156_v10 = vpack.c.bf16 %v5479_v12, %v5478_v31  ;;  %v9405_v62 = vadd.f32 %v11822_v50, %v11783_v61  ;;  %v6166_v46 = vld [vmem:[%s10222_s20 + $0x91] sm:$0xff] }
 0x2d4   : > { %v6932_v14 = vpop.f32.mrb[155].mxu0  ;;  %v7038_v30 = vpop.f32.mrb[103].mxu1  ;;  %9089 = vmatprep.subr.bf16.mxu1 %v9088_v54  ;;  %9149 = vmatprep.subr.bf16.mxu0 %v9148_v44  ;;  %v5079_v58 = vld [vmem:[#allocation8 + $0x260] sm:$0xff] }
 0x2d5   : > { %v11839_v49 = vadd.f32 %v6932_v14, %v6931_v13  ;;  %v7039_v7 = vadd.f32 %v7038_v30, %v7037_v63  ;;  %8163 = vmatmul.mubr.f32.gmra.mrb[180].mxu0 %v6161_v56  ;;  %8222 = vmatmul.mubr.f32.gmra.mrb[166].mxu1 %v11835_v23  ;;  %v5481_v13 = vld [vmem:[#allocation8 + $0x3d8] sm:$0xff]  ;;  %v11864_v35 = vld [vmem:[#allocation8 + $0x1e0] sm:$0xff]  ;;  %v9098_v30 = vpack.c.bf16 %v5062_v38, %v11847_v29  ;;  %v5483_v38 = vld [vmem:[#allocation8 + $0x3e8] sm:$0xff] }
 0x2d6   : > { %8224 = vmatprep.mubr.f32.mxu1 %v11842_v36  ;;  %9151 = vmatpush3.bf16.msra.mxu0 %v9150_v11  ;;  %v6165_v63 = vld [vmem:[%s10222_s20 + $0x81] sm:$0xff]  ;;  %v9100_v31 = vpack.c.bf16 %v5080_v16, %v5079_v58  ;;  %v9160_v12 = vpack.c.bf16 %v5481_v13, %v5480_v32 }
 0x2d7   : > { %v11849_v26 = vadd.f32 %v9390_v34, %v7039_v7  ;;  %9091 = vmatpush3.bf16.msra.mxu1 %v9090_v19  ;;  %v6934_v55 = vpop.f32.mrb[156].mxu0  ;;  %v7040_v6 = vpop.f32.mrb[104].mxu1  ;;  %8165 = vmatprep.mubr.f32.mxu0 %v6162_v22  ;;  %v11859_v22 = vld [vmem:[#allocation2 + $0x13a] sm:$0xff]  ;;  %v9158_v19 = vpack.c.bf16 %v5463_v39, %v5462_v42  ;;  %v11869_v7 = vld [vmem:[#allocation2 + $0x142] sm:$0xff] }
 0x2d8   : > { %v6935_v54 = vpop.f32.mrb[157].mxu0  ;;  %v7041_v44 = vpop.f32.mrb[105].mxu1  ;;  %9093 = vmatprep.subr.bf16.mxu1 %v9092_v17  ;;  %9153 = vmatprep.subr.bf16.mxu0 %v9152_v53  ;;  %v5064_v17 = vld [vmem:[#allocation8 + $0x1e8] sm:$0xff]  ;;  %v5464_v53 = vld [vmem:[#allocation8 + $0x350] sm:$0xff]  ;;  %v5066_v16 = vld [vmem:[#allocation8 + $0x1f8] sm:$0xff] }
 0x2d9   : > { %v11856_v56 = vadd.f32 %v6935_v54, %v6934_v55  ;;  %v7042_v11 = vadd.f32 %v7041_v44, %v7040_v6  ;;  %8166 = vmatmul.mubr.f32.gmra.mrb[182].mxu0 %v6163_v21  ;;  %8225 = vmatmul.mubr.f32.gmra.mrb[168].mxu1 %v11852_v28  ;;  %v5081_v21 = vld [vmem:[#allocation8 + $0x270] sm:$0xff]  ;;  %v11874_v6 = vld [vmem:[#allocation2 + $0x152] sm:$0xff]  ;;  %v9162_v39 = vpack.c.bf16 %v5465_v40, %v5464_v53  ;;  %v5485_v53 = vld [vmem:[#allocation8 + $0x3f8] sm:$0xff] }
 0x2da   : > { %8227 = vmatprep.mubr.f32.mxu1 %v11859_v22  ;;  %9155 = vmatpush3.bf16.msra.mxu0 %v9154_v0  ;;  %v5082_v0 = vld [vmem:[#allocation8 + $0x278] sm:$0xff]  ;;  %v5065_v44 = vld [vmem:[#allocation8 + $0x1f0] sm:$0xff]  ;;  %v9102_v58 = vpack.c.bf16 %v5064_v17, %v11864_v35  ;;  %v5083_v17 = vld [vmem:[#allocation8 + $0x280] sm:$0xff] }
 0x2db   : > { %v11866_v52 = vadd.f32 %v9405_v62, %v7042_v11  ;;  %9095 = vmatpush3.bf16.msra.mxu1 %v9094_v4  ;;  %v6937_v50 = vpop.f32.mrb[158].mxu0  ;;  %v7043_v14 = vpop.f32.mrb[106].mxu1  ;;  %8168 = vmatprep.mubr.f32.mxu0 %v6164_v25  ;;  %v9400_v25 = vadd.f32 %v11839_v49, %v11783_v61  ;;  %v5482_v4 = vld [vmem:[#allocation8 + $0x3e0] sm:$0xff]  ;;  %v5467_v11 = vld [vmem:[#allocation8 + $0x368] sm:$0xff] }
 0x2dc   : > { %v6938_v2 = vpop.f32.mrb[159].mxu0  ;;  %v7044_v34 = vpop.f32.mrb[107].mxu1  ;;  %9097 = vmatprep.subr.bf16.mxu1 %v9096_v8  ;;  %9157 = vmatprep.subr.bf16.mxu0 %v9156_v10  ;;  %v6167_v42 = vld [vmem:[%s10222_s20 + $0x99] sm:$0xff]  ;;  %v6168_v54 = vld [vmem:[%s10222_s20 + $0xa9] sm:$0xff] }
 0x2dd   : > { %v6939_v55 = vadd.f32 %v6938_v2, %v6937_v50  ;;  %v7045_v29 = vadd.f32 %v7044_v34, %v7043_v14  ;;  %8169 = vmatmul.mubr.f32.gmra.mrb[184].mxu0 %v6165_v63  ;;  %8228 = vmatmul.mubr.f32.gmra.mrb[170].mxu1 %v11869_v7  ;;  %v5466_v62 = vld [vmem:[#allocation8 + $0x360] sm:$0xff]  ;;  %v11882_v63 = vld [vmem:[#allocation2 + $0x15a] sm:$0xff]  ;;  %v9164_v50 = vpack.c.bf16 %v5483_v38, %v5482_v4 }
 0x2de   : > { %8230 = vmatprep.mubr.f32.mxu1 %v11874_v6  ;;  %9159 = vmatpush3.bf16.msra.mxu0 %v9158_v19  ;;  %v9104_v19 = vpack.c.bf16 %v5082_v0, %v5081_v21  ;;  %v5484_v14 = vld [vmem:[#allocation8 + $0x3f0] sm:$0xff]  ;;  %v11887_v35 = vld [vmem:[#allocation2 + $0x16a] sm:$0xff]  ;;  %v5084_v2 = vld [vmem:[#allocation8 + $0x288] sm:$0xff]  ;;  %v9106_v0 = vpack.c.bf16 %v5066_v16, %v5065_v44 }
 0x2df   : > { %v11879_v8 = vadd.f32 %v9400_v25, %v7045_v29  ;;  %9099 = vmatpush3.bf16.msra.mxu1 %v9098_v30  ;;  %v6940_v49 = vpop.f32.mrb[160].mxu0  ;;  %v7046_v10 = vpop.f32.mrb[108].mxu1  ;;  %8171 = vmatprep.mubr.f32.mxu0 %v6166_v46  ;;  %v9415_v30 = vadd.f32 %v11856_v56, %v11783_v61  ;;  %v6169_v34 = vld [vmem:[%s10222_s20 + $0xb1] sm:$0xff] }
 0x2e0   : > { %v6941_v32 = vpop.f32.mrb[161].mxu0  ;;  %v7047_v13 = vpop.f32.mrb[109].mxu1  ;;  %9101 = vmatprep.subr.bf16.mxu1 %v9100_v31  ;;  %9161 = vmatprep.subr.bf16.mxu0 %v9160_v12  ;;  %v9166_v31 = vpack.c.bf16 %v5467_v11, %v5466_v62  ;;  %v5468_v25 = vld [vmem:[#allocation8 + $0x370] sm:$0xff]  ;;  %v5469_v29 = vld [vmem:[#allocation8 + $0x378] sm:$0xff]  ;;  %v9410_v62 = vadd.f32 %v6939_v55, %v11783_v61 }
 0x2e1   : > { %v6942_v46 = vadd.f32 %v6941_v32, %v6940_v49  ;;  %v7048_v40 = vadd.f32 %v7047_v13, %v7046_v10  ;;  %8172 = vmatmul.mubr.f32.gmra.mrb[186].mxu0 %v6167_v42  ;;  %8231 = vmatmul.mubr.f32.gmra.mrb[172].mxu1 %v11882_v63  ;;  %v11893_v42 = vld [vmem:[#allocation2 + $0x172] sm:$0xff]  ;;  %v9108_v49 = vpack.c.bf16 %v5084_v2, %v5083_v17  ;;  %v5085_v44 = vld [vmem:[#allocation8 + $0x290] sm:$0xff]  ;;  %v5086_v16 = vld [vmem:[#allocation8 + $0x298] sm:$0xff] }
 0x2e2   : > { %8233 = vmatprep.mubr.f32.mxu1 %v11887_v35  ;;  %9163 = vmatpush3.bf16.msra.mxu0 %v9162_v39  ;;  %v6170_v39 = vld [vmem:[%s10222_s20 + $0xc1] sm:$0xff]  ;;  %v9168_v10 = vpack.c.bf16 %v5485_v53, %v5484_v14  ;;  %v6171_v32 = vld [vmem:[%s10222_s20 + $0xc9] sm:$0xff]  ;;  %v9170_v13 = vpack.c.bf16 %v5469_v29, %v5468_v25  ;;  %v9112_v53 = vpack.c.bf16 %v5086_v16, %v5085_v44 }
 0x2e3   : > { %v11891_v12 = vadd.f32 %v9415_v30, %v7048_v40  ;;  %9103 = vmatpush3.bf16.msra.mxu1 %v9102_v58  ;;  %v6943_v21 = vpop.f32.mrb[162].mxu0  ;;  %v7049_v56 = vpop.f32.mrb[110].mxu1  ;;  %8174 = vmatprep.mubr.f32.mxu0 %v6168_v54  ;;  %v5019_v54 = vld [vmem:[#allocation2 + $0xd9] sm:$0xff]  ;;  %v9425_v40 = vadd.f32 %v6942_v46, %v11783_v61  ;;  %v5422_v25 = vld [vmem:[#allocation2 + $0xf1] sm:$0xff] }
 0x2e4   : > { %v6944_v4 = vpop.f32.mrb[163].mxu0  ;;  %v7050_v38 = vpop.f32.mrb[111].mxu1  ;;  %9105 = vmatprep.subr.bf16.mxu1 %v9104_v19  ;;  %9165 = vmatprep.subr.bf16.mxu0 %v9164_v50  ;;  %v5004_v44 = vld [vmem:[#allocation2 + $0xe0] sm:$0xff] }
 0x2e5   : > { %v6945_v11 = vadd.f32 %v6944_v4, %v6943_v21  ;;  %v7051_v58 = vadd.f32 %v7050_v38, %v7049_v56  ;;  %8175 = vmatmul.mubr.f32.gmra.mrb[188].mxu0 %v6169_v34  ;;  %8234 = vmatmul.mubr.f32.gmra.mrb[174].mxu1 %v11893_v42  ;;  %v5003_v34 = vld [vmem:[#allocation2 + $0xd8] sm:$0xff]  ;;  %v5020_v56 = vld [vmem:[#allocation2 + $0xe1] sm:$0xff] }
 0x2e6   : > { %5163 = vmatprep.mubr.f32.mxu1 %v5019_v54  ;;  %9167 = vmatpush3.bf16.msra.mxu0 %v9166_v31  ;;  %v5087_v31 = vld [vmem:[#allocation8 + $0x2a0] sm:$0xff]  ;;  %v5088_v21 = vld [vmem:[#allocation8 + $0x2a8] sm:$0xff] }
 0x2e7   : > { %v11899_v30 = vadd.f32 %v9410_v62, %v7051_v58  ;;  %9107 = vmatpush3.bf16.msra.mxu1 %v9106_v0  ;;  %v6946_v19 = vpop.f32.mrb[164].mxu0  ;;  %v7052_v50 = vpop.f32.mrb[112].mxu1  ;;  %8177 = vmatprep.mubr.f32.mxu0 %v6170_v39  ;;  %v9116_v46 = vpack.c.bf16 %v5088_v21, %v5087_v31  ;;  %v9420_v62 = vadd.f32 %v6945_v11, %v11783_v61  ;;  %v5423_v16 = vld [vmem:[#allocation2 + $0xf9] sm:$0xff]  ;;  %v5091_v11 = vld [vmem:[#allocation8 + $0x2c0] sm:$0xff] }
 0x2e8   : > { %v6947_v14 = vpop.f32.mrb[165].mxu0  ;;  %v7053_v55 = vpop.f32.mrb[113].mxu1  ;;  %9109 = vmatprep.subr.bf16.mxu1 %v9108_v49  ;;  %9169 = vmatprep.subr.bf16.mxu0 %v9168_v10  ;;  %v5089_v10 = vld [vmem:[#allocation8 + $0x2b0] sm:$0xff]  ;;  %v5424_v31 = vld [vmem:[#allocation2 + $0x109] sm:$0xff]  ;;  %v5092_v21 = vld [vmem:[#allocation8 + $0x2c8] sm:$0xff] }
 0x2e9   : > { %v6948_v17 = vadd.f32 %v6947_v14, %v6946_v19  ;;  %v7054_v2 = vadd.f32 %v7053_v55, %v7052_v50  ;;  %8178 = vmatmul.mubr.f32.gmra.mrb[190].mxu0 %v6171_v32  ;;  %v5090_v32 = vld [vmem:[#allocation8 + $0x2b8] sm:$0xff] }
 0x2ea   : > { %5164 = vmatmul.mubr.f32.vlgmr.msra.gmra.mrb[176].mxu1 %v5003_v34  ;;  %9171 = vmatpush3.bf16.msra.mxu0 %v9170_v13  ;;  %v9120_v55 = vpack.c.bf16 %v5090_v32, %v5089_v10 }
 0x2eb   : > { %v11902_v0 = vadd.f32 %v9425_v40, %v7054_v2  ;;  %5168 = vmatprep.mubr.f32.mxu1 %v5020_v56  ;;  %9111 = vmatpush3.bf16.msra.mxu1 %v9108_v49  ;;  %v6949_v29 = vpop.f32.mrb[166].mxu0  ;;  %v7055_v4 = vpop.f32.mrb[114].mxu1  ;;  %v9435_v40 = vadd.f32 %v6948_v17, %v11783_v61  ;;  %v5093_v17 = vld [vmem:[#allocation8 + $0x2d0] sm:$0xff] }
 0x2ec   : > { %5566 = vmatprep.mubr.f32.mxu0 %v5422_v25  ;;  %v6950_v38 = vpop.f32.mrb[167].mxu0  ;;  %v7056_v39 = vpop.f32.mrb[115].mxu1  ;;  %9113 = vmatprep.subr.bf16.mxu1 %v9112_v53 }
 0x2ed   : > { %v6951_v58 = vadd.f32 %v6950_v38, %v6949_v29  ;;  %v7057_v54 = vadd.f32 %v7056_v39, %v7055_v4  ;;  %5567 = vmatmul.mubr.f32.vlgmr.msra.gmra.mrb[224].mxu0 %v11706_v48  ;;  %v5005_v48 = vld [vmem:[#allocation2 + $0xf0] sm:$0xff]  ;;  %v9124_v38 = vpack.c.bf16 %v5092_v21, %v5091_v11 }
 0x2ee   : > { %5169 = vmatmul.mubr.f32.gmra.mrb[178].mxu1 %v5004_v44  ;;  %5571 = vmatprep.mubr.f32.mxu0 %v5423_v16  ;;  %v5094_v44 = vld [vmem:[#allocation8 + $0x2d8] sm:$0xff] }
 0x2ef   : > { %v11906_v49 = vadd.f32 %v9420_v62, %v7057_v54  ;;  %5173 = vmatprep.mubr.f32.mxu1 %v5422_v25  ;;  %v6952_v13 = vpop.f32.mrb[168].mxu0  ;;  %v7058_v19 = vpop.f32.mrb[116].mxu1  ;;  %9115 = vmatpush3.bf16.msra.mxu1 %v9112_v53  ;;  %v9430_v39 = vadd.f32 %v6951_v58, %v11783_v61  ;;  %v5425_v54 = vld [vmem:[#allocation2 + $0x111] sm:$0xff] }
 0x2f0   : > { %v6953_v50 = vpop.f32.mrb[169].mxu0  ;;  %v7059_v14 = vpop.f32.mrb[117].mxu1  ;;  %9117 = vmatprep.subr.bf16.mxu1 %v9116_v46 }
 0x2f1   : > { %v6954_v2 = vadd.f32 %v6953_v50, %v6952_v13  ;;  %v7060_v34 = vadd.f32 %v7059_v14, %v7058_v19  ;;  %5572 = vmatmul.mubr.f32.gmra.mrb[226].mxu0 %v11719_v15  ;;  %v5006_v15 = vld [vmem:[#allocation2 + $0xf8] sm:$0xff]  ;;  %v9128_v50 = vpack.c.bf16 %v5094_v44, %v5093_v17 }
 0x2f2   : > { %5174 = vmatmul.mubr.f32.gmra.mrb[180].mxu1 %v5005_v48  ;;  %5576 = vmatprep.mubr.f32.mxu0 %v5424_v31  ;;  %v5096_v48 = vld [vmem:[#allocation8 + $0x2e8] sm:$0xff] }
 0x2f3   : > { %v11910_v56 = vadd.f32 %v9435_v40, %v7060_v34  ;;  %5178 = vmatprep.mubr.f32.mxu1 %v5423_v16  ;;  %v6955_v53 = vpop.f32.mrb[170].mxu0  ;;  %v7061_v25 = vpop.f32.mrb[118].mxu1  ;;  %9119 = vmatpush3.bf16.msra.mxu1 %v9116_v46  ;;  %v9445_v58 = vadd.f32 %v6954_v2, %v11783_v61  ;;  %v5426_v40 = vld [vmem:[#allocation2 + $0x121] sm:$0xff]  ;;  %v5095_v34 = vld [vmem:[#allocation8 + $0x2e0] sm:$0xff] }
 0x2f4   : > { %v6956_v29 = vpop.f32.mrb[171].mxu0  ;;  %v7062_v4 = vpop.f32.mrb[119].mxu1  ;;  %9121 = vmatprep.subr.bf16.mxu1 %v9120_v55  ;;  %v9132_v2 = vpack.c.bf16 %v5096_v48, %v5095_v34  ;;  %v5429_v34 = vld [vmem:[#allocation2 + $0x141] sm:$0xff] }
 0x2f5   : > { %v6957_v10 = vadd.f32 %v6956_v29, %v6955_v53  ;;  %v7063_v62 = vadd.f32 %v7062_v4, %v7061_v25  ;;  %5577 = vmatmul.mubr.f32.gmra.mrb[228].mxu0 %v11729_v59 }
 0x2f6   : > { %5179 = vmatmul.mubr.f32.gmra.mrb[182].mxu1 %v5006_v15  ;;  %5581 = vmatprep.mubr.f32.mxu0 %v5425_v54 }
 0x2f7   : > { %v11914_v16 = vadd.f32 %v9430_v39, %v7063_v62  ;;  %5183 = vmatprep.mubr.f32.mxu1 %v5424_v31  ;;  %v6958_v46 = vpop.f32.mrb[172].mxu0  ;;  %v7064_v32 = vpop.f32.mrb[120].mxu1  ;;  %9123 = vmatpush3.bf16.msra.mxu1 %v9120_v55  ;;  %v9440_v29 = vadd.f32 %v6957_v10, %v11783_v61  ;;  %v5427_v39 = vld [vmem:[#allocation2 + $0x129] sm:$0xff]  ;;  %v5097_v62 = vld [vmem:[#allocation8 + $0x2f0] sm:$0xff] }
 0x2f8   : > { %v6959_v13 = vpop.f32.mrb[173].mxu0  ;;  %v7065_v19 = vpop.f32.mrb[121].mxu1  ;;  %9125 = vmatprep.subr.bf16.mxu1 %v9124_v38 }
 0x2f9   : > { %v6960_v14 = vadd.f32 %v6959_v13, %v6958_v46  ;;  %v7066_v11 = vadd.f32 %v7065_v19, %v7064_v32  ;;  %5582 = vmatmul.mubr.f32.gmra.mrb[230].mxu0 %v11742_v57  ;;  %v5428_v32 = vld [vmem:[#allocation2 + $0x139] sm:$0xff]  ;;  %v5486_v13 = vld [vmem:[#allocation8 + $0x400] sm:$0xff] }
 0x2fa   : > { %5184 = vmatmul.mubr.f32.gmra.mrb[184].mxu1 %v11729_v59  ;;  %5586 = vmatprep.mubr.f32.mxu0 %v5426_v40  ;;  %v5098_v59 = vld [vmem:[#allocation8 + $0x2f8] sm:$0xff]  ;;  %v5487_v19 = vld [vmem:[#allocation8 + $0x408] sm:$0xff] }
 0x2fb   : > { %v11919_v31 = vadd.f32 %v9445_v58, %v7066_v11  ;;  %5188 = vmatprep.mubr.f32.mxu1 %v5425_v54  ;;  %v6961_v55 = vpop.f32.mrb[174].mxu0  ;;  %v7067_v21 = vpop.f32.mrb[122].mxu1  ;;  %9127 = vmatpush3.bf16.msra.mxu1 %v9124_v38  ;;  %v9136_v44 = vpack.c.bf16 %v5098_v59, %v5097_v62  ;;  %v9455_v10 = vadd.f32 %v6960_v14, %v11783_v61  ;;  %v9771_v62 = vld [vmem:[#allocation2] sm:$0xff] }
 0x2fc   : > { %v6962_v53 = vpop.f32.mrb[175].mxu0  ;;  %v7068_v25 = vpop.f32.mrb[123].mxu1  ;;  %9129 = vmatprep.subr.bf16.mxu1 %v9128_v50  ;;  %v11931_v11 = vpack.c.bf16 %v5487_v19, %v5486_v13  ;;  %v5488_v59 = vld [vmem:[#allocation8 + $0x410] sm:$0xff]  ;;  %v5495_v13 = vld [vmem:[#allocation8 + $0x448] sm:$0xff]  ;;  %v5497_v19 = vld [vmem:[#allocation8 + $0x458] sm:$0xff] }
 0x2fd   : > { %v6963_v4 = vadd.f32 %v6962_v53, %v6961_v55  ;;  %v7069_v17 = vadd.f32 %v7068_v25, %v7067_v21  ;;  %5587 = vmatmul.mubr.f32.gmra.mrb[232].mxu0 %v11750_v24 }
 0x2fe   : > { %5189 = vmatmul.mubr.f32.gmra.mrb[186].mxu1 %v11742_v57  ;;  %5591 = vmatprep.mubr.f32.mxu0 %v5427_v39 }
 0x2ff   : > { %v11924_v15 = vadd.f32 %v9440_v29, %v7069_v17  ;;  %5193 = vmatprep.mubr.f32.mxu1 %v5426_v40  ;;  %v7070_v38 = vpop.f32.mrb[124].mxu1  ;;  %9131 = vmatpush3.bf16.msra.mxu1 %v9128_v50  ;;  %v9450_v14 = vadd.f32 %v6963_v4, %v11783_v61  ;;  %v5430_v61 = vld [vmem:[#allocation2 + $0x151] sm:$0xff]  ;;  %v5432_v29 = vld [vmem:[#allocation2 + $0x169] sm:$0xff]  ;;  %v5434_v4 = vld [vmem:[#allocation2 + $0x181] sm:$0xff] }
 0x300   : > { %v7071_v54 = vpop.f32.mrb[125].mxu1  ;;  %9133 = vmatprep.subr.bf16.mxu1 %v9132_v2  ;;  %v5435_v17 = vld [vmem:[#allocation2 + $0x189] sm:$0xff] }
 0x301   : > { %v7072_v46 = vadd.f32 %v7071_v54, %v7070_v38  ;;  %5592 = vmatmul.mubr.f32.gmra.mrb[234].mxu0 %v11754_v47  ;;  %v5491_v54 = vld [vmem:[#allocation8 + $0x428] sm:$0xff] }
 0x302   : > { %5194 = vmatmul.mubr.f32.gmra.mrb[188].mxu1 %v11750_v24  ;;  %5596 = vmatprep.mubr.f32.mxu0 %v5428_v32 }
 0x303   : > { %v11929_v57 = vadd.f32 %v9455_v10, %v7072_v46  ;;  %5198 = vmatprep.mubr.f32.mxu1 %v5427_v39  ;;  %v7073_v58 = vpop.f32.mrb[126].mxu1  ;;  %9135 = vmatpush3.bf16.msra.mxu1 %v9132_v2  ;;  %v5431_v2 = vld [vmem:[#allocation2 + $0x159] sm:$0xff]  ;;  %v5419_v39 = vld [vmem:[#allocation2 + $0x188] sm:$0xff] }
 0x304   : > { %v7074_v50 = vpop.f32.mrb[127].mxu1  ;;  %9137 = vmatprep.subr.bf16.mxu1 %v9136_v44  ;;  %v5492_v10 = vld [vmem:[#allocation8 + $0x430] sm:$0xff]  ;;  %v5493_v46 = vld [vmem:[#allocation8 + $0x438] sm:$0xff] }
 0x305   : > { %v7075_v40 = vadd.f32 %v7074_v50, %v7073_v58  ;;  %5597 = vmatmul.mubr.f32.gmra.mrb[236].mxu0 %v11759_v9  ;;  %v5498_v50 = vld [vmem:[#allocation8 + $0x460] sm:$0xff] }
 0x306   : > { %5199 = vmatmul.mubr.f32.gmra.mrb[190].mxu1 %v11754_v47  ;;  %5601 = vmatprep.mubr.f32.mxu0 %v5429_v34 }
 0x307   : > { %v11936_v24 = vadd.f32 %v9450_v14, %v7075_v40  ;;  %5203 = vmatprep.mubr.f32.mxu1 %v5428_v32  ;;  %v7284_v48 = vpop.f32.mrb[128].mxu1  ;;  %9139 = vmatpush3.bf16.msra.mxu1 %v9136_v44  ;;  %v5494_v32 = vld [vmem:[#allocation8 + $0x440] sm:$0xff]  ;;  %v5500_v40 = vld [vmem:[#allocation8 + $0x470] sm:$0xff] }
 0x308   : > { %v7285_v55 = vpop.f32.mrb[129].mxu1  ;;  %9173 = vmatprep.subr.bf16.mxu1 %v11931_v11 }
 0x309   : > { %v11939_v21 = vadd.f32 %v7285_v55, %v7284_v48  ;;  %5602 = vmatmul.mubr.f32.gmra.mrb[238].mxu0 %v11763_v37 }
 0x30a   : > { %5204 = vmatmul.mubr.f32.gmra.mrb[192].mxu1 %v11759_v9  ;;  %5606 = vmatprep.mubr.f32.mxu0 %v5430_v61  ;;  %v5433_v9 = vld [vmem:[#allocation2 + $0x171] sm:$0xff] }
 0x30b   : > { %5208 = vmatprep.mubr.f32.mxu1 %v5429_v34  ;;  %v7287_v53 = vpop.f32.mrb[130].mxu1  ;;  %v5501_v34 = vld [vmem:[#allocation8 + $0x478] sm:$0xff] }
 0x30c   : > { %v7288_v47 = vpop.f32.mrb[131].mxu1 }
 0x30d   : > { %v11943_v25 = vadd.f32 %v7288_v47, %v7287_v53  ;;  %5607 = vmatmul.mubr.f32.gmra.mrb[240].mxu0 %v11767_v1  ;;  %v5825_v47 = vld [vmem:[#allocation9] sm:$0xff] }
 0x30e   : > { %5209 = vmatmul.mubr.f32.gmra.mrb[194].mxu1 %v11763_v37  ;;  %5611 = vmatprep.mubr.f32.mxu0 %v5431_v2  ;;  %v5418_v37 = vld [vmem:[#allocation2 + $0x180] sm:$0xff] }
 0x30f   : > { %5213 = vmatprep.mubr.f32.mxu1 %v5430_v61  ;;  %v9200_v61 = vpack.c.bf16 %v5501_v34, %v5500_v40  ;;  %v5835_v34 = vld [vmem:[#allocation9 + $0x50] sm:$0xff] }
 0x311   : > { %5612 = vmatmul.mubr.f32.gmra.mrb[242].mxu0 %v11771_v60 }
 0x312   : > { %5214 = vmatmul.mubr.f32.gmra.mrb[196].mxu1 %v11767_v1  ;;  %5616 = vmatprep.mubr.f32.mxu0 %v5432_v29  ;;  %v5436_v1 = vld [vmem:[#allocation2 + $0x199] sm:$0xff] }
 0x313   : > { %5218 = vmatprep.mubr.f32.mxu1 %v5431_v2  ;;  %v5826_v2 = vld [vmem:[#allocation9 + $0x8] sm:$0xff] }
 0x315   : > { %5617 = vmatmul.mubr.f32.gmra.mrb[244].mxu0 %v11775_v51 }
 0x316   : > { %5219 = vmatmul.mubr.f32.gmra.mrb[198].mxu1 %v11771_v60  ;;  %5621 = vmatprep.mubr.f32.mxu0 %v5433_v9  ;;  %v5437_v60 = vld [vmem:[#allocation2 + $0x1a1] sm:$0xff] }
 0x317   : > { %5223 = vmatprep.mubr.f32.mxu1 %v5432_v29  ;;  %v11969_v29 = vld [vmem:[#allocation2 + $0x182] sm:$0xff] }
 0x319   : > { %5622 = vmatmul.mubr.f32.gmra.mrb[246].mxu0 %v11786_v41 }
 0x31a   : > { %5224 = vmatmul.mubr.f32.gmra.mrb[200].mxu1 %v11775_v51  ;;  %5626 = vmatprep.mubr.f32.mxu0 %v5434_v4  ;;  %v5489_v51 = vld [vmem:[#allocation8 + $0x418] sm:$0xff] }
 0x31b   : > { %5228 = vmatprep.mubr.f32.mxu1 %v5433_v9  ;;  %v9176_v38 = vpack.c.bf16 %v5489_v51, %v5488_v59  ;;  %v5438_v59 = vld [vmem:[#allocation2 + $0xf2] sm:$0xff] }
 0x31d   : > { %5627 = vmatmul.mubr.f32.gmra.mrb[248].mxu0 %v5418_v37 }
 0x31e   : > { %5229 = vmatmul.mubr.f32.gmra.mrb[202].mxu1 %v11786_v41  ;;  %5631 = vmatprep.mubr.f32.mxu0 %v5435_v17  ;;  %v5490_v41 = vld [vmem:[#allocation8 + $0x420] sm:$0xff] }
 0x31f   : > { %5233 = vmatprep.mubr.f32.mxu1 %v5434_v4  ;;  %v9180_v44 = vpack.c.bf16 %v5491_v54, %v5490_v41 }
 0x321   : > { %5632 = vmatmul.mubr.f32.gmra.mrb[250].mxu0 %v5419_v39 }
 0x322   : > { %5234 = vmatmul.mubr.f32.gmra.mrb[204].mxu1 %v5418_v37  ;;  %5636 = vmatprep.mubr.f32.mxu0 %v5436_v1 }
 0x323   : > { %5238 = vmatprep.mubr.f32.mxu1 %v5435_v17  ;;  %v9204_v17 = vpack.c.bf16 %v5826_v2, %v5825_v47  ;;  %v5838_v47 = vld [vmem:[#allocation9 + $0x68] sm:$0xff] }
 0x325   : > { %5637 = vmatmul.mubr.f32.gmra.mrb[252].mxu0 %v9771_v62 }
 0x326   : > { %5239 = vmatmul.mubr.f32.gmra.mrb[206].mxu1 %v5419_v39  ;;  %5641 = vmatprep.mubr.f32.mxu0 %v5437_v60  ;;  %v11975_v39 = vld [vmem:[#allocation2 + $0x18a] sm:$0xff]  ;;  %v5827_v60 = vld [vmem:[#allocation9 + $0x10] sm:$0xff] }
 0x327   : > { %8268 = vmatprep.mubr.f32.mxu1 %v11788_v45  ;;  %v9184_v45 = vpack.c.bf16 %v5493_v46, %v5492_v10  ;;  %v5830_v10 = vld [vmem:[#allocation9 + $0x28] sm:$0xff] }
 0x329   : > { %5642 = vmatmul.mubr.f32.gmra.mrb[254].mxu0 %v9771_v62  ;;  %v5828_v62 = vld [vmem:[#allocation9 + $0x18] sm:$0xff] }
 0x32a   : > { %8269 = vmatmul.mubr.f32.vlgmr.msra.gmra.mrb[160].mxu1 %v11796_v20  ;;  %v9188_v20 = vpack.c.bf16 %v5495_v13, %v5494_v32 }
 0x32b   : > { %8271 = vmatprep.mubr.f32.mxu1 %v11810_v43  ;;  %9175 = vmatpush3.bf16.msra.mxu1 %v11931_v11  ;;  %v5496_v43 = vld [vmem:[#allocation8 + $0x450] sm:$0xff]  ;;  %v5499_v11 = vld [vmem:[#allocation8 + $0x468] sm:$0xff] }
 0x32c   : > { %9177 = vmatprep.subr.bf16.mxu1 %v9176_v38  ;;  %v9192_v58 = vpack.c.bf16 %v5497_v19, %v5496_v43  ;;  %v9196_v14 = vpack.c.bf16 %v5499_v11, %v5498_v50  ;;  %v5832_v43 = vld [vmem:[#allocation9 + $0x38] sm:$0xff]  ;;  %v5833_v50 = vld [vmem:[#allocation9 + $0x40] sm:$0xff]  ;;  %v5834_v11 = vld [vmem:[#allocation9 + $0x48] sm:$0xff] }
 0x32e   : > { %8272 = vmatmul.mubr.f32.gmra.mrb[162].mxu1 %v11819_v3 }
 0x32f   : > { %8274 = vmatprep.mubr.f32.mxu1 %v11825_v33  ;;  %9179 = vmatpush3.bf16.msra.mxu1 %v9176_v38 }
 0x330   : > { %9181 = vmatprep.subr.bf16.mxu1 %v9180_v44 }
 0x332   : > { %8275 = vmatmul.mubr.f32.gmra.mrb[164].mxu1 %v11835_v23 }
 0x333   : > { %8277 = vmatprep.mubr.f32.mxu1 %v11842_v36  ;;  %9183 = vmatpush3.bf16.msra.mxu1 %v9180_v44  ;;  %v5829_v44 = vld [vmem:[#allocation9 + $0x20] sm:$0xff] }
 0x334   : > { %9185 = vmatprep.subr.bf16.mxu1 %v9184_v45  ;;  %v9212_v13 = vpack.c.bf16 %v5830_v10, %v5829_v44  ;;  %v6174_v10 = vld [vmem:[%s10222_s20 + $0xe1] sm:$0xff] }
 0x336   : > { %8278 = vmatmul.mubr.f32.gmra.mrb[166].mxu1 %v11852_v28 }
 0x337   : > { %8280 = vmatprep.mubr.f32.mxu1 %v11859_v22  ;;  %9187 = vmatpush3.bf16.msra.mxu1 %v9184_v45 }
 0x338   : > { %9189 = vmatprep.subr.bf16.mxu1 %v9188_v20 }
 0x33a   : > { %8281 = vmatmul.mubr.f32.gmra.mrb[168].mxu1 %v11869_v7 }
 0x33b   : > { %8283 = vmatprep.mubr.f32.mxu1 %v11874_v6  ;;  %9191 = vmatpush3.bf16.msra.mxu1 %v9188_v20  ;;  %v5831_v20 = vld [vmem:[#allocation9 + $0x30] sm:$0xff] }
 0x33c   : > { %9193 = vmatprep.subr.bf16.mxu1 %v9192_v58 }
 0x33e   : > { %8284 = vmatmul.mubr.f32.gmra.mrb[170].mxu1 %v11882_v63 }
 0x33f   : > { %8286 = vmatprep.mubr.f32.mxu1 %v11887_v35  ;;  %9195 = vmatpush3.bf16.msra.mxu1 %v9192_v58  ;;  %v7140_v48 = vpop.f32.mrb[192].mxu0 }
 0x340   : > { %v7141_v55 = vpop.f32.mrb[193].mxu0  ;;  %9197 = vmatprep.subr.bf16.mxu1 %v9196_v14 }
 0x341   : > { %v7142_v53 = vadd.f32 %v7141_v55, %v7140_v48  ;;  %v5836_v48 = vld [vmem:[#allocation9 + $0x58] sm:$0xff] }
 0x342   : > { %8287 = vmatmul.mubr.f32.gmra.mrb[172].mxu1 %v11893_v42 }
 0x343   : > { %8289 = vmatprep.mubr.f32.mxu1 %v11969_v29  ;;  %9199 = vmatpush3.bf16.msra.mxu1 %v9196_v14  ;;  %v7143_v9 = vpop.f32.mrb[194].mxu0  ;;  %v11973_v4 = vadd.f32 %v11805_v18, %v7142_v53  ;;  %v9208_v18 = vpack.c.bf16 %v5828_v62, %v5827_v60  ;;  %v5837_v53 = vld [vmem:[#allocation9 + $0x60] sm:$0xff] }
 0x344   : > { %v7144_v37 = vpop.f32.mrb[195].mxu0  ;;  %9201 = vmatprep.subr.bf16.mxu1 %v9200_v61 }
 0x345   : > { %v7145_v1 = vadd.f32 %v7144_v37, %v7143_v9  ;;  %v5839_v37 = vld [vmem:[#allocation9 + $0x70] sm:$0xff] }
 0x346   : > { %8290 = vmatmul.mubr.f32.gmra.mrb[174].mxu1 %v11975_v39 }
 0x347   : > { %9203 = vmatpush3.bf16.msra.mxu1 %v9200_v61  ;;  %8324 = vmatprep.mubr.f32.mxu1 %v5438_v59  ;;  %v7146_v51 = vpop.f32.mrb[196].mxu0  ;;  %v11979_v38 = vadd.f32 %v11817_v27, %v7145_v1 }
 0x348   : > { %v7147_v41 = vpop.f32.mrb[197].mxu0  ;;  %9205 = vmatprep.subr.bf16.mxu1 %v9204_v17 }
 0x349   : > { %v7148_v54 = vadd.f32 %v7147_v41, %v7146_v51  ;;  %v6173_v41 = vld [vmem:[%s10222_s20 + $0xd9] sm:$0xff] }
 0x34a   : > { %8325 = vmatmul.mubr.f32.vlgmr.msra.gmra.mrb[160].mxu1 %v11819_v3 }
 0x34b   : > { %v11983_v46 = vadd.f32 %v11832_v5, %v7148_v54  ;;  %8327 = vmatprep.mubr.f32.mxu1 %v11825_v33  ;;  %9207 = vmatpush3.bf16.msra.mxu1 %v9204_v17  ;;  %v7149_v45 = vpop.f32.mrb[198].mxu0  ;;  %v9216_v33 = vpack.c.bf16 %v5832_v43, %v5831_v20  ;;  %v5840_v17 = vld [vmem:[#allocation9 + $0x78] sm:$0xff] }
 0x34c   : > { %v7150_v32 = vpop.f32.mrb[199].mxu0  ;;  %9209 = vmatprep.subr.bf16.mxu1 %v9208_v18  ;;  %v9232_v60 = vpack.c.bf16 %v5840_v17, %v5839_v37 }
 0x34d   : > { %v7151_v27 = vadd.f32 %v7150_v32, %v7149_v45 }
 0x34e   : > { %8328 = vmatmul.mubr.f32.gmra.mrb[162].mxu1 %v11835_v23 }
 0x34f   : > { %v11988_v19 = vadd.f32 %v11849_v26, %v7151_v27  ;;  %8330 = vmatprep.mubr.f32.mxu1 %v11842_v36  ;;  %9211 = vmatpush3.bf16.msra.mxu1 %v9208_v18  ;;  %v7152_v3 = vpop.f32.mrb[200].mxu0  ;;  %v9220_v36 = vpack.c.bf16 %v5834_v11, %v5833_v50  ;;  %v6177_v50 = vld [vmem:[%s10222_s20 + $0x109] sm:$0xff] }
 0x350   : > { %v7153_v5 = vpop.f32.mrb[201].mxu0  ;;  %9213 = vmatprep.subr.bf16.mxu1 %v9212_v13 }
 0x351   : > { %v7154_v58 = vadd.f32 %v7153_v5, %v7152_v3 }
 0x352   : > { %8331 = vmatmul.mubr.f32.gmra.mrb[164].mxu1 %v11852_v28 }
 0x353   : > { %v11993_v14 = vadd.f32 %v11866_v52, %v7154_v58  ;;  %8333 = vmatprep.mubr.f32.mxu1 %v11859_v22  ;;  %9215 = vmatpush3.bf16.msra.mxu1 %v9212_v13  ;;  %v7155_v23 = vpop.f32.mrb[202].mxu0  ;;  %v9224_v22 = vpack.c.bf16 %v5836_v48, %v5835_v34  ;;  %v6175_v13 = vld [vmem:[%s10222_s20 + $0xf1] sm:$0xff] }
 0x354   : > { %v7156_v26 = vpop.f32.mrb[203].mxu0  ;;  %9217 = vmatprep.subr.bf16.mxu1 %v9216_v33 }
 0x355   : > { %v7157_v40 = vadd.f32 %v7156_v26, %v7155_v23 }
 0x356   : > { %8334 = vmatmul.mubr.f32.gmra.mrb[166].mxu1 %v11869_v7 }
 0x357   : > { %v11998_v55 = vadd.f32 %v11879_v8, %v7157_v40  ;;  %8336 = vmatprep.mubr.f32.mxu1 %v11874_v6  ;;  %9219 = vmatpush3.bf16.msra.mxu1 %v9216_v33  ;;  %v7158_v28 = vpop.f32.mrb[204].mxu0  ;;  %v9228_v6 = vpack.c.bf16 %v5838_v47, %v5837_v53 }
 0x358   : > { %v7159_v52 = vpop.f32.mrb[205].mxu0  ;;  %9221 = vmatprep.subr.bf16.mxu1 %v9220_v36 }
 0x359   : > { %v7160_v61 = vadd.f32 %v7159_v52, %v7158_v28  ;;  %v6179_v28 = vld [vmem:[%s10222_s20 + $0x121] sm:$0xff] }
 0x35a   : > { %8337 = vmatmul.mubr.f32.gmra.mrb[168].mxu1 %v11882_v63 }
 0x35b   : > { %v12003_v2 = vadd.f32 %v11891_v12, %v7160_v61  ;;  %8339 = vmatprep.mubr.f32.mxu1 %v11887_v35  ;;  %9223 = vmatpush3.bf16.msra.mxu1 %v9220_v36  ;;  %v7161_v7 = vpop.f32.mrb[206].mxu0  ;;  %v5452_v35 = vld [vmem:[#allocation2 + $0x19a] sm:$0xff] }
 0x35c   : > { %v7162_v8 = vpop.f32.mrb[207].mxu0  ;;  %9225 = vmatprep.subr.bf16.mxu1 %v9224_v22 }
 0x35d   : > { %v7163_v9 = vadd.f32 %v7162_v8, %v7161_v7 }
 0x35e   : > { %8340 = vmatmul.mubr.f32.gmra.mrb[170].mxu1 %v11893_v42 }
 0x35f   : > { %v12008_v1 = vadd.f32 %v11899_v30, %v7163_v9  ;;  %8342 = vmatprep.mubr.f32.mxu1 %v11969_v29  ;;  %9227 = vmatpush3.bf16.msra.mxu1 %v9224_v22  ;;  %v7164_v63 = vpop.f32.mrb[208].mxu0  ;;  %v5453_v30 = vld [vmem:[#allocation2 + $0x1a2] sm:$0xff] }
 0x360   : > { %v7165_v12 = vpop.f32.mrb[209].mxu0  ;;  %9229 = vmatprep.subr.bf16.mxu1 %v9228_v6 }
 0x361   : > { %v7166_v62 = vadd.f32 %v7165_v12, %v7164_v63 }
 0x362   : > { %8343 = vmatmul.mubr.f32.gmra.mrb[172].mxu1 %v11975_v39 }
 0x363   : > { %v12013_v59 = vadd.f32 %v11902_v0, %v7166_v62  ;;  %9231 = vmatpush3.bf16.msra.mxu1 %v9228_v6  ;;  %v7167_v42 = vpop.f32.mrb[210].mxu0  ;;  %8345 = vmatprep.mubr.f32.mxu1 %v5452_v35  ;;  %v6181_v6 = vld [vmem:[%s10222_s20 + $0x139] sm:$0xff]  ;;  %v6183_v62 = vld [vmem:[%s10222_s20 + $0x151] sm:$0xff] }
 0x364   : > { %v7290_v29 = vpop.f32.mrb[132].mxu1  ;;  %v7168_v51 = vpop.f32.mrb[211].mxu0  ;;  %9233 = vmatprep.subr.bf16.mxu1 %v9232_v60 }
 0x365   : > { %v7169_v18 = vadd.f32 %v7168_v51, %v7167_v42  ;;  %v7291_v54 = vpop.f32.mrb[133].mxu1 }
 0x366   : > { %v12016_v44 = vadd.f32 %v7291_v54, %v7290_v29  ;;  %8346 = vmatmul.mubr.f32.gmra.mrb[174].mxu1 %v5453_v30 }
 0x367   : > { %v12019_v39 = vadd.f32 %v11906_v49, %v7169_v18  ;;  %9235 = vmatpush3.bf16.msra.mxu1 %v9232_v60  ;;  %v7170_v0 = vpop.f32.mrb[212].mxu0  ;;  %8380 = vmatprep.mubr.f32.mxu1 %v6173_v41  ;;  %v6176_v49 = vld [vmem:[%s10222_s20 + $0xf9] sm:$0xff] }
 0x368   : > { %v7293_v45 = vpop.f32.mrb[134].mxu1  ;;  %v7171_v32 = vpop.f32.mrb[213].mxu0 }
 0x369   : > { %v7172_v27 = vadd.f32 %v7171_v32, %v7170_v0  ;;  %v7294_v20 = vpop.f32.mrb[135].mxu1  ;;  %v6185_v0 = vld [vmem:[%s10222_s20 + $0x169] sm:$0xff] }
 0x36a   : > { %v12023_v43 = vadd.f32 %v7294_v20, %v7293_v45  ;;  %8381 = vmatmul.mubr.f32.vlgmr.msra.gmra.mrb[160].mxu1 %v6174_v10 }
 0x36b   : > { %v12026_v3 = vadd.f32 %v11910_v56, %v7172_v27  ;;  %v7173_v5 = vpop.f32.mrb[214].mxu0  ;;  %8383 = vmatprep.mubr.f32.mxu1 %v6175_v13  ;;  %v6178_v56 = vld [vmem:[%s10222_s20 + $0x111] sm:$0xff] }
 0x36c   : > { %v7296_v33 = vpop.f32.mrb[136].mxu1  ;;  %v7174_v58 = vpop.f32.mrb[215].mxu0  ;;  %v6186_v27 = vld [vmem:[%s10222_s20 + $0x171] sm:$0xff] }
 0x36d   : > { %v7175_v11 = vadd.f32 %v7174_v58, %v7173_v5  ;;  %v7297_v23 = vpop.f32.mrb[137].mxu1 }
 0x36e   : > { %v12030_v26 = vadd.f32 %v7297_v23, %v7296_v33  ;;  %8384 = vmatmul.mubr.f32.gmra.mrb[162].mxu1 %v6176_v49  ;;  %v6188_v33 = vld [vmem:[%s10222_s20 + $0x189] sm:$0xff] }
 0x36f   : > { %v12033_v36 = vadd.f32 %v11914_v16, %v7175_v11  ;;  %v7176_v40 = vpop.f32.mrb[216].mxu0  ;;  %8386 = vmatprep.mubr.f32.mxu1 %v6177_v50  ;;  %v6180_v16 = vld [vmem:[%s10222_s20 + $0x129] sm:$0xff] }
 0x370   : > { %v7299_v34 = vpop.f32.mrb[138].mxu1  ;;  %v7177_v48 = vpop.f32.mrb[217].mxu0 }
 0x371   : > { %v7178_v52 = vadd.f32 %v7177_v48, %v7176_v40  ;;  %v7300_v22 = vpop.f32.mrb[139].mxu1 }
 0x372   : > { %v12037_v61 = vadd.f32 %v7300_v22, %v7299_v34  ;;  %8387 = vmatmul.mubr.f32.gmra.mrb[164].mxu1 %v6178_v56 }
 0x373   : > { %v12040_v53 = vadd.f32 %v11919_v31, %v7178_v52  ;;  %v7179_v47 = vpop.f32.mrb[218].mxu0  ;;  %8389 = vmatprep.mubr.f32.mxu1 %v6179_v28  ;;  %v6182_v31 = vld [vmem:[%s10222_s20 + $0x141] sm:$0xff] }
 0x374   : > { %v7302_v7 = vpop.f32.mrb[140].mxu1  ;;  %v7180_v8 = vpop.f32.mrb[219].mxu0 }
 0x375   : > { %v7181_v9 = vadd.f32 %v7180_v8, %v7179_v47  ;;  %v7303_v37 = vpop.f32.mrb[141].mxu1 }
 0x376   : > { %v12044_v17 = vadd.f32 %v7303_v37, %v7302_v7  ;;  %8390 = vmatmul.mubr.f32.gmra.mrb[166].mxu1 %v6180_v16 }
 0x377   : > { %v12047_v63 = vadd.f32 %v11924_v15, %v7181_v9  ;;  %v7182_v12 = vpop.f32.mrb[220].mxu0  ;;  %8392 = vmatprep.mubr.f32.mxu1 %v6181_v6  ;;  %v6184_v15 = vld [vmem:[%s10222_s20 + $0x159] sm:$0xff] }
 0x378   : > { %v7305_v35 = vpop.f32.mrb[142].mxu1  ;;  %v7183_v60 = vpop.f32.mrb[221].mxu0 }
 0x379   : > { %v7184_v42 = vadd.f32 %v7183_v60, %v7182_v12  ;;  %v7306_v30 = vpop.f32.mrb[143].mxu1  ;;  %v12084_v12 = vld [vmem:[%s12304_s6] ss:$0 sm:$0xff] }
 0x37a   : > { %v12051_v29 = vadd.f32 %v7306_v30, %v7305_v35  ;;  %8393 = vmatmul.mubr.f32.gmra.mrb[168].mxu1 %v6182_v31 }
 0x37b   : > { %v12054_v51 = vadd.f32 %v11929_v57, %v7184_v42  ;;  %v7185_v41 = vpop.f32.mrb[222].mxu0  ;;  %8395 = vmatprep.mubr.f32.mxu1 %v6183_v62  ;;  %v6187_v57 = vld [vmem:[%s10222_s20 + $0x181] sm:$0xff]  ;;  %v9393_v42 = vadd.f32 %v11988_v19, %v12084_v12  ;;  %v9403_v19 = vadd.f32 %v11998_v55, %v12084_v12  ;;  %v9418_v55 = vadd.f32 %v12003_v2, %v12084_v12  ;;  %s6040_s20 = sshll.u32 %s12094_s15, 4  ;;  %s12252_s20 = int_to_ptr.vmem [resolvable:$true] %s6040_s20 }
 0x37c   : > { %v7308_v18 = vpop.f32.mrb[144].mxu1  ;;  %v7186_v54 = vpop.f32.mrb[223].mxu0  ;;  %v9433_v2 = vadd.f32 %v12033_v36, %v12084_v12  ;;  %s9887_s11 = scalar_lea.vmem %s12252_s20, 4096  ;;  %p9894_p12 = scmp.lt.s32.totalorder %s12252_s20, %s9892_s12 }
 0x37d   : > { %v7187_v10 = vadd.f32 %v7186_v54, %v7185_v41  ;;  %v7309_v45 = vpop.f32.mrb[145].mxu1  ;;  %v9408_v54 = vadd.f32 %v11993_v14, %v12084_v12  ;;  %v9423_v14 = vadd.f32 %v12019_v39, %v12084_v12  ;;  %v9438_v39 = vadd.f32 %v12026_v3, %v12084_v12  ;;  %p9888_p10 = scmp.ne.s32.totalorder %s12252_s20, %s9887_s11  ;;  %p9895_p1 = scmp.lt.s32.totalorder %s9893_s16, %s9887_s11 }
 0x37e   : > { %v12058_v32 = vadd.f32 %v7309_v45, %v7308_v18  ;;  %8396 = vmatmul.mubr.f32.gmra.mrb[170].mxu1 %v6184_v15  ;;  %v9398_v15 = vadd.f32 %v11983_v46, %v12084_v12 }
 0x37f   : > { %v12061_v13 = vadd.f32 %v11936_v24, %v7187_v10  ;;  %8398 = vmatprep.mubr.f32.mxu1 %v6185_v0  ;;  %p9889_p3 = pnand %p9888_p10, %p10167_p5  ;;  %p9896_p2 = por %p9895_p1, %p9894_p12 }
 0x380   : > { %v7311_v20 = vpop.f32.mrb[146].mxu1 }
 0x381   : > { %v7312_v5 = vpop.f32.mrb[147].mxu1  ;;  %v9453_v3 = vadd.f32 %v12061_v13, %v12084_v12  ;;  %p9890_p7 = pneg %p9889_p3 }
 0x382   : > { %v12065_v49 = vadd.f32 %v7312_v5, %v7311_v20  ;;  %8399 = vmatmul.mubr.f32.gmra.mrb[172].mxu1 %v6186_v27  ;;  %v9413_v27 = vadd.f32 %v12008_v1, %v12084_v12  ;;  %v9428_v1 = vadd.f32 %v12013_v59, %v12084_v12  ;;  %v9443_v59 = vadd.f32 %v12047_v63, %v12084_v12 }
 0x383   : > { %8401 = vmatprep.mubr.f32.mxu1 %v6187_v57  ;;  %p9897_p4 = pnand %p9896_p2, %p9890_p7 }
 0x384   : > { %v7314_v58 = vpop.f32.mrb[148].mxu1 }
 0x385   : > { %v7315_v50 = vpop.f32.mrb[149].mxu1 }
 0x386   : > { %v12068_v11 = vadd.f32 %v7315_v50, %v7314_v58  ;;  %8402 = vmatmul.mubr.f32.gmra.mrb[174].mxu1 %v6188_v33 }
 0x388   : > { %v7317_v23 = vpop.f32.mrb[150].mxu1 }
 0x389   : > { %v7318_v40 = vpop.f32.mrb[151].mxu1 }
 0x38a   : > { %v12070_v24 = vadd.f32 %v7318_v40, %v7317_v23 }
 0x38c   : > { %v7320_v56 = vpop.f32.mrb[152].mxu1 }
 0x38d   : > { %v7321_v34 = vpop.f32.mrb[153].mxu1 }
 0x38e   : > { %v12072_v48 = vadd.f32 %v7321_v34, %v7320_v56 }
 0x390   : > { %v7323_v28 = vpop.f32.mrb[154].mxu1 }
 0x391   : > { %v7324_v52 = vpop.f32.mrb[155].mxu1 }
 0x392   : > { %v12074_v22 = vadd.f32 %v7324_v52, %v7323_v28 }
 0x394   : > { %v7326_v47 = vpop.f32.mrb[156].mxu1 }
 0x395   : > { %v7327_v16 = vpop.f32.mrb[157].mxu1 }
 0x396   : > { %v12076_v7 = vadd.f32 %v7327_v16, %v7326_v47  ;;  %v9448_v16 = vadd.f32 %v12040_v53, %v12084_v12  ;;  %v12137_v53 = vld [vmem:[%s12302_s4] ss:$0 sm:$0xff] }
 0x398   : > { %v7329_v8 = vpop.f32.mrb[158].mxu1 }
 0x399   : > { %v7330_v6 = vpop.f32.mrb[159].mxu1 }
 0x39a   : > { %v12078_v9 = vadd.f32 %v7330_v6, %v7329_v8 }
 0x3a0   : > { %v8158_v37 = vpop.f32.mrb[176].mxu0 }
 0x3a1   : > { %v9383_v31 = vadd.f32 %v11979_v38, %v8158_v37  ;;  %v4489_v35 = vpop.f32.mrb[177].mxu0 }
 0x3a2   : > { %v9388_v60 = vadd.f32 %v11973_v4, %v4489_v35 }
 0x3a3   : > { %v9384_v62 = vadd.f32 %v9383_v31, %v12084_v12  ;;  %v9458_v31 = vadd.f32 %v12054_v51, %v12084_v12 }
 0x3a4   : > { %v9389_v30 = vadd.f32 %v9388_v60, %v12084_v12  ;;  %v8161_v41 = vpop.f32.mrb[178].mxu0 }
 0x3a5   : > { %4585 = vst [vmem:[%s12094_s15 + $0x8] sm:$0xff] %v9384_v62  ;;  %v9394_v4 = vadd.f32 %v9393_v42, %v8161_v41  ;;  %v4499_v38 = vpop.f32.mrb[179].mxu0 }
 0x3a6   : > { %4584 = vst [vmem:[%s12094_s15] sm:$0xff] %v9389_v30  ;;  %v9399_v18 = vadd.f32 %v9398_v15, %v4499_v38  ;;  %v9465_v30 = vadd.f32 %v12137_v53, %v11939_v21 }
 0x3a7   : > { %4587 = vst [vmem:[%s12094_s15 + $0x18] sm:$0xff] %v9394_v4 }
 0x3a8   : > { %4586 = vst [vmem:[%s12094_s15 + $0x10] sm:$0xff] %v9399_v18  ;;  %v8164_v46 = vpop.f32.mrb[180].mxu0 }
 0x3a9   : > { %v9404_v0 = vadd.f32 %v9403_v19, %v8164_v46  ;;  %v4509_v10 = vpop.f32.mrb[181].mxu0  ;;  %v9460_v19 = vadd.f32 %v12137_v53, %v11943_v25 }
 0x3aa   : > { %v9409_v45 = vadd.f32 %v9408_v54, %v4509_v10 }
 0x3ab   : > { %4589 = vst [vmem:[%s12094_s15 + $0x28] sm:$0xff] %v9404_v0 }
 0x3ac   : > { %4588 = vst [vmem:[%s12094_s15 + $0x20] sm:$0xff] %v9409_v45  ;;  %v8167_v20 = vpop.f32.mrb[182].mxu0 }
 0x3ad   : > { %v9414_v57 = vadd.f32 %v9413_v27, %v8167_v20  ;;  %v4519_v5 = vpop.f32.mrb[183].mxu0 }
 0x3ae   : > { %v9419_v33 = vadd.f32 %v9418_v55, %v4519_v5  ;;  %v9475_v55 = vadd.f32 %v12137_v53, %v12016_v44 }
 0x3af   : > { %4591 = vst [vmem:[%s12094_s15 + $0x38] sm:$0xff] %v9414_v57 }
 0x3b0   : > { %4590 = vst [vmem:[%s12094_s15 + $0x30] sm:$0xff] %v9419_v33  ;;  %v8170_v58 = vpop.f32.mrb[184].mxu0 }
 0x3b1   : > { %v9424_v50 = vadd.f32 %v9423_v14, %v8170_v58  ;;  %v4529_v23 = vpop.f32.mrb[185].mxu0 }
 0x3b2   : > { %v9429_v40 = vadd.f32 %v9428_v1, %v4529_v23  ;;  %v9470_v23 = vadd.f32 %v12137_v53, %v12023_v43 }
 0x3b3   : > { %4593 = vst [vmem:[%s12094_s15 + $0x48] sm:$0xff] %v9424_v50 }
 0x3b4   : > { %4592 = vst [vmem:[%s12094_s15 + $0x40] sm:$0xff] %v9429_v40  ;;  %v8173_v56 = vpop.f32.mrb[186].mxu0 }
 0x3b5   : > { %v9434_v34 = vadd.f32 %v9433_v2, %v8173_v56  ;;  %v4539_v28 = vpop.f32.mrb[187].mxu0 }
 0x3b6   : > { %v9439_v52 = vadd.f32 %v9438_v39, %v4539_v28 }
 0x3b7   : > { %4595 = vst [vmem:[%s12094_s15 + $0x58] sm:$0xff] %v9434_v34 }
 0x3b8   : > { %4594 = vst [vmem:[%s12094_s15 + $0x50] sm:$0xff] %v9439_v52  ;;  %v8176_v47 = vpop.f32.mrb[188].mxu0 }
 0x3b9   : > { %v9444_v36 = vadd.f32 %v9443_v59, %v8176_v47  ;;  %v4549_v8 = vpop.f32.mrb[189].mxu0  ;;  %v9485_v59 = vadd.f32 %v12137_v53, %v12030_v26 }
 0x3ba   : > { %v9449_v6 = vadd.f32 %v9448_v16, %v4549_v8 }
 0x3bb   : > { %4597 = vst [vmem:[%s12094_s15 + $0x68] sm:$0xff] %v9444_v36 }
 0x3bc   : > { %4596 = vst [vmem:[%s12094_s15 + $0x60] sm:$0xff] %v9449_v6  ;;  %v8179_v37 = vpop.f32.mrb[190].mxu0 }
 0x3bd   : > { %v9454_v63 = vadd.f32 %v9453_v3, %v8179_v37  ;;  %v7396_v35 = vpop.f32.mrb[176].mxu1  ;;  %v4559_v60 = vpop.f32.mrb[191].mxu0 }
 0x3be   : > { %v9459_v62 = vadd.f32 %v9458_v31, %v4559_v60  ;;  %v7397_v42 = vpop.f32.mrb[177].mxu1  ;;  %v9480_v31 = vadd.f32 %v12137_v53, %v12037_v61 }
 0x3bf   : > { %4599 = vst [vmem:[%s12094_s15 + $0x78] sm:$0xff] %v9454_v63  ;;  %v7398_v13 = vadd.f32 %v7397_v42, %v7396_v35 }
 0x3c0   : > { %4598 = vst [vmem:[%s12094_s15 + $0x70] sm:$0xff] %v9459_v62  ;;  %v7508_v41 = vpop.f32.mrb[224].mxu0 }
 0x3c1   : > { %v9466_v15 = vadd.f32 %v9465_v30, %v7398_v13  ;;  %v7399_v4 = vpop.f32.mrb[178].mxu1  ;;  %v7509_v51 = vpop.f32.mrb[225].mxu0 }
 0x3c2   : > { %v7400_v38 = vpop.f32.mrb[179].mxu1  ;;  %v7510_v18 = vadd.f32 %v7509_v51, %v7508_v41  ;;  %v9495_v41 = vadd.f32 %v12137_v53, %v12044_v17 }
 0x3c3   : > { %v7401_v46 = vadd.f32 %v7400_v38, %v7399_v4 }
 0x3c4   : > { %v7511_v54 = vpop.f32.mrb[226].mxu0  ;;  %v12145_v0 = vadd.f32 %v9466_v15, %v7510_v18 }
 0x3c5   : > { %v9461_v10 = vadd.f32 %v9460_v19, %v7401_v46  ;;  %v7402_v45 = vpop.f32.mrb[180].mxu1  ;;  %v7512_v27 = vpop.f32.mrb[227].mxu0 }
 0x3c6   : > { %v7403_v21 = vpop.f32.mrb[181].mxu1  ;;  %v7513_v20 = vadd.f32 %v7512_v27, %v7511_v54  ;;  %v9490_v54 = vadd.f32 %v12137_v53, %v12051_v29 }
 0x3c7   : > { %v7404_v57 = vadd.f32 %v7403_v21, %v7402_v45 }
 0x3c8   : > { %v7514_v5 = vpop.f32.mrb[228].mxu0  ;;  %v12149_v33 = vadd.f32 %v9461_v10, %v7513_v20 }
 0x3c9   : > { %v9476_v14 = vadd.f32 %v9475_v55, %v7404_v57  ;;  %v7405_v58 = vpop.f32.mrb[182].mxu1  ;;  %v7515_v1 = vpop.f32.mrb[229].mxu0 }
 0x3ca   : > { %v7406_v25 = vpop.f32.mrb[183].mxu1  ;;  %v7516_v50 = vadd.f32 %v7515_v1, %v7514_v5  ;;  %v9505_v5 = vadd.f32 %v12137_v53, %v12058_v32 }
 0x3cb   : > { %v7407_v40 = vadd.f32 %v7406_v25, %v7405_v58 }
 0x3cc   : > { %v12153_v2 = vadd.f32 %v9476_v14, %v7516_v50  ;;  %v7517_v56 = vpop.f32.mrb[230].mxu0 }
 0x3cd   : > { %v9471_v39 = vadd.f32 %v9470_v23, %v7407_v40  ;;  %v7408_v34 = vpop.f32.mrb[184].mxu1  ;;  %v7518_v28 = vpop.f32.mrb[231].mxu0 }
 0x3ce   : > { %v7409_v44 = vpop.f32.mrb[185].mxu1  ;;  %v7519_v52 = vadd.f32 %v7518_v28, %v7517_v56  ;;  %v9500_v56 = vadd.f32 %v12137_v53, %v12065_v49 }
 0x3cf   : > { %v7410_v47 = vadd.f32 %v7409_v44, %v7408_v34 }
 0x3d0   : > { %v12157_v16 = vadd.f32 %v9471_v39, %v7519_v52  ;;  %v7520_v36 = vpop.f32.mrb[232].mxu0 }
 0x3d1   : > { %v9486_v8 = vadd.f32 %v9485_v59, %v7410_v47  ;;  %v7411_v6 = vpop.f32.mrb[186].mxu1  ;;  %v7521_v3 = vpop.f32.mrb[233].mxu0 }
 0x3d2   : > { %v7412_v43 = vpop.f32.mrb[187].mxu1  ;;  %v7522_v37 = vadd.f32 %v7521_v3, %v7520_v36  ;;  %v9515_v36 = vadd.f32 %v12137_v53, %v12068_v11 }
 0x3d3   : > { %v7413_v63 = vadd.f32 %v7412_v43, %v7411_v6 }
 0x3d4   : > { %v12161_v35 = vadd.f32 %v9486_v8, %v7522_v37  ;;  %v7523_v60 = vpop.f32.mrb[234].mxu0 }
 0x3d5   : > { %v9481_v62 = vadd.f32 %v9480_v31, %v7413_v63  ;;  %v7414_v42 = vpop.f32.mrb[188].mxu1  ;;  %v7524_v30 = vpop.f32.mrb[235].mxu0 }
 0x3d6   : > { %v7415_v26 = vpop.f32.mrb[189].mxu1  ;;  %v7525_v13 = vadd.f32 %v7524_v30, %v7523_v60  ;;  %v9510_v60 = vadd.f32 %v12137_v53, %v12070_v24 }
 0x3d7   : > { %v7416_v15 = vadd.f32 %v7415_v26, %v7414_v42 }
 0x3d8   : > { %v12165_v4 = vadd.f32 %v9481_v62, %v7525_v13  ;;  %v7526_v51 = vpop.f32.mrb[236].mxu0 }
 0x3d9   : > { %v9496_v38 = vadd.f32 %v9495_v41, %v7416_v15  ;;  %v7417_v18 = vpop.f32.mrb[190].mxu1  ;;  %v7527_v19 = vpop.f32.mrb[237].mxu0 }
 0x3da   : > { %v7418_v61 = vpop.f32.mrb[191].mxu1  ;;  %v7528_v46 = vadd.f32 %v7527_v19, %v7526_v51  ;;  %v9525_v51 = vadd.f32 %v12137_v53, %v12072_v48 }
 0x3db   : > { %v7419_v10 = vadd.f32 %v7418_v61, %v7417_v18 }
 0x3dc   : > { %v12169_v45 = vadd.f32 %v9496_v38, %v7528_v46  ;;  %v7529_v27 = vpop.f32.mrb[238].mxu0 }
 0x3dd   : > { %v9491_v21 = vadd.f32 %v9490_v54, %v7419_v10  ;;  %v7420_v20 = vpop.f32.mrb[192].mxu1  ;;  %v7530_v55 = vpop.f32.mrb[239].mxu0 }
 0x3de   : > { %v7421_v17 = vpop.f32.mrb[193].mxu1  ;;  %v7531_v57 = vadd.f32 %v7530_v55, %v7529_v27  ;;  %v9520_v27 = vadd.f32 %v12137_v53, %v12074_v22 }
 0x3df   : > { %v7422_v14 = vadd.f32 %v7421_v17, %v7420_v20 }
 0x3e0   : > { %v12173_v58 = vadd.f32 %v9491_v21, %v7531_v57  ;;  %v7532_v1 = vpop.f32.mrb[240].mxu0 }
 0x3e1   : > { %v9506_v25 = vadd.f32 %v9505_v5, %v7422_v14  ;;  %v7423_v50 = vpop.f32.mrb[194].mxu1  ;;  %v7533_v23 = vpop.f32.mrb[241].mxu0 }
 0x3e2   : > { %v7424_v29 = vpop.f32.mrb[195].mxu1  ;;  %v7534_v40 = vadd.f32 %v7533_v23, %v7532_v1  ;;  %v9535_v1 = vadd.f32 %v12137_v53, %v12076_v7 }
 0x3e3   : > { %v7425_v39 = vadd.f32 %v7424_v29, %v7423_v50 }
 0x3e4   : > { %v12177_v34 = vadd.f32 %v9506_v25, %v7534_v40  ;;  %v7535_v28 = vpop.f32.mrb[242].mxu0 }
 0x3e5   : > { %v9501_v44 = vadd.f32 %v9500_v56, %v7425_v39  ;;  %v7426_v52 = vpop.f32.mrb[196].mxu1  ;;  %v7536_v59 = vpop.f32.mrb[243].mxu0 }
 0x3e6   : > { %v7427_v32 = vpop.f32.mrb[197].mxu1  ;;  %v7537_v47 = vadd.f32 %v7536_v59, %v7535_v28  ;;  %v9530_v28 = vadd.f32 %v12137_v53, %v12078_v9  ;;  %v9473_v53 = vadd.f32 %v12157_v16, %v12084_v12 }
 0x3e7   : > { %v7428_v8 = vadd.f32 %v7427_v32, %v7426_v52 }
 0x3e8   : > { %v12181_v6 = vadd.f32 %v9501_v44, %v7537_v47  ;;  %v7538_v3 = vpop.f32.mrb[244].mxu0 }
 0x3e9   : > { %v9516_v43 = vadd.f32 %v9515_v36, %v7428_v8  ;;  %v7429_v37 = vpop.f32.mrb[198].mxu1  ;;  %v7539_v31 = vpop.f32.mrb[245].mxu0 }
 0x3ea   : > { %v7430_v49 = vpop.f32.mrb[199].mxu1  ;;  %v7540_v63 = vadd.f32 %v7539_v31, %v7538_v3 }
 0x3eb   : > { %v7431_v62 = vadd.f32 %v7430_v49, %v7429_v37 }
 0x3ec   : > { %v12185_v42 = vadd.f32 %v9516_v43, %v7540_v63  ;;  %v7541_v30 = vpop.f32.mrb[246].mxu0  ;;  %v9478_v63 = vadd.f32 %v12153_v2, %v12084_v12 }
 0x3ed   : > { %v9511_v26 = vadd.f32 %v9510_v60, %v7431_v62  ;;  %v7432_v13 = vpop.f32.mrb[200].mxu1  ;;  %v7542_v41 = vpop.f32.mrb[247].mxu0 }
 0x3ee   : > { %v7433_v11 = vpop.f32.mrb[201].mxu1  ;;  %v7543_v15 = vadd.f32 %v7542_v41, %v7541_v30  ;;  %v9488_v30 = vadd.f32 %v12161_v35, %v12084_v12  ;;  %v9493_v41 = vadd.f32 %v12173_v58, %v12084_v12  ;;  %v9503_v35 = vadd.f32 %v12181_v6, %v12084_v12 }
 0x3ef   : > { %v7434_v38 = vadd.f32 %v7433_v11, %v7432_v13  ;;  %v9508_v58 = vadd.f32 %v12177_v34, %v12084_v12  ;;  %v9518_v6 = vadd.f32 %v12185_v42, %v12084_v12 }
 0x3f0   : > { %v12189_v18 = vadd.f32 %v9511_v26, %v7543_v15  ;;  %v7544_v19 = vpop.f32.mrb[248].mxu0 }
 0x3f1   : > { %v9526_v61 = vadd.f32 %v9525_v51, %v7434_v38  ;;  %v7435_v46 = vpop.f32.mrb[202].mxu1  ;;  %v7545_v54 = vpop.f32.mrb[249].mxu0 }
 0x3f2   : > { %v7436_v24 = vpop.f32.mrb[203].mxu1  ;;  %v7546_v10 = vadd.f32 %v7545_v54, %v7544_v19 }
 0x3f3   : > { %v7437_v21 = vadd.f32 %v7436_v24, %v7435_v46 }
 0x3f4   : > { %v12193_v20 = vadd.f32 %v9526_v61, %v7546_v10  ;;  %v7547_v55 = vpop.f32.mrb[250].mxu0 }
 0x3f5   : > { %v9521_v17 = vadd.f32 %v9520_v27, %v7437_v21  ;;  %v7438_v57 = vpop.f32.mrb[204].mxu1  ;;  %v7548_v5 = vpop.f32.mrb[251].mxu0 }
 0x3f6   : > { %v7439_v48 = vpop.f32.mrb[205].mxu1  ;;  %v7549_v14 = vadd.f32 %v7548_v5, %v7547_v55 }
 0x3f7   : > { %v7440_v25 = vadd.f32 %v7439_v48, %v7438_v57 }
 0x3f8   : > { %v9522_v50 = vadd.f32 %v9521_v17, %v7549_v14  ;;  %v7550_v23 = vpop.f32.mrb[252].mxu0  ;;  %v9528_v17 = vadd.f32 %v12193_v20, %v12084_v12 }
 0x3f9   : > { %v9536_v29 = vadd.f32 %v9535_v1, %v7440_v25  ;;  %v7441_v40 = vpop.f32.mrb[206].mxu1  ;;  %v7551_v56 = vpop.f32.mrb[253].mxu0 }
 0x3fa   : > { %v7442_v39 = vpop.f32.mrb[207].mxu1  ;;  %v7552_v22 = vadd.f32 %v7551_v56, %v7550_v23  ;;  %v9523_v34 = vadd.f32 %v9522_v50, %v12084_v12 }
 0x3fb   : > { %v7443_v44 = vadd.f32 %v7442_v39, %v7441_v40 }
 0x3fc   : > { %v12199_v52 = vadd.f32 %v9536_v29, %v7552_v22  ;;  %v7553_v59 = vpop.f32.mrb[254].mxu0 }
 0x3fd   : > { %v9531_v32 = vadd.f32 %v9530_v28, %v7443_v44  ;;  %v7554_v47 = vpop.f32.mrb[255].mxu0 }
 0x3fe   : > { %v7555_v7 = vadd.f32 %v7554_v47, %v7553_v59  ;;  %v9538_v14 = vadd.f32 %v12199_v52, %v12084_v12 }
 0x400   : > { %v9532_v36 = vadd.f32 %v9531_v32, %v7555_v7 }
 0x402   : > { %v9533_v42 = vadd.f32 %v9532_v36, %v12084_v12 }
 0x43d   : > { %v8382_v8 = vpop.f32.mrb[160].mxu1 }
 0x43e   : > { %v9463_v3 = vadd.f32 %v12149_v33, %v8382_v8  ;;  %v5914_v43 = vpop.f32.mrb[161].mxu1 }
 0x43f   : > { %v9468_v37 = vadd.f32 %v12145_v0, %v5914_v43  ;;  %v9483_v0 = vadd.f32 %v12165_v4, %v12084_v12  ;;  %v9498_v4 = vadd.f32 %v12169_v45, %v12084_v12  ;;  %v9513_v45 = vadd.f32 %v12189_v18, %v12084_v12 }
 0x440   : > { %v9464_v9 = vadd.f32 %v9463_v3, %v12084_v12 }
 0x441   : > { %v9469_v31 = vadd.f32 %v9468_v37, %v12084_v12  ;;  %v8385_v49 = vpop.f32.mrb[162].mxu1 }
 0x442   : > { %6191 = vst [vmem:[%s12094_s15 + $0x88] sm:$0xff] %v9464_v9  ;;  %v9474_v60 = vadd.f32 %v9473_v53, %v8385_v49  ;;  %v5924_v62 = vpop.f32.mrb[163].mxu1 }
 0x443   : > { %6190 = vst [vmem:[%s12094_s15 + $0x80] sm:$0xff] %v9469_v31  ;;  %v9479_v33 = vadd.f32 %v9478_v63, %v5924_v62 }
 0x444   : > { %6193 = vst [vmem:[%s12094_s15 + $0x98] sm:$0xff] %v9474_v60 }
 0x445   : > { %6192 = vst [vmem:[%s12094_s15 + $0x90] sm:$0xff] %v9479_v33  ;;  %v8388_v16 = vpop.f32.mrb[164].mxu1 }
 0x446   : > { %v9484_v26 = vadd.f32 %v9483_v0, %v8388_v16  ;;  %v5934_v13 = vpop.f32.mrb[165].mxu1 }
 0x447   : > { %v9489_v2 = vadd.f32 %v9488_v30, %v5934_v13 }
 0x448   : > { %6195 = vst [vmem:[%s12094_s15 + $0xa8] sm:$0xff] %v9484_v26 }
 0x449   : > { %6194 = vst [vmem:[%s12094_s15 + $0xa0] sm:$0xff] %v9489_v2  ;;  %v8391_v11 = vpop.f32.mrb[166].mxu1 }
 0x44a   : > { %v9494_v15 = vadd.f32 %v9493_v41, %v8391_v11  ;;  %v5944_v51 = vpop.f32.mrb[167].mxu1 }
 0x44b   : > { %v9499_v38 = vadd.f32 %v9498_v4, %v5944_v51 }
 0x44c   : > { %6197 = vst [vmem:[%s12094_s15 + $0xb8] sm:$0xff] %v9494_v15 }
 0x44d   : > { %6196 = vst [vmem:[%s12094_s15 + $0xb0] sm:$0xff] %v9499_v38  ;;  %v8394_v19 = vpop.f32.mrb[168].mxu1 }
 0x44e   : > { %v9504_v61 = vadd.f32 %v9503_v35, %v8394_v19  ;;  %v5954_v46 = vpop.f32.mrb[169].mxu1 }
 0x44f   : > { %v9509_v54 = vadd.f32 %v9508_v58, %v5954_v46 }
 0x450   : > { %6199 = vst [vmem:[%s12094_s15 + $0xc8] sm:$0xff] %v9504_v61 }
 0x451   : > { %6198 = vst [vmem:[%s12094_s15 + $0xc0] sm:$0xff] %v9509_v54  ;;  %v8397_v24 = vpop.f32.mrb[170].mxu1 }
 0x452   : > { %v9514_v10 = vadd.f32 %v9513_v45, %v8397_v24  ;;  %v5964_v27 = vpop.f32.mrb[171].mxu1 }
 0x453   : > { %v9519_v21 = vadd.f32 %v9518_v6, %v5964_v27 }
 0x454   : > { %6201 = vst [vmem:[%s12094_s15 + $0xd8] sm:$0xff] %v9514_v10 }
 0x455   : > { %6200 = vst [vmem:[%s12094_s15 + $0xd0] sm:$0xff] %v9519_v21  ;;  %v8400_v55 = vpop.f32.mrb[172].mxu1 }
 0x456   : > { %v9524_v18 = vadd.f32 %v9523_v34, %v8400_v55  ;;  %v5974_v57 = vpop.f32.mrb[173].mxu1 }
 0x457   : > { %v9529_v5 = vadd.f32 %v9528_v17, %v5974_v57 }
 0x458   : > { %6203 = vst [vmem:[%s12094_s15 + $0xe8] sm:$0xff] %v9524_v18 }
 0x459   : > { %6202 = vst [vmem:[%s12094_s15 + $0xe0] sm:$0xff] %v9529_v5  ;;  %v8403_v48 = vpop.f32.mrb[174].mxu1 }
 0x45a   : > { %v9534_v1 = vadd.f32 %v9533_v42, %v8403_v48  ;;  %v5984_v25 = vpop.f32.mrb[175].mxu1 }
 0x45b   : > { %v9539_v20 = vadd.f32 %v9538_v14, %v5984_v25 }
 0x45c   : > { %6205 = vst [vmem:[%s12094_s15 + $0xf8] sm:$0xff] %v9534_v1 }
 0x45d   : > { %6204 = vst [vmem:[%s12094_s15 + $0xf0] sm:$0xff] %v9539_v20 }
 0x45e   : > { %9900 = shalt.err (!%p9897_p4)
}
 0x45f   : > { %s9901_s14 = scalar_lea.hbm %s12250_s23, 4096  ;;  %s9905_s17 = scalar_lea.hbm %s12305_s7, 8192 }
 0x460   : > { %p9902_p9 = scmp.ne.s32.totalorder %s12250_s23, %s9901_s14  ;;  %p9906_p8 = scmp.lt.u32.totalorder %s12250_s23, %s12305_s7 }
 0x461   : > { %p9907_p13 = scmp.lt.u32.totalorder %s9905_s17, %s9901_s14  ;;  %p9909_p10 = scmp.lt.u32.totalorder %s9901_s14, %s12250_s23 }
 0x462   : > { %p9903_p0 = pnand %p9902_p9, %p10167_p5 }
 0x463   : > { %p9908_p6 = por %p9907_p13, %p9906_p8 }
 0x464   : > { %p9904_p11 = pneg %p9903_p0 }
 0x465   : > { %p9910_p3 = por %p9909_p10, %p9908_p6 }
 0x467   : > { %p9911_p7 = pnand %p9910_p3, %p9904_p11 }
 0x469   : > { %9914 = shalt.err (!%p9911_p7)
}
 0x46a   : > { %s9971_s30 = smov 128   ;;  %s9972_s9 = smov 8  }
 0x46b   : > { %9701 = dma.vmem_to_hbm [thread:$0]  (%p10167_p5), %s12252_s20, 4096, %s12250_s23, %s6027_s28, %s9971_s30, %s9971_s30, %s9972_s9  }
 0x46c PF: > { %s12443_s11 = sld [smem:[#allocation16_spill]]  ;;  %s6055_s8 = sand.u32 1, %s9949_s24  }
 0x46d   : > { %p12445_p1 = scmp.ge.s32.totalorder %s9961_s27, 2  ;;  %s6056_s12 = scalar_lea.sflag [#allocation5], %s6055_s8 }
 0x472   : > { %p12444_p12 = scmp.ne.s32.totalorder %s12443_s11, 0 }
 0x474   : > { %p9718_p2 = pnand %p12445_p1, %p12444_p12 }
 0x476   : > { %9944 = dma.done.wait (!%p9718_p2), %s6056_s12, 4096  }
 0x477   : > { %9946 = vsyncadd (!%p9718_p2), %s6056_s12, 4294963200  ;;  %p22_p4 = scmp.ge.s32.totalorder %s10153_s22, 4   ;;  %s12446_s24 = smov %s9953_s25 }
 0x478   : > { %s12447_s25 = smov %s9957_s26  ;;  %s12448_s26 = smov %s10163_s18 }
 0x479   : > { %s12449_s27 = smov %s10153_s22  ;;  %24 = sbr.rel (!%p22_p4) target bundleno = 7 (0x7), region = 118 }
 0x480   :  { %6061 = vsyncpa [#allocation4], 1 }
 0x481   :  { %6063 = vsyncpa [#allocation4 + $0x1], 1 }
 0x482   :  { %6064 = vsyncpa [#allocation7], 1 }
 0x483   :  { %6065 = vsyncpa [#allocation10], 1 }
 0x484   :  { %6066 = vsyncpa [#allocation5], 1 }
 0x485   :  { %6068 = vsyncpa [#allocation5 + $0x1], 1 }

</bundles_post_ra>
